<compile_context>
chip_gen: v7x
topology: tpu7x:2x2x1
jax: 0.10.0
libtpu: 0.0.40
codegen_flags: <defaults>
</compile_context>

<pallas_src>
import functools
import math

import numpy as np
import jax
import jax.numpy as jnp
from jax.experimental import pallas as pl
from jax.experimental.pallas import tpu as pltpu

BN_EPS = 1e-5
BN_SCALE = float(1.0 / math.sqrt(1.0 + BN_EPS))
T_STEPS = 4          # GRU sequence length (32 -> 16 -> 8 -> 4 after 3 pools)
HIDDEN = 64


# ----------------------------------------------------------------------------
# Host-side constant builders (masks / selection / permutation / upsampling)
# ----------------------------------------------------------------------------
def _upsample_matrix(l_in, l_out):
    """F.interpolate(mode='linear', align_corners=False) as (l_in, l_out)."""
    U = np.zeros((l_in, l_out), np.float32)
    scale = l_in / l_out
    for j in range(l_out):
        src = max((j + 0.5) * scale - 0.5, 0.0)
        i0 = min(int(np.floor(src)), l_in - 1)
        lam = src - i0
        i1 = min(i0 + 1, l_in - 1)
        U[i0, j] += 1.0 - lam
        U[i1, j] += lam
    return U


def _conv_mask(k_taps, L, b):
    """(K, 1, b*L) validity mask: 1 where tap k's source column stays inside
    its own batch block for 'same' padding (batch folded into lanes)."""
    p = k_taps // 2
    m = np.zeros((k_taps, 1, b * L), np.float32)
    for k in range(k_taps):
        s = k - p
        for j in range(L):
            if 0 <= j + s < L:
                for i in range(b):
                    m[k, 0, i * L + j] = 1.0
    return m


def _pool_select(bL):
    """(bL-1, bL//2) even-column compaction matrix (after pairwise max)."""
    sel = np.zeros((bL - 1, bL // 2), np.float32)
    for j in range(bL // 2):
        sel[2 * j, j] = 1.0
    return sel


def _perm_batch_to_time(b, t_steps):
    """(b*T, T*b) permutation: batch-major lane order -> time-major order."""
    P = np.zeros((b * t_steps, t_steps * b), np.float32)
    for i in range(b):
        for t in range(t_steps):
            P[i * t_steps + t, t * b + i] = 1.0
    return P


def _placement(b, t_steps):
    """(T, b, b*T): E[t] scatters an (H, b) timestep into batch-major columns."""
    E = np.zeros((t_steps, b, b * t_steps), np.float32)
    for t in range(t_steps):
        for i in range(b):
            E[t, i, i * t_steps + t] = 1.0
    return E


@functools.lru_cache(maxsize=None)
def _constants(b):
    c = {
        "m1": _conv_mask(13, 32, b), "s1": _pool_select(b * 32),
        "m2": _conv_mask(7, 16, b),  "s2": _pool_select(b * 16),
        "m3": _conv_mask(5, 8, b),   "s3": _pool_select(b * 8),
        "P":  _perm_batch_to_time(b, T_STEPS),
        "E":  _placement(b, T_STEPS),
        "U3": np.kron(np.eye(b, dtype=np.float32), _upsample_matrix(4, 8)),
        "U2": np.kron(np.eye(b, dtype=np.float32), _upsample_matrix(8, 16)),
        "U1": np.kron(np.eye(b, dtype=np.float32), _upsample_matrix(16, 32)),
        "mb3": _conv_mask(3, 8, b),
        "mb2": _conv_mask(3, 16, b),
        "mb1": _conv_mask(3, 32, b),
    }
    return {k: jnp.asarray(v) for k, v in c.items()}


# ----------------------------------------------------------------------------
# In-kernel building blocks (all operate on batch-folded (C, b*L) slabs)
# ----------------------------------------------------------------------------
def _conv1d_same(x, w_ref, m_ref, pad_ref, bL):
    """'same' Conv1d with batch folded into lanes.

    x: (Cin, bL) value.  w_ref: (K, Cout, Cin).  m_ref: (K, 1, bL) tap masks.
    pad_ref: shared VMEM scratch (>= Cin rows, >= bL + K - 1 cols).
    Returns (Cout, bL), accumulated in vregs (no scratch read-modify-write).
    """
    k_taps, cout, cin = w_ref.shape
    p = k_taps // 2
    pad_ref[...] = jnp.zeros(pad_ref.shape, pad_ref.dtype)      # zero padding
    pad_ref[0:cin, p:p + bL] = x
    acc = None
    for k in range(k_taps):
        xk = pad_ref[0:cin, k:k + bL]
        if k != p:                          # centre tap never crosses a block
            xk = xk * m_ref[k]
        part = jnp.dot(w_ref[k], xk, preferred_element_type=jnp.float32)
        acc = part if acc is None else acc + part
    return acc


def _maxpool2(y, sel_ref):
    """MaxPool1d(kernel=2, stride=2) on a (C, bL) slab (blocks have even len)."""
    m = jnp.maximum(y[:, :-1], y[:, 1:])                        # pairwise max (VPU)
    # even-column compaction via a tiny host-precomputed selection matmul
    # (avoids lane-strided slices for Mosaic portability).
    return jnp.dot(m, sel_ref[...], preferred_element_type=jnp.float32)


def _blend(xs, u_ref, skip, w_ref, m_ref, pad_ref, bL):
    """upsample(linear) + skip-add + BatchNorm(eval) + ReLU + Conv1d(k=3)."""
    up = jnp.dot(xs, u_ref[...], preferred_element_type=jnp.float32)
    y = jnp.maximum((up + skip) * BN_SCALE, 0.0)
    return _conv1d_same(y, w_ref, m_ref, pad_ref, bL)


# ----------------------------------------------------------------------------
# The fused kernel
# ----------------------------------------------------------------------------
def _make_kernel(b):
    H, T = HIDDEN, T_STEPS

    def kernel(x_ref,
               w1_ref, m1_ref, s1_ref,
               w2_ref, m2_ref, s2_ref,
               w3_ref, m3_ref, s3_ref,
               p_ref, e_ref, wih_ref, whh_ref, bih_ref, bhh_ref,
               u3_ref, wb3_ref, mb3_ref,
               u2_ref, wb2_ref, mb2_ref,
               u1_ref, wb1_ref, mb1_ref,
               hw1_ref, hb1_ref, hw2_ref, hb2_ref,
               dense_ref, reg_ref, pad_ref):
        x = x_ref[...]                                          # (4, b*32)

        # -------- encoder: (conv -> ReLU -> maxpool) x 3 ----------------------
        y1 = jnp.maximum(_conv1d_same(x, w1_ref, m1_ref, pad_ref, b * 32), 0.0)
        skip2 = _maxpool2(y1, s1_ref)                           # (64, b*16)
        y2 = jnp.maximum(_conv1d_same(skip2, w2_ref, m2_ref, pad_ref, b * 16), 0.0)
        skip3 = _maxpool2(y2, s2_ref)                           # (64, b*8)
        y3 = jnp.maximum(_conv1d_same(skip3, w3_ref, m3_ref, pad_ref, b * 8), 0.0)
        feat = _maxpool2(y3, s3_ref)                            # (64, b*4) == skip4^T

        # -------- GRU (T=4, hidden 64, batch_first), gate order (r, z, n) -----
        # batch-major lanes -> time-major lanes so each step is a contiguous slice
        feat_tm = jnp.dot(feat, p_ref[...], preferred_element_type=jnp.float32)   # (64, T*b)
        # input projection for ALL timesteps in one matmul; gates on sublanes
        gi_all = jnp.dot(wih_ref[...], feat_tm,
                         preferred_element_type=jnp.float32) + bih_ref[...]       # (192, T*b)
        whh = whh_ref[...]
        bhh = bhh_ref[...]
        h = jnp.zeros((H, b), jnp.float32)
        up4 = jnp.zeros((H, b * T), jnp.float32)                # batch-major columns
        for t in range(T):                                      # static unroll (T=4)
            gi = gi_all[:, t * b:(t + 1) * b]                   # (192, b)
            gh = jnp.dot(whh, h, preferred_element_type=jnp.float32) + bhh
            r = jax.nn.sigmoid(gi[0:H] + gh[0:H])
            z = jax.nn.sigmoid(gi[H:2 * H] + gh[H:2 * H])
            n = jnp.tanh(gi[2 * H:3 * H] + r * gh[2 * H:3 * H])
            h = (1.0 - z) * n + z * h
            up4 = up4 + jnp.dot(h, e_ref[t], preferred_element_type=jnp.float32)
        # TODO(synk): gru_drop / dropout / drop (p=0.5 / 0.2) are identity (inference).

        # -------- decoder: upsample + skip + BN(eval) + ReLU + conv -----------
        up3 = _blend(up4, u3_ref, skip3, wb3_ref, mb3_ref, pad_ref, b * 8)    # (64, b*8)
        up2 = _blend(up3, u2_ref, skip2, wb2_ref, mb2_ref, pad_ref, b * 16)   # (4,  b*16)
        up1 = _blend(up2, u1_ref, x,     wb1_ref, mb1_ref, pad_ref, b * 32)   # (1,  b*32)
        dense_ref[...] = jax.nn.sigmoid(up1)

        # -------- regression head on pre-GRU features (skip4) -----------------
        acc = None
        for t in range(T):
            part = jnp.dot(hw1_ref[t], feat_tm[:, t * b:(t + 1) * b],
                           preferred_element_type=jnp.float32)                # (64, b)
            acc = part if acc is None else acc + part
        hid = jnp.maximum(acc + hb1_ref[...], 0.0)
        reg_ref[...] = jnp.dot(hw2_ref[...], hid,
                               preferred_element_type=jnp.float32) + hb2_ref[...]

    return kernel


# ----------------------------------------------------------------------------
# Parameters (matching the PyTorch module's initialization)
# ----------------------------------------------------------------------------
def init_params(key):
    ks = jax.random.split(key, 12)

    def xavier(k, shape):
        if len(shape) == 3:                                    # conv (Cout, Cin, K)
            fan_in, fan_out = shape[1] * shape[2], shape[0] * shape[2]
        else:                                                  # linear (out, in)
            fan_in, fan_out = shape[1], shape[0]
        lim = float(np.sqrt(6.0 / (fan_in + fan_out)))
        return jax.random.uniform(k, shape, jnp.float32, -lim, lim)

    p = {}
    # conv weights reordered to (K, Cout, Cin) for the tap-major kernel loops
    p["w_conv1"] = jnp.transpose(xavier(ks[0], (64, 4, 13)), (2, 0, 1))
    p["w_conv2"] = jnp.transpose(xavier(ks[1], (64, 64, 7)), (2, 0, 1))
    p["w_conv3"] = jnp.transpose(xavier(ks[2], (64, 64, 5)), (2, 0, 1))
    p["w_blend3"] = jnp.transpose(xavier(ks[3], (64, 64, 3)), (2, 0, 1))
    p["w_blend2"] = jnp.transpose(xavier(ks[4], (4, 64, 3)), (2, 0, 1))
    p["w_blend1"] = jnp.transpose(xavier(ks[5], (1, 4, 3)), (2, 0, 1))
    # regression head: linear1 split per GRU timestep -> (T, 64, 64)
    w1 = xavier(ks[6], (64, 256))
    p["head_w1"] = jnp.transpose(w1.reshape(64, T_STEPS, 64), (1, 0, 2))
    p["head_b1"] = jnp.zeros((64, 1), jnp.float32)
    p["head_w2"] = xavier(ks[7], (1, 64))
    p["head_b2"] = jnp.zeros((1, 1), jnp.float32)
    # PyTorch default GRU init: U(-1/sqrt(H), 1/sqrt(H)), gate order (r, z, n)
    s = 1.0 / math.sqrt(float(HIDDEN))
    p["gru_wih"] = jax.random.uniform(ks[8], (3 * HIDDEN, HIDDEN), jnp.float32, -s, s)
    p["gru_whh"] = jax.random.uniform(ks[9], (3 * HIDDEN, HIDDEN), jnp.float32, -s, s)
    p["gru_bih"] = jax.random.uniform(ks[10], (3 * HIDDEN, 1), jnp.float32, -s, s)
    p["gru_bhh"] = jax.random.uniform(ks[11], (3 * HIDDEN, 1), jnp.float32, -s, s)
    return p


# ----------------------------------------------------------------------------
# Forward
# ----------------------------------------------------------------------------
@jax.jit
def fcngru_forward(x, p):
    """x: (b, 4, 32) float32 -> (out_regression (b, 1), out_dense (b, 32))."""
    b, cin, L = x.shape
    assert cin == 4 and L == 32, "FCNGRU expects (b, 4, 32) inputs"
    c = _constants(b)
    x2d = jnp.transpose(x, (1, 0, 2)).reshape(4, b * L)         # (4, b*32) batch-major lanes

    pad_w = ((b * 32 + 12 + 127) // 128) * 128                  # widest padded conv slab
    dense, reg = pl.pallas_call(
        _make_kernel(b),
        out_shape=(jax.ShapeDtypeStruct((1, b * L), jnp.float32),   # sigmoid(blend1)
                   jax.ShapeDtypeStruct((1, b), jnp.float32)),      # regression head
        scratch_shapes=[pltpu.VMEM((64, pad_w), jnp.float32)],      # shared zero-padded slab
    )(x2d,
      p["w_conv1"], c["m1"], c["s1"],
      p["w_conv2"], c["m2"], c["s2"],
      p["w_conv3"], c["m3"], c["s3"],
      c["P"], c["E"], p["gru_wih"], p["gru_whh"], p["gru_bih"], p["gru_bhh"],
      c["U3"], p["w_blend3"], c["mb3"],
      c["U2"], p["w_blend2"], c["mb2"],
      c["U1"], p["w_blend1"], c["mb1"],
      p["head_w1"], p["head_b1"], p["head_w2"], p["head_b2"])

    return reg.reshape(b, 1), dense.reshape(b, L)


if __name__ == "__main__":
    key = jax.random.PRNGKey(0)
    pkey, xkey = jax.random.split(key)
    params = init_params(pkey)
    x = jax.random.normal(xkey, (2, 4, 32), jnp.float32)        # (batch, 4 channels, length 32)
    out_reg, out_dense = fcngru_forward(x, params)
    jax.block_until_ready((out_reg, out_dense))
    assert out_reg.shape == (2, 1) and out_dense.shape == (2, 32)
    assert bool(jnp.all(jnp.isfinite(out_reg))) and bool(jnp.all(jnp.isfinite(out_dense)))
    print("KERNEL_OK")
</pallas_src>

<mosaic_0001>
module attributes {stable_mosaic.version = 11 : i64} {
  func.func @kernel(%arg0: memref<4x64xf32, #tpu.memory_space<vmem>>, %arg1: memref<13x64x4xf32, #tpu.memory_space<vmem>>, %arg2: memref<13x1x64xf32, #tpu.memory_space<vmem>>, %arg3: memref<63x32xf32, #tpu.memory_space<vmem>>, %arg4: memref<7x64x64xf32, #tpu.memory_space<vmem>>, %arg5: memref<7x1x32xf32, #tpu.memory_space<vmem>>, %arg6: memref<31x16xf32, #tpu.memory_space<vmem>>, %arg7: memref<5x64x64xf32, #tpu.memory_space<vmem>>, %arg8: memref<5x1x16xf32, #tpu.memory_space<vmem>>, %arg9: memref<15x8xf32, #tpu.memory_space<vmem>>, %arg10: memref<8x8xf32, #tpu.memory_space<vmem>>, %arg11: memref<4x2x8xf32, #tpu.memory_space<vmem>>, %arg12: memref<192x64xf32, #tpu.memory_space<vmem>>, %arg13: memref<192x64xf32, #tpu.memory_space<vmem>>, %arg14: memref<192x1xf32, #tpu.memory_space<vmem>>, %arg15: memref<192x1xf32, #tpu.memory_space<vmem>>, %arg16: memref<8x16xf32, #tpu.memory_space<vmem>>, %arg17: memref<3x64x64xf32, #tpu.memory_space<vmem>>, %arg18: memref<3x1x16xf32, #tpu.memory_space<vmem>>, %arg19: memref<16x32xf32, #tpu.memory_space<vmem>>, %arg20: memref<3x4x64xf32, #tpu.memory_space<vmem>>, %arg21: memref<3x1x32xf32, #tpu.memory_space<vmem>>, %arg22: memref<32x64xf32, #tpu.memory_space<vmem>>, %arg23: memref<3x1x4xf32, #tpu.memory_space<vmem>>, %arg24: memref<3x1x64xf32, #tpu.memory_space<vmem>>, %arg25: memref<4x64x64xf32, #tpu.memory_space<vmem>>, %arg26: memref<64x1xf32, #tpu.memory_space<vmem>>, %arg27: memref<1x64xf32, #tpu.memory_space<vmem>>, %arg28: memref<1x1xf32, #tpu.memory_space<vmem>>, %arg29: memref<1x64xf32, #tpu.memory_space<vmem>>, %arg30: memref<1x2xf32, #tpu.memory_space<vmem>>, %arg31: memref<64x128xf32, #tpu.memory_space<vmem>>) attributes {dimension_semantics = [], scalar_prefetch = 0 : i64, scratch_operands = 1 : i64, tpu.core_type = #tpu.core_type<tc>} {
    %c0 = arith.constant 0 : index
    %c0_0 = arith.constant 0 : index
    %0 = vector.load %arg0[%c0, %c0_0] : memref<4x64xf32, #tpu.memory_space<vmem>>, vector<4x64xf32>
    %cst = arith.constant 0.000000e+00 : f32
    %1 = vector.broadcast %cst : f32 to vector<64x128xf32>
    %c0_1 = arith.constant 0 : index
    %c0_2 = arith.constant 0 : index
    %2 = vector.load %arg31[%c0_1, %c0_2] : memref<64x128xf32, #tpu.memory_space<vmem>>, vector<64x128xf32>
    tpu.vector_store %arg31[%c0_1, %c0_2], %1 {strides = array<i32>} : memref<64x128xf32, #tpu.memory_space<vmem>>, vector<64x128xf32>,
    %c0_3 = arith.constant 0 : index
    %c6 = arith.constant 6 : index
    %3 = vector.load %arg31[%c0_3, %c6] : memref<64x128xf32, #tpu.memory_space<vmem>>, vector<4x64xf32>
    tpu.vector_store %arg31[%c0_3, %c6], %0 {strides = array<i32>} : memref<64x128xf32, #tpu.memory_space<vmem>>, vector<4x64xf32>,
    %c0_4 = arith.constant 0 : index
    %c0_5 = arith.constant 0 : index
    %4 = vector.load %arg31[%c0_4, %c0_5] : memref<64x128xf32, #tpu.memory_space<vmem>>, vector<4x64xf32>
    %c0_6 = arith.constant 0 : index
    %c0_7 = arith.constant 0 : index
    %c0_8 = arith.constant 0 : index
    %5 = vector.load %arg2[%c0_6, %c0_7, %c0_8] : memref<13x1x64xf32, #tpu.memory_space<vmem>>, vector<1x1x64xf32>
    %6 = vector.shape_cast %5 : vector<1x1x64xf32> to vector<1x64xf32>
    %7 = vector.broadcast %6 : vector<1x64xf32> to vector<4x64xf32>
    %8 = arith.mulf %4, %7 : vector<4x64xf32>
    %c0_9 = arith.constant 0 : index
    %c0_10 = arith.constant 0 : index
    %c0_11 = arith.constant 0 : index
    %9 = vector.load %arg1[%c0_9, %c0_10, %c0_11] : memref<13x64x4xf32, #tpu.memory_space<vmem>>, vector<1x64x4xf32>
    %10 = vector.shape_cast %9 : vector<1x64x4xf32> to vector<64x4xf32>
    %cst_12 = arith.constant dense<0.000000e+00> : vector<64x64xf32>
    %11 = tpu.matmul %10, %8, %cst_12 {dimension_numbers = #tpu.dot_dimension_numbers<[1], [0], [0], [1], [0, 0, 1, 1], [], []>} : vector<64x4xf32>, vector<4x64xf32>, vector<64x64xf32> -> vector<64x64xf32>
    %c0_13 = arith.constant 0 : index
    %c1 = arith.constant 1 : index
    %12 = vector.load %arg31[%c0_13, %c1] : memref<64x128xf32, #tpu.memory_space<vmem>>, vector<4x64xf32>
    %c1_14 = arith.constant 1 : index
    %c0_15 = arith.constant 0 : index
    %c0_16 = arith.constant 0 : index
    %13 = vector.load %arg2[%c1_14, %c0_15, %c0_16] : memref<13x1x64xf32, #tpu.memory_space<vmem>>, vector<1x1x64xf32>
    %14 = vector.shape_cast %13 : vector<1x1x64xf32> to vector<1x64xf32>
    %15 = vector.broadcast %14 : vector<1x64xf32> to vector<4x64xf32>
    %16 = arith.mulf %12, %15 : vector<4x64xf32>
    %c1_17 = arith.constant 1 : index
    %c0_18 = arith.constant 0 : index
    %c0_19 = arith.constant 0 : index
    %17 = vector.load %arg1[%c1_17, %c0_18, %c0_19] : memref<13x64x4xf32, #tpu.memory_space<vmem>>, vector<1x64x4xf32>
    %18 = vector.shape_cast %17 : vector<1x64x4xf32> to vector<64x4xf32>
    %cst_20 = arith.constant dense<0.000000e+00> : vector<64x64xf32>
    %19 = tpu.matmul %18, %16, %cst_20 {dimension_numbers = #tpu.dot_dimension_numbers<[1], [0], [0], [1], [0, 0, 1, 1], [], []>} : vector<64x4xf32>, vector<4x64xf32>, vector<64x64xf32> -> vector<64x64xf32>
    %20 = arith.addf %11, %19 : vector<64x64xf32>
    %c0_21 = arith.constant 0 : index
    %c2 = arith.constant 2 : index
    %21 = vector.load %arg31[%c0_21, %c2] : memref<64x128xf32, #tpu.memory_space<vmem>>, vector<4x64xf32>
    %c2_22 = arith.constant 2 : index
    %c0_23 = arith.constant 0 : index
    %c0_24 = arith.constant 0 : index
    %22 = vector.load %arg2[%c2_22, %c0_23, %c0_24] : memref<13x1x64xf32, #tpu.memory_space<vmem>>, vector<1x1x64xf32>
    %23 = vector.shape_cast %22 : vector<1x1x64xf32> to vector<1x64xf32>
    %24 = vector.broadcast %23 : vector<1x64xf32> to vector<4x64xf32>
    %25 = arith.mulf %21, %24 : vector<4x64xf32>
    %c2_25 = arith.constant 2 : index
    %c0_26 = arith.constant 0 : index
    %c0_27 = arith.constant 0 : index
    %26 = vector.load %arg1[%c2_25, %c0_26, %c0_27] : memref<13x64x4xf32, #tpu.memory_space<vmem>>, vector<1x64x4xf32>
    %27 = vector.shape_cast %26 : vector<1x64x4xf32> to vector<64x4xf32>
    %cst_28 = arith.constant dense<0.000000e+00> : vector<64x64xf32>
    %28 = tpu.matmul %27, %25, %cst_28 {dimension_numbers = #tpu.dot_dimension_numbers<[1], [0], [0], [1], [0, 0, 1, 1], [], []>} : vector<64x4xf32>, vector<4x64xf32>, vector<64x64xf32> -> vector<64x64xf32>
    %29 = arith.addf %20, %28 : vector<64x64xf32>
    %c0_29 = arith.constant 0 : index
    %c3 = arith.constant 3 : index
    %30 = vector.load %arg31[%c0_29, %c3] : memref<64x128xf32, #tpu.memory_space<vmem>>, vector<4x64xf32>
    %c3_30 = arith.constant 3 : index
    %c0_31 = arith.constant 0 : index
    %c0_32 = arith.constant 0 : index
    %31 = vector.load %arg2[%c3_30, %c0_31, %c0_32] : memref<13x1x64xf32, #tpu.memory_space<vmem>>, vector<1x1x64xf32>
    %32 = vector.shape_cast %31 : vector<1x1x64xf32> to vector<1x64xf32>
    %33 = vector.broadcast %32 : vector<1x64xf32> to vector<4x64xf32>
    %34 = arith.mulf %30, %33 : vector<4x64xf32>
    %c3_33 = arith.constant 3 : index
    %c0_34 = arith.constant 0 : index
    %c0_35 = arith.constant 0 : index
    %35 = vector.load %arg1[%c3_33, %c0_34, %c0_35] : memref<13x64x4xf32, #tpu.memory_space<vmem>>, vector<1x64x4xf32>
    %36 = vector.shape_cast %35 : vector<1x64x4xf32> to vector<64x4xf32>
    %cst_36 = arith.constant dense<0.000000e+00> : vector<64x64xf32>
    %37 = tpu.matmul %36, %34, %cst_36 {dimension_numbers = #tpu.dot_dimension_numbers<[1], [0], [0], [1], [0, 0, 1, 1], [], []>} : vector<64x4xf32>, vector<4x64xf32>, vector<64x64xf32> -> vector<64x64xf32>
    %38 = arith.addf %29, %37 : vector<64x64xf32>
    %c0_37 = arith.constant 0 : index
    %c4 = arith.constant 4 : index
    %39 = vector.load %arg31[%c0_37, %c4] : memref<64x128xf32, #tpu.memory_space<vmem>>, vector<4x64xf32>
    %c4_38 = arith.constant 4 : index
    %c0_39 = arith.constant 0 : index
    %c0_40 = arith.constant 0 : index
    %40 = vector.load %arg2[%c4_38, %c0_39, %c0_40] : memref<13x1x64xf32, #tpu.memory_space<vmem>>, vector<1x1x64xf32>
    %41 = vector.shape_cast %40 : vector<1x1x64xf32> to vector<1x64xf32>
    %42 = vector.broadcast %41 : vector<1x64xf32> to vector<4x64xf32>
    %43 = arith.mulf %39, %42 : vector<4x64xf32>
    %c4_41 = arith.constant 4 : index
    %c0_42 = arith.constant 0 : index
    %c0_43 = arith.constant 0 : index
    %44 = vector.load %arg1[%c4_41, %c0_42, %c0_43] : memref<13x64x4xf32, #tpu.memory_space<vmem>>, vector<1x64x4xf32>
    %45 = vector.shape_cast %44 : vector<1x64x4xf32> to vector<64x4xf32>
    %cst_44 = arith.constant dense<0.000000e+00> : vector<64x64xf32>
    %46 = tpu.matmul %45, %43, %cst_44 {dimension_numbers = #tpu.dot_dimension_numbers<[1], [0], [0], [1], [0, 0, 1, 1], [], []>} : vector<64x4xf32>, vector<4x64xf32>, vector<64x64xf32> -> vector<64x64xf32>
    %47 = arith.addf %38, %46 : vector<64x64xf32>
    %c0_45 = arith.constant 0 : index
    %c5 = arith.constant 5 : index
    %48 = vector.load %arg31[%c0_45, %c5] : memref<64x128xf32, #tpu.memory_space<vmem>>, vector<4x64xf32>
    %c5_46 = arith.constant 5 : index
    %c0_47 = arith.constant 0 : index
    %c0_48 = arith.constant 0 : index
    %49 = vector.load %arg2[%c5_46, %c0_47, %c0_48] : memref<13x1x64xf32, #tpu.memory_space<vmem>>, vector<1x1x64xf32>
    %50 = vector.shape_cast %49 : vector<1x1x64xf32> to vector<1x64xf32>
    %51 = vector.broadcast %50 : vector<1x64xf32> to vector<4x64xf32>
    %52 = arith.mulf %48, %51 : vector<4x64xf32>
    %c5_49 = arith.constant 5 : index
    %c0_50 = arith.constant 0 : index
    %c0_51 = arith.constant 0 : index
    %53 = vector.load %arg1[%c5_49, %c0_50, %c0_51] : memref<13x64x4xf32, #tpu.memory_space<vmem>>, vector<1x64x4xf32>
    %54 = vector.shape_cast %53 : vector<1x64x4xf32> to vector<64x4xf32>
    %cst_52 = arith.constant dense<0.000000e+00> : vector<64x64xf32>
    %55 = tpu.matmul %54, %52, %cst_52 {dimension_numbers = #tpu.dot_dimension_numbers<[1], [0], [0], [1], [0, 0, 1, 1], [], []>} : vector<64x4xf32>, vector<4x64xf32>, vector<64x64xf32> -> vector<64x64xf32>
    %56 = arith.addf %47, %55 : vector<64x64xf32>
    %c0_53 = arith.constant 0 : index
    %c6_54 = arith.constant 6 : index
    %57 = vector.load %arg31[%c0_53, %c6_54] : memref<64x128xf32, #tpu.memory_space<vmem>>, vector<4x64xf32>
    %c6_55 = arith.constant 6 : index
    %c0_56 = arith.constant 0 : index
    %c0_57 = arith.constant 0 : index
    %58 = vector.load %arg1[%c6_55, %c0_56, %c0_57] : memref<13x64x4xf32, #tpu.memory_space<vmem>>, vector<1x64x4xf32>
    %59 = vector.shape_cast %58 : vector<1x64x4xf32> to vector<64x4xf32>
    %cst_58 = arith.constant dense<0.000000e+00> : vector<64x64xf32>
    %60 = tpu.matmul %59, %57, %cst_58 {dimension_numbers = #tpu.dot_dimension_numbers<[1], [0], [0], [1], [0, 0, 1, 1], [], []>} : vector<64x4xf32>, vector<4x64xf32>, vector<64x64xf32> -> vector<64x64xf32>
    %61 = arith.addf %56, %60 : vector<64x64xf32>
    %c0_59 = arith.constant 0 : index
    %c7 = arith.constant 7 : index
    %62 = vector.load %arg31[%c0_59, %c7] : memref<64x128xf32, #tpu.memory_space<vmem>>, vector<4x64xf32>
    %c7_60 = arith.constant 7 : index
    %c0_61 = arith.constant 0 : index
    %c0_62 = arith.constant 0 : index
    %63 = vector.load %arg2[%c7_60, %c0_61, %c0_62] : memref<13x1x64xf32, #tpu.memory_space<vmem>>, vector<1x1x64xf32>
    %64 = vector.shape_cast %63 : vector<1x1x64xf32> to vector<1x64xf32>
    %65 = vector.broadcast %64 : vector<1x64xf32> to vector<4x64xf32>
    %66 = arith.mulf %62, %65 : vector<4x64xf32>
    %c7_63 = arith.constant 7 : index
    %c0_64 = arith.constant 0 : index
    %c0_65 = arith.constant 0 : index
    %67 = vector.load %arg1[%c7_63, %c0_64, %c0_65] : memref<13x64x4xf32, #tpu.memory_space<vmem>>, vector<1x64x4xf32>
    %68 = vector.shape_cast %67 : vector<1x64x4xf32> to vector<64x4xf32>
    %cst_66 = arith.constant dense<0.000000e+00> : vector<64x64xf32>
    %69 = tpu.matmul %68, %66, %cst_66 {dimension_numbers = #tpu.dot_dimension_numbers<[1], [0], [0], [1], [0, 0, 1, 1], [], []>} : vector<64x4xf32>, vector<4x64xf32>, vector<64x64xf32> -> vector<64x64xf32>
    %70 = arith.addf %61, %69 : vector<64x64xf32>
    %c0_67 = arith.constant 0 : index
    %c8 = arith.constant 8 : index
    %71 = vector.load %arg31[%c0_67, %c8] : memref<64x128xf32, #tpu.memory_space<vmem>>, vector<4x64xf32>
    %c8_68 = arith.constant 8 : index
    %c0_69 = arith.constant 0 : index
    %c0_70 = arith.constant 0 : index
    %72 = vector.load %arg2[%c8_68, %c0_69, %c0_70] : memref<13x1x64xf32, #tpu.memory_space<vmem>>, vector<1x1x64xf32>
    %73 = vector.shape_cast %72 : vector<1x1x64xf32> to vector<1x64xf32>
    %74 = vector.broadcast %73 : vector<1x64xf32> to vector<4x64xf32>
    %75 = arith.mulf %71, %74 : vector<4x64xf32>
    %c8_71 = arith.constant 8 : index
    %c0_72 = arith.constant 0 : index
    %c0_73 = arith.constant 0 : index
    %76 = vector.load %arg1[%c8_71, %c0_72, %c0_73] : memref<13x64x4xf32, #tpu.memory_space<vmem>>, vector<1x64x4xf32>
    %77 = vector.shape_cast %76 : vector<1x64x4xf32> to vector<64x4xf32>
    %cst_74 = arith.constant dense<0.000000e+00> : vector<64x64xf32>
    %78 = tpu.matmul %77, %75, %cst_74 {dimension_numbers = #tpu.dot_dimension_numbers<[1], [0], [0], [1], [0, 0, 1, 1], [], []>} : vector<64x4xf32>, vector<4x64xf32>, vector<64x64xf32> -> vector<64x64xf32>
    %79 = arith.addf %70, %78 : vector<64x64xf32>
    %c0_75 = arith.constant 0 : index
    %c9 = arith.constant 9 : index
    %80 = vector.load %arg31[%c0_75, %c9] : memref<64x128xf32, #tpu.memory_space<vmem>>, vector<4x64xf32>
    %c9_76 = arith.constant 9 : index
    %c0_77 = arith.constant 0 : index
    %c0_78 = arith.constant 0 : index
    %81 = vector.load %arg2[%c9_76, %c0_77, %c0_78] : memref<13x1x64xf32, #tpu.memory_space<vmem>>, vector<1x1x64xf32>
    %82 = vector.shape_cast %81 : vector<1x1x64xf32> to vector<1x64xf32>
    %83 = vector.broadcast %82 : vector<1x64xf32> to vector<4x64xf32>
    %84 = arith.mulf %80, %83 : vector<4x64xf32>
    %c9_79 = arith.constant 9 : index
    %c0_80 = arith.constant 0 : index
    %c0_81 = arith.constant 0 : index
    %85 = vector.load %arg1[%c9_79, %c0_80, %c0_81] : memref<13x64x4xf32, #tpu.memory_space<vmem>>, vector<1x64x4xf32>
    %86 = vector.shape_cast %85 : vector<1x64x4xf32> to vector<64x4xf32>
    %cst_82 = arith.constant dense<0.000000e+00> : vector<64x64xf32>
    %87 = tpu.matmul %86, %84, %cst_82 {dimension_numbers = #tpu.dot_dimension_numbers<[1], [0], [0], [1], [0, 0, 1, 1], [], []>} : vector<64x4xf32>, vector<4x64xf32>, vector<64x64xf32> -> vector<64x64xf32>
    %88 = arith.addf %79, %87 : vector<64x64xf32>
    %c0_83 = arith.constant 0 : index
    %c10 = arith.constant 10 : index
    %89 = vector.load %arg31[%c0_83, %c10] : memref<64x128xf32, #tpu.memory_space<vmem>>, vector<4x64xf32>
    %c10_84 = arith.constant 10 : index
    %c0_85 = arith.constant 0 : index
    %c0_86 = arith.constant 0 : index
    %90 = vector.load %arg2[%c10_84, %c0_85, %c0_86] : memref<13x1x64xf32, #tpu.memory_space<vmem>>, vector<1x1x64xf32>
    %91 = vector.shape_cast %90 : vector<1x1x64xf32> to vector<1x64xf32>
    %92 = vector.broadcast %91 : vector<1x64xf32> to vector<4x64xf32>
    %93 = arith.mulf %89, %92 : vector<4x64xf32>
    %c10_87 = arith.constant 10 : index
    %c0_88 = arith.constant 0 : index
    %c0_89 = arith.constant 0 : index
    %94 = vector.load %arg1[%c10_87, %c0_88, %c0_89] : memref<13x64x4xf32, #tpu.memory_space<vmem>>, vector<1x64x4xf32>
    %95 = vector.shape_cast %94 : vector<1x64x4xf32> to vector<64x4xf32>
    %cst_90 = arith.constant dense<0.000000e+00> : vector<64x64xf32>
    %96 = tpu.matmul %95, %93, %cst_90 {dimension_numbers = #tpu.dot_dimension_numbers<[1], [0], [0], [1], [0, 0, 1, 1], [], []>} : vector<64x4xf32>, vector<4x64xf32>, vector<64x64xf32> -> vector<64x64xf32>
    %97 = arith.addf %88, %96 : vector<64x64xf32>
    %c0_91 = arith.constant 0 : index
    %c11 = arith.constant 11 : index
    %98 = vector.load %arg31[%c0_91, %c11] : memref<64x128xf32, #tpu.memory_space<vmem>>, vector<4x64xf32>
    %c11_92 = arith.constant 11 : index
    %c0_93 = arith.constant 0 : index
    %c0_94 = arith.constant 0 : index
    %99 = vector.load %arg2[%c11_92, %c0_93, %c0_94] : memref<13x1x64xf32, #tpu.memory_space<vmem>>, vector<1x1x64xf32>
    %100 = vector.shape_cast %99 : vector<1x1x64xf32> to vector<1x64xf32>
    %101 = vector.broadcast %100 : vector<1x64xf32> to vector<4x64xf32>
    %102 = arith.mulf %98, %101 : vector<4x64xf32>
    %c11_95 = arith.constant 11 : index
    %c0_96 = arith.constant 0 : index
    %c0_97 = arith.constant 0 : index
    %103 = vector.load %arg1[%c11_95, %c0_96, %c0_97] : memref<13x64x4xf32, #tpu.memory_space<vmem>>, vector<1x64x4xf32>
    %104 = vector.shape_cast %103 : vector<1x64x4xf32> to vector<64x4xf32>
    %cst_98 = arith.constant dense<0.000000e+00> : vector<64x64xf32>
    %105 = tpu.matmul %104, %102, %cst_98 {dimension_numbers = #tpu.dot_dimension_numbers<[1], [0], [0], [1], [0, 0, 1, 1], [], []>} : vector<64x4xf32>, vector<4x64xf32>, vector<64x64xf32> -> vector<64x64xf32>
    %106 = arith.addf %97, %105 : vector<64x64xf32>
    %c0_99 = arith.constant 0 : index
    %c12 = arith.constant 12 : index
    %107 = vector.load %arg31[%c0_99, %c12] : memref<64x128xf32, #tpu.memory_space<vmem>>, vector<4x64xf32>
    %c12_100 = arith.constant 12 : index
    %c0_101 = arith.constant 0 : index
    %c0_102 = arith.constant 0 : index
    %108 = vector.load %arg2[%c12_100, %c0_101, %c0_102] : memref<13x1x64xf32, #tpu.memory_space<vmem>>, vector<1x1x64xf32>
    %109 = vector.shape_cast %108 : vector<1x1x64xf32> to vector<1x64xf32>
    %110 = vector.broadcast %109 : vector<1x64xf32> to vector<4x64xf32>
    %111 = arith.mulf %107, %110 : vector<4x64xf32>
    %c12_103 = arith.constant 12 : index
    %c0_104 = arith.constant 0 : index
    %c0_105 = arith.constant 0 : index
    %112 = vector.load %arg1[%c12_103, %c0_104, %c0_105] : memref<13x64x4xf32, #tpu.memory_space<vmem>>, vector<1x64x4xf32>
    %113 = vector.shape_cast %112 : vector<1x64x4xf32> to vector<64x4xf32>
    %cst_106 = arith.constant dense<0.000000e+00> : vector<64x64xf32>
    %114 = tpu.matmul %113, %111, %cst_106 {dimension_numbers = #tpu.dot_dimension_numbers<[1], [0], [0], [1], [0, 0, 1, 1], [], []>} : vector<64x4xf32>, vector<4x64xf32>, vector<64x64xf32> -> vector<64x64xf32>
    %115 = arith.addf %106, %114 : vector<64x64xf32>
    %cst_107 = arith.constant 0.000000e+00 : f32
    %116 = vector.broadcast %cst_107 : f32 to vector<64x64xf32>
    %117 = arith.maximumf %115, %116 : vector<64x64xf32>
    %118 = vector.extract_strided_slice %117 {offsets = [0, 0], sizes = [64, 63], strides = [1, 1]} : vector<64x64xf32> to vector<64x63xf32>
    %119 = vector.extract_strided_slice %117 {offsets = [0, 1], sizes = [64, 63], strides = [1, 1]} : vector<64x64xf32> to vector<64x63xf32>
    %120 = arith.maximumf %118, %119 : vector<64x63xf32>
    %c0_108 = arith.constant 0 : index
    %c0_109 = arith.constant 0 : index
    %121 = vector.load %arg3[%c0_108, %c0_109] : memref<63x32xf32, #tpu.memory_space<vmem>>, vector<63x32xf32>
    %cst_110 = arith.constant dense<0.000000e+00> : vector<64x32xf32>
    %122 = tpu.matmul %120, %121, %cst_110 {dimension_numbers = #tpu.dot_dimension_numbers<[1], [0], [0], [1], [0, 0, 1, 1], [], []>} : vector<64x63xf32>, vector<63x32xf32>, vector<64x32xf32> -> vector<64x32xf32>
    %cst_111 = arith.constant 0.000000e+00 : f32
    %123 = vector.broadcast %cst_111 : f32 to vector<64x128xf32>
    %c0_112 = arith.constant 0 : index
    %c0_113 = arith.constant 0 : index
    %124 = vector.load %arg31[%c0_112, %c0_113] : memref<64x128xf32, #tpu.memory_space<vmem>>, vector<64x128xf32>
    tpu.vector_store %arg31[%c0_112, %c0_113], %123 {strides = array<i32>} : memref<64x128xf32, #tpu.memory_space<vmem>>, vector<64x128xf32>,
    %c0_114 = arith.constant 0 : index
    %c3_115 = arith.constant 3 : index
    %125 = vector.load %arg31[%c0_114, %c3_115] : memref<64x128xf32, #tpu.memory_space<vmem>>, vector<64x32xf32>
    tpu.vector_store %arg31[%c0_114, %c3_115], %122 {strides = array<i32>} : memref<64x128xf32, #tpu.memory_space<vmem>>, vector<64x32xf32>,
    %c0_116 = arith.constant 0 : index
    %c0_117 = arith.constant 0 : index
    %126 = vector.load %arg31[%c0_116, %c0_117] : memref<64x128xf32, #tpu.memory_space<vmem>>, vector<64x32xf32>
    %c0_118 = arith.constant 0 : index
    %c0_119 = arith.constant 0 : index
    %c0_120 = arith.constant 0 : index
    %127 = vector.load %arg5[%c0_118, %c0_119, %c0_120] : memref<7x1x32xf32, #tpu.memory_space<vmem>>, vector<1x1x32xf32>
    %128 = vector.shape_cast %127 : vector<1x1x32xf32> to vector<1x32xf32>
    %129 = vector.broadcast %128 : vector<1x32xf32> to vector<64x32xf32>
    %130 = arith.mulf %126, %129 : vector<64x32xf32>
    %c0_121 = arith.constant 0 : index
    %c0_122 = arith.constant 0 : index
    %c0_123 = arith.constant 0 : index
    %131 = vector.load %arg4[%c0_121, %c0_122, %c0_123] : memref<7x64x64xf32, #tpu.memory_space<vmem>>, vector<1x64x64xf32>
    %132 = vector.shape_cast %131 : vector<1x64x64xf32> to vector<64x64xf32>
    %cst_124 = arith.constant dense<0.000000e+00> : vector<64x32xf32>
    %133 = tpu.matmul %132, %130, %cst_124 {dimension_numbers = #tpu.dot_dimension_numbers<[1], [0], [0], [1], [0, 0, 1, 1], [], []>} : vector<64x64xf32>, vector<64x32xf32>, vector<64x32xf32> -> vector<64x32xf32>
    %c0_125 = arith.constant 0 : index
    %c1_126 = arith.constant 1 : index
    %134 = vector.load %arg31[%c0_125, %c1_126] : memref<64x128xf32, #tpu.memory_space<vmem>>, vector<64x32xf32>
    %c1_127 = arith.constant 1 : index
    %c0_128 = arith.constant 0 : index
    %c0_129 = arith.constant 0 : index
    %135 = vector.load %arg5[%c1_127, %c0_128, %c0_129] : memref<7x1x32xf32, #tpu.memory_space<vmem>>, vector<1x1x32xf32>
    %136 = vector.shape_cast %135 : vector<1x1x32xf32> to vector<1x32xf32>
    %137 = vector.broadcast %136 : vector<1x32xf32> to vector<64x32xf32>
    %138 = arith.mulf %134, %137 : vector<64x32xf32>
    %c1_130 = arith.constant 1 : index
    %c0_131 = arith.constant 0 : index
    %c0_132 = arith.constant 0 : index
    %139 = vector.load %arg4[%c1_130, %c0_131, %c0_132] : memref<7x64x64xf32, #tpu.memory_space<vmem>>, vector<1x64x64xf32>
    %140 = vector.shape_cast %139 : vector<1x64x64xf32> to vector<64x64xf32>
    %cst_133 = arith.constant dense<0.000000e+00> : vector<64x32xf32>
    %141 = tpu.matmul %140, %138, %cst_133 {dimension_numbers = #tpu.dot_dimension_numbers<[1], [0], [0], [1], [0, 0, 1, 1], [], []>} : vector<64x64xf32>, vector<64x32xf32>, vector<64x32xf32> -> vector<64x32xf32>
    %142 = arith.addf %133, %141 : vector<64x32xf32>
    %c0_134 = arith.constant 0 : index
    %c2_135 = arith.constant 2 : index
    %143 = vector.load %arg31[%c0_134, %c2_135] : memref<64x128xf32, #tpu.memory_space<vmem>>, vector<64x32xf32>
    %c2_136 = arith.constant 2 : index
    %c0_137 = arith.constant 0 : index
    %c0_138 = arith.constant 0 : index
    %144 = vector.load %arg5[%c2_136, %c0_137, %c0_138] : memref<7x1x32xf32, #tpu.memory_space<vmem>>, vector<1x1x32xf32>
    %145 = vector.shape_cast %144 : vector<1x1x32xf32> to vector<1x32xf32>
    %146 = vector.broadcast %145 : vector<1x32xf32> to vector<64x32xf32>
    %147 = arith.mulf %143, %146 : vector<64x32xf32>
    %c2_139 = arith.constant 2 : index
    %c0_140 = arith.constant 0 : index
    %c0_141 = arith.constant 0 : index
    %148 = vector.load %arg4[%c2_139, %c0_140, %c0_141] : memref<7x64x64xf32, #tpu.memory_space<vmem>>, vector<1x64x64xf32>
    %149 = vector.shape_cast %148 : vector<1x64x64xf32> to vector<64x64xf32>
    %cst_142 = arith.constant dense<0.000000e+00> : vector<64x32xf32>
    %150 = tpu.matmul %149, %147, %cst_142 {dimension_numbers = #tpu.dot_dimension_numbers<[1], [0], [0], [1], [0, 0, 1, 1], [], []>} : vector<64x64xf32>, vector<64x32xf32>, vector<64x32xf32> -> vector<64x32xf32>
    %151 = arith.addf %142, %150 : vector<64x32xf32>
    %c0_143 = arith.constant 0 : index
    %c3_144 = arith.constant 3 : index
    %152 = vector.load %arg31[%c0_143, %c3_144] : memref<64x128xf32, #tpu.memory_space<vmem>>, vector<64x32xf32>
    %c3_145 = arith.constant 3 : index
    %c0_146 = arith.constant 0 : index
    %c0_147 = arith.constant 0 : index
    %153 = vector.load %arg4[%c3_145, %c0_146, %c0_147] : memref<7x64x64xf32, #tpu.memory_space<vmem>>, vector<1x64x64xf32>
    %154 = vector.shape_cast %153 : vector<1x64x64xf32> to vector<64x64xf32>
    %cst_148 = arith.constant dense<0.000000e+00> : vector<64x32xf32>
    %155 = tpu.matmul %154, %152, %cst_148 {dimension_numbers = #tpu.dot_dimension_numbers<[1], [0], [0], [1], [0, 0, 1, 1], [], []>} : vector<64x64xf32>, vector<64x32xf32>, vector<64x32xf32> -> vector<64x32xf32>
    %156 = arith.addf %151, %155 : vector<64x32xf32>
    %c0_149 = arith.constant 0 : index
    %c4_150 = arith.constant 4 : index
    %157 = vector.load %arg31[%c0_149, %c4_150] : memref<64x128xf32, #tpu.memory_space<vmem>>, vector<64x32xf32>
    %c4_151 = arith.constant 4 : index
    %c0_152 = arith.constant 0 : index
    %c0_153 = arith.constant 0 : index
    %158 = vector.load %arg5[%c4_151, %c0_152, %c0_153] : memref<7x1x32xf32, #tpu.memory_space<vmem>>, vector<1x1x32xf32>
    %159 = vector.shape_cast %158 : vector<1x1x32xf32> to vector<1x32xf32>
    %160 = vector.broadcast %159 : vector<1x32xf32> to vector<64x32xf32>
    %161 = arith.mulf %157, %160 : vector<64x32xf32>
    %c4_154 = arith.constant 4 : index
    %c0_155 = arith.constant 0 : index
    %c0_156 = arith.constant 0 : index
    %162 = vector.load %arg4[%c4_154, %c0_155, %c0_156] : memref<7x64x64xf32, #tpu.memory_space<vmem>>, vector<1x64x64xf32>
    %163 = vector.shape_cast %162 : vector<1x64x64xf32> to vector<64x64xf32>
    %cst_157 = arith.constant dense<0.000000e+00> : vector<64x32xf32>
    %164 = tpu.matmul %163, %161, %cst_157 {dimension_numbers = #tpu.dot_dimension_numbers<[1], [0], [0], [1], [0, 0, 1, 1], [], []>} : vector<64x64xf32>, vector<64x32xf32>, vector<64x32xf32> -> vector<64x32xf32>
    %165 = arith.addf %156, %164 : vector<64x32xf32>
    %c0_158 = arith.constant 0 : index
    %c5_159 = arith.constant 5 : index
    %166 = vector.load %arg31[%c0_158, %c5_159] : memref<64x128xf32, #tpu.memory_space<vmem>>, vector<64x32xf32>
    %c5_160 = arith.constant 5 : index
    %c0_161 = arith.constant 0 : index
    %c0_162 = arith.constant 0 : index
    %167 = vector.load %arg5[%c5_160, %c0_161, %c0_162] : memref<7x1x32xf32, #tpu.memory_space<vmem>>, vector<1x1x32xf32>
    %168 = vector.shape_cast %167 : vector<1x1x32xf32> to vector<1x32xf32>
    %169 = vector.broadcast %168 : vector<1x32xf32> to vector<64x32xf32>
    %170 = arith.mulf %166, %169 : vector<64x32xf32>
    %c5_163 = arith.constant 5 : index
    %c0_164 = arith.constant 0 : index
    %c0_165 = arith.constant 0 : index
    %171 = vector.load %arg4[%c5_163, %c0_164, %c0_165] : memref<7x64x64xf32, #tpu.memory_space<vmem>>, vector<1x64x64xf32>
    %172 = vector.shape_cast %171 : vector<1x64x64xf32> to vector<64x64xf32>
    %cst_166 = arith.constant dense<0.000000e+00> : vector<64x32xf32>
    %173 = tpu.matmul %172, %170, %cst_166 {dimension_numbers = #tpu.dot_dimension_numbers<[1], [0], [0], [1], [0, 0, 1, 1], [], []>} : vector<64x64xf32>, vector<64x32xf32>, vector<64x32xf32> -> vector<64x32xf32>
    %174 = arith.addf %165, %173 : vector<64x32xf32>
    %c0_167 = arith.constant 0 : index
    %c6_168 = arith.constant 6 : index
    %175 = vector.load %arg31[%c0_167, %c6_168] : memref<64x128xf32, #tpu.memory_space<vmem>>, vector<64x32xf32>
    %c6_169 = arith.constant 6 : index
    %c0_170 = arith.constant 0 : index
    %c0_171 = arith.constant 0 : index
    %176 = vector.load %arg5[%c6_169, %c0_170, %c0_171] : memref<7x1x32xf32, #tpu.memory_space<vmem>>, vector<1x1x32xf32>
    %177 = vector.shape_cast %176 : vector<1x1x32xf32> to vector<1x32xf32>
    %178 = vector.broadcast %177 : vector<1x32xf32> to vector<64x32xf32>
    %179 = arith.mulf %175, %178 : vector<64x32xf32>
    %c6_172 = arith.constant 6 : index
    %c0_173 = arith.constant 0 : index
    %c0_174 = arith.constant 0 : index
    %180 = vector.load %arg4[%c6_172, %c0_173, %c0_174] : memref<7x64x64xf32, #tpu.memory_space<vmem>>, vector<1x64x64xf32>
    %181 = vector.shape_cast %180 : vector<1x64x64xf32> to vector<64x64xf32>
    %cst_175 = arith.constant dense<0.000000e+00> : vector<64x32xf32>
    %182 = tpu.matmul %181, %179, %cst_175 {dimension_numbers = #tpu.dot_dimension_numbers<[1], [0], [0], [1], [0, 0, 1, 1], [], []>} : vector<64x64xf32>, vector<64x32xf32>, vector<64x32xf32> -> vector<64x32xf32>
    %183 = arith.addf %174, %182 : vector<64x32xf32>
    %cst_176 = arith.constant 0.000000e+00 : f32
    %184 = vector.broadcast %cst_176 : f32 to vector<64x32xf32>
    %185 = arith.maximumf %183, %184 : vector<64x32xf32>
    %186 = vector.extract_strided_slice %185 {offsets = [0, 0], sizes = [64, 31], strides = [1, 1]} : vector<64x32xf32> to vector<64x31xf32>
    %187 = vector.extract_strided_slice %185 {offsets = [0, 1], sizes = [64, 31], strides = [1, 1]} : vector<64x32xf32> to vector<64x31xf32>
    %188 = arith.maximumf %186, %187 : vector<64x31xf32>
    %c0_177 = arith.constant 0 : index
    %c0_178 = arith.constant 0 : index
    %189 = vector.load %arg6[%c0_177, %c0_178] : memref<31x16xf32, #tpu.memory_space<vmem>>, vector<31x16xf32>
    %cst_179 = arith.constant dense<0.000000e+00> : vector<64x16xf32>
    %190 = tpu.matmul %188, %189, %cst_179 {dimension_numbers = #tpu.dot_dimension_numbers<[1], [0], [0], [1], [0, 0, 1, 1], [], []>} : vector<64x31xf32>, vector<31x16xf32>, vector<64x16xf32> -> vector<64x16xf32>
    %cst_180 = arith.constant 0.000000e+00 : f32
    %191 = vector.broadcast %cst_180 : f32 to vector<64x128xf32>
    %c0_181 = arith.constant 0 : index
    %c0_182 = arith.constant 0 : index
    %192 = vector.load %arg31[%c0_181, %c0_182] : memref<64x128xf32, #tpu.memory_space<vmem>>, vector<64x128xf32>
    tpu.vector_store %arg31[%c0_181, %c0_182], %191 {strides = array<i32>} : memref<64x128xf32, #tpu.memory_space<vmem>>, vector<64x128xf32>,
    %c0_183 = arith.constant 0 : index
    %c2_184 = arith.constant 2 : index
    %193 = vector.load %arg31[%c0_183, %c2_184] : memref<64x128xf32, #tpu.memory_space<vmem>>, vector<64x16xf32>
    tpu.vector_store %arg31[%c0_183, %c2_184], %190 {strides = array<i32>} : memref<64x128xf32, #tpu.memory_space<vmem>>, vector<64x16xf32>,
    %c0_185 = arith.constant 0 : index
    %c0_186 = arith.constant 0 : index
    %194 = vector.load %arg31[%c0_185, %c0_186] : memref<64x128xf32, #tpu.memory_space<vmem>>, vector<64x16xf32>
    %c0_187 = arith.constant 0 : index
    %c0_188 = arith.constant 0 : index
    %c0_189 = arith.constant 0 : index
    %195 = vector.load %arg8[%c0_187, %c0_188, %c0_189] : memref<5x1x16xf32, #tpu.memory_space<vmem>>, vector<1x1x16xf32>
    %196 = vector.shape_cast %195 : vector<1x1x16xf32> to vector<1x16xf32>
    %197 = vector.broadcast %196 : vector<1x16xf32> to vector<64x16xf32>
    %198 = arith.mulf %194, %197 : vector<64x16xf32>
    %c0_190 = arith.constant 0 : index
    %c0_191 = arith.constant 0 : index
    %c0_192 = arith.constant 0 : index
    %199 = vector.load %arg7[%c0_190, %c0_191, %c0_192] : memref<5x64x64xf32, #tpu.memory_space<vmem>>, vector<1x64x64xf32>
    %200 = vector.shape_cast %199 : vector<1x64x64xf32> to vector<64x64xf32>
    %cst_193 = arith.constant dense<0.000000e+00> : vector<64x16xf32>
    %201 = tpu.matmul %200, %198, %cst_193 {dimension_numbers = #tpu.dot_dimension_numbers<[1], [0], [0], [1], [0, 0, 1, 1], [], []>} : vector<64x64xf32>, vector<64x16xf32>, vector<64x16xf32> -> vector<64x16xf32>
    %c0_194 = arith.constant 0 : index
    %c1_195 = arith.constant 1 : index
    %202 = vector.load %arg31[%c0_194, %c1_195] : memref<64x128xf32, #tpu.memory_space<vmem>>, vector<64x16xf32>
    %c1_196 = arith.constant 1 : index
    %c0_197 = arith.constant 0 : index
    %c0_198 = arith.constant 0 : index
    %203 = vector.load %arg8[%c1_196, %c0_197, %c0_198] : memref<5x1x16xf32, #tpu.memory_space<vmem>>, vector<1x1x16xf32>
    %204 = vector.shape_cast %203 : vector<1x1x16xf32> to vector<1x16xf32>
    %205 = vector.broadcast %204 : vector<1x16xf32> to vector<64x16xf32>
    %206 = arith.mulf %202, %205 : vector<64x16xf32>
    %c1_199 = arith.constant 1 : index
    %c0_200 = arith.constant 0 : index
    %c0_201 = arith.constant 0 : index
    %207 = vector.load %arg7[%c1_199, %c0_200, %c0_201] : memref<5x64x64xf32, #tpu.memory_space<vmem>>, vector<1x64x64xf32>
    %208 = vector.shape_cast %207 : vector<1x64x64xf32> to vector<64x64xf32>
    %cst_202 = arith.constant dense<0.000000e+00> : vector<64x16xf32>
    %209 = tpu.matmul %208, %206, %cst_202 {dimension_numbers = #tpu.dot_dimension_numbers<[1], [0], [0], [1], [0, 0, 1, 1], [], []>} : vector<64x64xf32>, vector<64x16xf32>, vector<64x16xf32> -> vector<64x16xf32>
    %210 = arith.addf %201, %209 : vector<64x16xf32>
    %c0_203 = arith.constant 0 : index
    %c2_204 = arith.constant 2 : index
    %211 = vector.load %arg31[%c0_203, %c2_204] : memref<64x128xf32, #tpu.memory_space<vmem>>, vector<64x16xf32>
    %c2_205 = arith.constant 2 : index
    %c0_206 = arith.constant 0 : index
    %c0_207 = arith.constant 0 : index
    %212 = vector.load %arg7[%c2_205, %c0_206, %c0_207] : memref<5x64x64xf32, #tpu.memory_space<vmem>>, vector<1x64x64xf32>
    %213 = vector.shape_cast %212 : vector<1x64x64xf32> to vector<64x64xf32>
    %cst_208 = arith.constant dense<0.000000e+00> : vector<64x16xf32>
    %214 = tpu.matmul %213, %211, %cst_208 {dimension_numbers = #tpu.dot_dimension_numbers<[1], [0], [0], [1], [0, 0, 1, 1], [], []>} : vector<64x64xf32>, vector<64x16xf32>, vector<64x16xf32> -> vector<64x16xf32>
    %215 = arith.addf %210, %214 : vector<64x16xf32>
    %c0_209 = arith.constant 0 : index
    %c3_210 = arith.constant 3 : index
    %216 = vector.load %arg31[%c0_209, %c3_210] : memref<64x128xf32, #tpu.memory_space<vmem>>, vector<64x16xf32>
    %c3_211 = arith.constant 3 : index
    %c0_212 = arith.constant 0 : index
    %c0_213 = arith.constant 0 : index
    %217 = vector.load %arg8[%c3_211, %c0_212, %c0_213] : memref<5x1x16xf32, #tpu.memory_space<vmem>>, vector<1x1x16xf32>
    %218 = vector.shape_cast %217 : vector<1x1x16xf32> to vector<1x16xf32>
    %219 = vector.broadcast %218 : vector<1x16xf32> to vector<64x16xf32>
    %220 = arith.mulf %216, %219 : vector<64x16xf32>
    %c3_214 = arith.constant 3 : index
    %c0_215 = arith.constant 0 : index
    %c0_216 = arith.constant 0 : index
    %221 = vector.load %arg7[%c3_214, %c0_215, %c0_216] : memref<5x64x64xf32, #tpu.memory_space<vmem>>, vector<1x64x64xf32>
    %222 = vector.shape_cast %221 : vector<1x64x64xf32> to vector<64x64xf32>
    %cst_217 = arith.constant dense<0.000000e+00> : vector<64x16xf32>
    %223 = tpu.matmul %222, %220, %cst_217 {dimension_numbers = #tpu.dot_dimension_numbers<[1], [0], [0], [1], [0, 0, 1, 1], [], []>} : vector<64x64xf32>, vector<64x16xf32>, vector<64x16xf32> -> vector<64x16xf32>
    %224 = arith.addf %215, %223 : vector<64x16xf32>
    %c0_218 = arith.constant 0 : index
    %c4_219 = arith.constant 4 : index
    %225 = vector.load %arg31[%c0_218, %c4_219] : memref<64x128xf32, #tpu.memory_space<vmem>>, vector<64x16xf32>
    %c4_220 = arith.constant 4 : index
    %c0_221 = arith.constant 0 : index
    %c0_222 = arith.constant 0 : index
    %226 = vector.load %arg8[%c4_220, %c0_221, %c0_222] : memref<5x1x16xf32, #tpu.memory_space<vmem>>, vector<1x1x16xf32>
    %227 = vector.shape_cast %226 : vector<1x1x16xf32> to vector<1x16xf32>
    %228 = vector.broadcast %227 : vector<1x16xf32> to vector<64x16xf32>
    %229 = arith.mulf %225, %228 : vector<64x16xf32>
    %c4_223 = arith.constant 4 : index
    %c0_224 = arith.constant 0 : index
    %c0_225 = arith.constant 0 : index
    %230 = vector.load %arg7[%c4_223, %c0_224, %c0_225] : memref<5x64x64xf32, #tpu.memory_space<vmem>>, vector<1x64x64xf32>
    %231 = vector.shape_cast %230 : vector<1x64x64xf32> to vector<64x64xf32>
    %cst_226 = arith.constant dense<0.000000e+00> : vector<64x16xf32>
    %232 = tpu.matmul %231, %229, %cst_226 {dimension_numbers = #tpu.dot_dimension_numbers<[1], [0], [0], [1], [0, 0, 1, 1], [], []>} : vector<64x64xf32>, vector<64x16xf32>, vector<64x16xf32> -> vector<64x16xf32>
    %233 = arith.addf %224, %232 : vector<64x16xf32>
    %cst_227 = arith.constant 0.000000e+00 : f32
    %234 = vector.broadcast %cst_227 : f32 to vector<64x16xf32>
    %235 = arith.maximumf %233, %234 : vector<64x16xf32>
    %236 = vector.extract_strided_slice %235 {offsets = [0, 0], sizes = [64, 15], strides = [1, 1]} : vector<64x16xf32> to vector<64x15xf32>
    %237 = vector.extract_strided_slice %235 {offsets = [0, 1], sizes = [64, 15], strides = [1, 1]} : vector<64x16xf32> to vector<64x15xf32>
    %238 = arith.maximumf %236, %237 : vector<64x15xf32>
    %c0_228 = arith.constant 0 : index
    %c0_229 = arith.constant 0 : index
    %239 = vector.load %arg9[%c0_228, %c0_229] : memref<15x8xf32, #tpu.memory_space<vmem>>, vector<15x8xf32>
    %cst_230 = arith.constant dense<0.000000e+00> : vector<64x8xf32>
    %240 = tpu.matmul %238, %239, %cst_230 {dimension_numbers = #tpu.dot_dimension_numbers<[1], [0], [0], [1], [0, 0, 1, 1], [], []>} : vector<64x15xf32>, vector<15x8xf32>, vector<64x8xf32> -> vector<64x8xf32>
    %c0_231 = arith.constant 0 : index
    %c0_232 = arith.constant 0 : index
    %241 = vector.load %arg10[%c0_231, %c0_232] : memref<8x8xf32, #tpu.memory_space<vmem>>, vector<8x8xf32>
    %cst_233 = arith.constant dense<0.000000e+00> : vector<64x8xf32>
    %242 = tpu.matmul %240, %241, %cst_233 {dimension_numbers = #tpu.dot_dimension_numbers<[1], [0], [0], [1], [0, 0, 1, 1], [], []>} : vector<64x8xf32>, vector<8x8xf32>, vector<64x8xf32> -> vector<64x8xf32>
    %c0_234 = arith.constant 0 : index
    %c0_235 = arith.constant 0 : index
    %243 = vector.load %arg12[%c0_234, %c0_235] : memref<192x64xf32, #tpu.memory_space<vmem>>, vector<192x64xf32>
    %cst_236 = arith.constant dense<0.000000e+00> : vector<192x8xf32>
    %244 = tpu.matmul %243, %242, %cst_236 {dimension_numbers = #tpu.dot_dimension_numbers<[1], [0], [0], [1], [0, 0, 1, 1], [], []>} : vector<192x64xf32>, vector<64x8xf32>, vector<192x8xf32> -> vector<192x8xf32>
    %c0_237 = arith.constant 0 : index
    %c0_238 = arith.constant 0 : index
    %245 = vector.load %arg14[%c0_237, %c0_238] : memref<192x1xf32, #tpu.memory_space<vmem>>, vector<192x1xf32>
    %246 = vector.broadcast %245 : vector<192x1xf32> to vector<192x8xf32>
    %247 = arith.addf %244, %246 : vector<192x8xf32>
    %c0_239 = arith.constant 0 : index
    %c0_240 = arith.constant 0 : index
    %248 = vector.load %arg13[%c0_239, %c0_240] : memref<192x64xf32, #tpu.memory_space<vmem>>, vector<192x64xf32>
    %c0_241 = arith.constant 0 : index
    %c0_242 = arith.constant 0 : index
    %249 = vector.load %arg15[%c0_241, %c0_242] : memref<192x1xf32, #tpu.memory_space<vmem>>, vector<192x1xf32>
    %cst_243 = arith.constant 0.000000e+00 : f32
    %250 = vector.broadcast %cst_243 : f32 to vector<64x2xf32>
    %cst_244 = arith.constant 0.000000e+00 : f32
    %251 = vector.broadcast %cst_244 : f32 to vector<64x8xf32>
    %252 = vector.extract_strided_slice %247 {offsets = [0, 0], sizes = [192, 2], strides = [1, 1]} : vector<192x8xf32> to vector<192x2xf32>
    %cst_245 = arith.constant dense<0.000000e+00> : vector<192x2xf32>
    %253 = tpu.matmul %248, %250, %cst_245 {dimension_numbers = #tpu.dot_dimension_numbers<[1], [0], [0], [1], [0, 0, 1, 1], [], []>} : vector<192x64xf32>, vector<64x2xf32>, vector<192x2xf32> -> vector<192x2xf32>
    %254 = vector.broadcast %249 : vector<192x1xf32> to vector<192x2xf32>
    %255 = arith.addf %253, %254 : vector<192x2xf32>
    %256 = vector.extract_strided_slice %252 {offsets = [0, 0], sizes = [64, 2], strides = [1, 1]} : vector<192x2xf32> to vector<64x2xf32>
    %257 = vector.extract_strided_slice %255 {offsets = [0, 0], sizes = [64, 2], strides = [1, 1]} : vector<192x2xf32> to vector<64x2xf32>
    %258 = arith.addf %256, %257 : vector<64x2xf32>
    %259 = arith.negf %258 : vector<64x2xf32>
    %260 = math.exp %259 : vector<64x2xf32>
    %cst_246 = arith.constant 1.000000e+00 : f32
    %261 = vector.broadcast %cst_246 : f32 to vector<64x2xf32>
    %262 = arith.addf %261, %260 : vector<64x2xf32>
    %263 = arith.divf %261, %262 : vector<64x2xf32>
    %264 = vector.extract_strided_slice %252 {offsets = [64, 0], sizes = [64, 2], strides = [1, 1]} : vector<192x2xf32> to vector<64x2xf32>
    %265 = vector.extract_strided_slice %255 {offsets = [64, 0], sizes = [64, 2], strides = [1, 1]} : vector<192x2xf32> to vector<64x2xf32>
    %266 = arith.addf %264, %265 : vector<64x2xf32>
    %267 = arith.negf %266 : vector<64x2xf32>
    %268 = math.exp %267 : vector<64x2xf32>
    %cst_247 = arith.constant 1.000000e+00 : f32
    %269 = vector.broadcast %cst_247 : f32 to vector<64x2xf32>
    %270 = arith.addf %269, %268 : vector<64x2xf32>
    %271 = arith.divf %269, %270 : vector<64x2xf32>
    %272 = vector.extract_strided_slice %252 {offsets = [128, 0], sizes = [64, 2], strides = [1, 1]} : vector<192x2xf32> to vector<64x2xf32>
    %273 = vector.extract_strided_slice %255 {offsets = [128, 0], sizes = [64, 2], strides = [1, 1]} : vector<192x2xf32> to vector<64x2xf32>
    %274 = arith.mulf %263, %273 : vector<64x2xf32>
    %275 = arith.addf %272, %274 : vector<64x2xf32>
    %276 = math.tanh %275 : vector<64x2xf32>
    %cst_248 = arith.constant 1.000000e+00 : f32
    %277 = vector.broadcast %cst_248 : f32 to vector<64x2xf32>
    %278 = arith.subf %277, %271 : vector<64x2xf32>
    %279 = arith.mulf %278, %276 : vector<64x2xf32>
    %280 = arith.mulf %271, %250 : vector<64x2xf32>
    %281 = arith.addf %279, %280 : vector<64x2xf32>
    %c0_249 = arith.constant 0 : index
    %c0_250 = arith.constant 0 : index
    %c0_251 = arith.constant 0 : index
    %282 = vector.load %arg11[%c0_249, %c0_250, %c0_251] : memref<4x2x8xf32, #tpu.memory_space<vmem>>, vector<1x2x8xf32>
    %283 = vector.shape_cast %282 : vector<1x2x8xf32> to vector<2x8xf32>
    %cst_252 = arith.constant dense<0.000000e+00> : vector<64x8xf32>
    %284 = tpu.matmul %281, %283, %cst_252 {dimension_numbers = #tpu.dot_dimension_numbers<[1], [0], [0], [1], [0, 0, 1, 1], [], []>} : vector<64x2xf32>, vector<2x8xf32>, vector<64x8xf32> -> vector<64x8xf32>
    %285 = arith.addf %251, %284 : vector<64x8xf32>
    %286 = vector.extract_strided_slice %247 {offsets = [0, 2], sizes = [192, 2], strides = [1, 1]} : vector<192x8xf32> to vector<192x2xf32>
    %cst_253 = arith.constant dense<0.000000e+00> : vector<192x2xf32>
    %287 = tpu.matmul %248, %281, %cst_253 {dimension_numbers = #tpu.dot_dimension_numbers<[1], [0], [0], [1], [0, 0, 1, 1], [], []>} : vector<192x64xf32>, vector<64x2xf32>, vector<192x2xf32> -> vector<192x2xf32>
    %288 = vector.broadcast %249 : vector<192x1xf32> to vector<192x2xf32>
    %289 = arith.addf %287, %288 : vector<192x2xf32>
    %290 = vector.extract_strided_slice %286 {offsets = [0, 0], sizes = [64, 2], strides = [1, 1]} : vector<192x2xf32> to vector<64x2xf32>
    %291 = vector.extract_strided_slice %289 {offsets = [0, 0], sizes = [64, 2], strides = [1, 1]} : vector<192x2xf32> to vector<64x2xf32>
    %292 = arith.addf %290, %291 : vector<64x2xf32>
    %293 = arith.negf %292 : vector<64x2xf32>
    %294 = math.exp %293 : vector<64x2xf32>
    %cst_254 = arith.constant 1.000000e+00 : f32
    %295 = vector.broadcast %cst_254 : f32 to vector<64x2xf32>
    %296 = arith.addf %295, %294 : vector<64x2xf32>
    %297 = arith.divf %295, %296 : vector<64x2xf32>
    %298 = vector.extract_strided_slice %286 {offsets = [64, 0], sizes = [64, 2], strides = [1, 1]} : vector<192x2xf32> to vector<64x2xf32>
    %299 = vector.extract_strided_slice %289 {offsets = [64, 0], sizes = [64, 2], strides = [1, 1]} : vector<192x2xf32> to vector<64x2xf32>
    %300 = arith.addf %298, %299 : vector<64x2xf32>
    %301 = arith.negf %300 : vector<64x2xf32>
    %302 = math.exp %301 : vector<64x2xf32>
    %cst_255 = arith.constant 1.000000e+00 : f32
    %303 = vector.broadcast %cst_255 : f32 to vector<64x2xf32>
    %304 = arith.addf %303, %302 : vector<64x2xf32>
    %305 = arith.divf %303, %304 : vector<64x2xf32>
    %306 = vector.extract_strided_slice %286 {offsets = [128, 0], sizes = [64, 2], strides = [1, 1]} : vector<192x2xf32> to vector<64x2xf32>
    %307 = vector.extract_strided_slice %289 {offsets = [128, 0], sizes = [64, 2], strides = [1, 1]} : vector<192x2xf32> to vector<64x2xf32>
    %308 = arith.mulf %297, %307 : vector<64x2xf32>
    %309 = arith.addf %306, %308 : vector<64x2xf32>
    %310 = math.tanh %309 : vector<64x2xf32>
    %cst_256 = arith.constant 1.000000e+00 : f32
    %311 = vector.broadcast %cst_256 : f32 to vector<64x2xf32>
    %312 = arith.subf %311, %305 : vector<64x2xf32>
    %313 = arith.mulf %312, %310 : vector<64x2xf32>
    %314 = arith.mulf %305, %281 : vector<64x2xf32>
    %315 = arith.addf %313, %314 : vector<64x2xf32>
    %c1_257 = arith.constant 1 : index
    %c0_258 = arith.constant 0 : index
    %c0_259 = arith.constant 0 : index
    %316 = vector.load %arg11[%c1_257, %c0_258, %c0_259] : memref<4x2x8xf32, #tpu.memory_space<vmem>>, vector<1x2x8xf32>
    %317 = vector.shape_cast %316 : vector<1x2x8xf32> to vector<2x8xf32>
    %cst_260 = arith.constant dense<0.000000e+00> : vector<64x8xf32>
    %318 = tpu.matmul %315, %317, %cst_260 {dimension_numbers = #tpu.dot_dimension_numbers<[1], [0], [0], [1], [0, 0, 1, 1], [], []>} : vector<64x2xf32>, vector<2x8xf32>, vector<64x8xf32> -> vector<64x8xf32>
    %319 = arith.addf %285, %318 : vector<64x8xf32>
    %320 = vector.extract_strided_slice %247 {offsets = [0, 4], sizes = [192, 2], strides = [1, 1]} : vector<192x8xf32> to vector<192x2xf32>
    %cst_261 = arith.constant dense<0.000000e+00> : vector<192x2xf32>
    %321 = tpu.matmul %248, %315, %cst_261 {dimension_numbers = #tpu.dot_dimension_numbers<[1], [0], [0], [1], [0, 0, 1, 1], [], []>} : vector<192x64xf32>, vector<64x2xf32>, vector<192x2xf32> -> vector<192x2xf32>
    %322 = vector.broadcast %249 : vector<192x1xf32> to vector<192x2xf32>
    %323 = arith.addf %321, %322 : vector<192x2xf32>
    %324 = vector.extract_strided_slice %320 {offsets = [0, 0], sizes = [64, 2], strides = [1, 1]} : vector<192x2xf32> to vector<64x2xf32>
    %325 = vector.extract_strided_slice %323 {offsets = [0, 0], sizes = [64, 2], strides = [1, 1]} : vector<192x2xf32> to vector<64x2xf32>
    %326 = arith.addf %324, %325 : vector<64x2xf32>
    %327 = arith.negf %326 : vector<64x2xf32>
    %328 = math.exp %327 : vector<64x2xf32>
    %cst_262 = arith.constant 1.000000e+00 : f32
    %329 = vector.broadcast %cst_262 : f32 to vector<64x2xf32>
    %330 = arith.addf %329, %328 : vector<64x2xf32>
    %331 = arith.divf %329, %330 : vector<64x2xf32>
    %332 = vector.extract_strided_slice %320 {offsets = [64, 0], sizes = [64, 2], strides = [1, 1]} : vector<192x2xf32> to vector<64x2xf32>
    %333 = vector.extract_strided_slice %323 {offsets = [64, 0], sizes = [64, 2], strides = [1, 1]} : vector<192x2xf32> to vector<64x2xf32>
    %334 = arith.addf %332, %333 : vector<64x2xf32>
    %335 = arith.negf %334 : vector<64x2xf32>
    %336 = math.exp %335 : vector<64x2xf32>
    %cst_263 = arith.constant 1.000000e+00 : f32
    %337 = vector.broadcast %cst_263 : f32 to vector<64x2xf32>
    %338 = arith.addf %337, %336 : vector<64x2xf32>
    %339 = arith.divf %337, %338 : vector<64x2xf32>
    %340 = vector.extract_strided_slice %320 {offsets = [128, 0], sizes = [64, 2], strides = [1, 1]} : vector<192x2xf32> to vector<64x2xf32>
    %341 = vector.extract_strided_slice %323 {offsets = [128, 0], sizes = [64, 2], strides = [1, 1]} : vector<192x2xf32> to vector<64x2xf32>
    %342 = arith.mulf %331, %341 : vector<64x2xf32>
    %343 = arith.addf %340, %342 : vector<64x2xf32>
    %344 = math.tanh %343 : vector<64x2xf32>
    %cst_264 = arith.constant 1.000000e+00 : f32
    %345 = vector.broadcast %cst_264 : f32 to vector<64x2xf32>
    %346 = arith.subf %345, %339 : vector<64x2xf32>
    %347 = arith.mulf %346, %344 : vector<64x2xf32>
    %348 = arith.mulf %339, %315 : vector<64x2xf32>
    %349 = arith.addf %347, %348 : vector<64x2xf32>
    %c2_265 = arith.constant 2 : index
    %c0_266 = arith.constant 0 : index
    %c0_267 = arith.constant 0 : index
    %350 = vector.load %arg11[%c2_265, %c0_266, %c0_267] : memref<4x2x8xf32, #tpu.memory_space<vmem>>, vector<1x2x8xf32>
    %351 = vector.shape_cast %350 : vector<1x2x8xf32> to vector<2x8xf32>
    %cst_268 = arith.constant dense<0.000000e+00> : vector<64x8xf32>
    %352 = tpu.matmul %349, %351, %cst_268 {dimension_numbers = #tpu.dot_dimension_numbers<[1], [0], [0], [1], [0, 0, 1, 1], [], []>} : vector<64x2xf32>, vector<2x8xf32>, vector<64x8xf32> -> vector<64x8xf32>
    %353 = arith.addf %319, %352 : vector<64x8xf32>
    %354 = vector.extract_strided_slice %247 {offsets = [0, 6], sizes = [192, 2], strides = [1, 1]} : vector<192x8xf32> to vector<192x2xf32>
    %cst_269 = arith.constant dense<0.000000e+00> : vector<192x2xf32>
    %355 = tpu.matmul %248, %349, %cst_269 {dimension_numbers = #tpu.dot_dimension_numbers<[1], [0], [0], [1], [0, 0, 1, 1], [], []>} : vector<192x64xf32>, vector<64x2xf32>, vector<192x2xf32> -> vector<192x2xf32>
    %356 = vector.broadcast %249 : vector<192x1xf32> to vector<192x2xf32>
    %357 = arith.addf %355, %356 : vector<192x2xf32>
    %358 = vector.extract_strided_slice %354 {offsets = [0, 0], sizes = [64, 2], strides = [1, 1]} : vector<192x2xf32> to vector<64x2xf32>
    %359 = vector.extract_strided_slice %357 {offsets = [0, 0], sizes = [64, 2], strides = [1, 1]} : vector<192x2xf32> to vector<64x2xf32>
    %360 = arith.addf %358, %359 : vector<64x2xf32>
    %361 = arith.negf %360 : vector<64x2xf32>
    %362 = math.exp %361 : vector<64x2xf32>
    %cst_270 = arith.constant 1.000000e+00 : f32
    %363 = vector.broadcast %cst_270 : f32 to vector<64x2xf32>
    %364 = arith.addf %363, %362 : vector<64x2xf32>
    %365 = arith.divf %363, %364 : vector<64x2xf32>
    %366 = vector.extract_strided_slice %354 {offsets = [64, 0], sizes = [64, 2], strides = [1, 1]} : vector<192x2xf32> to vector<64x2xf32>
    %367 = vector.extract_strided_slice %357 {offsets = [64, 0], sizes = [64, 2], strides = [1, 1]} : vector<192x2xf32> to vector<64x2xf32>
    %368 = arith.addf %366, %367 : vector<64x2xf32>
    %369 = arith.negf %368 : vector<64x2xf32>
    %370 = math.exp %369 : vector<64x2xf32>
    %cst_271 = arith.constant 1.000000e+00 : f32
    %371 = vector.broadcast %cst_271 : f32 to vector<64x2xf32>
    %372 = arith.addf %371, %370 : vector<64x2xf32>
    %373 = arith.divf %371, %372 : vector<64x2xf32>
    %374 = vector.extract_strided_slice %354 {offsets = [128, 0], sizes = [64, 2], strides = [1, 1]} : vector<192x2xf32> to vector<64x2xf32>
    %375 = vector.extract_strided_slice %357 {offsets = [128, 0], sizes = [64, 2], strides = [1, 1]} : vector<192x2xf32> to vector<64x2xf32>
    %376 = arith.mulf %365, %375 : vector<64x2xf32>
    %377 = arith.addf %374, %376 : vector<64x2xf32>
    %378 = math.tanh %377 : vector<64x2xf32>
    %cst_272 = arith.constant 1.000000e+00 : f32
    %379 = vector.broadcast %cst_272 : f32 to vector<64x2xf32>
    %380 = arith.subf %379, %373 : vector<64x2xf32>
    %381 = arith.mulf %380, %378 : vector<64x2xf32>
    %382 = arith.mulf %373, %349 : vector<64x2xf32>
    %383 = arith.addf %381, %382 : vector<64x2xf32>
    %c3_273 = arith.constant 3 : index
    %c0_274 = arith.constant 0 : index
    %c0_275 = arith.constant 0 : index
    %384 = vector.load %arg11[%c3_273, %c0_274, %c0_275] : memref<4x2x8xf32, #tpu.memory_space<vmem>>, vector<1x2x8xf32>
    %385 = vector.shape_cast %384 : vector<1x2x8xf32> to vector<2x8xf32>
    %cst_276 = arith.constant dense<0.000000e+00> : vector<64x8xf32>
    %386 = tpu.matmul %383, %385, %cst_276 {dimension_numbers = #tpu.dot_dimension_numbers<[1], [0], [0], [1], [0, 0, 1, 1], [], []>} : vector<64x2xf32>, vector<2x8xf32>, vector<64x8xf32> -> vector<64x8xf32>
    %387 = arith.addf %353, %386 : vector<64x8xf32>
    %c0_277 = arith.constant 0 : index
    %c0_278 = arith.constant 0 : index
    %388 = vector.load %arg16[%c0_277, %c0_278] : memref<8x16xf32, #tpu.memory_space<vmem>>, vector<8x16xf32>
    %cst_279 = arith.constant dense<0.000000e+00> : vector<64x16xf32>
    %389 = tpu.matmul %387, %388, %cst_279 {dimension_numbers = #tpu.dot_dimension_numbers<[1], [0], [0], [1], [0, 0, 1, 1], [], []>} : vector<64x8xf32>, vector<8x16xf32>, vector<64x16xf32> -> vector<64x16xf32>
    %390 = arith.addf %389, %190 : vector<64x16xf32>
    %cst_280 = arith.constant 0.999994993 : f32
    %391 = vector.broadcast %cst_280 : f32 to vector<64x16xf32>
    %392 = arith.mulf %390, %391 : vector<64x16xf32>
    %cst_281 = arith.constant 0.000000e+00 : f32
    %393 = vector.broadcast %cst_281 : f32 to vector<64x16xf32>
    %394 = arith.maximumf %392, %393 : vector<64x16xf32>
    %cst_282 = arith.constant 0.000000e+00 : f32
    %395 = vector.broadcast %cst_282 : f32 to vector<64x128xf32>
    %c0_283 = arith.constant 0 : index
    %c0_284 = arith.constant 0 : index
    %396 = vector.load %arg31[%c0_283, %c0_284] : memref<64x128xf32, #tpu.memory_space<vmem>>, vector<64x128xf32>
    tpu.vector_store %arg31[%c0_283, %c0_284], %395 {strides = array<i32>} : memref<64x128xf32, #tpu.memory_space<vmem>>, vector<64x128xf32>,
    %c0_285 = arith.constant 0 : index
    %c1_286 = arith.constant 1 : index
    %397 = vector.load %arg31[%c0_285, %c1_286] : memref<64x128xf32, #tpu.memory_space<vmem>>, vector<64x16xf32>
    tpu.vector_store %arg31[%c0_285, %c1_286], %394 {strides = array<i32>} : memref<64x128xf32, #tpu.memory_space<vmem>>, vector<64x16xf32>,
    %c0_287 = arith.constant 0 : index
    %c0_288 = arith.constant 0 : index
    %398 = vector.load %arg31[%c0_287, %c0_288] : memref<64x128xf32, #tpu.memory_space<vmem>>, vector<64x16xf32>
    %c0_289 = arith.constant 0 : index
    %c0_290 = arith.constant 0 : index
    %c0_291 = arith.constant 0 : index
    %399 = vector.load %arg18[%c0_289, %c0_290, %c0_291] : memref<3x1x16xf32, #tpu.memory_space<vmem>>, vector<1x1x16xf32>
    %400 = vector.shape_cast %399 : vector<1x1x16xf32> to vector<1x16xf32>
    %401 = vector.broadcast %400 : vector<1x16xf32> to vector<64x16xf32>
    %402 = arith.mulf %398, %401 : vector<64x16xf32>
    %c0_292 = arith.constant 0 : index
    %c0_293 = arith.constant 0 : index
    %c0_294 = arith.constant 0 : index
    %403 = vector.load %arg17[%c0_292, %c0_293, %c0_294] : memref<3x64x64xf32, #tpu.memory_space<vmem>>, vector<1x64x64xf32>
    %404 = vector.shape_cast %403 : vector<1x64x64xf32> to vector<64x64xf32>
    %cst_295 = arith.constant dense<0.000000e+00> : vector<64x16xf32>
    %405 = tpu.matmul %404, %402, %cst_295 {dimension_numbers = #tpu.dot_dimension_numbers<[1], [0], [0], [1], [0, 0, 1, 1], [], []>} : vector<64x64xf32>, vector<64x16xf32>, vector<64x16xf32> -> vector<64x16xf32>
    %c0_296 = arith.constant 0 : index
    %c1_297 = arith.constant 1 : index
    %406 = vector.load %arg31[%c0_296, %c1_297] : memref<64x128xf32, #tpu.memory_space<vmem>>, vector<64x16xf32>
    %c1_298 = arith.constant 1 : index
    %c0_299 = arith.constant 0 : index
    %c0_300 = arith.constant 0 : index
    %407 = vector.load %arg17[%c1_298, %c0_299, %c0_300] : memref<3x64x64xf32, #tpu.memory_space<vmem>>, vector<1x64x64xf32>
    %408 = vector.shape_cast %407 : vector<1x64x64xf32> to vector<64x64xf32>
    %cst_301 = arith.constant dense<0.000000e+00> : vector<64x16xf32>
    %409 = tpu.matmul %408, %406, %cst_301 {dimension_numbers = #tpu.dot_dimension_numbers<[1], [0], [0], [1], [0, 0, 1, 1], [], []>} : vector<64x64xf32>, vector<64x16xf32>, vector<64x16xf32> -> vector<64x16xf32>
    %410 = arith.addf %405, %409 : vector<64x16xf32>
    %c0_302 = arith.constant 0 : index
    %c2_303 = arith.constant 2 : index
    %411 = vector.load %arg31[%c0_302, %c2_303] : memref<64x128xf32, #tpu.memory_space<vmem>>, vector<64x16xf32>
    %c2_304 = arith.constant 2 : index
    %c0_305 = arith.constant 0 : index
    %c0_306 = arith.constant 0 : index
    %412 = vector.load %arg18[%c2_304, %c0_305, %c0_306] : memref<3x1x16xf32, #tpu.memory_space<vmem>>, vector<1x1x16xf32>
    %413 = vector.shape_cast %412 : vector<1x1x16xf32> to vector<1x16xf32>
    %414 = vector.broadcast %413 : vector<1x16xf32> to vector<64x16xf32>
    %415 = arith.mulf %411, %414 : vector<64x16xf32>
    %c2_307 = arith.constant 2 : index
    %c0_308 = arith.constant 0 : index
    %c0_309 = arith.constant 0 : index
    %416 = vector.load %arg17[%c2_307, %c0_308, %c0_309] : memref<3x64x64xf32, #tpu.memory_space<vmem>>, vector<1x64x64xf32>
    %417 = vector.shape_cast %416 : vector<1x64x64xf32> to vector<64x64xf32>
    %cst_310 = arith.constant dense<0.000000e+00> : vector<64x16xf32>
    %418 = tpu.matmul %417, %415, %cst_310 {dimension_numbers = #tpu.dot_dimension_numbers<[1], [0], [0], [1], [0, 0, 1, 1], [], []>} : vector<64x64xf32>, vector<64x16xf32>, vector<64x16xf32> -> vector<64x16xf32>
    %419 = arith.addf %410, %418 : vector<64x16xf32>
    %c0_311 = arith.constant 0 : index
    %c0_312 = arith.constant 0 : index
    %420 = vector.load %arg19[%c0_311, %c0_312] : memref<16x32xf32, #tpu.memory_space<vmem>>, vector<16x32xf32>
    %cst_313 = arith.constant dense<0.000000e+00> : vector<64x32xf32>
    %421 = tpu.matmul %419, %420, %cst_313 {dimension_numbers = #tpu.dot_dimension_numbers<[1], [0], [0], [1], [0, 0, 1, 1], [], []>} : vector<64x16xf32>, vector<16x32xf32>, vector<64x32xf32> -> vector<64x32xf32>
    %422 = arith.addf %421, %122 : vector<64x32xf32>
    %cst_314 = arith.constant 0.999994993 : f32
    %423 = vector.broadcast %cst_314 : f32 to vector<64x32xf32>
    %424 = arith.mulf %422, %423 : vector<64x32xf32>
    %cst_315 = arith.constant 0.000000e+00 : f32
    %425 = vector.broadcast %cst_315 : f32 to vector<64x32xf32>
    %426 = arith.maximumf %424, %425 : vector<64x32xf32>
    %cst_316 = arith.constant 0.000000e+00 : f32
    %427 = vector.broadcast %cst_316 : f32 to vector<64x128xf32>
    %c0_317 = arith.constant 0 : index
    %c0_318 = arith.constant 0 : index
    %428 = vector.load %arg31[%c0_317, %c0_318] : memref<64x128xf32, #tpu.memory_space<vmem>>, vector<64x128xf32>
    tpu.vector_store %arg31[%c0_317, %c0_318], %427 {strides = array<i32>} : memref<64x128xf32, #tpu.memory_space<vmem>>, vector<64x128xf32>,
    %c0_319 = arith.constant 0 : index
    %c1_320 = arith.constant 1 : index
    %429 = vector.load %arg31[%c0_319, %c1_320] : memref<64x128xf32, #tpu.memory_space<vmem>>, vector<64x32xf32>
    tpu.vector_store %arg31[%c0_319, %c1_320], %426 {strides = array<i32>} : memref<64x128xf32, #tpu.memory_space<vmem>>, vector<64x32xf32>,
    %c0_321 = arith.constant 0 : index
    %c0_322 = arith.constant 0 : index
    %430 = vector.load %arg31[%c0_321, %c0_322] : memref<64x128xf32, #tpu.memory_space<vmem>>, vector<64x32xf32>
    %c0_323 = arith.constant 0 : index
    %c0_324 = arith.constant 0 : index
    %c0_325 = arith.constant 0 : index
    %431 = vector.load %arg21[%c0_323, %c0_324, %c0_325] : memref<3x1x32xf32, #tpu.memory_space<vmem>>, vector<1x1x32xf32>
    %432 = vector.shape_cast %431 : vector<1x1x32xf32> to vector<1x32xf32>
    %433 = vector.broadcast %432 : vector<1x32xf32> to vector<64x32xf32>
    %434 = arith.mulf %430, %433 : vector<64x32xf32>
    %c0_326 = arith.constant 0 : index
    %c0_327 = arith.constant 0 : index
    %c0_328 = arith.constant 0 : index
    %435 = vector.load %arg20[%c0_326, %c0_327, %c0_328] : memref<3x4x64xf32, #tpu.memory_space<vmem>>, vector<1x4x64xf32>
    %436 = vector.shape_cast %435 : vector<1x4x64xf32> to vector<4x64xf32>
    %cst_329 = arith.constant dense<0.000000e+00> : vector<4x32xf32>
    %437 = tpu.matmul %436, %434, %cst_329 {dimension_numbers = #tpu.dot_dimension_numbers<[1], [0], [0], [1], [0, 0, 1, 1], [], []>} : vector<4x64xf32>, vector<64x32xf32>, vector<4x32xf32> -> vector<4x32xf32>
    %c0_330 = arith.constant 0 : index
    %c1_331 = arith.constant 1 : index
    %438 = vector.load %arg31[%c0_330, %c1_331] : memref<64x128xf32, #tpu.memory_space<vmem>>, vector<64x32xf32>
    %c1_332 = arith.constant 1 : index
    %c0_333 = arith.constant 0 : index
    %c0_334 = arith.constant 0 : index
    %439 = vector.load %arg20[%c1_332, %c0_333, %c0_334] : memref<3x4x64xf32, #tpu.memory_space<vmem>>, vector<1x4x64xf32>
    %440 = vector.shape_cast %439 : vector<1x4x64xf32> to vector<4x64xf32>
    %cst_335 = arith.constant dense<0.000000e+00> : vector<4x32xf32>
    %441 = tpu.matmul %440, %438, %cst_335 {dimension_numbers = #tpu.dot_dimension_numbers<[1], [0], [0], [1], [0, 0, 1, 1], [], []>} : vector<4x64xf32>, vector<64x32xf32>, vector<4x32xf32> -> vector<4x32xf32>
    %442 = arith.addf %437, %441 : vector<4x32xf32>
    %c0_336 = arith.constant 0 : index
    %c2_337 = arith.constant 2 : index
    %443 = vector.load %arg31[%c0_336, %c2_337] : memref<64x128xf32, #tpu.memory_space<vmem>>, vector<64x32xf32>
    %c2_338 = arith.constant 2 : index
    %c0_339 = arith.constant 0 : index
    %c0_340 = arith.constant 0 : index
    %444 = vector.load %arg21[%c2_338, %c0_339, %c0_340] : memref<3x1x32xf32, #tpu.memory_space<vmem>>, vector<1x1x32xf32>
    %445 = vector.shape_cast %444 : vector<1x1x32xf32> to vector<1x32xf32>
    %446 = vector.broadcast %445 : vector<1x32xf32> to vector<64x32xf32>
    %447 = arith.mulf %443, %446 : vector<64x32xf32>
    %c2_341 = arith.constant 2 : index
    %c0_342 = arith.constant 0 : index
    %c0_343 = arith.constant 0 : index
    %448 = vector.load %arg20[%c2_341, %c0_342, %c0_343] : memref<3x4x64xf32, #tpu.memory_space<vmem>>, vector<1x4x64xf32>
    %449 = vector.shape_cast %448 : vector<1x4x64xf32> to vector<4x64xf32>
    %cst_344 = arith.constant dense<0.000000e+00> : vector<4x32xf32>
    %450 = tpu.matmul %449, %447, %cst_344 {dimension_numbers = #tpu.dot_dimension_numbers<[1], [0], [0], [1], [0, 0, 1, 1], [], []>} : vector<4x64xf32>, vector<64x32xf32>, vector<4x32xf32> -> vector<4x32xf32>
    %451 = arith.addf %442, %450 : vector<4x32xf32>
    %c0_345 = arith.constant 0 : index
    %c0_346 = arith.constant 0 : index
    %452 = vector.load %arg22[%c0_345, %c0_346] : memref<32x64xf32, #tpu.memory_space<vmem>>, vector<32x64xf32>
    %cst_347 = arith.constant dense<0.000000e+00> : vector<4x64xf32>
    %453 = tpu.matmul %451, %452, %cst_347 {dimension_numbers = #tpu.dot_dimension_numbers<[1], [0], [0], [1], [0, 0, 1, 1], [], []>} : vector<4x32xf32>, vector<32x64xf32>, vector<4x64xf32> -> vector<4x64xf32>
    %454 = arith.addf %453, %0 : vector<4x64xf32>
    %cst_348 = arith.constant 0.999994993 : f32
    %455 = vector.broadcast %cst_348 : f32 to vector<4x64xf32>
    %456 = arith.mulf %454, %455 : vector<4x64xf32>
    %cst_349 = arith.constant 0.000000e+00 : f32
    %457 = vector.broadcast %cst_349 : f32 to vector<4x64xf32>
    %458 = arith.maximumf %456, %457 : vector<4x64xf32>
    %cst_350 = arith.constant 0.000000e+00 : f32
    %459 = vector.broadcast %cst_350 : f32 to vector<64x128xf32>
    %c0_351 = arith.constant 0 : index
    %c0_352 = arith.constant 0 : index
    %460 = vector.load %arg31[%c0_351, %c0_352] : memref<64x128xf32, #tpu.memory_space<vmem>>, vector<64x128xf32>
    tpu.vector_store %arg31[%c0_351, %c0_352], %459 {strides = array<i32>} : memref<64x128xf32, #tpu.memory_space<vmem>>, vector<64x128xf32>,
    %c0_353 = arith.constant 0 : index
    %c1_354 = arith.constant 1 : index
    %461 = vector.load %arg31[%c0_353, %c1_354] : memref<64x128xf32, #tpu.memory_space<vmem>>, vector<4x64xf32>
    tpu.vector_store %arg31[%c0_353, %c1_354], %458 {strides = array<i32>} : memref<64x128xf32, #tpu.memory_space<vmem>>, vector<4x64xf32>,
    %c0_355 = arith.constant 0 : index
    %c0_356 = arith.constant 0 : index
    %462 = vector.load %arg31[%c0_355, %c0_356] : memref<64x128xf32, #tpu.memory_space<vmem>>, vector<4x64xf32>
    %c0_357 = arith.constant 0 : index
    %c0_358 = arith.constant 0 : index
    %c0_359 = arith.constant 0 : index
    %463 = vector.load %arg24[%c0_357, %c0_358, %c0_359] : memref<3x1x64xf32, #tpu.memory_space<vmem>>, vector<1x1x64xf32>
    %464 = vector.shape_cast %463 : vector<1x1x64xf32> to vector<1x64xf32>
    %465 = vector.broadcast %464 : vector<1x64xf32> to vector<4x64xf32>
    %466 = arith.mulf %462, %465 : vector<4x64xf32>
    %c0_360 = arith.constant 0 : index
    %c0_361 = arith.constant 0 : index
    %c0_362 = arith.constant 0 : index
    %467 = vector.load %arg23[%c0_360, %c0_361, %c0_362] : memref<3x1x4xf32, #tpu.memory_space<vmem>>, vector<1x1x4xf32>
    %468 = vector.shape_cast %467 : vector<1x1x4xf32> to vector<1x4xf32>
    %cst_363 = arith.constant dense<0.000000e+00> : vector<1x64xf32>
    %469 = tpu.matmul %468, %466, %cst_363 {dimension_numbers = #tpu.dot_dimension_numbers<[1], [0], [0], [1], [0, 0, 1, 1], [], []>} : vector<1x4xf32>, vector<4x64xf32>, vector<1x64xf32> -> vector<1x64xf32>
    %c0_364 = arith.constant 0 : index
    %c1_365 = arith.constant 1 : index
    %470 = vector.load %arg31[%c0_364, %c1_365] : memref<64x128xf32, #tpu.memory_space<vmem>>, vector<4x64xf32>
    %c1_366 = arith.constant 1 : index
    %c0_367 = arith.constant 0 : index
    %c0_368 = arith.constant 0 : index
    %471 = vector.load %arg23[%c1_366, %c0_367, %c0_368] : memref<3x1x4xf32, #tpu.memory_space<vmem>>, vector<1x1x4xf32>
    %472 = vector.shape_cast %471 : vector<1x1x4xf32> to vector<1x4xf32>
    %cst_369 = arith.constant dense<0.000000e+00> : vector<1x64xf32>
    %473 = tpu.matmul %472, %470, %cst_369 {dimension_numbers = #tpu.dot_dimension_numbers<[1], [0], [0], [1], [0, 0, 1, 1], [], []>} : vector<1x4xf32>, vector<4x64xf32>, vector<1x64xf32> -> vector<1x64xf32>
    %474 = arith.addf %469, %473 : vector<1x64xf32>
    %c0_370 = arith.constant 0 : index
    %c2_371 = arith.constant 2 : index
    %475 = vector.load %arg31[%c0_370, %c2_371] : memref<64x128xf32, #tpu.memory_space<vmem>>, vector<4x64xf32>
    %c2_372 = arith.constant 2 : index
    %c0_373 = arith.constant 0 : index
    %c0_374 = arith.constant 0 : index
    %476 = vector.load %arg24[%c2_372, %c0_373, %c0_374] : memref<3x1x64xf32, #tpu.memory_space<vmem>>, vector<1x1x64xf32>
    %477 = vector.shape_cast %476 : vector<1x1x64xf32> to vector<1x64xf32>
    %478 = vector.broadcast %477 : vector<1x64xf32> to vector<4x64xf32>
    %479 = arith.mulf %475, %478 : vector<4x64xf32>
    %c2_375 = arith.constant 2 : index
    %c0_376 = arith.constant 0 : index
    %c0_377 = arith.constant 0 : index
    %480 = vector.load %arg23[%c2_375, %c0_376, %c0_377] : memref<3x1x4xf32, #tpu.memory_space<vmem>>, vector<1x1x4xf32>
    %481 = vector.shape_cast %480 : vector<1x1x4xf32> to vector<1x4xf32>
    %cst_378 = arith.constant dense<0.000000e+00> : vector<1x64xf32>
    %482 = tpu.matmul %481, %479, %cst_378 {dimension_numbers = #tpu.dot_dimension_numbers<[1], [0], [0], [1], [0, 0, 1, 1], [], []>} : vector<1x4xf32>, vector<4x64xf32>, vector<1x64xf32> -> vector<1x64xf32>
    %483 = arith.addf %474, %482 : vector<1x64xf32>
    %484 = arith.negf %483 : vector<1x64xf32>
    %485 = math.exp %484 : vector<1x64xf32>
    %cst_379 = arith.constant 1.000000e+00 : f32
    %486 = vector.broadcast %cst_379 : f32 to vector<1x64xf32>
    %487 = arith.addf %486, %485 : vector<1x64xf32>
    %488 = arith.divf %486, %487 : vector<1x64xf32>
    %c0_380 = arith.constant 0 : index
    %c0_381 = arith.constant 0 : index
    %489 = vector.load %arg29[%c0_380, %c0_381] : memref<1x64xf32, #tpu.memory_space<vmem>>, vector<1x64xf32>
    tpu.vector_store %arg29[%c0_380, %c0_381], %488 {strides = array<i32>} : memref<1x64xf32, #tpu.memory_space<vmem>>, vector<1x64xf32>,
    %c0_382 = arith.constant 0 : index
    %c0_383 = arith.constant 0 : index
    %c0_384 = arith.constant 0 : index
    %490 = vector.load %arg25[%c0_382, %c0_383, %c0_384] : memref<4x64x64xf32, #tpu.memory_space<vmem>>, vector<1x64x64xf32>
    %491 = vector.shape_cast %490 : vector<1x64x64xf32> to vector<64x64xf32>
    %492 = vector.extract_strided_slice %242 {offsets = [0, 0], sizes = [64, 2], strides = [1, 1]} : vector<64x8xf32> to vector<64x2xf32>
    %cst_385 = arith.constant dense<0.000000e+00> : vector<64x2xf32>
    %493 = tpu.matmul %491, %492, %cst_385 {dimension_numbers = #tpu.dot_dimension_numbers<[1], [0], [0], [1], [0, 0, 1, 1], [], []>} : vector<64x64xf32>, vector<64x2xf32>, vector<64x2xf32> -> vector<64x2xf32>
    %c1_386 = arith.constant 1 : index
    %c0_387 = arith.constant 0 : index
    %c0_388 = arith.constant 0 : index
    %494 = vector.load %arg25[%c1_386, %c0_387, %c0_388] : memref<4x64x64xf32, #tpu.memory_space<vmem>>, vector<1x64x64xf32>
    %495 = vector.shape_cast %494 : vector<1x64x64xf32> to vector<64x64xf32>
    %496 = vector.extract_strided_slice %242 {offsets = [0, 2], sizes = [64, 2], strides = [1, 1]} : vector<64x8xf32> to vector<64x2xf32>
    %cst_389 = arith.constant dense<0.000000e+00> : vector<64x2xf32>
    %497 = tpu.matmul %495, %496, %cst_389 {dimension_numbers = #tpu.dot_dimension_numbers<[1], [0], [0], [1], [0, 0, 1, 1], [], []>} : vector<64x64xf32>, vector<64x2xf32>, vector<64x2xf32> -> vector<64x2xf32>
    %498 = arith.addf %493, %497 : vector<64x2xf32>
    %c2_390 = arith.constant 2 : index
    %c0_391 = arith.constant 0 : index
    %c0_392 = arith.constant 0 : index
    %499 = vector.load %arg25[%c2_390, %c0_391, %c0_392] : memref<4x64x64xf32, #tpu.memory_space<vmem>>, vector<1x64x64xf32>
    %500 = vector.shape_cast %499 : vector<1x64x64xf32> to vector<64x64xf32>
    %501 = vector.extract_strided_slice %242 {offsets = [0, 4], sizes = [64, 2], strides = [1, 1]} : vector<64x8xf32> to vector<64x2xf32>
    %cst_393 = arith.constant dense<0.000000e+00> : vector<64x2xf32>
    %502 = tpu.matmul %500, %501, %cst_393 {dimension_numbers = #tpu.dot_dimension_numbers<[1], [0], [0], [1], [0, 0, 1, 1], [], []>} : vector<64x64xf32>, vector<64x2xf32>, vector<64x2xf32> -> vector<64x2xf32>
    %503 = arith.addf %498, %502 : vector<64x2xf32>
    %c3_394 = arith.constant 3 : index
    %c0_395 = arith.constant 0 : index
    %c0_396 = arith.constant 0 : index
    %504 = vector.load %arg25[%c3_394, %c0_395, %c0_396] : memref<4x64x64xf32, #tpu.memory_space<vmem>>, vector<1x64x64xf32>
    %505 = vector.shape_cast %504 : vector<1x64x64xf32> to vector<64x64xf32>
    %506 = vector.extract_strided_slice %242 {offsets = [0, 6], sizes = [64, 2], strides = [1, 1]} : vector<64x8xf32> to vector<64x2xf32>
    %cst_397 = arith.constant dense<0.000000e+00> : vector<64x2xf32>
    %507 = tpu.matmul %505, %506, %cst_397 {dimension_numbers = #tpu.dot_dimension_numbers<[1], [0], [0], [1], [0, 0, 1, 1], [], []>} : vector<64x64xf32>, vector<64x2xf32>, vector<64x2xf32> -> vector<64x2xf32>
    %508 = arith.addf %503, %507 : vector<64x2xf32>
    %c0_398 = arith.constant 0 : index
    %c0_399 = arith.constant 0 : index
    %509 = vector.load %arg26[%c0_398, %c0_399] : memref<64x1xf32, #tpu.memory_space<vmem>>, vector<64x1xf32>
    %510 = vector.broadcast %509 : vector<64x1xf32> to vector<64x2xf32>
    %511 = arith.addf %508, %510 : vector<64x2xf32>
    %cst_400 = arith.constant 0.000000e+00 : f32
    %512 = vector.broadcast %cst_400 : f32 to vector<64x2xf32>
    %513 = arith.maximumf %511, %512 : vector<64x2xf32>
    %c0_401 = arith.constant 0 : index
    %c0_402 = arith.constant 0 : index
    %514 = vector.load %arg27[%c0_401, %c0_402] : memref<1x64xf32, #tpu.memory_space<vmem>>, vector<1x64xf32>
    %cst_403 = arith.constant dense<0.000000e+00> : vector<1x2xf32>
    %515 = tpu.matmul %514, %513, %cst_403 {dimension_numbers = #tpu.dot_dimension_numbers<[1], [0], [0], [1], [0, 0, 1, 1], [], []>} : vector<1x64xf32>, vector<64x2xf32>, vector<1x2xf32> -> vector<1x2xf32>
    %c0_404 = arith.constant 0 : index
    %c0_405 = arith.constant 0 : index
    %516 = vector.load %arg28[%c0_404, %c0_405] : memref<1x1xf32, #tpu.memory_space<vmem>>, vector<1x1xf32>
    %517 = vector.broadcast %516 : vector<1x1xf32> to vector<1x2xf32>
    %518 = arith.addf %515, %517 : vector<1x2xf32>
    %c0_406 = arith.constant 0 : index
    %c0_407 = arith.constant 0 : index
    %519 = vector.load %arg30[%c0_406, %c0_407] : memref<1x2xf32, #tpu.memory_space<vmem>>, vector<1x2xf32>
    tpu.vector_store %arg30[%c0_406, %c0_407], %518 {strides = array<i32>} : memref<1x2xf32, #tpu.memory_space<vmem>>, vector<1x2xf32>,
    return
  }
}

</mosaic_0001>

<bundles_post_ra>
// kernel: fcngru_forward.1
= control target key start
LH: loop header
LB: loop body
LE: loop exit
PB: predicated region body
PF: predicated region fallthrough
CT: control target
= control target key end

     0   :  { %s15014_s6 = smov 1   ;;  %s15015_s10 = smov 2   ;;  %s17580_s0 = inlined_call_operand.smem [shape: u32[31], index: -1, kind: input, shape index: {}] }
   0x1   :  { %s15082_s5 = sld [smem:[%s17580_s0]]   ;;  %s15016_s14 = smov 3  }
   0x2   :  { %s15087_s9 = sld [smem:[%s17580_s0 + %s15014_s6]]   ;;  %s15017_s18 = smov 4  }
   0x3   :  { %s15092_s13 = sld [smem:[%s17580_s0 + %s15015_s10]]   ;;  %s15018_s22 = smov 5  }
   0x4   :  { %s15097_s17 = sld [smem:[%s17580_s0 + %s15016_s14]]   ;;  %s15019_s26 = smov 6  }
   0x5   :  { %s15102_s21 = sld [smem:[%s17580_s0 + %s15017_s18]]   ;;  %s15020_s30 = smov 7  }
   0x6   :  { %s15107_s25 = sld [smem:[%s17580_s0 + %s15018_s22]]   ;;  %s15021_s4 = smov 8  }
   0x7   :  { %s15112_s29 = sld [smem:[%s17580_s0 + %s15019_s26]]   ;;  %s15022_s10 = smov 9  }
   0x8   :  { %s15117_s3 = sld [smem:[%s17580_s0 + %s15020_s30]]   ;;  %s15023_s15 = smov 10  }
   0x9   :  { %s15122_s8 = sld [smem:[%s17580_s0 + %s15021_s4]]   ;;  %s15024_s20 = smov 11  }
   0xa   :  { %s15127_s14 = sld [smem:[%s17580_s0 + %s15022_s10]]   ;;  %s15025_s26 = smov 12  }
   0xb   :  { %s15132_s19 = sld [smem:[%s17580_s0 + %s15023_s15]]   ;;  %s15026_s1 = smov 13  }
   0xc   :  { %s15137_s24 = sld [smem:[%s17580_s0 + %s15024_s20]]   ;;  %s15027_s7 = smov 14  }
   0xd   :  { %s15142_s30 = sld [smem:[%s17580_s0 + %s15025_s26]]   ;;  %s15028_s15 = smov 15  }
   0xe   :  { %s15147_s6 = sld [smem:[%s17580_s0 + %s15026_s1]]   ;;  %s15029_s22 = smov 16  }
   0xf   :  { %s15152_s12 = sld [smem:[%s17580_s0 + %s15027_s7]]   ;;  %s15030_s28 = smov 17  }
  0x10   :  { %s15157_s20 = sld [smem:[%s17580_s0 + %s15028_s15]]   ;;  %s15031_s7 = smov 18  }
  0x11   :  { %s15162_s27 = sld [smem:[%s17580_s0 + %s15029_s22]]   ;;  %s15032_s15 = smov 19  }
  0x12   :  { %17696 = sst [smem:[#allocation7_spill]] %s15137_s24  ;;  %s15033_s22 = smov 20  }
  0x13   :  { %17697 = sst [smem:[#allocation8_spill]] %s15142_s30  ;;  %s15042_s1 = smov 29  }
  0x14   :  { %s15167_s4 = sld [smem:[%s17580_s0 + %s15030_s28]]   ;;  %s15034_s28 = smov 21  }
  0x15   :  { %s15172_s24 = sld [smem:[%s17580_s0 + %s15031_s7]]   ;;  %s15035_s7 = smov 22  }
  0x16   :  { %s15177_s30 = sld [smem:[%s17580_s0 + %s15032_s15]]   ;;  %s15036_s15 = smov 23  }
  0x17   :  { %17698 = sst [smem:[#allocation9_spill]] %s15162_s27  ;;  %s15043_s10 = smov 30  }
  0x18   :  { %s15182_s27 = sld [smem:[%s17580_s0 + %s15033_s22]]   ;;  %s15037_s22 = smov 24  }
  0x1a   :  { %17699 = sst [smem:[#allocation10_spill]] %s15167_s4 }
  0x1b   :  { %17700 = sst [smem:[#allocation11_spill]] %s15172_s24 }
  0x1c   :  { %17701 = sst [smem:[#allocation12_spill]] %s15177_s30 }
  0x1d   :  { %s15187_s4 = sld [smem:[%s17580_s0 + %s15034_s28]]   ;;  %s15038_s28 = smov 25  }
  0x1e   :  { %17702 = sst [smem:[#allocation13_spill]] %s15182_s27 }
  0x1f   :  { %s15192_s24 = sld [smem:[%s17580_s0 + %s15035_s7]]   ;;  %s15039_s7 = smov 26  }
  0x20   :  { %s15197_s30 = sld [smem:[%s17580_s0 + %s15036_s15]]   ;;  %s15040_s15 = smov 27  }
  0x21   :  { %s15202_s27 = sld [smem:[%s17580_s0 + %s15037_s22]]   ;;  %s15041_s22 = smov 28  }
  0x23   :  { %17703 = sst [smem:[#allocation14_spill]] %s15187_s4 }
  0x24   :  { %s15207_s4 = sld [smem:[%s17580_s0 + %s15038_s28]]  }
  0x25   :  { %17704 = sst [smem:[#allocation15_spill]] %s15192_s24 }
  0x26   :  { %17705 = sst [smem:[#allocation16_spill]] %s15197_s30 }
  0x27   :  { %17706 = sst [smem:[#allocation17_spill]] %s15202_s27 }
  0x28   :  { %s15212_s24 = sld [smem:[%s17580_s0 + %s15039_s7]]  }
  0x29   :  { %s15217_s30 = sld [smem:[%s17580_s0 + %s15040_s15]]  }
  0x2a   :  { %17707 = sst [smem:[#allocation18_spill]] %s15207_s4 }
  0x2b   :  { %s10739_s27 = sld [smem:[%s17580_s0 + %s15041_s22]]  }
  0x2c   :  { %s15225_s4 = sld [smem:[%s17580_s0 + %s15042_s1]]  }
  0x2e   :  { %17708 = sst [smem:[#allocation19_spill]] %s15212_s24 }
  0x2f   :  { %s15230_s24 = sld [smem:[%s17580_s0 + %s15043_s10]]  }
  0x31   :  { %v67_v0 = vstv %s10739_s27 }
  0x32   :  { %68 = vst [vmem:[#allocation3] sm:$0x1] %v67_v0 }
  0x33   :  { %v10772_v1 = vld [vmem:[%s15092_s13 + $0x2] ss:$0 sm:$0xff]  ;;  %s15044_s15 = smov 2   ;;  %s15045_s16 = smov 6   ;;  %v10791_v3 = vld [vmem:[%s15092_s13 + $0x3] ss:$0 sm:$0xff] }
  0x34   :  { %v128_v2 = vld [vmem:[%s15082_s5] sm:$0xf]  ;;  %455 = vrot.lane.b32.xlu1 %v10772_v1, %s15044_s15  ;;  %v15046_v5 = vmov 0.0   ;;  %s15047_s0 = smov 3   ;;  %s15048_s27 = smov 1  }
  0x35   :  { %138 = vrot.lane.b32.xlu0 %v128_v2, %s15045_s16  ;;  %v10744_v4 = vld [vmem:[%s15092_s13 + $0x1] ss:$0 sm:$0xff]  ;;  %129 = vst [vmem:[#allocation2] sm:$0xff] %v15046_v5  ;;  %2410 = vst [vmem:[#allocation2 + $0x8] sm:$0xff] %v15046_v5 }
  0x36   :  { %2411 = vst [vmem:[#allocation2 + $0x10] sm:$0xff] %v15046_v5  ;;  %2412 = vst [vmem:[#allocation2 + $0x18] sm:$0xff] %v15046_v5 }
  0x37   :  { %2413 = vst [vmem:[#allocation2 + $0x20] sm:$0xff] %v15046_v5  ;;  %2414 = vst [vmem:[#allocation2 + $0x28] sm:$0xff] %v15046_v5 }
  0x38   :  { %2415 = vst [vmem:[#allocation2 + $0x30] sm:$0xff] %v15046_v5  ;;  %2416 = vst [vmem:[#allocation2 + $0x38] sm:$0xff] %v15046_v5  ;;  %617 = vrot.lane.b32.xlu1 %v10791_v3, %s15047_s0 }
  0x39   :  { %167 = vrot.lane.b32.xlu0 %v10744_v4, %s15048_s27 }
  0x3a   :  { %69 = vsyncpa [#allocation5], 0  ;;  %v10810_v6 = vld [vmem:[%s15092_s13 + $0x4] ss:$0 sm:$0xff]  ;;  %s15049_s18 = smov 4   ;;  %vm141_vm0 = vcmask 568368  }
  0x3b   :  { %v10745_v7 = vld [vmem:[%s15087_s9 + $0x40] sm:$0xff]  ;;  %vm183_vm1 = vcmask 31744   ;;  %s15050_s22 = smov 126   ;;  %s15051_s23 = smov 127   ;;  %v10884_v17 = vld [vmem:[%s15092_s13 + $0x8] ss:$0 sm:$0xff] }
  0x3c   :  { %779 = vrot.lane.b32.xlu1 %v10810_v6, %s15049_s18  ;;  %12292 = vmatprep.mubr.msk.f32.mxu0 %vm183_vm1, %v10745_v7  ;;  %v10865_v15 = vld [vmem:[%s15092_s13 + $0x7] ss:$0 sm:$0xff]  ;;  %v10829_v16 = vld [vmem:[%s15092_s13 + $0x5] ss:$0 sm:$0xff]  ;;  %s15052_s26 = smov 7   ;;  %s15053_s1 = smov 5  }
  0x3d   :  { %s15054_s28 = smov 8   ;;  %s15055_s2 = smov 125   ;;  %v10903_v20 = vld [vmem:[%s15092_s13 + $0x9] ss:$0 sm:$0xff]  ;;  %v10922_v22 = vld [vmem:[%s15092_s13 + $0xa] ss:$0 sm:$0xff] }
  0x3e   :  { %s15056_s10 = smov 9   ;;  %s15057_s7 = smov 124   ;;  %v10941_v23 = vld [vmem:[%s15092_s13 + $0xb] ss:$0 sm:$0xff]  ;;  %v10960_v24 = vld [vmem:[%s15092_s13 + $0xc] ss:$0 sm:$0xff] }
  0x3f   :  { %s15058_s11 = smov 10   ;;  %vm208_vm2 = vcmask 1043456   ;;  %v10742_v25 = vld [vmem:[%s15092_s13] ss:$0 sm:$0xff]  ;;  %v10746_v28 = vld [vmem:[%s15087_s9 + $0x48] sm:$0xff]  ;;  %v10747_v30 = vld [vmem:[%s15087_s9 + $0x50] sm:$0xff] }
  0x40   :  { %v10748_v33 = vld [vmem:[%s15087_s9 + $0x58] sm:$0xff]  ;;  %v10749_v35 = vld [vmem:[%s15087_s9 + $0x60] sm:$0xff]  ;;  %s15061_s13 = smov 123   ;;  %v10750_v37 = vld [vmem:[%s15087_s9 + $0x68] sm:$0xff]  ;;  %vm2300_vm3 = vcmask 1046528   ;;  %vm15069_vm4 = vmmov 1  }
  0x41   :  { %v10751_v38 = vld [vmem:[%s15087_s9 + $0x70] sm:$0xff]  ;;  %v10752_v40 = vld [vmem:[%s15087_s9 + $0x78] sm:$0xff]  ;;  %v152_v42 = vld [vmem:[%s15087_s9] sm:$0xff]  ;;  %vm2275_vm6 = vcmask 515072   ;;  %vm2449_vm7 = vcmask 285720   ;;  %vm2548_vm8 = vcmask 523264  }
  0x42   :  { %v153_v44 = vld [vmem:[%s15087_s9 + $0x8] sm:$0xff]  ;;  %v154_v47 = vld [vmem:[%s15087_s9 + $0x10] sm:$0xff]  ;;  %v155_v50 = vld [vmem:[%s15087_s9 + $0x18] sm:$0xff]  ;;  %vm3821_vm9 = vcmask 252928   ;;  %vm3994_vm10 = vcmask 146448   ;;  %vm4971_vm11 = vcmask 121856  }
  0x43   :  { %v156_v51 = vld [vmem:[%s15087_s9 + $0x20] sm:$0xff]  ;;  %v157_v54 = vld [vmem:[%s15087_s9 + $0x28] sm:$0xff]  ;;  %v158_v56 = vld [vmem:[%s15087_s9 + $0x30] sm:$0xff]  ;;  %vm5105_vm12 = vcmask 64512   ;;  %vm6778_vm13 = vcmask 1041408   ;;  %vm6761_vm14 = vcmask 15360  }
  0x44   :  { %v159_v58 = vld [vmem:[%s15087_s9 + $0x38] sm:$0xff]  ;;  %v10773_v59 = vld [vmem:[%s15087_s9 + $0x80] sm:$0xff]  ;;  %v10774_v60 = vld [vmem:[%s15087_s9 + $0x88] sm:$0xff]  ;;  %vm8475_vm15 = vcmask 138248  }
  0x45   :  { %v10775_v61 = vld [vmem:[%s15087_s9 + $0x90] sm:$0xff]  ;;  %v10776_v63 = vld [vmem:[%s15087_s9 + $0x98] sm:$0xff]  ;;  %v10777_v0 = vld [vmem:[%s15087_s9 + $0xa0] sm:$0xff] }
  0x46   :  { %v10778_v1 = vld [vmem:[%s15087_s9 + $0xa8] sm:$0xff]  ;;  %v10779_v2 = vld [vmem:[%s15087_s9 + $0xb0] sm:$0xff]  ;;  %v10780_v3 = vld [vmem:[%s15087_s9 + $0xb8] sm:$0xff] }
  0x47   :  { %v10792_v4 = vld [vmem:[%s15087_s9 + $0xc0] sm:$0xff]  ;;  %v10793_v6 = vld [vmem:[%s15087_s9 + $0xc8] sm:$0xff]  ;;  %v10794_v7 = vld [vmem:[%s15087_s9 + $0xd0] sm:$0xff] }
  0x48   :  { %vm15523_vm5 = vmpackc.low %vm2300_vm3, %vm15069_vm4  ;;  %vm9198_vm3 = vcmask 269320   ;;  %vm15072_vm4 = vmmov 0  }
  0xa6   :  { %v456_v9 = vpop.permute.xlu1 %455 }
  0xa7   :  { %v139_v8 = vpop.permute.xlu0 %138 }
  0xa8   :  { %142 = vst.msk [vmem:[#allocation2] sm:$0xf] %vm141_vm0, %v139_v8  ;;  %v10795_v8 = vld [vmem:[%s15087_s9 + $0xd8] sm:$0xff]  ;;  %vm9012_vm0 = vcmask 130048  }
  0xaa   :  { %v618_v14 = vpop.permute.xlu1 %617 }
  0xab   :  { %v168_v10 = vpop.permute.xlu0 %167 }
  0xae   :  { %v780_v19 = vpop.permute.xlu1 %779 }
  0xaf   :  { %v15252_v11 = vld [vmem:[#allocation2] sm:$0xf] }
  0xb0   :  { %2409 = vst [vmem:[#allocation2] sm:$0xff] %v15046_v5  ;;  %v170_v12 = vmul.f32 %v168_v10, %v15252_v11  ;;  %v458_v13 = vmul.f32 %v456_v9, %v15252_v11  ;;  %v620_v18 = vmul.f32 %v618_v14, %v15252_v11  ;;  %v782_v21 = vmul.f32 %v780_v19, %v15252_v11  ;;  %v10796_v9 = vld [vmem:[%s15087_s9 + $0xe0] sm:$0xff]  ;;  %v10797_v10 = vld [vmem:[%s15087_s9 + $0xe8] sm:$0xff]  ;;  %v10817_v19 = vld [vmem:[%s15087_s9 + $0x130] sm:$0xff] }
  0xb1   :  { %v151_v29 = vmul.f32 %v10742_v25, %v15252_v11  ;;  %v10812_v14 = vld [vmem:[%s15087_s9 + $0x108] sm:$0xff] }
  0xb2   :  { %469 = vrot.lane.b32.xlu1 %v458_v13, %s15050_s22  ;;  %181 = vrot.lane.b32.xlu0 %v170_v12, %s15051_s23  ;;  %v10799_v12 = vld [vmem:[%s15087_s9 + $0xf8] sm:$0xff]  ;;  %v10811_v13 = vld [vmem:[%s15087_s9 + $0x100] sm:$0xff] }
  0xb6   :  { %1254 = vrot.lane.b32.xlu1 %v10865_v15, %s15052_s26  ;;  %941 = vrot.lane.b32.xlu0 %v10829_v16, %s15053_s1  ;;  %s15059_s26 = smov 11   ;;  %v10813_v15 = vld [vmem:[%s15087_s9 + $0x110] sm:$0xff]  ;;  %v10814_v16 = vld [vmem:[%s15087_s9 + $0x118] sm:$0xff] }
  0xba   :  { %1416 = vrot.lane.b32.xlu1 %v10884_v17, %s15054_s28  ;;  %631 = vrot.lane.b32.xlu0 %v620_v18, %s15055_s2  ;;  %s15060_s28 = smov 12   ;;  %v10815_v17 = vld [vmem:[%s15087_s9 + $0x120] sm:$0xff]  ;;  %v10816_v18 = vld [vmem:[%s15087_s9 + $0x128] sm:$0xff] }
  0xbe   :  { %1578 = vrot.lane.b32.xlu1 %v10903_v20, %s15056_s10  ;;  %793 = vrot.lane.b32.xlu0 %v782_v21, %s15057_s7  ;;  %s15062_s10 = smov 122   ;;  %v10818_v20 = vld [vmem:[%s15087_s9 + $0x138] sm:$0xff]  ;;  %v10830_v21 = vld [vmem:[%s15087_s9 + $0x140] sm:$0xff] }
  0xc2   :  { %1740 = vrot.lane.b32.xlu1 %v10922_v22, %s15058_s11  ;;  %s15063_s11 = smov 121  }
  0xc6   :  { %1902 = vrot.lane.b32.xlu1 %v10941_v23, %s15059_s26  ;;  %s15064_s26 = smov 118   ;;  %v10831_v23 = vld [vmem:[%s15087_s9 + $0x148] sm:$0xff] }
  0xca   :  { %2064 = vrot.lane.b32.xlu1 %v10960_v24, %s15060_s28  ;;  %s15065_s28 = smov 120   ;;  %v10832_v24 = vld [vmem:[%s15087_s9 + $0x150] sm:$0xff] }
 0x124   :  { %v470_v26 = vpop.permute.xlu1 %469  ;;  %v182_v27 = vpop.permute.xlu0 %181 }
 0x125   :  { %12290 = vmatprep.subr.msk.mxu0 %vm208_vm2, %v182_v27 }
 0x126   :  { %12291 = vmatpush3.msk.msra.mxu0 %vm208_vm2, %v182_v27  ;;  %v10834_v27 = vld [vmem:[%s15087_s9 + $0x160] sm:$0xff] }
 0x127   :  { %12293 = vmatmul.mubr.msk.f32.vlgmr.msra.gmra.mrb[0].mxu0 %vm183_vm1, %v10746_v28  ;;  %12304 = vmatprep.subr.msk.mxu0 %vm208_vm2, %v151_v29 }
 0x128   :  { %v1255_v31 = vpop.permute.xlu1 %1254  ;;  %12305 = vmatpush3.msk.msra.mxu0 %vm208_vm2, %v151_v29  ;;  %v942_v32 = vpop.permute.xlu0 %941  ;;  %12295 = vmatprep.mubr.msk.f32.mxu0 %vm183_vm1, %v10747_v30  ;;  %v10835_v29 = vld [vmem:[%s15087_s9 + $0x168] sm:$0xff]  ;;  %v10836_v30 = vld [vmem:[%s15087_s9 + $0x170] sm:$0xff] }
 0x129   :  { %v944_v34 = vmul.f32 %v942_v32, %v15252_v11  ;;  %12318 = vmatprep.subr.msk.mxu0 %vm208_vm2, %v470_v26  ;;  %v1257_v41 = vmul.f32 %v1255_v31, %v15252_v11  ;;  %v10837_v31 = vld [vmem:[%s15087_s9 + $0x178] sm:$0xff]  ;;  %v10847_v32 = vld [vmem:[%s15087_s9 + $0x180] sm:$0xff] }
 0x12b   :  { %12296 = vmatmul.mubr.msk.f32.gmra.mrb[2].mxu0 %vm183_vm1, %v10748_v33  ;;  %955 = vrot.lane.b32.xlu0 %v944_v34, %s15061_s13  ;;  %v10848_v33 = vld [vmem:[%s15087_s9 + $0x188] sm:$0xff]  ;;  %v10849_v34 = vld [vmem:[%s15087_s9 + $0x190] sm:$0xff] }
 0x12c   :  { %v1417_v36 = vpop.permute.xlu1 %1416  ;;  %12298 = vmatprep.mubr.msk.f32.mxu0 %vm183_vm1, %v10749_v35  ;;  %v632_v48 = vpop.permute.xlu0 %631 }
 0x12d   :  { %v1419_v46 = vmul.f32 %v1417_v36, %v15252_v11  ;;  %v10850_v36 = vld [vmem:[%s15087_s9 + $0x198] sm:$0xff] }
 0x12f   :  { %12299 = vmatmul.mubr.msk.f32.gmra.mrb[4].mxu0 %vm183_vm1, %v10750_v37  ;;  %1106 = vrot.lane.b32.xlu0 %v15252_v11, %s15062_s10  ;;  %v10851_v37 = vld [vmem:[%s15087_s9 + $0x1a0] sm:$0xff] }
 0x130   :  { %v1579_v39 = vpop.permute.xlu1 %1578  ;;  %12301 = vmatprep.mubr.msk.f32.mxu0 %vm183_vm1, %v10751_v38  ;;  %v794_v62 = vpop.permute.xlu0 %793  ;;  %v10852_v38 = vld [vmem:[%s15087_s9 + $0x1a8] sm:$0xff] }
 0x131   :  { %v1581_v52 = vmul.f32 %v1579_v39, %v15252_v11  ;;  %v10853_v39 = vld [vmem:[%s15087_s9 + $0x1b0] sm:$0xff] }
 0x133   :  { %12302 = vmatmul.mubr.msk.f32.gmra.mrb[6].mxu0 %vm183_vm1, %v10752_v40  ;;  %1268 = vrot.lane.b32.xlu0 %v1257_v41, %s15063_s11  ;;  %s15066_s11 = smov 119   ;;  %v10854_v40 = vld [vmem:[%s15087_s9 + $0x1b8] sm:$0xff]  ;;  %v10866_v41 = vld [vmem:[%s15087_s9 + $0x1c0] sm:$0xff] }
 0x134   :  { %v1741_v43 = vpop.permute.xlu1 %1740  ;;  %12306 = vmatprep.mubr.msk.f32.mxu0 %vm183_vm1, %v152_v42  ;;  %v10867_v42 = vld [vmem:[%s15087_s9 + $0x1c8] sm:$0xff] }
 0x135   :  { %v1743_v45 = vmul.f32 %v1741_v43, %v15252_v11  ;;  %v10868_v43 = vld [vmem:[%s15087_s9 + $0x1d0] sm:$0xff] }
 0x137   :  { %1754 = vrot.lane.b32.xlu1 %v1743_v45, %s15064_s26  ;;  %12307 = vmatmul.mubr.msk.f32.vlgmr.msra.gmra.mrb[0].mxu0 %vm183_vm1, %v153_v44  ;;  %s15067_s26 = smov 116   ;;  %v10869_v45 = vld [vmem:[%s15087_s9 + $0x1d8] sm:$0xff] }
 0x138   :  { %12319 = vmatpush3.msk.msra.mxu0 %vm208_vm2, %v470_v26  ;;  %1430 = vrot.lane.b32.xlu0 %v1419_v46, %s15065_s28  ;;  %v1903_v49 = vpop.permute.xlu1 %1902  ;;  %s15068_s28 = smov 117   ;;  %v10833_v26 = vld [vmem:[%s15087_s9 + $0x158] sm:$0xff]  ;;  %v10870_v46 = vld [vmem:[%s15087_s9 + $0x1e0] sm:$0xff] }
 0x139   :  { %12332 = vmatprep.subr.msk.mxu0 %vm208_vm2, %v632_v48  ;;  %12309 = vmatprep.mubr.msk.f32.mxu0 %vm183_vm1, %v154_v47  ;;  %v1905_v57 = vmul.f32 %v1903_v49, %v15252_v11  ;;  %v10871_v47 = vld [vmem:[%s15087_s9 + $0x1e8] sm:$0xff]  ;;  %v10873_v49 = vld [vmem:[%s15087_s9 + $0x1f8] sm:$0xff] }
 0x13b   :  { %12310 = vmatmul.mubr.msk.f32.gmra.mrb[2].mxu0 %vm183_vm1, %v155_v50  ;;  %v10885_v50 = vld [vmem:[%s15087_s9 + $0x200] sm:$0xff] }
 0x13c   :  { %1592 = vrot.lane.b32.xlu0 %v1581_v52, %s15066_s11  ;;  %v2065_v53 = vpop.permute.xlu1 %2064  ;;  %12312 = vmatprep.mubr.msk.f32.mxu0 %vm183_vm1, %v156_v51  ;;  %v10886_v51 = vld [vmem:[%s15087_s9 + $0x208] sm:$0xff]  ;;  %v10887_v52 = vld [vmem:[%s15087_s9 + $0x210] sm:$0xff] }
 0x13d   :  { %v2067_v55 = vmul.f32 %v2065_v53, %v15252_v11  ;;  %v10798_v11 = vld [vmem:[%s15087_s9 + $0xf0] sm:$0xff] }
 0x13f   :  { %2078 = vrot.lane.b32.xlu1 %v2067_v55, %s15067_s26  ;;  %12313 = vmatmul.mubr.msk.f32.gmra.mrb[4].mxu0 %vm183_vm1, %v157_v54  ;;  %v10888_v54 = vld [vmem:[%s15087_s9 + $0x218] sm:$0xff]  ;;  %v10889_v55 = vld [vmem:[%s15087_s9 + $0x220] sm:$0xff] }
 0x140   :  { %1916 = vrot.lane.b32.xlu0 %v1905_v57, %s15068_s28  ;;  %12315 = vmatprep.mubr.msk.f32.mxu0 %vm183_vm1, %v158_v56  ;;  %v10890_v56 = vld [vmem:[%s15087_s9 + $0x228] sm:$0xff]  ;;  %v10891_v57 = vld [vmem:[%s15087_s9 + $0x230] sm:$0xff] }
 0x143   :  { %12316 = vmatmul.mubr.msk.f32.gmra.mrb[6].mxu0 %vm183_vm1, %v159_v58  ;;  %v10892_v58 = vld [vmem:[%s15087_s9 + $0x238] sm:$0xff] }
 0x144   :  { %12320 = vmatprep.mubr.msk.f32.mxu0 %vm183_vm1, %v10773_v59  ;;  %v10904_v59 = vld [vmem:[%s15087_s9 + $0x240] sm:$0xff] }
 0x147   :  { %12321 = vmatmul.mubr.msk.f32.vlgmr.msra.gmra.mrb[0].mxu0 %vm183_vm1, %v10774_v60  ;;  %v10905_v60 = vld [vmem:[%s15087_s9 + $0x248] sm:$0xff] }
 0x148   :  { %12333 = vmatpush3.msk.msra.mxu0 %vm208_vm2, %v632_v48  ;;  %12323 = vmatprep.mubr.msk.f32.mxu0 %vm183_vm1, %v10775_v61  ;;  %v10872_v48 = vld [vmem:[%s15087_s9 + $0x1f0] sm:$0xff] }
 0x149   :  { %12346 = vmatprep.subr.msk.mxu0 %vm208_vm2, %v794_v62  ;;  %v10906_v61 = vld [vmem:[%s15087_s9 + $0x250] sm:$0xff] }
 0x14b   :  { %12324 = vmatmul.mubr.msk.f32.gmra.mrb[2].mxu0 %vm183_vm1, %v10776_v63  ;;  %v10907_v63 = vld [vmem:[%s15087_s9 + $0x258] sm:$0xff] }
 0x14c   :  { %12326 = vmatprep.mubr.msk.f32.mxu0 %vm183_vm1, %v10777_v0  ;;  %v10908_v0 = vld [vmem:[%s15087_s9 + $0x260] sm:$0xff] }
 0x14f   :  { %12327 = vmatmul.mubr.msk.f32.gmra.mrb[4].mxu0 %vm183_vm1, %v10778_v1  ;;  %v10909_v1 = vld [vmem:[%s15087_s9 + $0x268] sm:$0xff] }
 0x150   :  { %12329 = vmatprep.mubr.msk.f32.mxu0 %vm183_vm1, %v10779_v2  ;;  %v10910_v2 = vld [vmem:[%s15087_s9 + $0x270] sm:$0xff] }
 0x153   :  { %12330 = vmatmul.mubr.msk.f32.gmra.mrb[6].mxu0 %vm183_vm1, %v10780_v3  ;;  %v10911_v3 = vld [vmem:[%s15087_s9 + $0x278] sm:$0xff] }
 0x154   :  { %12334 = vmatprep.mubr.msk.f32.mxu0 %vm183_vm1, %v10792_v4  ;;  %v10923_v4 = vld [vmem:[%s15087_s9 + $0x280] sm:$0xff] }
 0x157   :  { %12335 = vmatmul.mubr.msk.f32.vlgmr.msra.gmra.mrb[0].mxu0 %vm183_vm1, %v10793_v6  ;;  %v10924_v6 = vld [vmem:[%s15087_s9 + $0x288] sm:$0xff] }
 0x158   :  { %12347 = vmatpush3.msk.msra.mxu0 %vm208_vm2, %v794_v62  ;;  %12337 = vmatprep.mubr.msk.f32.mxu0 %vm183_vm1, %v10794_v7  ;;  %v10925_v7 = vld [vmem:[%s15087_s9 + $0x290] sm:$0xff] }
 0x15b   :  { %12338 = vmatmul.mubr.msk.f32.gmra.mrb[2].mxu0 %vm183_vm1, %v10795_v8 }
 0x15c   :  { %12340 = vmatprep.mubr.msk.f32.mxu0 %vm183_vm1, %v10796_v9  ;;  %v10926_v9 = vld [vmem:[%s15087_s9 + $0x298] sm:$0xff] }
 0x15f   :  { %12341 = vmatmul.mubr.msk.f32.gmra.mrb[4].mxu0 %vm183_vm1, %v10797_v10  ;;  %v10927_v10 = vld [vmem:[%s15087_s9 + $0x2a0] sm:$0xff] }
 0x160   :  { %12343 = vmatprep.mubr.msk.f32.mxu0 %vm183_vm1, %v10798_v11  ;;  %v10928_v11 = vld [vmem:[%s15087_s9 + $0x2a8] sm:$0xff] }
 0x163   :  { %12344 = vmatmul.mubr.msk.f32.gmra.mrb[6].mxu0 %vm183_vm1, %v10799_v12  ;;  %v10929_v12 = vld [vmem:[%s15087_s9 + $0x2b0] sm:$0xff] }
 0x164   :  { %12348 = vmatprep.mubr.msk.f32.mxu0 %vm183_vm1, %v10811_v13  ;;  %v10930_v13 = vld [vmem:[%s15087_s9 + $0x2b8] sm:$0xff] }
 0x167   :  { %12349 = vmatmul.mubr.msk.f32.vlgmr.msra.gmra.mrb[0].mxu0 %vm183_vm1, %v10812_v14  ;;  %v10942_v14 = vld [vmem:[%s15087_s9 + $0x2c0] sm:$0xff] }
 0x168   :  { %12351 = vmatprep.mubr.msk.f32.mxu0 %vm183_vm1, %v10813_v15  ;;  %v10943_v15 = vld [vmem:[%s15087_s9 + $0x2c8] sm:$0xff] }
 0x16b   :  { %12352 = vmatmul.mubr.msk.f32.gmra.mrb[2].mxu0 %vm183_vm1, %v10814_v16  ;;  %v10944_v16 = vld [vmem:[%s15087_s9 + $0x2d0] sm:$0xff] }
 0x16c   :  { %12354 = vmatprep.mubr.msk.f32.mxu0 %vm183_vm1, %v10815_v17  ;;  %v10945_v17 = vld [vmem:[%s15087_s9 + $0x2d8] sm:$0xff] }
 0x16f   :  { %12355 = vmatmul.mubr.msk.f32.gmra.mrb[4].mxu0 %vm183_vm1, %v10816_v18  ;;  %v10946_v18 = vld [vmem:[%s15087_s9 + $0x2e0] sm:$0xff] }
 0x170   :  { %12357 = vmatprep.mubr.msk.f32.mxu0 %vm183_vm1, %v10817_v19  ;;  %v10947_v19 = vld [vmem:[%s15087_s9 + $0x2e8] sm:$0xff] }
 0x173   :  { %12358 = vmatmul.mubr.msk.f32.gmra.mrb[6].mxu0 %vm183_vm1, %v10818_v20  ;;  %v10948_v20 = vld [vmem:[%s15087_s9 + $0x2f0] sm:$0xff] }
 0x174   :  { %12362 = vmatprep.mubr.msk.f32.mxu0 %vm183_vm1, %v10830_v21  ;;  %v10949_v21 = vld [vmem:[%s15087_s9 + $0x2f8] sm:$0xff] }
 0x19d   :  { %v956_v22 = vpop.permute.xlu0 %955 }
 0x19e   :  { %12360 = vmatprep.subr.msk.mxu0 %vm208_vm2, %v956_v22 }
 0x19f   :  { %12361 = vmatpush3.msk.msra.mxu0 %vm208_vm2, %v956_v22  ;;  %v10961_v22 = vld [vmem:[%s15087_s9 + $0x300] sm:$0xff] }
 0x1a0   :  { %12363 = vmatmul.mubr.msk.f32.vlgmr.msra.gmra.mrb[0].mxu0 %vm183_vm1, %v10831_v23  ;;  %v10962_v23 = vld [vmem:[%s15087_s9 + $0x308] sm:$0xff] }
 0x1a1   :  { %v1107_v25 = vpop.permute.xlu0 %1106  ;;  %12365 = vmatprep.mubr.msk.f32.mxu0 %vm183_vm1, %v10832_v24  ;;  %v10963_v24 = vld [vmem:[%s15087_s9 + $0x310] sm:$0xff] }
 0x1a2   :  { %12374 = vmatprep.subr.msk.mxu0 %vm208_vm2, %v1107_v25 }
 0x1a3   :  { %12375 = vmatpush3.msk.msra.mxu0 %vm208_vm2, %v1107_v25  ;;  %v10964_v25 = vld [vmem:[%s15087_s9 + $0x318] sm:$0xff] }
 0x1a4   :  { %12366 = vmatmul.mubr.msk.f32.gmra.mrb[2].mxu0 %vm183_vm1, %v10833_v26  ;;  %v10965_v26 = vld [vmem:[%s15087_s9 + $0x320] sm:$0xff] }
 0x1a5   :  { %v1269_v28 = vpop.permute.xlu0 %1268  ;;  %12368 = vmatprep.mubr.msk.f32.mxu0 %vm183_vm1, %v10834_v27  ;;  %v10966_v27 = vld [vmem:[%s15087_s9 + $0x328] sm:$0xff] }
 0x1a6   :  { %12388 = vmatprep.subr.msk.mxu0 %vm208_vm2, %v1269_v28 }
 0x1a8   :  { %12369 = vmatmul.mubr.msk.f32.gmra.mrb[4].mxu0 %vm183_vm1, %v10835_v29  ;;  %v10968_v29 = vld [vmem:[%s15087_s9 + $0x338] sm:$0xff] }
 0x1a9   :  { %12371 = vmatprep.mubr.msk.f32.mxu0 %vm183_vm1, %v10836_v30  ;;  %v1755_v53 = vpop.permute.xlu1 %1754  ;;  %v2267_v30 = vld [vmem:[%s15097_s17] sm:$0xff] }
 0x1aa   :  { %v1431_v35 = vpop.permute.xlu0 %1430 }
 0x1ac   :  { %12372 = vmatmul.mubr.msk.f32.gmra.mrb[6].mxu0 %vm183_vm1, %v10837_v31  ;;  %v2268_v31 = vld [vmem:[%s15097_s17 + $0x8] sm:$0xff] }
 0x1ad   :  { %12376 = vmatprep.mubr.msk.f32.mxu0 %vm183_vm1, %v10847_v32  ;;  %v2269_v32 = vld [vmem:[%s15097_s17 + $0x10] sm:$0xff] }
 0x1ae   :  { %v1593_v44 = vpop.permute.xlu0 %1592 }
 0x1b0   :  { %12377 = vmatmul.mubr.msk.f32.vlgmr.msra.gmra.mrb[0].mxu0 %vm183_vm1, %v10848_v33  ;;  %v13516_v33 = vpack.c.bf16 %v2268_v31, %v2267_v30 }
 0x1b1   :  { %12389 = vmatpush3.msk.msra.mxu0 %vm208_vm2, %v1269_v28  ;;  %12379 = vmatprep.mubr.msk.f32.mxu0 %vm183_vm1, %v10849_v34  ;;  %v2079_v8 = vpop.permute.xlu1 %2078  ;;  %v10967_v28 = vld [vmem:[%s15087_s9 + $0x330] sm:$0xff]  ;;  %v2270_v34 = vld [vmem:[%s15097_s17 + $0x18] sm:$0xff]  ;;  %s17727_s9 = sld [smem:[#allocation8_spill]] }
 0x1b2   :  { %12402 = vmatprep.subr.msk.mxu0 %vm208_vm2, %v1431_v35  ;;  %v1917_v62 = vpop.permute.xlu0 %1916  ;;  %13517 = vmatprep.subr.bf16.mxu1 %v13516_v33 }
 0x1b3   :  { %13519 = vmatpush3.bf16.msra.mxu1 %v13516_v33 }
 0x1b4   :  { %12380 = vmatmul.mubr.msk.f32.gmra.mrb[2].mxu0 %vm183_vm1, %v10850_v36  ;;  %v2271_v36 = vld [vmem:[%s15097_s17 + $0x20] sm:$0xff] }
 0x1b5   :  { %12382 = vmatprep.mubr.msk.f32.mxu0 %vm183_vm1, %v10851_v37  ;;  %v2272_v37 = vld [vmem:[%s15097_s17 + $0x28] sm:$0xff] }
 0x1b8   :  { %12383 = vmatmul.mubr.msk.f32.gmra.mrb[4].mxu0 %vm183_vm1, %v10852_v38  ;;  %v13524_v38 = vpack.c.bf16 %v2272_v37, %v2271_v36 }
 0x1b9   :  { %12385 = vmatprep.mubr.msk.f32.mxu0 %vm183_vm1, %v10853_v39  ;;  %v2273_v39 = vld [vmem:[%s15097_s17 + $0x30] sm:$0xff] }
 0x1bc   :  { %12386 = vmatmul.mubr.msk.f32.gmra.mrb[6].mxu0 %vm183_vm1, %v10854_v40  ;;  %v2274_v40 = vld [vmem:[%s15097_s17 + $0x38] sm:$0x7f]  ;;  %s17787_s17 = sld [smem:[#allocation7_spill]] }
 0x1bd   :  { %12390 = vmatprep.mubr.msk.f32.mxu0 %vm183_vm1, %v10866_v41  ;;  %v13528_v41 = vpack.c.bf16 %v2274_v40, %v2273_v39  ;;  %v11049_v40 = vld [vmem:[%s15107_s25 + $0x4] ss:$0 sm:$0xff] }
 0x1c0   :  { %12391 = vmatmul.mubr.msk.f32.vlgmr.msra.gmra.mrb[0].mxu0 %vm183_vm1, %v10867_v42 }
 0x1c1   :  { %12403 = vmatpush3.msk.msra.mxu0 %vm208_vm2, %v1431_v35  ;;  %12393 = vmatprep.mubr.msk.f32.mxu0 %vm183_vm1, %v10868_v43  ;;  %v13520_v35 = vpack.c.bf16 %v2270_v34, %v2269_v32 }
 0x1c2   :  { %12416 = vmatprep.subr.msk.mxu0 %vm208_vm2, %v1593_v44 }
 0x1c3   :  { %13521 = vmatprep.subr.bf16.mxu1 %v13520_v35 }
 0x1c4   :  { %12394 = vmatmul.mubr.msk.f32.gmra.mrb[2].mxu0 %vm183_vm1, %v10869_v45  ;;  %13523 = vmatpush3.bf16.msra.mxu1 %v13520_v35 }
 0x1c5   :  { %12396 = vmatprep.mubr.msk.f32.mxu0 %vm183_vm1, %v10870_v46  ;;  %13525 = vmatprep.subr.bf16.mxu1 %v13524_v38 }
 0x1c8   :  { %12397 = vmatmul.mubr.msk.f32.gmra.mrb[4].mxu0 %vm183_vm1, %v10871_v47  ;;  %13527 = vmatpush3.bf16.msra.mxu1 %v13524_v38 }
 0x1c9   :  { %12399 = vmatprep.mubr.msk.f32.mxu0 %vm183_vm1, %v10872_v48  ;;  %13530 = vmatprep.subr.msk.bf16.mxu1 %vm15523_vm5, %v13528_v41 }
 0x1cc   :  { %12400 = vmatmul.mubr.msk.f32.gmra.mrb[6].mxu0 %vm183_vm1, %v10873_v49  ;;  %13533 = vmatpush3.bf16.msk.msra.mxu1 %vm15523_vm5, %v13528_v41 }
 0x1cd   :  { %12404 = vmatprep.mubr.msk.f32.mxu0 %vm183_vm1, %v10885_v50 }
 0x1d0   :  { %12405 = vmatmul.mubr.msk.f32.vlgmr.msra.gmra.mrb[0].mxu0 %vm183_vm1, %v10886_v51 }
 0x1d1   :  { %12417 = vmatpush3.msk.msra.mxu0 %vm208_vm2, %v1593_v44  ;;  %12407 = vmatprep.mubr.msk.f32.mxu0 %vm183_vm1, %v10887_v52 }
 0x1d2   :  { %12430 = vmatprep.subr.msk.mxu0 %vm208_vm2, %v1755_v53 }
 0x1d4   :  { %12408 = vmatmul.mubr.msk.f32.gmra.mrb[2].mxu0 %vm183_vm1, %v10888_v54 }
 0x1d5   :  { %12410 = vmatprep.mubr.msk.f32.mxu0 %vm183_vm1, %v10889_v55 }
 0x1d8   :  { %12411 = vmatmul.mubr.msk.f32.gmra.mrb[4].mxu0 %vm183_vm1, %v10890_v56 }
 0x1d9   :  { %12413 = vmatprep.mubr.msk.f32.mxu0 %vm183_vm1, %v10891_v57 }
 0x1dc   :  { %12414 = vmatmul.mubr.msk.f32.gmra.mrb[6].mxu0 %vm183_vm1, %v10892_v58 }
 0x1dd   :  { %12418 = vmatprep.mubr.msk.f32.mxu0 %vm183_vm1, %v10904_v59  ;;  %v10989_v59 = vld [vmem:[%s15107_s25 + $0x1] ss:$0 sm:$0xff] }
 0x1e0   :  { %12419 = vmatmul.mubr.msk.f32.vlgmr.msra.gmra.mrb[0].mxu0 %vm183_vm1, %v10905_v60 }
 0x1e1   :  { %12431 = vmatpush3.msk.msra.mxu0 %vm208_vm2, %v1755_v53  ;;  %12421 = vmatprep.mubr.msk.f32.mxu0 %vm183_vm1, %v10906_v61 }
 0x1e2   :  { %12444 = vmatprep.subr.msk.mxu0 %vm208_vm2, %v1917_v62 }
 0x1e4   :  { %12422 = vmatmul.mubr.msk.f32.gmra.mrb[2].mxu0 %vm183_vm1, %v10907_v63 }
 0x1e5   :  { %12424 = vmatprep.mubr.msk.f32.mxu0 %vm183_vm1, %v10908_v0 }
 0x1e8   :  { %12425 = vmatmul.mubr.msk.f32.gmra.mrb[4].mxu0 %vm183_vm1, %v10909_v1 }
 0x1e9   :  { %12427 = vmatprep.mubr.msk.f32.mxu0 %vm183_vm1, %v10910_v2 }
 0x1ec   :  { %12428 = vmatmul.mubr.msk.f32.gmra.mrb[6].mxu0 %vm183_vm1, %v10911_v3 }
 0x1ed   :  { %12432 = vmatprep.mubr.msk.f32.mxu0 %vm183_vm1, %v10923_v4 }
 0x1f0   :  { %12433 = vmatmul.mubr.msk.f32.vlgmr.msra.gmra.mrb[0].mxu0 %vm183_vm1, %v10924_v6 }
 0x1f1   :  { %12445 = vmatpush3.msk.msra.mxu0 %vm208_vm2, %v1917_v62  ;;  %12435 = vmatprep.mubr.msk.f32.mxu0 %vm183_vm1, %v10925_v7 }
 0x1f2   :  { %12458 = vmatprep.subr.msk.mxu0 %vm208_vm2, %v2079_v8 }
 0x1f4   :  { %12436 = vmatmul.mubr.msk.f32.gmra.mrb[2].mxu0 %vm183_vm1, %v10926_v9 }
 0x1f5   :  { %12438 = vmatprep.mubr.msk.f32.mxu0 %vm183_vm1, %v10927_v10 }
 0x1f8   :  { %12439 = vmatmul.mubr.msk.f32.gmra.mrb[4].mxu0 %vm183_vm1, %v10928_v11 }
 0x1f9   :  { %12441 = vmatprep.mubr.msk.f32.mxu0 %vm183_vm1, %v10929_v12 }
 0x1fc   :  { %12442 = vmatmul.mubr.msk.f32.gmra.mrb[6].mxu0 %vm183_vm1, %v10930_v13 }
 0x1fd   :  { %12446 = vmatprep.mubr.msk.f32.mxu0 %vm183_vm1, %v10942_v14 }
 0x200   :  { %12447 = vmatmul.mubr.msk.f32.vlgmr.msra.gmra.mrb[0].mxu0 %vm183_vm1, %v10943_v15 }
 0x201   :  { %12459 = vmatpush3.msk.msra.mxu0 %vm208_vm2, %v2079_v8  ;;  %12449 = vmatprep.mubr.msk.f32.mxu0 %vm183_vm1, %v10944_v16 }
 0x204   :  { %12450 = vmatmul.mubr.msk.f32.gmra.mrb[2].mxu0 %vm183_vm1, %v10945_v17 }
 0x205   :  { %12452 = vmatprep.mubr.msk.f32.mxu0 %vm183_vm1, %v10946_v18 }
 0x208   :  { %12453 = vmatmul.mubr.msk.f32.gmra.mrb[4].mxu0 %vm183_vm1, %v10947_v19 }
 0x209   :  { %12455 = vmatprep.mubr.msk.f32.mxu0 %vm183_vm1, %v10948_v20 }
 0x20c   :  { %12456 = vmatmul.mubr.msk.f32.gmra.mrb[6].mxu0 %vm183_vm1, %v10949_v21  ;;  %v11015_v21 = vld [vmem:[%s15107_s25 + $0x2] ss:$0 sm:$0xff] }
 0x20d   :  { %12460 = vmatprep.mubr.msk.f32.mxu0 %vm183_vm1, %v10961_v22 }
 0x210   :  { %12461 = vmatmul.mubr.msk.f32.vlgmr.msra.gmra.mrb[0].mxu0 %vm183_vm1, %v10962_v23 }
 0x211   :  { %12463 = vmatprep.mubr.msk.f32.mxu0 %vm183_vm1, %v10963_v24 }
 0x214   :  { %12464 = vmatmul.mubr.msk.f32.gmra.mrb[2].mxu0 %vm183_vm1, %v10964_v25 }
 0x215   :  { %12466 = vmatprep.mubr.msk.f32.mxu0 %vm183_vm1, %v10965_v26 }
 0x218   :  { %12467 = vmatmul.mubr.msk.f32.gmra.mrb[4].mxu0 %vm183_vm1, %v10966_v27 }
 0x219   :  { %12469 = vmatprep.mubr.msk.f32.mxu0 %vm183_vm1, %v10967_v28 }
 0x21c   :  { %12470 = vmatmul.mubr.msk.f32.gmra.mrb[6].mxu0 %vm183_vm1, %v10968_v29 }
 0x2e3   :  { %v12462_v43 = vpop.f32.mrb[0].mxu0 }
 0x2e4   :  { %v2220_v44 = vmax.f32 %v12462_v43, 0.0  ;;  %v2172_v45 = vpop.f32.mrb[1].mxu0 }
 0x2e5   :  { %v2219_v46 = vmax.f32 %v2172_v45, 0.0 }
 0x2e6   :  { %2237 = vrot.lane.b32.xlu1 %v2220_v44, %s15051_s23 }
 0x2e7   :  { %2235 = vrot.lane.b32.xlu0 %v2219_v46, %s15051_s23  ;;  %v12465_v47 = vpop.f32.mrb[2].mxu0 }
 0x2e8   :  { %v2222_v48 = vmax.f32 %v12465_v47, 0.0  ;;  %v2182_v49 = vpop.f32.mrb[3].mxu0 }
 0x2e9   :  { %v2221_v50 = vmax.f32 %v2182_v49, 0.0 }
 0x2ea   :  { %2241 = vrot.lane.b32.xlu1 %v2222_v48, %s15051_s23 }
 0x2eb   :  { %2239 = vrot.lane.b32.xlu0 %v2221_v50, %s15051_s23  ;;  %v12468_v51 = vpop.f32.mrb[4].mxu0 }
 0x2ec   :  { %v2224_v52 = vmax.f32 %v12468_v51, 0.0  ;;  %v2192_v53 = vpop.f32.mrb[5].mxu0  ;;  %v10990_v51 = vld [vmem:[%s15102_s21 + $0x40] sm:$0xff] }
 0x2ed   :  { %v2223_v54 = vmax.f32 %v2192_v53, 0.0 }
 0x2ee   :  { %2245 = vrot.lane.b32.xlu1 %v2224_v52, %s15051_s23 }
 0x2ef   :  { %2243 = vrot.lane.b32.xlu0 %v2223_v54, %s15051_s23  ;;  %v12471_v55 = vpop.f32.mrb[6].mxu0 }
 0x2f0   :  { %v2226_v56 = vmax.f32 %v12471_v55, 0.0  ;;  %v2202_v57 = vpop.f32.mrb[7].mxu0 }
 0x2f1   :  { %v2225_v58 = vmax.f32 %v2202_v57, 0.0 }
 0x2f2   :  { %2249 = vrot.lane.b32.xlu1 %v2226_v56, %s15051_s23 }
 0x2f3   :  { %2247 = vrot.lane.b32.xlu0 %v2225_v58, %s15051_s23 }
 0x2f7   :  { %2496 = vrot.lane.b32.xlu0 %v10989_v59, %s15048_s27 }
 0x358   :  { %v2238_v60 = vpop.permute.xlu1 %2237 }
 0x359   :  { %v2236_v61 = vpop.permute.xlu0 %2235  ;;  %v2260_v63 = vmax.f32 %v2220_v44, %v2238_v60 }
 0x35a   :  { %v2259_v62 = vmax.f32 %v2219_v46, %v2236_v61 }
 0x35c   :  { %12488 = vmatprep.mubr.msk.f32.mxu1 %vm2275_vm6, %v2259_v62  ;;  %v2242_v0 = vpop.permute.xlu1 %2241 }
 0x35d   :  { %12489 = vmatmul.mubr.msk.f32.vlgmr.msra.gmra.mrb[0].mxu1 %vm2275_vm6, %v2260_v63  ;;  %v2240_v1 = vpop.permute.xlu0 %2239  ;;  %v2262_v3 = vmax.f32 %v2222_v48, %v2242_v0  ;;  %v11085_v0 = vld [vmem:[%s15107_s25 + $0x6] ss:$0 sm:$0xff] }
 0x35e   :  { %v2261_v2 = vmax.f32 %v2221_v50, %v2240_v1 }
 0x360   :  { %12491 = vmatprep.mubr.msk.f32.mxu1 %vm2275_vm6, %v2261_v2  ;;  %v2246_v4 = vpop.permute.xlu1 %2245 }
 0x361   :  { %12492 = vmatmul.mubr.msk.f32.gmra.mrb[2].mxu1 %vm2275_vm6, %v2262_v3  ;;  %v2244_v6 = vpop.permute.xlu0 %2243  ;;  %v2264_v8 = vmax.f32 %v2224_v52, %v2246_v4 }
 0x362   :  { %v2263_v7 = vmax.f32 %v2223_v54, %v2244_v6  ;;  %v11067_v54 = vld [vmem:[%s15107_s25 + $0x5] ss:$0 sm:$0xff] }
 0x364   :  { %12494 = vmatprep.mubr.msk.f32.mxu1 %vm2275_vm6, %v2263_v7  ;;  %v2250_v9 = vpop.permute.xlu1 %2249 }
 0x365   :  { %12495 = vmatmul.mubr.msk.f32.gmra.mrb[4].mxu1 %vm2275_vm6, %v2264_v8  ;;  %v2248_v10 = vpop.permute.xlu0 %2247  ;;  %v2266_v12 = vmax.f32 %v2226_v56, %v2250_v9 }
 0x366   :  { %v2265_v11 = vmax.f32 %v2225_v58, %v2248_v10 }
 0x368   :  { %12497 = vmatprep.mubr.msk.f32.mxu1 %vm2275_vm6, %v2265_v11 }
 0x369   :  { %12498 = vmatmul.mubr.msk.f32.gmra.mrb[6].mxu1 %vm2275_vm6, %v2266_v12  ;;  %v2497_v22 = vpop.permute.xlu0 %2496  ;;  %vm9629_vm6 = vcmask 527368  }
 0x36a   :  { %12516 = vmatprep.mubr.msk.f32.mxu1 %vm2548_vm8, %v10990_v51 }
 0x430   :  { %v15549_v13 = vpop.f32.mrb[0].mxu1 }
 0x431   :  { %17711 = vst [vmem:[#allocation20_spill] sm:$0xff] %v15549_v13  ;;  %v15551_v14 = vpop.f32.mrb[1].mxu1  ;;  %2427 = vrot.lane.b32.xlu1 %v15549_v13, %s15047_s0 }
 0x432   :  { %17712 = vst [vmem:[#allocation21_spill] sm:$0xff] %v15551_v14  ;;  %2425 = vrot.lane.b32.xlu0 %v15551_v14, %s15047_s0 }
 0x434   :  { %v15557_v15 = vpop.f32.mrb[2].mxu1 }
 0x435   :  { %17713 = vst [vmem:[#allocation22_spill] sm:$0xff] %v15557_v15  ;;  %v15559_v16 = vpop.f32.mrb[3].mxu1  ;;  %2431 = vrot.lane.b32.xlu1 %v15557_v15, %s15047_s0 }
 0x436   :  { %17714 = vst [vmem:[#allocation23_spill] sm:$0xff] %v15559_v16  ;;  %2429 = vrot.lane.b32.xlu0 %v15559_v16, %s15047_s0 }
 0x438   :  { %v15565_v17 = vpop.f32.mrb[4].mxu1 }
 0x439   :  { %17715 = vst [vmem:[#allocation24_spill] sm:$0xff] %v15565_v17  ;;  %v15567_v18 = vpop.f32.mrb[5].mxu1  ;;  %2435 = vrot.lane.b32.xlu1 %v15565_v17, %s15047_s0 }
 0x43a   :  { %17716 = vst [vmem:[#allocation25_spill] sm:$0xff] %v15567_v18  ;;  %2433 = vrot.lane.b32.xlu0 %v15567_v18, %s15047_s0 }
 0x43c   :  { %v15573_v19 = vpop.f32.mrb[6].mxu1 }
 0x43d   :  { %17717 = vst [vmem:[#allocation26_spill] sm:$0xff] %v15573_v19  ;;  %v15575_v20 = vpop.f32.mrb[7].mxu1 }
 0x43e   :  { %17718 = vst [vmem:[#allocation27_spill] sm:$0xff] %v15575_v20  ;;  %2439 = vrot.lane.b32.xlu0 %v15573_v19, %s15047_s0  ;;  %2437 = vrot.lane.b32.xlu1 %v15575_v20, %s15047_s0 }
 0x442   :  { %2814 = vrot.lane.b32.xlu1 %v11015_v21, %s15044_s15 }
 0x4a3   :  { %v2428_v23 = vpop.permute.xlu1 %2427 }
 0x4a4   :  { %2451 = vst.msk [vmem:[#allocation2 + $0x8] sm:$0xff] %vm2449_vm7, %v2428_v23  ;;  %v2426_v24 = vpop.permute.xlu0 %2425 }
 0x4a5   :  { %2450 = vst.msk [vmem:[#allocation2] sm:$0xff] %vm2449_vm7, %v2426_v24 }
 0x4a7   :  { %v2432_v25 = vpop.permute.xlu1 %2431 }
 0x4a8   :  { %2453 = vst.msk [vmem:[#allocation2 + $0x18] sm:$0xff] %vm2449_vm7, %v2432_v25  ;;  %v2430_v26 = vpop.permute.xlu0 %2429 }
 0x4a9   :  { %2452 = vst.msk [vmem:[#allocation2 + $0x10] sm:$0xff] %vm2449_vm7, %v2430_v26 }
 0x4ab   :  { %v2436_v27 = vpop.permute.xlu1 %2435  ;;  %v15587_v28 = vld [vmem:[#allocation2 + $0x8] sm:$0xff] }
 0x4ac   :  { %2455 = vst.msk [vmem:[#allocation2 + $0x28] sm:$0xff] %vm2449_vm7, %v2436_v27  ;;  %v2434_v29 = vpop.permute.xlu0 %2433  ;;  %v15590_v30 = vld [vmem:[#allocation2] sm:$0xff]  ;;  %v2500_v31 = vmul.f32 %v2497_v22, %v15587_v28  ;;  %3955 = vst [vmem:[#allocation2 + $0x8] sm:$0xff] %v15046_v5 }
 0x4ad   :  { %2454 = vst.msk [vmem:[#allocation2 + $0x20] sm:$0xff] %vm2449_vm7, %v2434_v29  ;;  %v2499_v32 = vmul.f32 %v2497_v22, %v15590_v30  ;;  %3954 = vst [vmem:[#allocation2] sm:$0xff] %v15046_v5  ;;  %v14326_v4 = vpack.i.bf16 %v15587_v28, %v15590_v30 }
 0x4af   :  { %v14286_v33 = vpack.i.bf16 %v2500_v31, %v2499_v32  ;;  %v15597_v34 = vld [vmem:[#allocation2 + $0x18] sm:$0xff] }
 0x4b0   :  { %v2438_v35 = vpop.permute.xlu1 %2437  ;;  %v2440_v36 = vpop.permute.xlu0 %2439  ;;  %v15599_v37 = vld [vmem:[#allocation2 + $0x10] sm:$0xff]  ;;  %v2502_v38 = vmul.f32 %v2497_v22, %v15597_v34  ;;  %3957 = vst [vmem:[#allocation2 + $0x18] sm:$0xff] %v15046_v5 }
 0x4b1   :  { %2456 = vst.msk [vmem:[#allocation2 + $0x30] sm:$0xff] %vm2449_vm7, %v2438_v35  ;;  %2457 = vst.msk [vmem:[#allocation2 + $0x38] sm:$0xff] %vm2449_vm7, %v2440_v36  ;;  %14287 = vrot.lane.b32.xlu0 %v14286_v33, %s15051_s23  ;;  %v2501_v39 = vmul.f32 %v2497_v22, %v15599_v37  ;;  %v14331_v8 = vpack.i.bf16 %v15597_v34, %v15599_v37 }
 0x4b2   :  { %3956 = vst [vmem:[#allocation2 + $0x10] sm:$0xff] %v15046_v5 }
 0x4b3   :  { %v14291_v41 = vpack.i.bf16 %v2502_v38, %v2501_v39  ;;  %v15609_v43 = vld [vmem:[#allocation2 + $0x28] sm:$0xff] }
 0x4b4   :  { %v15611_v44 = vld [vmem:[#allocation2 + $0x20] sm:$0xff]  ;;  %v2504_v45 = vmul.f32 %v2497_v22, %v15609_v43  ;;  %3959 = vst [vmem:[#allocation2 + $0x28] sm:$0xff] %v15046_v5  ;;  %v2815_v47 = vpop.permute.xlu1 %2814 }
 0x4b5   :  { %3188 = vrot.lane.b32.xlu0 %v11049_v40, %s15049_s18  ;;  %14292 = vrot.lane.b32.xlu1 %v14291_v41, %s15051_s23  ;;  %v2503_v46 = vmul.f32 %v2497_v22, %v15611_v44  ;;  %3958 = vst [vmem:[#allocation2 + $0x20] sm:$0xff] %v15046_v5  ;;  %v2819_v55 = vmul.f32 %v2815_v47, %v15599_v37 }
 0x4b6   :  { %v2820_v57 = vmul.f32 %v2815_v47, %v15597_v34  ;;  %v2817_v58 = vmul.f32 %v2815_v47, %v15590_v30  ;;  %v2818_v59 = vmul.f32 %v2815_v47, %v15587_v28  ;;  %v2821_v62 = vmul.f32 %v2815_v47, %v15611_v44 }
 0x4b7   :  { %v14296_v48 = vpack.i.bf16 %v2504_v45, %v2503_v46  ;;  %v2822_v63 = vmul.f32 %v2815_v47, %v15609_v43  ;;  %v14336_v7 = vpack.i.bf16 %v15609_v43, %v15611_v44 }
 0x4b8   :  { %v15619_v49 = vld [vmem:[#allocation2 + $0x30] sm:$0xff]  ;;  %v15621_v50 = vld [vmem:[#allocation2 + $0x38] sm:$0xff]  ;;  %v14311_v60 = vpack.i.bf16 %v2820_v57, %v2819_v55  ;;  %v14306_v61 = vpack.i.bf16 %v2818_v59, %v2817_v58 }
 0x4b9   :  { %14297 = vrot.lane.b32.xlu1 %v14296_v48, %s15051_s23  ;;  %v2505_v52 = vmul.f32 %v2497_v22, %v15619_v49  ;;  %v2506_v53 = vmul.f32 %v2497_v22, %v15621_v50  ;;  %3960 = vst [vmem:[#allocation2 + $0x30] sm:$0xff] %v15046_v5  ;;  %3961 = vst [vmem:[#allocation2 + $0x38] sm:$0xff] %v15046_v5  ;;  %v14316_v1 = vpack.i.bf16 %v2822_v63, %v2821_v62 }
 0x4ba   :  { %v2823_v2 = vmul.f32 %v2815_v47, %v15619_v49  ;;  %v2824_v3 = vmul.f32 %v2815_v47, %v15621_v50  ;;  %v14341_v9 = vpack.i.bf16 %v15621_v50, %v15619_v49  ;;  %v15669_v47 = vld [vmem:[%s15107_s25] ss:$0 sm:$0xff]  ;;  %s17861_s25 = sld [smem:[#allocation11_spill]] }
 0x4bb   :  { %v14301_v56 = vpack.i.bf16 %v2506_v53, %v2505_v52  ;;  %v2473_v55 = vmul.f32 %v15669_v47, %v15590_v30  ;;  %v2476_v63 = vmul.f32 %v15669_v47, %v15597_v34 }
 0x4bc   :  { %v14321_v6 = vpack.i.bf16 %v2824_v3, %v2823_v2 }
 0x4bd   :  { %3384 = vrot.lane.b32.xlu1 %v11067_v54, %s15053_s1  ;;  %14302 = vrot.lane.b32.xlu0 %v14301_v56, %s15051_s23  ;;  %v2474_v56 = vmul.f32 %v15669_v47, %v15587_v28 }
 0x4c1   :  { %14312 = vrot.lane.b32.xlu1 %v14311_v60, %s15050_s22  ;;  %14307 = vrot.lane.b32.xlu0 %v14306_v61, %s15050_s22 }
 0x4c5   :  { %14317 = vrot.lane.b32.xlu1 %v14316_v1, %s15050_s22  ;;  %3580 = vrot.lane.b32.xlu0 %v11085_v0, %s15045_s16 }
 0x4c9   :  { %14327 = vrot.lane.b32.xlu1 %v14326_v4, %s15055_s2  ;;  %14322 = vrot.lane.b32.xlu0 %v14321_v6, %s15050_s22 }
 0x4cd   :  { %14337 = vrot.lane.b32.xlu1 %v14336_v7, %s15055_s2  ;;  %14332 = vrot.lane.b32.xlu0 %v14331_v8, %s15055_s2 }
 0x4d1   :  { %14342 = vrot.lane.b32.xlu0 %v14341_v9, %s15055_s2  ;;  %v2475_v9 = vmul.f32 %v15669_v47, %v15599_v37 }
 0x523   :  { %v14288_v10 = vpop.permute.xlu0 %14287 }
 0x524   :  { %v14290_v11 = vunpack.i.h.bf16 %v14288_v10  ;;  %v14289_v12 = vunpack.i.l.bf16 %v14288_v10  ;;  %v13550_v10 = vpack.c.bf16 %v2474_v56, %v2473_v55 }
 0x526   :  { %v13534_v21 = vpack.c.bf16 %v14290_v11, %v14289_v12  ;;  %v10991_v11 = vld [vmem:[%s15102_s21 + $0x48] sm:$0xff] }
 0x527   :  { %v14293_v22 = vpop.permute.xlu1 %14292  ;;  %v3189_v23 = vpop.permute.xlu0 %3188 }
 0x528   :  { %v14295_v24 = vunpack.i.h.bf16 %v14293_v22  ;;  %v14294_v25 = vunpack.i.l.bf16 %v14293_v22  ;;  %13535 = vmatprep.subr.bf16.mxu1 %v13534_v21  ;;  %v3193_v26 = vmul.f32 %v3189_v23, %v15599_v37  ;;  %v3194_v27 = vmul.f32 %v3189_v23, %v15597_v34 }
 0x529   :  { %13537 = vmatpush3.bf16.msra.mxu1 %v13534_v21  ;;  %v3191_v29 = vmul.f32 %v3189_v23, %v15590_v30  ;;  %v3192_v31 = vmul.f32 %v3189_v23, %v15587_v28  ;;  %v3197_v35 = vmul.f32 %v3189_v23, %v15619_v49  ;;  %v3198_v36 = vmul.f32 %v3189_v23, %v15621_v50 }
 0x52a   :  { %v14351_v32 = vpack.i.bf16 %v3194_v27, %v3193_v26  ;;  %v13538_v33 = vpack.c.bf16 %v14295_v24, %v14294_v25  ;;  %v3195_v40 = vmul.f32 %v3189_v23, %v15611_v44  ;;  %v3196_v41 = vmul.f32 %v3189_v23, %v15609_v43  ;;  %v10992_v24 = vld [vmem:[%s15102_s21 + $0x50] sm:$0xff] }
 0x52b   :  { %v14298_v38 = vpop.permute.xlu1 %14297  ;;  %v14346_v39 = vpack.i.bf16 %v3192_v31, %v3191_v29  ;;  %v14361_v48 = vpack.i.bf16 %v3198_v36, %v3197_v35  ;;  %v13554_v23 = vpack.c.bf16 %v2476_v63, %v2475_v9  ;;  %v2478_v25 = vmul.f32 %v15669_v47, %v15609_v43  ;;  %v2484_v63 = vld [vmem:[%s15102_s21 + $0x18] sm:$0xff] }
 0x52c   :  { %v14300_v45 = vunpack.i.h.bf16 %v14298_v38  ;;  %v14299_v46 = vunpack.i.l.bf16 %v14298_v38  ;;  %14352 = vrot.lane.b32.xlu0 %v14351_v32, %s15057_s7  ;;  %13539 = vmatprep.subr.bf16.mxu1 %v13538_v33  ;;  %v14356_v54 = vpack.i.bf16 %v3196_v41, %v3195_v40  ;;  %v2477_v29 = vmul.f32 %v15669_v47, %v15611_v44  ;;  %v10994_v40 = vld [vmem:[%s15102_s21 + $0x60] sm:$0xff] }
 0x52d   :  { %14347 = vrot.lane.b32.xlu1 %v14346_v39, %s15057_s7  ;;  %13541 = vmatpush3.bf16.msra.mxu1 %v13538_v33  ;;  %v10993_v33 = vld [vmem:[%s15102_s21 + $0x58] sm:$0xff]  ;;  %v2480_v41 = vmul.f32 %v15669_v47, %v15621_v50 }
 0x52e   :  { %v13542_v51 = vpack.c.bf16 %v14300_v45, %v14299_v46 }
 0x52f   :  { %v3385_v52 = vpop.permute.xlu1 %3384  ;;  %v14303_v53 = vpop.permute.xlu0 %14302 }
 0x530   :  { %v14305_v57 = vunpack.i.h.bf16 %v14303_v53  ;;  %v14304_v58 = vunpack.i.l.bf16 %v14303_v53  ;;  %14362 = vrot.lane.b32.xlu0 %v14361_v48, %s15057_s7  ;;  %13543 = vmatprep.subr.bf16.mxu1 %v13542_v51  ;;  %v3389_v59 = vmul.f32 %v3385_v52, %v15599_v37  ;;  %v3390_v60 = vmul.f32 %v3385_v52, %v15597_v34  ;;  %v10996_v48 = vld [vmem:[%s15102_s21 + $0x70] sm:$0xff] }
 0x531   :  { %14357 = vrot.lane.b32.xlu1 %v14356_v54, %s15057_s7  ;;  %13545 = vmatpush3.bf16.msra.mxu1 %v13542_v51  ;;  %v3387_v61 = vmul.f32 %v3385_v52, %v15590_v30  ;;  %v3388_v62 = vmul.f32 %v3385_v52, %v15587_v28  ;;  %v3393_v2 = vmul.f32 %v3385_v52, %v15619_v49 }
 0x532   :  { %v14371_v0 = vpack.i.bf16 %v3390_v60, %v3389_v59  ;;  %v13546_v1 = vpack.c.bf16 %v14305_v57, %v14304_v58  ;;  %v3394_v3 = vmul.f32 %v3385_v52, %v15621_v50  ;;  %v3391_v7 = vmul.f32 %v3385_v52, %v15611_v44  ;;  %v2482_v57 = vld [vmem:[%s15102_s21 + $0x8] sm:$0xff]  ;;  %v2483_v58 = vld [vmem:[%s15102_s21 + $0x10] sm:$0xff] }
 0x533   :  { %v15686_v4 = vpop.permute.xlu0 %14307  ;;  %v14366_v6 = vpack.i.bf16 %v3388_v62, %v3387_v61  ;;  %v3392_v8 = vmul.f32 %v3385_v52, %v15609_v43  ;;  %v14313_v45 = vpop.permute.xlu1 %14312  ;;  %v2481_v52 = vld [vmem:[%s15102_s21] sm:$0xff] }
 0x534   :  { %14372 = vrot.lane.b32.xlu0 %v14371_v0, %s15061_s13  ;;  %13547 = vmatprep.subr.bf16.mxu1 %v13546_v1  ;;  %v14381_v12 = vpack.i.bf16 %v3394_v3, %v3393_v2  ;;  %v14310_v51 = vunpack.i.h.bf16 %v15686_v4  ;;  %v14315_v53 = vunpack.i.h.bf16 %v14313_v45  ;;  %v14314_v54 = vunpack.i.l.bf16 %v14313_v45  ;;  %v2485_v0 = vld [vmem:[%s15102_s21 + $0x20] sm:$0xff]  ;;  %v11035_v45 = vld [vmem:[%s15102_s21 + $0xd8] sm:$0xff] }
 0x535   :  { %14367 = vrot.lane.b32.xlu1 %v14366_v6, %s15061_s13  ;;  %13549 = vmatpush3.bf16.msra.mxu1 %v13546_v1  ;;  %v14376_v22 = vpack.i.bf16 %v3392_v8, %v3391_v7  ;;  %v2486_v6 = vld [vmem:[%s15102_s21 + $0x28] sm:$0xff]  ;;  %v2487_v7 = vld [vmem:[%s15102_s21 + $0x30] sm:$0xff] }
 0x536   :  { %13551 = vmatprep.subr.bf16.mxu1 %v13550_v10  ;;  %v13570_v61 = vpack.c.bf16 %v14315_v53, %v14314_v54 }
 0x537   :  { %v3581_v21 = vpop.permute.xlu0 %3580  ;;  %v14318_v56 = vpop.permute.xlu1 %14317 }
 0x538   :  { %14382 = vrot.lane.b32.xlu0 %v14381_v12, %s15061_s13  ;;  %12517 = vmatmul.mubr.msk.f32.vlgmr.msra.gmra.mrb[8].mxu1 %vm2548_vm8, %v10991_v11  ;;  %v3585_v26 = vmul.f32 %v3581_v21, %v15599_v37  ;;  %v3586_v27 = vmul.f32 %v3581_v21, %v15597_v34  ;;  %v3583_v31 = vmul.f32 %v3581_v21, %v15590_v30  ;;  %v14320_v59 = vunpack.i.h.bf16 %v14318_v56  ;;  %v2488_v12 = vld [vmem:[%s15102_s21 + $0x38] sm:$0xff] }
 0x539   :  { %14377 = vrot.lane.b32.xlu1 %v14376_v22, %s15061_s13  ;;  %13553 = vmatpush3.bf16.msra.mxu1 %v13550_v10  ;;  %v3584_v32 = vmul.f32 %v3581_v21, %v15587_v28  ;;  %v3589_v37 = vmul.f32 %v3581_v21, %v15619_v49  ;;  %v3590_v34 = vmul.f32 %v3581_v21, %v15621_v50  ;;  %v14319_v60 = vunpack.i.l.bf16 %v14318_v56 }
 0x53a   :  { %13555 = vmatprep.subr.bf16.mxu1 %v13554_v23  ;;  %v14391_v35 = vpack.i.bf16 %v3586_v27, %v3585_v26  ;;  %12519 = vmatprep.mubr.msk.f32.mxu1 %vm2548_vm8, %v10992_v24  ;;  %v3587_v38 = vmul.f32 %v3581_v21, %v15611_v44  ;;  %v3588_v39 = vmul.f32 %v3581_v21, %v15609_v43  ;;  %v10995_v44 = vld [vmem:[%s15102_s21 + $0x68] sm:$0xff]  ;;  %v11016_v21 = vld [vmem:[%s15102_s21 + $0x80] sm:$0xff]  ;;  %v11018_v27 = vld [vmem:[%s15102_s21 + $0x90] sm:$0xff] }
 0x53b   :  { %v14386_v36 = vpack.i.bf16 %v3584_v32, %v3583_v31  ;;  %v13558_v28 = vpack.c.bf16 %v2478_v25, %v2477_v29  ;;  %v2479_v30 = vmul.f32 %v15669_v47, %v15619_v49  ;;  %v14401_v43 = vpack.i.bf16 %v3590_v34, %v3589_v37  ;;  %v10997_v47 = vld [vmem:[%s15102_s21 + $0x78] sm:$0xff]  ;;  %v14323_v62 = vpop.permute.xlu0 %14322  ;;  %v11017_v26 = vld [vmem:[%s15102_s21 + $0x88] sm:$0xff]  ;;  %v11020_v37 = vld [vmem:[%s15102_s21 + $0xa0] sm:$0xff] }
 0x53c   :  { %14392 = vrot.lane.b32.xlu0 %v14391_v35, %s15062_s10  ;;  %12520 = vmatmul.mubr.msk.f32.gmra.mrb[10].mxu1 %vm2548_vm8, %v10993_v33  ;;  %v14396_v46 = vpack.i.bf16 %v3588_v39, %v3587_v38  ;;  %v14309_v49 = vunpack.i.l.bf16 %v15686_v4  ;;  %v14325_v1 = vunpack.i.h.bf16 %v14323_v62  ;;  %v14324_v2 = vunpack.i.l.bf16 %v14323_v62  ;;  %v14328_v4 = vpop.permute.xlu1 %14327  ;;  %v11019_v35 = vld [vmem:[%s15102_s21 + $0x98] sm:$0xff]  ;;  %v11021_v39 = vld [vmem:[%s15102_s21 + $0xa8] sm:$0xff] }
 0x53d   :  { %14387 = vrot.lane.b32.xlu1 %v14386_v36, %s15062_s10  ;;  %13557 = vmatpush3.bf16.msra.mxu1 %v13554_v23  ;;  %v13562_v50 = vpack.c.bf16 %v2480_v41, %v2479_v30  ;;  %v13574_v3 = vpack.c.bf16 %v14320_v59, %v14319_v60  ;;  %v14330_v8 = vunpack.i.h.bf16 %v14328_v4  ;;  %v14329_v9 = vunpack.i.l.bf16 %v14328_v4  ;;  %v11023_v30 = vld [vmem:[%s15102_s21 + $0xb8] sm:$0xff]  ;;  %v11032_v41 = vld [vmem:[%s15102_s21 + $0xc0] sm:$0xff] }
 0x53e   :  { %13559 = vmatprep.subr.bf16.mxu1 %v13558_v28  ;;  %12522 = vmatprep.mubr.msk.f32.mxu1 %vm2548_vm8, %v10994_v40  ;;  %v13566_v55 = vpack.c.bf16 %v14310_v51, %v14309_v49  ;;  %v13578_v10 = vpack.c.bf16 %v14325_v1, %v14324_v2  ;;  %v11022_v40 = vld [vmem:[%s15102_s21 + $0xb0] sm:$0xff]  ;;  %v11039_v49 = vld [vmem:[%s15102_s21 + $0xf8] sm:$0xff] }
 0x53f   :  { %v14333_v11 = vpop.permute.xlu0 %14332  ;;  %v13582_v24 = vpack.c.bf16 %v14330_v8, %v14329_v9  ;;  %v11038_v51 = vld [vmem:[%s15102_s21 + $0xf0] sm:$0xff] }
 0x540   :  { %14402 = vrot.lane.b32.xlu0 %v14401_v43, %s15062_s10  ;;  %12523 = vmatmul.mubr.msk.f32.gmra.mrb[12].mxu1 %vm2548_vm8, %v10995_v44  ;;  %v14335_v22 = vunpack.i.h.bf16 %v14333_v11  ;;  %v14334_v23 = vunpack.i.l.bf16 %v14333_v11  ;;  %v14338_v25 = vpop.permute.xlu1 %14337  ;;  %v11033_v44 = vld [vmem:[%s15102_s21 + $0xc8] sm:$0xff]  ;;  %v11034_v43 = vld [vmem:[%s15102_s21 + $0xd0] sm:$0xff] }
 0x541   :  { %14397 = vrot.lane.b32.xlu1 %v14396_v46, %s15062_s10  ;;  %13561 = vmatpush3.bf16.msra.mxu1 %v13558_v28  ;;  %v14340_v29 = vunpack.i.h.bf16 %v14338_v25  ;;  %v14339_v31 = vunpack.i.l.bf16 %v14338_v25  ;;  %v11036_v46 = vld [vmem:[%s15102_s21 + $0xe0] sm:$0xff] }
 0x542   :  { %13563 = vmatprep.subr.bf16.mxu1 %v13562_v50  ;;  %12525 = vmatprep.mubr.msk.f32.mxu1 %vm2548_vm8, %v10996_v48  ;;  %v13586_v32 = vpack.c.bf16 %v14335_v22, %v14334_v23  ;;  %v11037_v48 = vld [vmem:[%s15102_s21 + $0xe8] sm:$0xff] }
 0x543   :  { %v14343_v33 = vpop.permute.xlu0 %14342  ;;  %v13590_v38 = vpack.c.bf16 %v14340_v29, %v14339_v31 }
 0x544   :  { %12526 = vmatmul.mubr.msk.f32.gmra.mrb[14].mxu1 %vm2548_vm8, %v10997_v47  ;;  %v14345_v34 = vunpack.i.h.bf16 %v14343_v33  ;;  %v14344_v36 = vunpack.i.l.bf16 %v14343_v33 }
 0x545   :  { %13565 = vmatpush3.bf16.msra.mxu1 %v13562_v50  ;;  %12544 = vmatprep.mubr.msk.f32.mxu1 %vm2548_vm8, %v2481_v52  ;;  %v11050_v50 = vld [vmem:[%s15102_s21 + $0x100] sm:$0xff] }
 0x546   :  { %13567 = vmatprep.subr.bf16.mxu1 %v13566_v55  ;;  %v13594_v28 = vpack.c.bf16 %v14345_v34, %v14344_v36 }
 0x548   :  { %12545 = vmatmul.mubr.msk.f32.vlgmr.msra.gmra.mrb[8].mxu1 %vm2548_vm8, %v2482_v57 }
 0x549   :  { %13569 = vmatpush3.bf16.msra.mxu1 %v13566_v55  ;;  %12547 = vmatprep.mubr.msk.f32.mxu1 %vm2548_vm8, %v2483_v58 }
 0x54a   :  { %13571 = vmatprep.subr.bf16.mxu1 %v13570_v61 }
 0x54c   :  { %12548 = vmatmul.mubr.msk.f32.gmra.mrb[10].mxu1 %vm2548_vm8, %v2484_v63 }
 0x54d   :  { %13573 = vmatpush3.bf16.msra.mxu1 %v13570_v61  ;;  %12550 = vmatprep.mubr.msk.f32.mxu1 %vm2548_vm8, %v2485_v0 }
 0x54e   :  { %13575 = vmatprep.subr.bf16.mxu1 %v13574_v3 }
 0x550   :  { %12551 = vmatmul.mubr.msk.f32.gmra.mrb[12].mxu1 %vm2548_vm8, %v2486_v6 }
 0x551   :  { %13577 = vmatpush3.bf16.msra.mxu1 %v13574_v3  ;;  %12553 = vmatprep.mubr.msk.f32.mxu1 %vm2548_vm8, %v2487_v7 }
 0x552   :  { %13579 = vmatprep.subr.bf16.mxu1 %v13578_v10 }
 0x554   :  { %12554 = vmatmul.mubr.msk.f32.gmra.mrb[14].mxu1 %vm2548_vm8, %v2488_v12  ;;  %v11051_v12 = vld [vmem:[%s15102_s21 + $0x108] sm:$0xff] }
 0x555   :  { %13581 = vmatpush3.bf16.msra.mxu1 %v13578_v10  ;;  %12572 = vmatprep.mubr.msk.f32.mxu1 %vm2548_vm8, %v11016_v21  ;;  %v11052_v21 = vld [vmem:[%s15102_s21 + $0x110] sm:$0xff] }
 0x556   :  { %13583 = vmatprep.subr.bf16.mxu1 %v13582_v24 }
 0x558   :  { %12573 = vmatmul.mubr.msk.f32.vlgmr.msra.gmra.mrb[8].mxu1 %vm2548_vm8, %v11017_v26  ;;  %v11053_v26 = vld [vmem:[%s15102_s21 + $0x118] sm:$0xff] }
 0x559   :  { %13585 = vmatpush3.bf16.msra.mxu1 %v13582_v24  ;;  %12575 = vmatprep.mubr.msk.f32.mxu1 %vm2548_vm8, %v11018_v27  ;;  %v11054_v27 = vld [vmem:[%s15102_s21 + $0x120] sm:$0xff] }
 0x55a   :  { %13587 = vmatprep.subr.bf16.mxu1 %v13586_v32 }
 0x55c   :  { %12576 = vmatmul.mubr.msk.f32.gmra.mrb[10].mxu1 %vm2548_vm8, %v11019_v35  ;;  %v11055_v35 = vld [vmem:[%s15102_s21 + $0x128] sm:$0xff] }
 0x55d   :  { %13589 = vmatpush3.bf16.msra.mxu1 %v13586_v32  ;;  %12578 = vmatprep.mubr.msk.f32.mxu1 %vm2548_vm8, %v11020_v37  ;;  %v11056_v37 = vld [vmem:[%s15102_s21 + $0x130] sm:$0xff] }
 0x55e   :  { %13591 = vmatprep.subr.bf16.mxu1 %v13590_v38 }
 0x560   :  { %12579 = vmatmul.mubr.msk.f32.gmra.mrb[12].mxu1 %vm2548_vm8, %v11021_v39 }
 0x561   :  { %13593 = vmatpush3.bf16.msra.mxu1 %v13590_v38  ;;  %12581 = vmatprep.mubr.msk.f32.mxu1 %vm2548_vm8, %v11022_v40  ;;  %v11057_v40 = vld [vmem:[%s15102_s21 + $0x138] sm:$0xff] }
 0x562   :  { %13595 = vmatprep.subr.bf16.mxu1 %v13594_v28 }
 0x564   :  { %12582 = vmatmul.mubr.msk.f32.gmra.mrb[14].mxu1 %vm2548_vm8, %v11023_v30 }
 0x565   :  { %13597 = vmatpush3.bf16.msra.mxu1 %v13594_v28  ;;  %12600 = vmatprep.mubr.msk.f32.mxu1 %vm2548_vm8, %v11032_v41  ;;  %v11068_v28 = vld [vmem:[%s15102_s21 + $0x140] sm:$0xff] }
 0x568   :  { %12601 = vmatmul.mubr.msk.f32.vlgmr.msra.gmra.mrb[8].mxu1 %vm2548_vm8, %v11033_v44 }
 0x569   :  { %12603 = vmatprep.mubr.msk.f32.mxu1 %vm2548_vm8, %v11034_v43 }
 0x56c   :  { %12604 = vmatmul.mubr.msk.f32.gmra.mrb[10].mxu1 %vm2548_vm8, %v11035_v45  ;;  %v11069_v45 = vld [vmem:[%s15102_s21 + $0x148] sm:$0xff] }
 0x56d   :  { %12606 = vmatprep.mubr.msk.f32.mxu1 %vm2548_vm8, %v11036_v46  ;;  %v11070_v46 = vld [vmem:[%s15102_s21 + $0x150] sm:$0xff] }
 0x570   :  { %12607 = vmatmul.mubr.msk.f32.gmra.mrb[12].mxu1 %vm2548_vm8, %v11037_v48 }
 0x571   :  { %12609 = vmatprep.mubr.msk.f32.mxu1 %vm2548_vm8, %v11038_v51 }
 0x574   :  { %12610 = vmatmul.mubr.msk.f32.gmra.mrb[14].mxu1 %vm2548_vm8, %v11039_v49 }
 0x575   :  { %12628 = vmatprep.mubr.msk.f32.mxu1 %vm2548_vm8, %v11050_v50 }
 0x59e   :  { %v14353_v47 = vpop.permute.xlu0 %14352 }
 0x59f   :  { %v14348_v52 = vpop.permute.xlu1 %14347  ;;  %v14355_v55 = vunpack.i.h.bf16 %v14353_v47  ;;  %v14354_v56 = vunpack.i.l.bf16 %v14353_v47  ;;  %v11071_v47 = vld [vmem:[%s15102_s21 + $0x158] sm:$0xff] }
 0x5a0   :  { %v14350_v53 = vunpack.i.h.bf16 %v14348_v52  ;;  %v14349_v54 = vunpack.i.l.bf16 %v14348_v52  ;;  %v11072_v52 = vld [vmem:[%s15102_s21 + $0x160] sm:$0xff] }
 0x5a1   :  { %v13602_v61 = vpack.c.bf16 %v14355_v55, %v14354_v56  ;;  %v11073_v56 = vld [vmem:[%s15102_s21 + $0x168] sm:$0xff] }
 0x5a2   :  { %v13598_v57 = vpack.c.bf16 %v14350_v53, %v14349_v54  ;;  %v14363_v62 = vpop.permute.xlu0 %14362 }
 0x5a3   :  { %v14358_v58 = vpop.permute.xlu1 %14357  ;;  %v14365_v63 = vunpack.i.h.bf16 %v14363_v62  ;;  %v14364_v0 = vunpack.i.l.bf16 %v14363_v62  ;;  %v11088_v62 = vld [vmem:[%s15102_s21 + $0x190] sm:$0xff] }
 0x5a4   :  { %v14360_v59 = vunpack.i.h.bf16 %v14358_v58  ;;  %v14359_v60 = vunpack.i.l.bf16 %v14358_v58  ;;  %13599 = vmatprep.subr.bf16.mxu1 %v13598_v57 }
 0x5a5   :  { %13601 = vmatpush3.bf16.msra.mxu1 %v13598_v57  ;;  %v13610_v6 = vpack.c.bf16 %v14365_v63, %v14364_v0  ;;  %v11074_v57 = vld [vmem:[%s15102_s21 + $0x170] sm:$0xff]  ;;  %v11089_v63 = vld [vmem:[%s15102_s21 + $0x198] sm:$0xff]  ;;  %v11090_v0 = vld [vmem:[%s15102_s21 + $0x1a0] sm:$0xff] }
 0x5a6   :  { %13603 = vmatprep.subr.bf16.mxu1 %v13602_v61  ;;  %v13606_v1 = vpack.c.bf16 %v14360_v59, %v14359_v60  ;;  %v14373_v7 = vpop.permute.xlu0 %14372  ;;  %v11075_v59 = vld [vmem:[%s15102_s21 + $0x178] sm:$0xff]  ;;  %v11086_v60 = vld [vmem:[%s15102_s21 + $0x180] sm:$0xff] }
 0x5a7   :  { %v14368_v2 = vpop.permute.xlu1 %14367  ;;  %v14375_v8 = vunpack.i.h.bf16 %v14373_v7  ;;  %v14374_v9 = vunpack.i.l.bf16 %v14373_v7 }
 0x5a8   :  { %v14370_v3 = vunpack.i.h.bf16 %v14368_v2  ;;  %v14369_v4 = vunpack.i.l.bf16 %v14368_v2  ;;  %v11092_v2 = vld [vmem:[%s15102_s21 + $0x1b0] sm:$0xff] }
 0x5a9   :  { %13605 = vmatpush3.bf16.msra.mxu1 %v13602_v61  ;;  %v13618_v24 = vpack.c.bf16 %v14375_v8, %v14374_v9  ;;  %v11087_v61 = vld [vmem:[%s15102_s21 + $0x188] sm:$0xff]  ;;  %v3819_v8 = vld [vmem:[%s15112_s29 + $0x10] sm:$0xff]  ;;  %v3820_v9 = vld [vmem:[%s15112_s29 + $0x18] sm:$0x7f] }
 0x5aa   :  { %13607 = vmatprep.subr.bf16.mxu1 %v13606_v1  ;;  %v13614_v10 = vpack.c.bf16 %v14370_v3, %v14369_v4  ;;  %v14383_v25 = vpop.permute.xlu0 %14382  ;;  %v11093_v3 = vld [vmem:[%s15102_s21 + $0x1b8] sm:$0xff]  ;;  %v3817_v4 = vld [vmem:[%s15112_s29] sm:$0xff] }
 0x5ab   :  { %v14378_v11 = vpop.permute.xlu1 %14377  ;;  %v14385_v29 = vunpack.i.h.bf16 %v14383_v25  ;;  %v14384_v31 = vunpack.i.l.bf16 %v14383_v25 }
 0x5ac   :  { %v14380_v22 = vunpack.i.h.bf16 %v14378_v11  ;;  %v14379_v23 = vunpack.i.l.bf16 %v14378_v11 }
 0x5ad   :  { %13609 = vmatpush3.bf16.msra.mxu1 %v13606_v1  ;;  %v13626_v38 = vpack.c.bf16 %v14385_v29, %v14384_v31  ;;  %v11091_v1 = vld [vmem:[%s15102_s21 + $0x1a8] sm:$0xff]  ;;  %s17854_s21 = sld [smem:[#allocation9_spill]] }
 0x5ae   :  { %13611 = vmatprep.subr.bf16.mxu1 %v13610_v6  ;;  %v13622_v32 = vpack.c.bf16 %v14380_v22, %v14379_v23  ;;  %v14393_v39 = vpop.permute.xlu0 %14392 }
 0x5af   :  { %v14388_v33 = vpop.permute.xlu1 %14387  ;;  %v14395_v30 = vunpack.i.h.bf16 %v14393_v39  ;;  %v14394_v41 = vunpack.i.l.bf16 %v14393_v39 }
 0x5b0   :  { %v14390_v34 = vunpack.i.h.bf16 %v14388_v33  ;;  %v14389_v36 = vunpack.i.l.bf16 %v14388_v33 }
 0x5b1   :  { %13613 = vmatpush3.bf16.msra.mxu1 %v13610_v6  ;;  %v13634_v49 = vpack.c.bf16 %v14395_v30, %v14394_v41  ;;  %v3818_v6 = vld [vmem:[%s15112_s29 + $0x8] sm:$0xff]  ;;  %s17864_s29 = sld [smem:[#allocation10_spill]] }
 0x5b2   :  { %13615 = vmatprep.subr.bf16.mxu1 %v13614_v10  ;;  %v13630_v44 = vpack.c.bf16 %v14390_v34, %v14389_v36  ;;  %v14403_v50 = vpop.permute.xlu0 %14402  ;;  %v13646_v7 = vpack.c.bf16 %v3818_v6, %v3817_v4  ;;  %v11113_v36 = vld [vmem:[%s15122_s8 + $0x1] ss:$0 sm:$0xff] }
 0x5b3   :  { %v14398_v43 = vpop.permute.xlu1 %14397  ;;  %v14405_v53 = vunpack.i.h.bf16 %v14403_v50  ;;  %v14404_v54 = vunpack.i.l.bf16 %v14403_v50 }
 0x5b4   :  { %12629 = vmatmul.mubr.msk.f32.vlgmr.msra.gmra.mrb[8].mxu1 %vm2548_vm8, %v11051_v12  ;;  %v14400_v48 = vunpack.i.h.bf16 %v14398_v43  ;;  %v14399_v51 = vunpack.i.l.bf16 %v14398_v43 }
 0x5b5   :  { %13617 = vmatpush3.bf16.msra.mxu1 %v13614_v10  ;;  %12631 = vmatprep.mubr.msk.f32.mxu1 %vm2548_vm8, %v11052_v21  ;;  %v13642_v58 = vpack.c.bf16 %v14405_v53, %v14404_v54  ;;  %v13650_v10 = vpack.c.bf16 %v3820_v9, %v3819_v8 }
 0x5b6   :  { %13619 = vmatprep.subr.bf16.mxu1 %v13618_v24  ;;  %v13638_v55 = vpack.c.bf16 %v14400_v48, %v14399_v51 }
 0x5b8   :  { %12632 = vmatmul.mubr.msk.f32.gmra.mrb[10].mxu1 %vm2548_vm8, %v11053_v26 }
 0x5b9   :  { %13621 = vmatpush3.bf16.msra.mxu1 %v13618_v24  ;;  %12634 = vmatprep.mubr.msk.f32.mxu1 %vm2548_vm8, %v11054_v27 }
 0x5ba   :  { %13623 = vmatprep.subr.bf16.mxu1 %v13622_v32 }
 0x5bc   :  { %12635 = vmatmul.mubr.msk.f32.gmra.mrb[12].mxu1 %vm2548_vm8, %v11055_v35 }
 0x5bd   :  { %13625 = vmatpush3.bf16.msra.mxu1 %v13622_v32  ;;  %12637 = vmatprep.mubr.msk.f32.mxu1 %vm2548_vm8, %v11056_v37 }
 0x5be   :  { %13627 = vmatprep.subr.bf16.mxu1 %v13626_v38 }
 0x5c0   :  { %12638 = vmatmul.mubr.msk.f32.gmra.mrb[14].mxu1 %vm2548_vm8, %v11057_v40 }
 0x5c1   :  { %13629 = vmatpush3.bf16.msra.mxu1 %v13626_v38  ;;  %12656 = vmatprep.mubr.msk.f32.mxu1 %vm2548_vm8, %v11068_v28 }
 0x5c2   :  { %13631 = vmatprep.subr.bf16.mxu1 %v13630_v44 }
 0x5c4   :  { %12657 = vmatmul.mubr.msk.f32.vlgmr.msra.gmra.mrb[8].mxu1 %vm2548_vm8, %v11069_v45 }
 0x5c5   :  { %13633 = vmatpush3.bf16.msra.mxu1 %v13630_v44  ;;  %12659 = vmatprep.mubr.msk.f32.mxu1 %vm2548_vm8, %v11070_v46 }
 0x5c6   :  { %13635 = vmatprep.subr.bf16.mxu1 %v13634_v49 }
 0x5c8   :  { %12660 = vmatmul.mubr.msk.f32.gmra.mrb[10].mxu1 %vm2548_vm8, %v11071_v47 }
 0x5c9   :  { %13637 = vmatpush3.bf16.msra.mxu1 %v13634_v49  ;;  %12662 = vmatprep.mubr.msk.f32.mxu1 %vm2548_vm8, %v11072_v52 }
 0x5ca   :  { %13639 = vmatprep.subr.bf16.mxu1 %v13638_v55 }
 0x5cc   :  { %12663 = vmatmul.mubr.msk.f32.gmra.mrb[12].mxu1 %vm2548_vm8, %v11073_v56 }
 0x5cd   :  { %13641 = vmatpush3.bf16.msra.mxu1 %v13638_v55  ;;  %12665 = vmatprep.mubr.msk.f32.mxu1 %vm2548_vm8, %v11074_v57 }
 0x5ce   :  { %13643 = vmatprep.subr.bf16.mxu1 %v13642_v58 }
 0x5d0   :  { %12666 = vmatmul.mubr.msk.f32.gmra.mrb[14].mxu1 %vm2548_vm8, %v11075_v59 }
 0x5d1   :  { %13645 = vmatpush3.bf16.msra.mxu1 %v13642_v58  ;;  %12684 = vmatprep.mubr.msk.f32.mxu1 %vm2548_vm8, %v11086_v60 }
 0x5d2   :  { %13647 = vmatprep.subr.bf16.mxu1 %v13646_v7 }
 0x5d4   :  { %12685 = vmatmul.mubr.msk.f32.vlgmr.msra.gmra.mrb[8].mxu1 %vm2548_vm8, %v11087_v61  ;;  %v11155_v61 = vld [vmem:[%s15122_s8 + $0x3] ss:$0 sm:$0xff] }
 0x5d5   :  { %12687 = vmatprep.mubr.msk.f32.mxu1 %vm2548_vm8, %v11088_v62  ;;  %13649 = vmatpush3.bf16.msra.mxu1 %v13646_v7 }
 0x5d6   :  { %13652 = vmatprep.subr.msk.bf16.mxu1 %vm15523_vm5, %v13650_v10 }
 0x5d8   :  { %12688 = vmatmul.mubr.msk.f32.gmra.mrb[10].mxu1 %vm2548_vm8, %v11089_v63 }
 0x5d9   :  { %12690 = vmatprep.mubr.msk.f32.mxu1 %vm2548_vm8, %v11090_v0  ;;  %13655 = vmatpush3.bf16.msk.msra.mxu1 %vm15523_vm5, %v13650_v10 }
 0x5dc   :  { %12691 = vmatmul.mubr.msk.f32.gmra.mrb[12].mxu1 %vm2548_vm8, %v11091_v1 }
 0x5dd   :  { %12693 = vmatprep.mubr.msk.f32.mxu1 %vm2548_vm8, %v11092_v2 }
 0x5e0   :  { %12694 = vmatmul.mubr.msk.f32.gmra.mrb[14].mxu1 %vm2548_vm8, %v11093_v3 }
 0x6a7   :  { %v12686_v11 = vpop.f32.mrb[8].mxu1 }
 0x6a8   :  { %v3770_v12 = vmax.f32 %v12686_v11, 0.0  ;;  %v3722_v21 = vpop.f32.mrb[9].mxu1 }
 0x6a9   :  { %v3769_v22 = vmax.f32 %v3722_v21, 0.0 }
 0x6aa   :  { %3787 = vrot.lane.b32.xlu0 %v3770_v12, %s15051_s23 }
 0x6ab   :  { %3785 = vrot.lane.b32.xlu1 %v3769_v22, %s15051_s23  ;;  %v12689_v23 = vpop.f32.mrb[10].mxu1 }
 0x6ac   :  { %v3772_v24 = vmax.f32 %v12689_v23, 0.0  ;;  %v3732_v25 = vpop.f32.mrb[11].mxu1 }
 0x6ad   :  { %v3771_v26 = vmax.f32 %v3732_v25, 0.0  ;;  %v11173_v25 = vld [vmem:[%s15122_s8 + $0x4] ss:$0 sm:$0xff] }
 0x6ae   :  { %3791 = vrot.lane.b32.xlu0 %v3772_v24, %s15051_s23 }
 0x6af   :  { %3789 = vrot.lane.b32.xlu1 %v3771_v26, %s15051_s23  ;;  %v12692_v27 = vpop.f32.mrb[12].mxu1 }
 0x6b0   :  { %v3774_v29 = vmax.f32 %v12692_v27, 0.0  ;;  %v3742_v31 = vpop.f32.mrb[13].mxu1 }
 0x6b1   :  { %v3773_v32 = vmax.f32 %v3742_v31, 0.0 }
 0x6b2   :  { %3795 = vrot.lane.b32.xlu0 %v3774_v29, %s15051_s23 }
 0x6b3   :  { %3793 = vrot.lane.b32.xlu1 %v3773_v32, %s15051_s23  ;;  %v12695_v33 = vpop.f32.mrb[14].mxu1 }
 0x6b4   :  { %v3776_v35 = vmax.f32 %v12695_v33, 0.0  ;;  %v3752_v37 = vpop.f32.mrb[15].mxu1 }
 0x6b5   :  { %v3775_v34 = vmax.f32 %v3752_v37, 0.0 }
 0x6b6   :  { %3799 = vrot.lane.b32.xlu0 %v3776_v35, %s15051_s23 }
 0x6b7   :  { %3797 = vrot.lane.b32.xlu1 %v3775_v34, %s15051_s23 }
 0x6bb   :  { %4041 = vrot.lane.b32.xlu1 %v11113_v36, %s15048_s27 }
 0x71c   :  { %v3788_v38 = vpop.permute.xlu0 %3787 }
 0x71d   :  { %v3786_v39 = vpop.permute.xlu1 %3785  ;;  %v3810_v28 = vmax.f32 %v3770_v12, %v3788_v38 }
 0x71e   :  { %v3809_v40 = vmax.f32 %v3769_v22, %v3786_v39 }
 0x720   :  { %12704 = vmatprep.mubr.msk.f32.mxu1 %vm3821_vm9, %v3809_v40  ;;  %v3792_v30 = vpop.permute.xlu0 %3791 }
 0x721   :  { %12705 = vmatmul.mubr.msk.f32.vlgmr.msra.gmra.mrb[16].mxu1 %vm3821_vm9, %v3810_v28  ;;  %v3790_v41 = vpop.permute.xlu1 %3789  ;;  %v3812_v43 = vmax.f32 %v3772_v24, %v3792_v30 }
 0x722   :  { %v3811_v44 = vmax.f32 %v3771_v26, %v3790_v41 }
 0x724   :  { %12707 = vmatprep.mubr.msk.f32.mxu1 %vm3821_vm9, %v3811_v44  ;;  %v3796_v45 = vpop.permute.xlu0 %3795 }
 0x725   :  { %12708 = vmatmul.mubr.msk.f32.gmra.mrb[18].mxu1 %vm3821_vm9, %v3812_v43  ;;  %v3794_v46 = vpop.permute.xlu1 %3793  ;;  %v3814_v51 = vmax.f32 %v3774_v29, %v3796_v45 }
 0x726   :  { %v3813_v48 = vmax.f32 %v3773_v32, %v3794_v46 }
 0x728   :  { %12710 = vmatprep.mubr.msk.f32.mxu1 %vm3821_vm9, %v3813_v48  ;;  %v3800_v49 = vpop.permute.xlu0 %3799 }
 0x729   :  { %12711 = vmatmul.mubr.msk.f32.gmra.mrb[20].mxu1 %vm3821_vm9, %v3814_v51  ;;  %v3798_v50 = vpop.permute.xlu1 %3797  ;;  %v3816_v52 = vmax.f32 %v3776_v35, %v3800_v49 }
 0x72a   :  { %v3815_v47 = vmax.f32 %v3775_v34, %v3798_v50  ;;  %v11114_v34 = vld [vmem:[%s15117_s3 + $0x40] sm:$0xff] }
 0x72c   :  { %12713 = vmatprep.mubr.msk.f32.mxu1 %vm3821_vm9, %v3815_v47 }
 0x72d   :  { %12714 = vmatmul.mubr.msk.f32.gmra.mrb[22].mxu1 %vm3821_vm9, %v3816_v52  ;;  %v4042_v62 = vpop.permute.xlu1 %4041 }
 0x72e   :  { %12732 = vmatprep.mubr.msk.f32.mxu1 %vm2548_vm8, %v11114_v34 }
 0x7f4   :  { %v15854_v53 = vpop.f32.mrb[16].mxu1 }
 0x7f5   :  { %17719 = vst [vmem:[#allocation28_spill] sm:$0xff] %v15854_v53  ;;  %3972 = vrot.lane.b32.xlu0 %v15854_v53, %s15044_s15  ;;  %v15858_v54 = vpop.f32.mrb[17].mxu1 }
 0x7f6   :  { %17720 = vst [vmem:[#allocation29_spill] sm:$0xff] %v15858_v54  ;;  %3970 = vrot.lane.b32.xlu1 %v15858_v54, %s15044_s15 }
 0x7f8   :  { %v15862_v55 = vpop.f32.mrb[18].mxu1 }
 0x7f9   :  { %17721 = vst [vmem:[#allocation30_spill] sm:$0xff] %v15862_v55  ;;  %3976 = vrot.lane.b32.xlu0 %v15862_v55, %s15044_s15  ;;  %v15866_v56 = vpop.f32.mrb[19].mxu1 }
 0x7fa   :  { %17722 = vst [vmem:[#allocation31_spill] sm:$0xff] %v15866_v56  ;;  %3974 = vrot.lane.b32.xlu1 %v15866_v56, %s15044_s15 }
 0x7fc   :  { %v15870_v57 = vpop.f32.mrb[20].mxu1 }
 0x7fd   :  { %17723 = vst [vmem:[#allocation32_spill] sm:$0xff] %v15870_v57  ;;  %3980 = vrot.lane.b32.xlu0 %v15870_v57, %s15044_s15  ;;  %v15874_v58 = vpop.f32.mrb[21].mxu1 }
 0x7fe   :  { %17724 = vst [vmem:[#allocation33_spill] sm:$0xff] %v15874_v58  ;;  %3978 = vrot.lane.b32.xlu1 %v15874_v58, %s15044_s15 }
 0x800   :  { %v15878_v59 = vpop.f32.mrb[22].mxu1 }
 0x801   :  { %17725 = vst [vmem:[#allocation34_spill] sm:$0xff] %v15878_v59  ;;  %v15880_v60 = vpop.f32.mrb[23].mxu1 }
 0x802   :  { %17726 = vst [vmem:[#allocation35_spill] sm:$0xff] %v15880_v60  ;;  %3984 = vrot.lane.b32.xlu1 %v15878_v59, %s15044_s15  ;;  %3982 = vrot.lane.b32.xlu0 %v15880_v60, %s15044_s15 }
 0x806   :  { %4536 = vrot.lane.b32.xlu0 %v11155_v61, %s15047_s0 }
 0x867   :  { %v3973_v63 = vpop.permute.xlu0 %3972 }
 0x868   :  { %3996 = vst.msk [vmem:[#allocation2 + $0x8] sm:$0xff] %vm3994_vm10, %v3973_v63  ;;  %v3971_v0 = vpop.permute.xlu1 %3970 }
 0x869   :  { %3995 = vst.msk [vmem:[#allocation2] sm:$0xff] %vm3994_vm10, %v3971_v0 }
 0x86b   :  { %v3977_v1 = vpop.permute.xlu0 %3976 }
 0x86c   :  { %3998 = vst.msk [vmem:[#allocation2 + $0x18] sm:$0xff] %vm3994_vm10, %v3977_v1  ;;  %v3975_v2 = vpop.permute.xlu1 %3974 }
 0x86d   :  { %3997 = vst.msk [vmem:[#allocation2 + $0x10] sm:$0xff] %vm3994_vm10, %v3975_v2 }
 0x86f   :  { %v3981_v3 = vpop.permute.xlu0 %3980  ;;  %v15892_v4 = vld [vmem:[#allocation2 + $0x8] sm:$0xff] }
 0x870   :  { %4000 = vst.msk [vmem:[#allocation2 + $0x28] sm:$0xff] %vm3994_vm10, %v3981_v3  ;;  %v3979_v6 = vpop.permute.xlu1 %3978  ;;  %v15895_v7 = vld [vmem:[#allocation2] sm:$0xff]  ;;  %v4045_v8 = vmul.f32 %v4042_v62, %v15892_v4  ;;  %8436 = vst [vmem:[#allocation2 + $0x8] sm:$0xff] %v15046_v5 }
 0x871   :  { %3999 = vst.msk [vmem:[#allocation2 + $0x20] sm:$0xff] %vm3994_vm10, %v3979_v6  ;;  %v4044_v9 = vmul.f32 %v4042_v62, %v15895_v7  ;;  %8435 = vst [vmem:[#allocation2] sm:$0xff] %v15046_v5  ;;  %v14426_v39 = vpack.i.bf16 %v15892_v4, %v15895_v7 }
 0x873   :  { %v14406_v10 = vpack.i.bf16 %v4045_v8, %v4044_v9  ;;  %v15902_v11 = vld [vmem:[#allocation2 + $0x18] sm:$0xff] }
 0x874   :  { %v3983_v12 = vpop.permute.xlu0 %3982  ;;  %v3985_v21 = vpop.permute.xlu1 %3984  ;;  %v15904_v22 = vld [vmem:[#allocation2 + $0x10] sm:$0xff]  ;;  %v4047_v23 = vmul.f32 %v4042_v62, %v15902_v11  ;;  %8438 = vst [vmem:[#allocation2 + $0x18] sm:$0xff] %v15046_v5 }
 0x875   :  { %4001 = vst.msk [vmem:[#allocation2 + $0x30] sm:$0xff] %vm3994_vm10, %v3983_v12  ;;  %4002 = vst.msk [vmem:[#allocation2 + $0x38] sm:$0xff] %vm3994_vm10, %v3985_v21  ;;  %14407 = vrot.lane.b32.xlu1 %v14406_v10, %s15051_s23  ;;  %v4046_v24 = vmul.f32 %v4042_v62, %v15904_v22  ;;  %v14431_v41 = vpack.i.bf16 %v15902_v11, %v15904_v22 }
 0x876   :  { %8437 = vst [vmem:[#allocation2 + $0x10] sm:$0xff] %v15046_v5 }
 0x877   :  { %v14411_v26 = vpack.i.bf16 %v4047_v23, %v4046_v24  ;;  %v15914_v27 = vld [vmem:[#allocation2 + $0x28] sm:$0xff] }
 0x878   :  { %v15916_v29 = vld [vmem:[#allocation2 + $0x20] sm:$0xff]  ;;  %v4049_v31 = vmul.f32 %v4042_v62, %v15914_v27  ;;  %8440 = vst [vmem:[#allocation2 + $0x28] sm:$0xff] %v15046_v5  ;;  %v4537_v28 = vpop.permute.xlu0 %4536 }
 0x879   :  { %4732 = vrot.lane.b32.xlu1 %v11173_v25, %s15049_s18  ;;  %14412 = vrot.lane.b32.xlu0 %v14411_v26, %s15051_s23  ;;  %v4048_v32 = vmul.f32 %v4042_v62, %v15916_v29  ;;  %8439 = vst [vmem:[#allocation2 + $0x20] sm:$0xff] %v15046_v5  ;;  %v14436_v30 = vpack.i.bf16 %v15914_v27, %v15916_v29 }
 0x87a   :  { %v4539_v44 = vmul.f32 %v4537_v28, %v15895_v7  ;;  %v4540_v43 = vmul.f32 %v4537_v28, %v15892_v4  ;;  %v4543_v45 = vmul.f32 %v4537_v28, %v15916_v29  ;;  %v4544_v46 = vmul.f32 %v4537_v28, %v15914_v27 }
 0x87b   :  { %v14416_v33 = vpack.i.bf16 %v4049_v31, %v4048_v32  ;;  %v4541_v49 = vmul.f32 %v4537_v28, %v15904_v22  ;;  %v4542_v50 = vmul.f32 %v4537_v28, %v15902_v11 }
 0x87c   :  { %v15924_v35 = vld [vmem:[#allocation2 + $0x30] sm:$0xff]  ;;  %v15926_v37 = vld [vmem:[#allocation2 + $0x38] sm:$0xff]  ;;  %v14446_v48 = vpack.i.bf16 %v4540_v43, %v4539_v44  ;;  %v14456_v47 = vpack.i.bf16 %v4544_v46, %v4543_v45 }
 0x87d   :  { %14417 = vrot.lane.b32.xlu0 %v14416_v33, %s15051_s23  ;;  %v4050_v36 = vmul.f32 %v4042_v62, %v15924_v35  ;;  %v4051_v38 = vmul.f32 %v4042_v62, %v15926_v37  ;;  %8441 = vst [vmem:[#allocation2 + $0x30] sm:$0xff] %v15046_v5  ;;  %8442 = vst [vmem:[#allocation2 + $0x38] sm:$0xff] %v15046_v5  ;;  %v14441_v51 = vpack.i.bf16 %v15926_v37, %v15924_v35 }
 0x87e   :  { %v14451_v52 = vpack.i.bf16 %v4542_v50, %v4541_v49  ;;  %v4545_v61 = vmul.f32 %v4537_v28, %v15924_v35  ;;  %v4546_v62 = vmul.f32 %v4537_v28, %v15926_v37  ;;  %v11111_v28 = vld [vmem:[%s15122_s8] ss:$0 sm:$0xff]  ;;  %s17872_s8 = sld [smem:[#allocation14_spill]] }
 0x87f   :  { %v14421_v40 = vpack.i.bf16 %v4051_v38, %v4050_v36 }
 0x880   :  { %v14461_v63 = vpack.i.bf16 %v4546_v62, %v4545_v61  ;;  %v11115_v61 = vld [vmem:[%s15117_s3 + $0x48] sm:$0xff]  ;;  %v11116_v62 = vld [vmem:[%s15117_s3 + $0x50] sm:$0xff] }
 0x881   :  { %14427 = vrot.lane.b32.xlu0 %v14426_v39, %s15050_s22  ;;  %14422 = vrot.lane.b32.xlu1 %v14421_v40, %s15051_s23 }
 0x885   :  { %14437 = vrot.lane.b32.xlu0 %v14436_v30, %s15050_s22  ;;  %14432 = vrot.lane.b32.xlu1 %v14431_v41, %s15050_s22 }
 0x889   :  { %14447 = vrot.lane.b32.xlu0 %v14446_v48, %s15055_s2  ;;  %14442 = vrot.lane.b32.xlu1 %v14441_v51, %s15050_s22  ;;  %v4018_v48 = vmul.f32 %v11111_v28, %v15895_v7  ;;  %v4019_v51 = vmul.f32 %v11111_v28, %v15892_v4 }
 0x88b   :  { %v13672_v50 = vpack.c.bf16 %v4019_v51, %v4018_v48  ;;  %v4033_v51 = vld [vmem:[%s15117_s3 + $0x38] sm:$0xff] }
 0x88d   :  { %14457 = vrot.lane.b32.xlu0 %v14456_v47, %s15055_s2  ;;  %14452 = vrot.lane.b32.xlu1 %v14451_v52, %s15055_s2  ;;  %v4020_v47 = vmul.f32 %v11111_v28, %v15904_v22  ;;  %v4021_v52 = vmul.f32 %v11111_v28, %v15902_v11 }
 0x891   :  { %14462 = vrot.lane.b32.xlu1 %v14461_v63, %s15055_s2  ;;  %v4023_v63 = vmul.f32 %v11111_v28, %v15914_v27 }
 0x8e7   :  { %v14408_v0 = vpop.permute.xlu1 %14407 }
 0x8e8   :  { %v14410_v1 = vunpack.i.h.bf16 %v14408_v0  ;;  %v14409_v2 = vunpack.i.l.bf16 %v14408_v0  ;;  %v11117_v0 = vld [vmem:[%s15117_s3 + $0x58] sm:$0xff] }
 0x8ea   :  { %v13656_v3 = vpack.c.bf16 %v14410_v1, %v14409_v2  ;;  %v4024_v1 = vmul.f32 %v11111_v28, %v15924_v35  ;;  %v4025_v2 = vmul.f32 %v11111_v28, %v15926_v37 }
 0x8eb   :  { %v14413_v6 = vpop.permute.xlu0 %14412  ;;  %v4733_v8 = vpop.permute.xlu1 %4732 }
 0x8ec   :  { %v14415_v9 = vunpack.i.h.bf16 %v14413_v6  ;;  %v14414_v10 = vunpack.i.l.bf16 %v14413_v6  ;;  %13657 = vmatprep.subr.bf16.mxu1 %v13656_v3  ;;  %v4737_v12 = vmul.f32 %v4733_v8, %v15904_v22  ;;  %v4738_v21 = vmul.f32 %v4733_v8, %v15902_v11  ;;  %v11118_v22 = vld [vmem:[%s15117_s3 + $0x60] sm:$0xff] }
 0x8ed   :  { %13659 = vmatpush3.bf16.msra.mxu1 %v13656_v3  ;;  %v4735_v23 = vmul.f32 %v4733_v8, %v15895_v7  ;;  %v4736_v24 = vmul.f32 %v4733_v8, %v15892_v4  ;;  %v4741_v31 = vmul.f32 %v4733_v8, %v15924_v35  ;;  %v4742_v32 = vmul.f32 %v4733_v8, %v15926_v37  ;;  %v11121_v35 = vld [vmem:[%s15117_s3 + $0x78] sm:$0xff]  ;;  %v4026_v37 = vld [vmem:[%s15117_s3] sm:$0xff] }
 0x8ee   :  { %v14471_v25 = vpack.i.bf16 %v4738_v21, %v4737_v12  ;;  %v13660_v26 = vpack.c.bf16 %v14415_v9, %v14414_v10  ;;  %v4739_v36 = vmul.f32 %v4733_v8, %v15916_v29  ;;  %v4740_v38 = vmul.f32 %v4733_v8, %v15914_v27  ;;  %v11119_v27 = vld [vmem:[%s15117_s3 + $0x68] sm:$0xff] }
 0x8ef   :  { %v14418_v33 = vpop.permute.xlu0 %14417  ;;  %v14466_v34 = vpack.i.bf16 %v4736_v24, %v4735_v23  ;;  %v14481_v30 = vpack.i.bf16 %v4742_v32, %v4741_v31  ;;  %v13676_v4 = vpack.c.bf16 %v4021_v52, %v4020_v47  ;;  %v4022_v7 = vmul.f32 %v11111_v28, %v15916_v29  ;;  %v11120_v29 = vld [vmem:[%s15117_s3 + $0x70] sm:$0xff] }
 0x8f0   :  { %v14420_v39 = vunpack.i.h.bf16 %v14418_v33  ;;  %v14419_v40 = vunpack.i.l.bf16 %v14418_v33  ;;  %14472 = vrot.lane.b32.xlu1 %v14471_v25, %s15057_s7  ;;  %13661 = vmatprep.subr.bf16.mxu1 %v13660_v26  ;;  %v14476_v43 = vpack.i.bf16 %v4740_v38, %v4739_v36  ;;  %v13684_v9 = vpack.c.bf16 %v4025_v2, %v4024_v1  ;;  %v4027_v25 = vld [vmem:[%s15117_s3 + $0x8] sm:$0xff]  ;;  %v4029_v36 = vld [vmem:[%s15117_s3 + $0x18] sm:$0xff]  ;;  %v4030_v38 = vld [vmem:[%s15117_s3 + $0x20] sm:$0xff] }
 0x8f1   :  { %14467 = vrot.lane.b32.xlu0 %v14466_v34, %s15057_s7  ;;  %13663 = vmatpush3.bf16.msra.mxu1 %v13660_v26  ;;  %v13680_v11 = vpack.c.bf16 %v4023_v63, %v4022_v7  ;;  %v4028_v26 = vld [vmem:[%s15117_s3 + $0x10] sm:$0xff]  ;;  %v11142_v1 = vld [vmem:[%s15117_s3 + $0xa0] sm:$0xff] }
 0x8f2   :  { %v13664_v41 = vpack.c.bf16 %v14420_v39, %v14419_v40 }
 0x8f3   :  { %v14423_v44 = vpop.permute.xlu1 %14422  ;;  %v14428_v3 = vpop.permute.xlu0 %14427 }
 0x8f4   :  { %v14425_v45 = vunpack.i.h.bf16 %v14423_v44  ;;  %v14424_v46 = vunpack.i.l.bf16 %v14423_v44  ;;  %14482 = vrot.lane.b32.xlu1 %v14481_v30, %s15057_s7  ;;  %13665 = vmatprep.subr.bf16.mxu1 %v13664_v41  ;;  %v14430_v6 = vunpack.i.h.bf16 %v14428_v3  ;;  %v14429_v8 = vunpack.i.l.bf16 %v14428_v3  ;;  %v4032_v44 = vld [vmem:[%s15117_s3 + $0x30] sm:$0xff] }
 0x8f5   :  { %14477 = vrot.lane.b32.xlu0 %v14476_v43, %s15057_s7  ;;  %13667 = vmatpush3.bf16.msra.mxu1 %v13664_v41  ;;  %v4031_v41 = vld [vmem:[%s15117_s3 + $0x28] sm:$0xff] }
 0x8f6   :  { %v13668_v49 = vpack.c.bf16 %v14425_v45, %v14424_v46  ;;  %v13688_v23 = vpack.c.bf16 %v14430_v6, %v14429_v8  ;;  %v11144_v6 = vld [vmem:[%s15117_s3 + $0xb0] sm:$0xff] }
 0x8f7   :  { %v14433_v10 = vpop.permute.xlu1 %14432  ;;  %v14438_v24 = vpop.permute.xlu0 %14437 }
 0x8f8   :  { %13669 = vmatprep.subr.bf16.mxu1 %v13668_v49  ;;  %v14435_v12 = vunpack.i.h.bf16 %v14433_v10  ;;  %v14434_v21 = vunpack.i.l.bf16 %v14433_v10  ;;  %v14440_v31 = vunpack.i.h.bf16 %v14438_v24  ;;  %v14439_v32 = vunpack.i.l.bf16 %v14438_v24  ;;  %v11156_v10 = vld [vmem:[%s15117_s3 + $0xc0] sm:$0xff]  ;;  %v11162_v24 = vld [vmem:[%s15117_s3 + $0xf0] sm:$0xff] }
 0x8f9   :  { %13671 = vmatpush3.bf16.msra.mxu1 %v13668_v49  ;;  %v11138_v49 = vld [vmem:[%s15117_s3 + $0x80] sm:$0xff] }
 0x8fa   :  { %13673 = vmatprep.subr.bf16.mxu1 %v13672_v50  ;;  %v13692_v33 = vpack.c.bf16 %v14435_v12, %v14434_v21  ;;  %v13696_v28 = vpack.c.bf16 %v14440_v31, %v14439_v32  ;;  %v11159_v12 = vld [vmem:[%s15117_s3 + $0xd8] sm:$0xff]  ;;  %v11160_v21 = vld [vmem:[%s15117_s3 + $0xe0] sm:$0xff] }
 0x8fb   :  { %v14443_v34 = vpop.permute.xlu1 %14442  ;;  %v14448_v30 = vpop.permute.xlu0 %14447 }
 0x8fc   :  { %12733 = vmatmul.mubr.msk.f32.vlgmr.msra.gmra.mrb[24].mxu1 %vm2548_vm8, %v11115_v61  ;;  %v14445_v39 = vunpack.i.h.bf16 %v14443_v34  ;;  %v14444_v40 = vunpack.i.l.bf16 %v14443_v34  ;;  %v14450_v43 = vunpack.i.h.bf16 %v14448_v30  ;;  %v14449_v45 = vunpack.i.l.bf16 %v14448_v30 }
 0x8fd   :  { %13675 = vmatpush3.bf16.msra.mxu1 %v13672_v50  ;;  %12735 = vmatprep.mubr.msk.f32.mxu1 %vm2548_vm8, %v11116_v62  ;;  %v11139_v62 = vld [vmem:[%s15117_s3 + $0x88] sm:$0xff] }
 0x8fe   :  { %13677 = vmatprep.subr.bf16.mxu1 %v13676_v4  ;;  %v13700_v46 = vpack.c.bf16 %v14445_v39, %v14444_v40  ;;  %v13704_v52 = vpack.c.bf16 %v14450_v43, %v14449_v45 }
 0x8ff   :  { %v14453_v48 = vpop.permute.xlu1 %14452  ;;  %v14458_v61 = vpop.permute.xlu0 %14457 }
 0x900   :  { %12736 = vmatmul.mubr.msk.f32.gmra.mrb[26].mxu1 %vm2548_vm8, %v11117_v0  ;;  %v14455_v50 = vunpack.i.h.bf16 %v14453_v48  ;;  %v14454_v47 = vunpack.i.l.bf16 %v14453_v48  ;;  %v14460_v7 = vunpack.i.h.bf16 %v14458_v61  ;;  %v14459_v63 = vunpack.i.l.bf16 %v14458_v61  ;;  %v11180_v61 = vld [vmem:[%s15117_s3 + $0x130] sm:$0xff] }
 0x901   :  { %13679 = vmatpush3.bf16.msra.mxu1 %v13676_v4  ;;  %12738 = vmatprep.mubr.msk.f32.mxu1 %vm2548_vm8, %v11118_v22  ;;  %v11140_v4 = vld [vmem:[%s15117_s3 + $0x90] sm:$0xff] }
 0x902   :  { %13681 = vmatprep.subr.bf16.mxu1 %v13680_v11  ;;  %v13708_v0 = vpack.c.bf16 %v14455_v50, %v14454_v47  ;;  %v11177_v50 = vld [vmem:[%s15117_s3 + $0x118] sm:$0xff]  ;;  %v11178_v47 = vld [vmem:[%s15117_s3 + $0x120] sm:$0xff] }
 0x903   :  { %v14463_v22 = vpop.permute.xlu1 %14462 }
 0x904   :  { %12739 = vmatmul.mubr.msk.f32.gmra.mrb[28].mxu1 %vm2548_vm8, %v11119_v27  ;;  %v14465_v2 = vunpack.i.h.bf16 %v14463_v22  ;;  %v14464_v3 = vunpack.i.l.bf16 %v14463_v22  ;;  %v13712_v27 = vpack.c.bf16 %v14460_v7, %v14459_v63  ;;  %v4970_v7 = vld [vmem:[%s15127_s14 + $0x8] sm:$0x7f] }
 0x905   :  { %13683 = vmatpush3.bf16.msra.mxu1 %v13680_v11  ;;  %12741 = vmatprep.mubr.msk.f32.mxu1 %vm2548_vm8, %v11120_v29  ;;  %v11141_v11 = vld [vmem:[%s15117_s3 + $0x98] sm:$0xff]  ;;  %v11143_v29 = vld [vmem:[%s15117_s3 + $0xa8] sm:$0xff] }
 0x906   :  { %13685 = vmatprep.subr.bf16.mxu1 %v13684_v9  ;;  %v13716_v8 = vpack.c.bf16 %v14465_v2, %v14464_v3 }
 0x908   :  { %12742 = vmatmul.mubr.msk.f32.gmra.mrb[30].mxu1 %vm2548_vm8, %v11121_v35  ;;  %v11157_v35 = vld [vmem:[%s15117_s3 + $0xc8] sm:$0xff] }
 0x909   :  { %13687 = vmatpush3.bf16.msra.mxu1 %v13684_v9  ;;  %12760 = vmatprep.mubr.msk.f32.mxu1 %vm2548_vm8, %v4026_v37  ;;  %v11145_v9 = vld [vmem:[%s15117_s3 + $0xb8] sm:$0xff]  ;;  %v11158_v37 = vld [vmem:[%s15117_s3 + $0xd0] sm:$0xff] }
 0x90a   :  { %13689 = vmatprep.subr.bf16.mxu1 %v13688_v23 }
 0x90c   :  { %12761 = vmatmul.mubr.msk.f32.vlgmr.msra.gmra.mrb[24].mxu1 %vm2548_vm8, %v4027_v25  ;;  %v11163_v25 = vld [vmem:[%s15117_s3 + $0xf8] sm:$0xff] }
 0x90d   :  { %13691 = vmatpush3.bf16.msra.mxu1 %v13688_v23  ;;  %12763 = vmatprep.mubr.msk.f32.mxu1 %vm2548_vm8, %v4028_v26  ;;  %v11161_v23 = vld [vmem:[%s15117_s3 + $0xe8] sm:$0xff]  ;;  %v11174_v26 = vld [vmem:[%s15117_s3 + $0x100] sm:$0xff] }
 0x90e   :  { %13693 = vmatprep.subr.bf16.mxu1 %v13692_v33 }
 0x910   :  { %12764 = vmatmul.mubr.msk.f32.gmra.mrb[26].mxu1 %vm2548_vm8, %v4029_v36 }
 0x911   :  { %13695 = vmatpush3.bf16.msra.mxu1 %v13692_v33  ;;  %12766 = vmatprep.mubr.msk.f32.mxu1 %vm2548_vm8, %v4030_v38 }
 0x912   :  { %13697 = vmatprep.subr.bf16.mxu1 %v13696_v28 }
 0x914   :  { %12767 = vmatmul.mubr.msk.f32.gmra.mrb[28].mxu1 %vm2548_vm8, %v4031_v41 }
 0x915   :  { %13699 = vmatpush3.bf16.msra.mxu1 %v13696_v28  ;;  %12769 = vmatprep.mubr.msk.f32.mxu1 %vm2548_vm8, %v4032_v44 }
 0x916   :  { %13701 = vmatprep.subr.bf16.mxu1 %v13700_v46 }
 0x918   :  { %12770 = vmatmul.mubr.msk.f32.gmra.mrb[30].mxu1 %vm2548_vm8, %v4033_v51  ;;  %v11175_v51 = vld [vmem:[%s15117_s3 + $0x108] sm:$0xff] }
 0x919   :  { %13703 = vmatpush3.bf16.msra.mxu1 %v13700_v46  ;;  %12788 = vmatprep.mubr.msk.f32.mxu1 %vm2548_vm8, %v11138_v49  ;;  %v11176_v49 = vld [vmem:[%s15117_s3 + $0x110] sm:$0xff] }
 0x91a   :  { %13705 = vmatprep.subr.bf16.mxu1 %v13704_v52 }
 0x91c   :  { %12789 = vmatmul.mubr.msk.f32.vlgmr.msra.gmra.mrb[24].mxu1 %vm2548_vm8, %v11139_v62  ;;  %v11181_v62 = vld [vmem:[%s15117_s3 + $0x138] sm:$0xff] }
 0x91d   :  { %13707 = vmatpush3.bf16.msra.mxu1 %v13704_v52  ;;  %12791 = vmatprep.mubr.msk.f32.mxu1 %vm2548_vm8, %v11140_v4  ;;  %v11179_v52 = vld [vmem:[%s15117_s3 + $0x128] sm:$0xff]  ;;  %v4969_v4 = vld [vmem:[%s15127_s14] sm:$0xff]  ;;  %s17865_s3 = sld [smem:[#allocation12_spill]]  ;;  %s17875_s14 = sld [smem:[#allocation17_spill]] }
 0x91e   :  { %13709 = vmatprep.subr.bf16.mxu1 %v13708_v0  ;;  %v13736_v63 = vpack.c.bf16 %v4970_v7, %v4969_v4 }
 0x920   :  { %12792 = vmatmul.mubr.msk.f32.gmra.mrb[26].mxu1 %vm2548_vm8, %v11141_v11  ;;  %13738 = vmatprep.subr.msk.bf16.mxu0 %vm15523_vm5, %v13736_v63 }
 0x921   :  { %13711 = vmatpush3.bf16.msra.mxu1 %v13708_v0  ;;  %12794 = vmatprep.mubr.msk.f32.mxu1 %vm2548_vm8, %v11142_v1 }
 0x922   :  { %13713 = vmatprep.subr.bf16.mxu1 %v13712_v27  ;;  %13741 = vmatpush3.bf16.msk.msra.mxu0 %vm15523_vm5, %v13736_v63  ;;  %vm9541_vm5 = vcmask 261120  }
 0x924   :  { %12795 = vmatmul.mubr.msk.f32.gmra.mrb[28].mxu1 %vm2548_vm8, %v11143_v29 }
 0x925   :  { %13715 = vmatpush3.bf16.msra.mxu1 %v13712_v27  ;;  %12797 = vmatprep.mubr.msk.f32.mxu1 %vm2548_vm8, %v11144_v6 }
 0x926   :  { %13717 = vmatprep.subr.bf16.mxu1 %v13716_v8 }
 0x928   :  { %12798 = vmatmul.mubr.msk.f32.gmra.mrb[30].mxu1 %vm2548_vm8, %v11145_v9 }
 0x929   :  { %13719 = vmatpush3.bf16.msra.mxu1 %v13716_v8  ;;  %12816 = vmatprep.mubr.msk.f32.mxu1 %vm2548_vm8, %v11156_v10 }
 0x92c   :  { %12817 = vmatmul.mubr.msk.f32.vlgmr.msra.gmra.mrb[24].mxu1 %vm2548_vm8, %v11157_v35 }
 0x92d   :  { %12819 = vmatprep.mubr.msk.f32.mxu1 %vm2548_vm8, %v11158_v37 }
 0x930   :  { %12820 = vmatmul.mubr.msk.f32.gmra.mrb[26].mxu1 %vm2548_vm8, %v11159_v12 }
 0x931   :  { %12822 = vmatprep.mubr.msk.f32.mxu1 %vm2548_vm8, %v11160_v21 }
 0x934   :  { %12823 = vmatmul.mubr.msk.f32.gmra.mrb[28].mxu1 %vm2548_vm8, %v11161_v23 }
 0x935   :  { %12825 = vmatprep.mubr.msk.f32.mxu1 %vm2548_vm8, %v11162_v24 }
 0x938   :  { %12826 = vmatmul.mubr.msk.f32.gmra.mrb[30].mxu1 %vm2548_vm8, %v11163_v25 }
 0x939   :  { %12844 = vmatprep.mubr.msk.f32.mxu1 %vm2548_vm8, %v11174_v26 }
 0x962   :  { %v14473_v31 = vpop.permute.xlu1 %14472 }
 0x963   :  { %v14468_v32 = vpop.permute.xlu0 %14467  ;;  %v14475_v36 = vunpack.i.h.bf16 %v14473_v31  ;;  %v14474_v38 = vunpack.i.l.bf16 %v14473_v31 }
 0x964   :  { %v14470_v33 = vunpack.i.h.bf16 %v14468_v32  ;;  %v14469_v34 = vunpack.i.l.bf16 %v14468_v32 }
 0x965   :  { %v13724_v41 = vpack.c.bf16 %v14475_v36, %v14474_v38 }
 0x966   :  { %v13720_v39 = vpack.c.bf16 %v14470_v33, %v14469_v34  ;;  %v14483_v44 = vpop.permute.xlu1 %14482 }
 0x967   :  { %v14478_v40 = vpop.permute.xlu0 %14477  ;;  %v14485_v43 = vunpack.i.h.bf16 %v14483_v44  ;;  %v14484_v45 = vunpack.i.l.bf16 %v14483_v44  ;;  %v5104_v44 = vld [vmem:[%s15132_s19] sm:$0xff]  ;;  %s17876_s19 = sld [smem:[#allocation19_spill]] }
 0x968   :  { %v14480_v28 = vunpack.i.h.bf16 %v14478_v40  ;;  %v14479_v30 = vunpack.i.l.bf16 %v14478_v40  ;;  %13721 = vmatprep.subr.bf16.mxu1 %v13720_v39  ;;  %12872 = vmatprep.subr.mxu0 %v5104_v44 }
 0x969   :  { %13723 = vmatpush3.bf16.msra.mxu1 %v13720_v39  ;;  %v13732_v48 = vpack.c.bf16 %v14485_v43, %v14484_v45  ;;  %v15070_v43 = vmov 0   ;;  %v5260_v45 = vld [vmem:[%s15152_s12 + $0x8] sm:$0xff] }
 0x96a   :  { %13725 = vmatprep.subr.bf16.mxu1 %v13724_v41  ;;  %v13728_v46 = vpack.c.bf16 %v14480_v28, %v14479_v30  ;;  %14487 = vset.pattern.permute.xlu1 %v15070_v43 }
 0x96b   :  { %14486 = vset.pattern.permute.xlu0 %v15070_v43  ;;  %v5696_v43 = vld [vmem:[%s15157_s20 + $0x60] sm:$0xff] }
 0x96d   :  { %13727 = vmatpush3.bf16.msra.mxu1 %v13724_v41 }
 0x96e   :  { %13729 = vmatprep.subr.bf16.mxu1 %v13728_v46 }
 0x971   :  { %13731 = vmatpush3.bf16.msra.mxu1 %v13728_v46  ;;  %v5259_v46 = vld [vmem:[%s15152_s12] sm:$0xff] }
 0x972   :  { %13733 = vmatprep.subr.bf16.mxu1 %v13732_v48 }
 0x975   :  { %13735 = vmatpush3.bf16.msra.mxu1 %v13732_v48  ;;  %v5684_v48 = vld [vmem:[%s15157_s20] sm:$0xff] }
 0x978   :  { %12845 = vmatmul.mubr.msk.f32.vlgmr.msra.gmra.mrb[24].mxu1 %vm2548_vm8, %v11175_v51  ;;  %v5685_v51 = vld [vmem:[%s15157_s20 + $0x8] sm:$0xff] }
 0x979   :  { %12847 = vmatprep.mubr.msk.f32.mxu1 %vm2548_vm8, %v11176_v49  ;;  %v5261_v49 = vld [vmem:[%s15152_s12 + $0x10] sm:$0xff] }
 0x97c   :  { %12848 = vmatmul.mubr.msk.f32.gmra.mrb[26].mxu1 %vm2548_vm8, %v11177_v50  ;;  %v5262_v50 = vld [vmem:[%s15152_s12 + $0x18] sm:$0xff] }
 0x97d   :  { %12850 = vmatprep.mubr.msk.f32.mxu1 %vm2548_vm8, %v11178_v47 }
 0x980   :  { %12851 = vmatmul.mubr.msk.f32.gmra.mrb[28].mxu1 %vm2548_vm8, %v11179_v52 }
 0x981   :  { %12853 = vmatprep.mubr.msk.f32.mxu1 %vm2548_vm8, %v11180_v61 }
 0x984   :  { %12854 = vmatmul.mubr.msk.f32.gmra.mrb[30].mxu1 %vm2548_vm8, %v11181_v62 }
 0xa4b   :  { %v12846_v0 = vpop.f32.mrb[24].mxu1 }
 0xa4c   :  { %v4922_v22 = vmax.f32 %v12846_v0, 0.0  ;;  %v4874_v11 = vpop.f32.mrb[25].mxu1 }
 0xa4d   :  { %v4921_v1 = vmax.f32 %v4874_v11, 0.0  ;;  %v5662_v11 = vld [vmem:[%s15147_s6 + $0x10] sm:$0xff] }
 0xa4e   :  { %4939 = vrot.lane.b32.xlu1 %v4922_v22, %s15051_s23 }
 0xa4f   :  { %4937 = vrot.lane.b32.xlu0 %v4921_v1, %s15051_s23  ;;  %v12849_v2 = vpop.f32.mrb[26].mxu1 }
 0xa50   :  { %v4924_v3 = vmax.f32 %v12849_v2, 0.0  ;;  %v4884_v27 = vpop.f32.mrb[27].mxu1  ;;  %v5664_v2 = vld [vmem:[%s15147_s6 + $0x20] sm:$0xff] }
 0xa51   :  { %v4923_v29 = vmax.f32 %v4884_v27, 0.0  ;;  %v5666_v27 = vld [vmem:[%s15147_s6 + $0x30] sm:$0xff] }
 0xa52   :  { %4943 = vrot.lane.b32.xlu1 %v4924_v3, %s15051_s23 }
 0xa53   :  { %4941 = vrot.lane.b32.xlu0 %v4923_v29, %s15051_s23  ;;  %v12852_v6 = vpop.f32.mrb[28].mxu1 }
 0xa54   :  { %v4926_v8 = vmax.f32 %v12852_v6, 0.0  ;;  %v4894_v42 = vpop.f32.mrb[29].mxu1  ;;  %v5668_v6 = vld [vmem:[%s15147_s6 + $0x40] sm:$0xff] }
 0xa55   :  { %v4925_v9 = vmax.f32 %v4894_v42, 0.0  ;;  %v5670_v42 = vld [vmem:[%s15147_s6 + $0x50] sm:$0xff] }
 0xa56   :  { %4947 = vrot.lane.b32.xlu1 %v4926_v8, %s15051_s23 }
 0xa57   :  { %4945 = vrot.lane.b32.xlu0 %v4925_v9, %s15051_s23  ;;  %v12855_v10 = vpop.f32.mrb[30].mxu1 }
 0xa58   :  { %v4928_v35 = vmax.f32 %v12855_v10, 0.0  ;;  %v4904_v37 = vpop.f32.mrb[31].mxu1  ;;  %v5686_v10 = vld [vmem:[%s15157_s20 + $0x10] sm:$0xff] }
 0xa59   :  { %v4927_v12 = vmax.f32 %v4904_v37, 0.0  ;;  %v5263_v37 = vld [vmem:[%s15152_s12 + $0x20] sm:$0xff] }
 0xa5a   :  { %4951 = vrot.lane.b32.xlu1 %v4928_v35, %s15051_s23 }
 0xa5b   :  { %4949 = vrot.lane.b32.xlu0 %v4927_v12, %s15051_s23 }
 0xa5e   :  { %5290 = vperm.xlu1 %14487, %v5260_v45   ;;  %v5697_v45 = vld [vmem:[%s15157_s20 + $0x68] sm:$0xff] }
 0xa5f   :  { %5285 = vperm.xlu0 %14486, %v5259_v46   ;;  %v5273_v46 = vld [vmem:[%s15152_s12 + $0x70] sm:$0xff] }
 0xa62   :  { %5710 = vperm.xlu1 %14487, %v5684_v48   ;;  %v5274_v48 = vld [vmem:[%s15152_s12 + $0x78] sm:$0xff] }
 0xa63   :  { %5715 = vperm.xlu0 %14486, %v5685_v51   ;;  %v5698_v51 = vld [vmem:[%s15157_s20 + $0x70] sm:$0xff] }
 0xa66   :  { %5295 = vperm.xlu1 %14487, %v5261_v49   ;;  %v5699_v49 = vld [vmem:[%s15157_s20 + $0x78] sm:$0xff] }
 0xa67   :  { %5300 = vperm.xlu0 %14486, %v5262_v50   ;;  %v5700_v50 = vld [vmem:[%s15157_s20 + $0x80] sm:$0xff] }
 0xa6a   :  { %5720 = vperm.xlu1 %14487, %v5686_v10  }
 0xa6e   :  { %5305 = vperm.xlu1 %14487, %v5263_v37  }
 0xac0   :  { %v4940_v21 = vpop.permute.xlu1 %4939 }
 0xac1   :  { %v4938_v23 = vpop.permute.xlu0 %4937  ;;  %v4962_v25 = vmax.f32 %v4922_v22, %v4940_v21  ;;  %v16097_v22 = vld [vmem:[%s15147_s6] sm:$0xff] }
 0xac2   :  { %v4961_v24 = vmax.f32 %v4921_v1, %v4938_v23  ;;  %v5663_v1 = vld [vmem:[%s15147_s6 + $0x18] sm:$0xff]  ;;  %v5688_v21 = vld [vmem:[%s15157_s20 + $0x20] sm:$0xff]  ;;  %v5689_v23 = vld [vmem:[%s15157_s20 + $0x28] sm:$0xff] }
 0xac3   :  { %5730 = vperm.xlu1 %14487, %v5688_v21  }
 0xac4   :  { %12860 = vmatprep.mubr.msk.f32.mxu0 %vm4971_vm11, %v4961_v24  ;;  %v4944_v26 = vpop.permute.xlu1 %4943  ;;  %v5265_v24 = vld [vmem:[%s15152_s12 + $0x30] sm:$0xff] }
 0xac5   :  { %12861 = vmatmul.mubr.msk.f32.vlgmr.msra.gmra.mrb[8].mxu0 %vm4971_vm11, %v4962_v25  ;;  %v4942_v31 = vpop.permute.xlu0 %4941  ;;  %v4964_v33 = vmax.f32 %v4924_v3, %v4944_v26  ;;  %v5665_v3 = vld [vmem:[%s15147_s6 + $0x28] sm:$0xff]  ;;  %v5266_v25 = vld [vmem:[%s15152_s12 + $0x38] sm:$0xff]  ;;  %v5235_v26 = vld [vmem:[%s17727_s9] sm:$0xff] }
 0xac6   :  { %v4963_v32 = vmax.f32 %v4923_v29, %v4942_v31  ;;  %12873 = vmatpush3.msra.mxu0 %v5104_v44  ;;  %v5667_v29 = vld [vmem:[%s15147_s6 + $0x38] sm:$0xff]  ;;  %v5690_v31 = vld [vmem:[%s15157_s20 + $0x30] sm:$0xff]  ;;  %12902 = vmatprep.mubr.msk.f32.mxu1 %vm2548_vm8, %v5235_v26  ;;  %v5272_v44 = vld [vmem:[%s15152_s12 + $0x68] sm:$0xff] }
 0xac7   :  { %12938 = vmatprep.subr.mxu0 %v15046_v5  ;;  %5315 = vperm.xlu1 %14487, %v5265_v24  }
 0xac8   :  { %12863 = vmatprep.mubr.msk.f32.mxu0 %vm4971_vm11, %v4963_v32  ;;  %v4948_v34 = vpop.permute.xlu1 %4947  ;;  %v5691_v32 = vld [vmem:[%s15157_s20 + $0x38] sm:$0xff] }
 0xac9   :  { %12864 = vmatmul.mubr.msk.f32.gmra.mrb[10].mxu0 %vm4971_vm11, %v4964_v33  ;;  %v4946_v36 = vpop.permute.xlu0 %4945  ;;  %v4966_v39 = vmax.f32 %v4926_v8, %v4948_v34  ;;  %v5669_v8 = vld [vmem:[%s15147_s6 + $0x48] sm:$0xff]  ;;  %v5267_v33 = vld [vmem:[%s15152_s12 + $0x40] sm:$0xff] }
 0xaca   :  { %v4965_v38 = vmax.f32 %v4925_v9, %v4946_v36  ;;  %v5671_v9 = vld [vmem:[%s15147_s6 + $0x58] sm:$0xff]  ;;  %v5268_v34 = vld [vmem:[%s15152_s12 + $0x48] sm:$0xff]  ;;  %v5692_v36 = vld [vmem:[%s15157_s20 + $0x40] sm:$0xff] }
 0xacb   :  { %5740 = vperm.xlu1 %14487, %v5690_v31  }
 0xacc   :  { %12866 = vmatprep.mubr.msk.f32.mxu0 %vm4971_vm11, %v4965_v38  ;;  %v4952_v40 = vpop.permute.xlu1 %4951  ;;  %v5693_v38 = vld [vmem:[%s15157_s20 + $0x48] sm:$0xff] }
 0xacd   :  { %12867 = vmatmul.mubr.msk.f32.gmra.mrb[12].mxu0 %vm4971_vm11, %v4966_v39  ;;  %v4950_v28 = vpop.permute.xlu0 %4949  ;;  %v4968_v41 = vmax.f32 %v4928_v35, %v4952_v40  ;;  %v5687_v35 = vld [vmem:[%s15157_s20 + $0x18] sm:$0xff]  ;;  %v5269_v39 = vld [vmem:[%s15152_s12 + $0x50] sm:$0xff] }
 0xace   :  { %v4967_v30 = vmax.f32 %v4927_v12, %v4950_v28  ;;  %5725 = vperm.xlu0 %14486, %v5687_v35   ;;  %v5264_v12 = vld [vmem:[%s15152_s12 + $0x28] sm:$0xff]  ;;  %v5270_v40 = vld [vmem:[%s15152_s12 + $0x58] sm:$0xff]  ;;  %v5694_v28 = vld [vmem:[%s15157_s20 + $0x50] sm:$0xff] }
 0xacf   :  { %5325 = vperm.xlu1 %14487, %v5267_v33  }
 0xad0   :  { %12869 = vmatprep.mubr.msk.f32.mxu0 %vm4971_vm11, %v4967_v30  ;;  %v5695_v30 = vld [vmem:[%s15157_s20 + $0x58] sm:$0xff] }
 0xad1   :  { %12870 = vmatmul.mubr.msk.f32.gmra.mrb[14].mxu0 %vm4971_vm11, %v4968_v41  ;;  %v5271_v41 = vld [vmem:[%s15152_s12 + $0x60] sm:$0xff] }
 0xad2   :  { %5310 = vperm.xlu0 %14486, %v5264_v12  }
 0xad3   :  { %5750 = vperm.xlu1 %14487, %v5692_v36   ;;  %v5236_v36 = vld [vmem:[%s17727_s9 + $0x8] sm:$0xff] }
 0xad6   :  { %5735 = vperm.xlu0 %14486, %v5689_v23  }
 0xad7   :  { %5335 = vperm.xlu1 %14487, %v5269_v39   ;;  %v5237_v39 = vld [vmem:[%s17727_s9 + $0x10] sm:$0xff] }
 0xada   :  { %5320 = vperm.xlu0 %14486, %v5266_v25  }
 0xadb   :  { %5760 = vperm.xlu1 %14487, %v5694_v28  }
 0xade   :  { %5745 = vperm.xlu0 %14486, %v5691_v32  }
 0xadf   :  { %5345 = vperm.xlu1 %14487, %v5271_v41  }
 0xae2   :  { %5330 = vperm.xlu0 %14486, %v5268_v34  }
 0xae3   :  { %5770 = vperm.xlu1 %14487, %v5696_v43  }
 0xae6   :  { %5755 = vperm.xlu0 %14486, %v5693_v38  }
 0xae7   :  { %5355 = vperm.xlu1 %14487, %v5273_v46  }
 0xaea   :  { %5340 = vperm.xlu0 %14486, %v5270_v40   ;;  %v14952_v40 = vld [vmem:[#allocation2 + $0x8] sm:$0xff] }
 0xaeb   :  { %5780 = vperm.xlu1 %14487, %v5698_v51  }
 0xaee   :  { %5765 = vperm.xlu0 %14486, %v5695_v30   ;;  %v5238_v30 = vld [vmem:[%s17727_s9 + $0x18] sm:$0xff] }
 0xaef   :  { %5790 = vperm.xlu1 %14487, %v5700_v50  }
 0xaf2   :  { %5350 = vperm.xlu0 %14486, %v5272_v44   ;;  %v5239_v44 = vld [vmem:[%s17727_s9 + $0x20] sm:$0xff] }
 0xaf6   :  { %5775 = vperm.xlu0 %14486, %v5697_v45   ;;  %v5240_v45 = vld [vmem:[%s17727_s9 + $0x28] sm:$0xff] }
 0xafa   :  { %5360 = vperm.xlu0 %14486, %v5274_v48   ;;  %v5241_v48 = vld [vmem:[%s17727_s9 + $0x30] sm:$0xff] }
 0xafe   :  { %5785 = vperm.xlu0 %14486, %v5699_v49   ;;  %v5242_v49 = vld [vmem:[%s17727_s9 + $0x38] sm:$0xff] }
 0xb98   :  { %v12862_v47 = vpop.f32.mrb[8].mxu0 }
 0xb99   :  { %v5065_v52 = vpop.f32.mrb[9].mxu0 }
 0xb9a   :  { %12874 = vmatprep.mubr.msk.f32.mxu0 %vm5105_vm12, %v5065_v52  ;;  %v5275_v52 = vld [vmem:[%s15152_s12 + $0x80] sm:$0xff] }
 0xb9b   :  { %12875 = vmatmul.mubr.msk.f32.vlgmr.msra.gmra.mrb[16].mxu0 %vm5105_vm12, %v12862_v47  ;;  %v5701_v47 = vld [vmem:[%s15157_s20 + $0x88] sm:$0xff]  ;;  %5365 = vperm.xlu1 %14487, %v5275_v52  }
 0xb9c   :  { %v12865_v61 = vpop.f32.mrb[10].mxu0  ;;  %12939 = vmatpush3.msra.mxu0 %v15046_v5  ;;  %v5661_v5 = vld [vmem:[%s15147_s6 + $0x8] sm:$0xff]  ;;  %5795 = vperm.xlu0 %14486, %v5701_v47   ;;  %v5243_v47 = vld [vmem:[%s17727_s9 + $0x40] sm:$0xff] }
 0xb9d   :  { %v5075_v62 = vpop.f32.mrb[11].mxu0 }
 0xb9e   :  { %12877 = vmatprep.mubr.msk.f32.mxu0 %vm5105_vm12, %v5075_v62  ;;  %v5702_v62 = vld [vmem:[%s15157_s20 + $0x90] sm:$0xff] }
 0xb9f   :  { %12878 = vmatmul.mubr.msk.f32.gmra.mrb[18].mxu0 %vm5105_vm12, %v12865_v61  ;;  %v5276_v61 = vld [vmem:[%s15152_s12 + $0x88] sm:$0xff]  ;;  %5800 = vperm.xlu1 %14487, %v5702_v62  }
 0xba0   :  { %v12868_v4 = vpop.f32.mrb[12].mxu0  ;;  %5370 = vperm.xlu0 %14486, %v5276_v61   ;;  %v5244_v61 = vld [vmem:[%s17727_s9 + $0x48] sm:$0xff] }
 0xba1   :  { %v5085_v7 = vpop.f32.mrb[13].mxu0 }
 0xba2   :  { %12880 = vmatprep.mubr.msk.f32.mxu0 %vm5105_vm12, %v5085_v7  ;;  %v5277_v7 = vld [vmem:[%s15152_s12 + $0x90] sm:$0xff] }
 0xba3   :  { %12881 = vmatmul.mubr.msk.f32.gmra.mrb[20].mxu0 %vm5105_vm12, %v12868_v4  ;;  %v5703_v4 = vld [vmem:[%s15157_s20 + $0x98] sm:$0xff]  ;;  %5375 = vperm.xlu1 %14487, %v5277_v7  }
 0xba4   :  { %v12871_v63 = vpop.f32.mrb[14].mxu0  ;;  %5805 = vperm.xlu0 %14486, %v5703_v4   ;;  %v5245_v4 = vld [vmem:[%s17727_s9 + $0x50] sm:$0xff] }
 0xba5   :  { %v5095_v0 = vpop.f32.mrb[15].mxu0 }
 0xba6   :  { %12883 = vmatprep.mubr.msk.f32.mxu0 %vm5105_vm12, %v5095_v0  ;;  %v5704_v0 = vld [vmem:[%s15157_s20 + $0xa0] sm:$0xff] }
 0xba7   :  { %12884 = vmatmul.mubr.msk.f32.gmra.mrb[22].mxu0 %vm5105_vm12, %v12871_v63  ;;  %v5278_v63 = vld [vmem:[%s15152_s12 + $0x98] sm:$0xff]  ;;  %5810 = vperm.xlu1 %14487, %v5704_v0  }
 0xba8   :  { %12940 = vmatprep.mubr.msk.f32.mxu0 %vm2548_vm8, %v16097_v22  ;;  %5380 = vperm.xlu0 %14486, %v5278_v63   ;;  %v5246_v63 = vld [vmem:[%s17727_s9 + $0x58] sm:$0xff] }
 0xbab   :  { %12941 = vmatmul.mubr.msk.f32.vlgmr.msra.gmra.mrb[24].mxu0 %vm2548_vm8, %v5661_v5  ;;  %v5705_v5 = vld [vmem:[%s15157_s20 + $0xa8] sm:$0xff] }
 0xbac   :  { %12943 = vmatprep.mubr.msk.f32.mxu0 %vm2548_vm8, %v5662_v11  ;;  %5815 = vperm.xlu0 %14486, %v5705_v5   ;;  %v5279_v11 = vld [vmem:[%s15152_s12 + $0xa0] sm:$0xff] }
 0xbad   :  { %5385 = vperm.xlu1 %14487, %v5279_v11   ;;  %v5247_v5 = vld [vmem:[%s17727_s9 + $0x60] sm:$0xff]  ;;  %v5248_v11 = vld [vmem:[%s17727_s9 + $0x68] sm:$0xff] }
 0xbaf   :  { %12944 = vmatmul.mubr.msk.f32.gmra.mrb[26].mxu0 %vm2548_vm8, %v5663_v1  ;;  %v5280_v1 = vld [vmem:[%s15152_s12 + $0xa8] sm:$0xff] }
 0xbb0   :  { %12946 = vmatprep.mubr.msk.f32.mxu0 %vm2548_vm8, %v5664_v2  ;;  %5390 = vperm.xlu0 %14486, %v5280_v1   ;;  %v5706_v2 = vld [vmem:[%s15157_s20 + $0xb0] sm:$0xff] }
 0xbb1   :  { %5820 = vperm.xlu1 %14487, %v5706_v2   ;;  %v5249_v1 = vld [vmem:[%s17727_s9 + $0x70] sm:$0xff]  ;;  %v5250_v2 = vld [vmem:[%s17727_s9 + $0x78] sm:$0xff] }
 0xbb3   :  { %12947 = vmatmul.mubr.msk.f32.gmra.mrb[28].mxu0 %vm2548_vm8, %v5665_v3  ;;  %v5707_v3 = vld [vmem:[%s15157_s20 + $0xb8] sm:$0xff]  ;;  %s17883_s20 = sld [smem:[#allocation18_spill]] }
 0xbb4   :  { %12949 = vmatprep.mubr.msk.f32.mxu0 %vm2548_vm8, %v5666_v27  ;;  %5825 = vperm.xlu0 %14486, %v5707_v3   ;;  %v5281_v27 = vld [vmem:[%s15152_s12 + $0xb0] sm:$0xff]  ;;  %v5251_v3 = vld [vmem:[%s17727_s9 + $0x80] sm:$0xff] }
 0xbb5   :  { %5395 = vperm.xlu1 %14487, %v5281_v27   ;;  %v5252_v27 = vld [vmem:[%s17727_s9 + $0x88] sm:$0xff] }
 0xbb7   :  { %12950 = vmatmul.mubr.msk.f32.gmra.mrb[30].mxu0 %vm2548_vm8, %v5667_v29  ;;  %v5282_v29 = vld [vmem:[%s15152_s12 + $0xb8] sm:$0xff]  ;;  %s17882_s12 = sld [smem:[#allocation13_spill]] }
 0xbb8   :  { %12952 = vmatprep.mubr.msk.f32.mxu0 %vm2548_vm8, %v5668_v6  ;;  %5400 = vperm.xlu0 %14486, %v5282_v29   ;;  %v5253_v29 = vld [vmem:[%s17727_s9 + $0x90] sm:$0xff] }
 0xbbb   :  { %12953 = vmatmul.mubr.msk.f32.gmra.mrb[32].mxu0 %vm2548_vm8, %v5669_v8 }
 0xbbc   :  { %12955 = vmatprep.mubr.msk.f32.mxu0 %vm2548_vm8, %v5670_v42 }
 0xbbf   :  { %12956 = vmatmul.mubr.msk.f32.gmra.mrb[34].mxu0 %vm2548_vm8, %v5671_v9 }
 0xc6e   :  { %v12876_v6 = vpop.f32.mrb[16].mxu0 }
 0xc6f   :  { %v5196_v8 = vpop.f32.mrb[17].mxu0 }
 0xc70   :  { %v16169_v42 = vpack.i.bf16 %v12876_v6, %v5196_v8  ;;  %v16171_v9 = vpack.c.bf16 %v12876_v6, %v5196_v8  ;;  %v5254_v6 = vld [vmem:[%s17727_s9 + $0x98] sm:$0xff]  ;;  %v5255_v8 = vld [vmem:[%s17727_s9 + $0xa0] sm:$0xff] }
 0xc72   :  { %17728 = vst [vmem:[#allocation36_spill] sm:$0xff] %v16169_v42  ;;  %17729 = vst [vmem:[#allocation37_spill] sm:$0xff] %v16171_v9  ;;  %v12879_v10 = vpop.f32.mrb[18].mxu0  ;;  %13743 = vmatprep.subr.bf16.mxu1 %v16171_v9 }
 0xc73   :  { %v5206_v35 = vpop.f32.mrb[19].mxu0  ;;  %13745 = vmatpush3.bf16.msra.mxu1 %v16171_v9 }
 0xc74   :  { %v16175_v37 = vpack.i.bf16 %v12879_v10, %v5206_v35  ;;  %v16177_v12 = vpack.c.bf16 %v12879_v10, %v5206_v35  ;;  %v5256_v10 = vld [vmem:[%s17727_s9 + $0xa8] sm:$0xff]  ;;  %v5257_v35 = vld [vmem:[%s17727_s9 + $0xb0] sm:$0xff] }
 0xc76   :  { %17730 = vst [vmem:[#allocation38_spill] sm:$0xff] %v16175_v37  ;;  %17731 = vst [vmem:[#allocation39_spill] sm:$0xff] %v16177_v12  ;;  %v12882_v21 = vpop.f32.mrb[20].mxu0  ;;  %13747 = vmatprep.subr.bf16.mxu1 %v16177_v12 }
 0xc77   :  { %v5216_v23 = vpop.f32.mrb[21].mxu0  ;;  %13749 = vmatpush3.bf16.msra.mxu1 %v16177_v12 }
 0xc78   :  { %v16181_v24 = vpack.i.bf16 %v12882_v21, %v5216_v23  ;;  %v16183_v25 = vpack.c.bf16 %v12882_v21, %v5216_v23  ;;  %v5258_v21 = vld [vmem:[%s17727_s9 + $0xb8] sm:$0xff]  ;;  %v16263_v23 = vld [vmem:[%s15147_s6 + $0x60] sm:$0xff] }
 0xc7a   :  { %17732 = vst [vmem:[#allocation40_spill] sm:$0xff] %v16181_v24  ;;  %17733 = vst [vmem:[#allocation41_spill] sm:$0xff] %v16183_v25  ;;  %v12885_v26 = vpop.f32.mrb[22].mxu0  ;;  %13751 = vmatprep.subr.bf16.mxu1 %v16183_v25 }
 0xc7b   :  { %v5226_v31 = vpop.f32.mrb[23].mxu0  ;;  %13753 = vmatpush3.bf16.msra.mxu1 %v16183_v25 }
 0xc7c   :  { %v16187_v32 = vpack.i.bf16 %v12885_v26, %v5226_v31  ;;  %v16189_v33 = vpack.c.bf16 %v12885_v26, %v5226_v31  ;;  %v16269_v26 = vld [vmem:[%s15147_s6 + $0x68] sm:$0xff]  ;;  %v16272_v31 = vld [vmem:[%s15147_s6 + $0x70] sm:$0xff] }
 0xc7e   :  { %17734 = vst [vmem:[#allocation42_spill] sm:$0xff] %v16187_v32  ;;  %17735 = vst [vmem:[#allocation43_spill] sm:$0xff] %v16189_v33  ;;  %13755 = vmatprep.subr.bf16.mxu1 %v16189_v33  ;;  %v16192_v34 = vpop.f32.mrb[24].mxu0 }
 0xc7f   :  { %13757 = vmatpush3.bf16.msra.mxu1 %v16189_v33  ;;  %v16196_v38 = vpop.f32.mrb[25].mxu0 }
 0xc80   :  { %13976 = vmatprep.subr.mxu1 %v14952_v40 }
 0xc82   :  { %12903 = vmatmul.mubr.msk.f32.vlgmr.msra.gmra.mrb[32].mxu1 %vm2548_vm8, %v5236_v36  ;;  %v16200_v28 = vpop.f32.mrb[26].mxu0  ;;  %v16279_v36 = vld [vmem:[%s15147_s6 + $0x78] sm:$0xff] }
 0xc83   :  { %12905 = vmatprep.mubr.msk.f32.mxu1 %vm2548_vm8, %v5237_v39  ;;  %13977 = vmatpush3.msra.mxu1 %v14952_v40  ;;  %v16204_v41 = vpop.f32.mrb[27].mxu0  ;;  %17736 = vst [vmem:[#allocation44_spill] sm:$0xff] %v16279_v36  ;;  %v16282_v39 = vld [vmem:[%s15147_s6 + $0x80] sm:$0xff]  ;;  %v16289_v40 = vld [vmem:[%s15147_s6 + $0x88] sm:$0xff] }
 0xc84   :  { %17737 = vst [vmem:[#allocation45_spill] sm:$0xff] %v16282_v39  ;;  %17738 = vst [vmem:[#allocation46_spill] sm:$0xff] %v16289_v40 }
 0xc86   :  { %12906 = vmatmul.mubr.msk.f32.gmra.mrb[34].mxu1 %vm2548_vm8, %v5238_v30  ;;  %v16208_v43 = vpop.f32.mrb[28].mxu0  ;;  %v16292_v30 = vld [vmem:[%s15147_s6 + $0x90] sm:$0xff] }
 0xc87   :  { %12908 = vmatprep.mubr.msk.f32.mxu1 %vm2548_vm8, %v5239_v44  ;;  %v16212_v46 = vpop.f32.mrb[29].mxu0  ;;  %17739 = vst [vmem:[#allocation47_spill] sm:$0xff] %v16292_v30  ;;  %v16299_v44 = vld [vmem:[%s15147_s6 + $0x98] sm:$0xff] }
 0xc88   :  { %17740 = vst [vmem:[#allocation48_spill] sm:$0xff] %v16299_v44 }
 0xc8a   :  { %12909 = vmatmul.mubr.msk.f32.gmra.mrb[36].mxu1 %vm2548_vm8, %v5240_v45  ;;  %v16216_v51 = vpop.f32.mrb[30].mxu0  ;;  %v16302_v45 = vld [vmem:[%s15147_s6 + $0xa0] sm:$0xff] }
 0xc8b   :  { %12911 = vmatprep.mubr.msk.f32.mxu1 %vm2548_vm8, %v5241_v48  ;;  %v16220_v50 = vpop.f32.mrb[31].mxu0  ;;  %17741 = vst [vmem:[#allocation49_spill] sm:$0xff] %v16302_v45  ;;  %v16309_v48 = vld [vmem:[%s15147_s6 + $0xa8] sm:$0xff] }
 0xc8c   :  { %17742 = vst [vmem:[#allocation50_spill] sm:$0xff] %v16309_v48 }
 0xc8e   :  { %12912 = vmatmul.mubr.msk.f32.gmra.mrb[38].mxu1 %vm2548_vm8, %v5242_v49  ;;  %v16224_v52 = vpop.f32.mrb[32].mxu0  ;;  %v16312_v49 = vld [vmem:[%s15147_s6 + $0xb0] sm:$0xff] }
 0xc8f   :  { %12914 = vmatprep.mubr.msk.f32.mxu1 %vm2548_vm8, %v5243_v47  ;;  %v16228_v62 = vpop.f32.mrb[33].mxu0  ;;  %17743 = vst [vmem:[#allocation51_spill] sm:$0xff] %v16312_v49  ;;  %v16319_v47 = vld [vmem:[%s15147_s6 + $0xb8] sm:$0xff] }
 0xc90   :  { %17744 = vst [vmem:[#allocation52_spill] sm:$0xff] %v16319_v47 }
 0xc92   :  { %12915 = vmatmul.mubr.msk.f32.gmra.mrb[40].mxu1 %vm2548_vm8, %v5244_v61  ;;  %v16232_v7 = vpop.f32.mrb[34].mxu0  ;;  %v5286_v61 = vpop.permute.xlu0 %5285 }
 0xc93   :  { %12917 = vmatprep.mubr.msk.f32.mxu1 %vm2548_vm8, %v5245_v4  ;;  %v16236_v0 = vpop.f32.mrb[35].mxu0  ;;  %v5291_v4 = vpop.permute.xlu1 %5290 }
 0xc96   :  { %12918 = vmatmul.mubr.msk.f32.gmra.mrb[42].mxu1 %vm2548_vm8, %v5246_v63  ;;  %v16325_v63 = vpop.permute.xlu0 %5715 }
 0xc97   :  { %12920 = vmatprep.mubr.msk.f32.mxu1 %vm2548_vm8, %v5247_v5  ;;  %17745 = vst [vmem:[#allocation53_spill] sm:$0xff] %v16325_v63  ;;  %v16327_v5 = vpop.permute.xlu1 %5710 }
 0xc9a   :  { %12921 = vmatmul.mubr.msk.f32.gmra.mrb[44].mxu1 %vm2548_vm8, %v5248_v11  ;;  %v5301_v11 = vpop.permute.xlu0 %5300 }
 0xc9b   :  { %12923 = vmatprep.mubr.msk.f32.mxu1 %vm2548_vm8, %v5249_v1  ;;  %v5296_v1 = vpop.permute.xlu1 %5295 }
 0xc9e   :  { %12924 = vmatmul.mubr.msk.f32.gmra.mrb[46].mxu1 %vm2548_vm8, %v5250_v2  ;;  %v16329_v2 = vpop.permute.xlu0 %5725 }
 0xc9f   :  { %12926 = vmatprep.mubr.msk.f32.mxu1 %vm2548_vm8, %v5251_v3  ;;  %v16331_v3 = vpop.permute.xlu1 %5720 }
 0xca2   :  { %12927 = vmatmul.mubr.msk.f32.gmra.mrb[48].mxu1 %vm2548_vm8, %v5252_v27  ;;  %v5311_v27 = vpop.permute.xlu0 %5310 }
 0xca3   :  { %12929 = vmatprep.mubr.msk.f32.mxu1 %vm2548_vm8, %v5253_v29  ;;  %v5306_v29 = vpop.permute.xlu1 %5305 }
 0xca6   :  { %12930 = vmatmul.mubr.msk.f32.gmra.mrb[50].mxu1 %vm2548_vm8, %v5254_v6  ;;  %v16333_v6 = vpop.permute.xlu0 %5735 }
 0xca7   :  { %12932 = vmatprep.mubr.msk.f32.mxu1 %vm2548_vm8, %v5255_v8  ;;  %v16335_v8 = vpop.permute.xlu1 %5730 }
 0xcaa   :  { %12933 = vmatmul.mubr.msk.f32.gmra.mrb[52].mxu1 %vm2548_vm8, %v5256_v10  ;;  %v5321_v10 = vpop.permute.xlu0 %5320 }
 0xcab   :  { %12935 = vmatprep.mubr.msk.f32.mxu1 %vm2548_vm8, %v5257_v35 }
 0xcae   :  { %12936 = vmatmul.mubr.msk.f32.gmra.mrb[54].mxu1 %vm2548_vm8, %v5258_v21  ;;  %v16339_v35 = vpop.permute.xlu0 %5745 }
 0xcaf   :  { %12958 = vmatprep.mubr.msk.f32.mxu1 %vm2548_vm8, %v16263_v23 }
 0xcb2   :  { %12959 = vmatmul.mubr.msk.f32.vlgmr.msra.gmra.mrb[56].mxu1 %vm2548_vm8, %v16269_v26  ;;  %v5331_v33 = vpop.permute.xlu0 %5330 }
 0xcb3   :  { %12961 = vmatprep.mubr.msk.f32.mxu1 %vm2548_vm8, %v16272_v31 }
 0xcb6   :  { %12962 = vmatmul.mubr.msk.f32.gmra.mrb[58].mxu1 %vm2548_vm8, %v16279_v36  ;;  %v16343_v12 = vpop.permute.xlu0 %5755 }
 0xcb7   :  { %12964 = vmatprep.mubr.msk.f32.mxu1 %vm2548_vm8, %v16282_v39 }
 0xcba   :  { %12965 = vmatmul.mubr.msk.f32.gmra.mrb[60].mxu1 %vm2548_vm8, %v16289_v40  ;;  %v16347_v32 = vpop.permute.xlu0 %5340  ;;  %v5982_v40 = vadd.f32 %v16200_v28, %v16329_v2 }
 0xcbb   :  { %12967 = vmatprep.mubr.msk.f32.mxu1 %vm2548_vm8, %v16292_v30 }
 0xcbe   :  { %12968 = vmatmul.mubr.msk.f32.gmra.mrb[62].mxu1 %vm2548_vm8, %v16299_v44  ;;  %v16351_v37 = vpop.permute.xlu0 %5765  ;;  %v5967_v44 = vadd.f32 %v16196_v38, %v16327_v5 }
 0xcbf   :  { %12970 = vmatprep.mubr.msk.f32.mxu1 %vm2548_vm8, %v16302_v45 }
 0xcc2   :  { %12971 = vmatmul.mubr.msk.f32.gmra.mrb[64].mxu1 %vm2548_vm8, %v16309_v48  ;;  %v16355_v18 = vpop.permute.xlu0 %5350  ;;  %v5972_v48 = vadd.f32 %v16192_v34, %v16325_v63  ;;  %v5977_v34 = vadd.f32 %v16204_v41, %v16331_v3 }
 0xcc3   :  { %12973 = vmatprep.mubr.msk.f32.mxu1 %vm2548_vm8, %v16312_v49 }
 0xcc6   :  { %12974 = vmatmul.mubr.msk.f32.gmra.mrb[66].mxu1 %vm2548_vm8, %v16319_v47  ;;  %v16359_v60 = vpop.permute.xlu0 %5775 }
 0xcc7   :  { %12992 = vmatprep.mubr.msk.f32.mxu1 %vm2548_vm8, %v16097_v22  ;;  %v16337_v22 = vpop.permute.xlu1 %5315 }
 0xcca   :  { %v16363_v56 = vpop.permute.xlu0 %5360 }
 0xccb   :  { %v16341_v21 = vpop.permute.xlu1 %5740 }
 0xccf   :  { %v5326_v25 = vpop.permute.xlu1 %5325 }
 0xcd3   :  { %v16345_v9 = vpop.permute.xlu1 %5750 }
 0xcd7   :  { %v16349_v24 = vpop.permute.xlu1 %5335 }
 0xcdb   :  { %v16353_v42 = vpop.permute.xlu1 %5760 }
 0xcdf   :  { %v16357_v16 = vpop.permute.xlu1 %5345 }
 0xce3   :  { %v16361_v59 = vpop.permute.xlu1 %5770 }
 0xce7   :  { %v16365_v54 = vpop.permute.xlu1 %5355 }
 0xd55   :  { %v12904_v20 = vpop.f32.mrb[32].mxu1 }
 0xd56   :  { %v5541_v19 = vpop.f32.mrb[33].mxu1  ;;  %v16367_v53 = vadd.f32 %v12904_v20, %v5291_v4  ;;  %v16382_v4 = vpop.permute.xlu0 %5785 }
 0xd57   :  { %v16369_v49 = vadd.f32 %v5541_v19, %v5286_v61 }
 0xd58   :  { %17746 = vst [vmem:[#allocation54_spill] sm:$0xff] %v16367_v53  ;;  %v6086_v39 = vadd.f32 %v5972_v48, %v16367_v53  ;;  %v5987_v48 = vadd.f32 %v16212_v46, %v16335_v8 }
 0xd59   :  { %v12907_v17 = vpop.f32.mrb[34].mxu1  ;;  %17747 = vst [vmem:[#allocation55_spill] sm:$0xff] %v16369_v49  ;;  %v6085_v19 = vadd.f32 %v5967_v44, %v16369_v49 }
 0xd5a   :  { %v5551_v15 = vpop.f32.mrb[35].mxu1  ;;  %v16373_v45 = vadd.f32 %v12907_v17, %v5301_v11  ;;  %v16387_v17 = vpop.permute.xlu1 %5780  ;;  %v11256_v44 = vmul.f32 -1.442695, %v6086_v39 }
 0xd5b   :  { %v16380_v36 = vadd.f32 %v5551_v15, %v5296_v1  ;;  %v5992_v15 = vadd.f32 %v16208_v43, %v16333_v6  ;;  %v11255_v41 = vmul.f32 -1.442695, %v6085_v19 }
 0xd5c   :  { %17748 = vst [vmem:[#allocation56_spill] sm:$0xff] %v16373_v45  ;;  %v6088_v38 = vadd.f32 %v5982_v40, %v16373_v45  ;;  %v16409_v45 = vpop.permute.xlu0 %5795  ;;  %14628 = vpow2.f32 %v11256_v44 }
 0xd5d   :  { %v12910_v14 = vpop.f32.mrb[36].mxu1  ;;  %17749 = vst [vmem:[#allocation57_spill] sm:$0xff] %v16380_v36  ;;  %17753 = vst [vmem:[#allocation61_spill] sm:$0xff] %v16409_v45  ;;  %14630 = vpow2.f32 %v11255_v41 }
 0xd5e   :  { %v5561_v13 = vpop.f32.mrb[37].mxu1  ;;  %v16385_v61 = vadd.f32 %v12910_v14, %v5311_v27  ;;  %v6087_v14 = vadd.f32 %v5977_v34, %v16380_v36  ;;  %v16415_v39 = vpop.permute.xlu1 %5790 }
 0xd5f   :  { %v16392_v11 = vadd.f32 %v5561_v13, %v5306_v29  ;;  %v6002_v13 = vadd.f32 %v16216_v51, %v16339_v35  ;;  %v11258_v29 = vmul.f32 -1.442695, %v6088_v38  ;;  %17755 = vst [vmem:[#allocation63_spill] sm:$0xff] %v16415_v39  ;;  %v6012_v51 = vadd.f32 %v16224_v52, %v16343_v12 }
 0xd60   :  { %17750 = vst [vmem:[#allocation58_spill] sm:$0xff] %v16385_v61  ;;  %v6090_v40 = vadd.f32 %v5992_v15, %v16385_v61  ;;  %v16438_v41 = vpop.permute.xlu0 %5370 }
 0xd61   :  { %v12913_v58 = vpop.f32.mrb[38].mxu1  ;;  %17751 = vst [vmem:[#allocation59_spill] sm:$0xff] %v16392_v11  ;;  %v6089_v43 = vadd.f32 %v5987_v48, %v16392_v11  ;;  %14632 = vpow2.f32 %v11258_v29 }
 0xd62   :  { %v5571_v57 = vpop.f32.mrb[39].mxu1  ;;  %v16401_v1 = vadd.f32 %v12913_v58, %v5321_v10  ;;  %v11257_v58 = vmul.f32 -1.442695, %v6087_v14  ;;  %v11260_v38 = vmul.f32 -1.442695, %v6090_v40 }
 0xd63   :  { %v16427_v15 = vadd.f32 %v5571_v57, %v16337_v22  ;;  %v16442_v57 = vpop.permute.xlu1 %5365  ;;  %v6022_v22 = vadd.f32 %v16232_v7, %v16351_v37 }
 0xd64   :  { %17752 = vst [vmem:[#allocation60_spill] sm:$0xff] %v16401_v1  ;;  %v6092_v10 = vadd.f32 %v6002_v13, %v16401_v1  ;;  %14634 = vpow2.f32 %v11257_v58 }
 0xd65   :  { %v12916_v55 = vpop.f32.mrb[40].mxu1  ;;  %17757 = vst [vmem:[#allocation65_spill] sm:$0xff] %v16427_v15  ;;  %14636 = vpow2.f32 %v11260_v38 }
 0xd66   :  { %v5581_v47 = vpop.f32.mrb[41].mxu1  ;;  %v16411_v49 = vadd.f32 %v12916_v55, %v5331_v33  ;;  %v6007_v55 = vadd.f32 %v16228_v62, %v16345_v9  ;;  %v11259_v33 = vmul.f32 -1.442695, %v6089_v43  ;;  %v5997_v62 = vadd.f32 %v16220_v50, %v16341_v21  ;;  %v14629_v58 = vpop.eup %14628 }
 0xd67   :  { %v16418_v19 = vadd.f32 %v5581_v47, %v5326_v25  ;;  %v11262_v25 = vmul.f32 -1.442695, %v6092_v10  ;;  %v6017_v10 = vadd.f32 %v16236_v0, %v16353_v42  ;;  %v14631_v7 = vpop.eup %14630 }
 0xd68   :  { %17754 = vst [vmem:[#allocation62_spill] sm:$0xff] %v16411_v49  ;;  %v6142_v48 = vadd.f32 %v6012_v51, %v16411_v49  ;;  %14638 = vpow2.f32 %v11259_v33  ;;  %v6091_v40 = vadd.f32 %v5997_v62, %v16427_v15  ;;  %v16457_v51 = vpop.permute.xlu0 %5805 }
 0xd69   :  { %v12919_v30 = vpop.f32.mrb[42].mxu1  ;;  %17756 = vst [vmem:[#allocation64_spill] sm:$0xff] %v16418_v19  ;;  %v6141_v47 = vadd.f32 %v6007_v55, %v16418_v19  ;;  %14640 = vpow2.f32 %v11262_v25  ;;  %17760 = vst [vmem:[#allocation68_spill] sm:$0xff] %v16457_v51 }
 0xd6a   :  { %v5591_v20 = vpop.f32.mrb[43].mxu1  ;;  %v16434_v52 = vadd.f32 %v12919_v30, %v16347_v32  ;;  %v11264_v13 = vmul.f32 -1.442695, %v6142_v48  ;;  %v11261_v38 = vmul.f32 -1.442695, %v6091_v40  ;;  %v16461_v48 = vpop.permute.xlu1 %5800 }
 0xd6b   :  { %v11263_v32 = vmul.f32 -1.442695, %v6141_v47  ;;  %v16451_v43 = vadd.f32 %v5591_v20, %v16349_v24  ;;  %v14633_v33 = vpop.eup %14632  ;;  %17761 = vst [vmem:[#allocation69_spill] sm:$0xff] %v16461_v48  ;;  %v6118_v47 = vadd.f32 1.0, %v14629_v58 }
 0xd6c   :  { %17758 = vst [vmem:[#allocation66_spill] sm:$0xff] %v16434_v52  ;;  %v6144_v30 = vadd.f32 %v6022_v22, %v16434_v52  ;;  %14642 = vpow2.f32 %v11264_v13  ;;  %v6117_v22 = vadd.f32 1.0, %v14631_v7  ;;  %v6120_v52 = vadd.f32 1.0, %v14633_v33  ;;  %v16470_v15 = vpop.permute.xlu0 %5380 }
 0xd6d   :  { %v16396_v28 = vpop.f32.mrb[44].mxu1  ;;  %17759 = vst [vmem:[#allocation67_spill] sm:$0xff] %v16451_v43  ;;  %14644 = vpow2.f32 %v11263_v32  ;;  %v6143_v24 = vadd.f32 %v6017_v10, %v16451_v43 }
 0xd6e   :  { %v16403_v27 = vpop.f32.mrb[45].mxu1  ;;  %v11266_v25 = vmul.f32 -1.442695, %v6144_v30  ;;  %v14635_v62 = vpop.eup %14634  ;;  %14646 = vpow2.f32 %v11261_v38  ;;  %v16476_v38 = vadd.f32 %v16396_v28, %v16355_v18 }
 0xd6f   :  { %v14637_v0 = vpop.eup %14636  ;;  %v11265_v13 = vmul.f32 -1.442695, %v6143_v24  ;;  %v6119_v32 = vadd.f32 1.0, %v14635_v62  ;;  %v16472_v10 = vpop.permute.xlu1 %5375  ;;  %v16481_v62 = vadd.f32 %v16403_v27, %v16357_v16 }
 0xd70   :  { %14648 = vpow2.f32 %v11266_v25  ;;  %v6122_v58 = vadd.f32 1.0, %v14637_v0  ;;  %17762 = vst [vmem:[#allocation70_spill] sm:$0xff] %v16476_v38 }
 0xd71   :  { %v16413_v46 = vpop.f32.mrb[46].mxu1  ;;  %14650 = vrcp.f32 %v6118_v47  ;;  %17763 = vst [vmem:[#allocation71_spill] sm:$0xff] %v16481_v62 }
 0xd72   :  { %v16420_v34 = vpop.f32.mrb[47].mxu1  ;;  %v14639_v40 = vpop.eup %14638  ;;  %14652 = vrcp.f32 %v6117_v22  ;;  %v16489_v18 = vadd.f32 %v16413_v46, %v16363_v56 }
 0xd73   :  { %v14641_v30 = vpop.eup %14640  ;;  %14654 = vrcp.f32 %v6120_v52  ;;  %v6121_v7 = vadd.f32 1.0, %v14639_v40  ;;  %v16485_v40 = vpop.permute.xlu0 %5815  ;;  %v16496_v27 = vadd.f32 %v16420_v34, %v16365_v54 }
 0xd74   :  { %14656 = vpow2.f32 %v11265_v13  ;;  %v6124_v47 = vadd.f32 1.0, %v14641_v30  ;;  %17764 = vst [vmem:[#allocation72_spill] sm:$0xff] %v16485_v40  ;;  %17765 = vst [vmem:[#allocation73_spill] sm:$0xff] %v16489_v18 }
 0xd75   :  { %v16430_v44 = vpop.f32.mrb[48].mxu1  ;;  %14658 = vrcp.f32 %v6119_v32  ;;  %v16492_v32 = vpop.permute.xlu1 %5810  ;;  %17767 = vst [vmem:[#allocation75_spill] sm:$0xff] %v16496_v27 }
 0xd76   :  { %v16436_v14 = vpop.f32.mrb[49].mxu1  ;;  %v14643_v43 = vpop.eup %14642  ;;  %14660 = vrcp.f32 %v6122_v58  ;;  %17766 = vst [vmem:[#allocation74_spill] sm:$0xff] %v16492_v32 }
 0xd77   :  { %v14645_v52 = vpop.eup %14644  ;;  %14662 = vrcp.f32 %v6121_v7  ;;  %v6174_v16 = vadd.f32 1.0, %v14643_v43 }
 0xd78   :  { %14664 = vrcp.f32 %v6124_v47  ;;  %v6173_v7 = vadd.f32 1.0, %v14645_v52 }
 0xd79   :  { %v16447_v29 = vpop.f32.mrb[50].mxu1 }
 0xd7a   :  { %v16453_v50 = vpop.f32.mrb[51].mxu1 }
 0xd7d   :  { %v16459_v55 = vpop.f32.mrb[52].mxu1 }
 0xd7e   :  { %v16464_v20 = vpop.f32.mrb[53].mxu1 }
 0xd81   :  { %v16466_v19 = vpop.f32.mrb[54].mxu1 }
 0xd82   :  { %v16468_v49 = vpop.f32.mrb[55].mxu1 }
 0xd85   :  { %v12960_v33 = vpop.f32.mrb[56].mxu1 }
 0xd86   :  { %v6032_v25 = vadd.f32 %v12960_v33, %v16359_v60  ;;  %v6026_v24 = vpop.f32.mrb[57].mxu1 }
 0xd87   :  { %v6027_v22 = vadd.f32 %v6026_v24, %v16361_v59 }
 0xd88   :  { %v6146_v0 = vadd.f32 %v6032_v25, %v16476_v38  ;;  %v14647_v25 = vpop.eup %14646 }
 0xd89   :  { %v6145_v28 = vadd.f32 %v6027_v22, %v16481_v62  ;;  %v12963_v13 = vpop.f32.mrb[58].mxu1  ;;  %v14649_v46 = vpop.eup %14648 }
 0xd8a   :  { %v11268_v30 = vmul.f32 -1.442695, %v6146_v0  ;;  %v6042_v58 = vadd.f32 %v12963_v13, %v16382_v4  ;;  %v6036_v33 = vpop.f32.mrb[59].mxu1  ;;  %v14651_v62 = vpop.eup %14650  ;;  %v6123_v0 = vadd.f32 1.0, %v14647_v25 }
 0xd8b   :  { %v11267_v24 = vmul.f32 -1.442695, %v6145_v28  ;;  %v6037_v56 = vadd.f32 %v6036_v33, %v16387_v17  ;;  %v14653_v34 = vpop.eup %14652  ;;  %v5391_v28 = vpop.permute.xlu0 %5390  ;;  %v6176_v33 = vadd.f32 1.0, %v14649_v46 }
 0xd8c   :  { %14666 = vpow2.f32 %v11268_v30  ;;  %v6148_v22 = vadd.f32 %v6042_v58, %v16489_v18  ;;  %v14655_v52 = vpop.eup %14654  ;;  %v5386_v18 = vpop.permute.xlu1 %5385 }
 0xd8d   :  { %14668 = vpow2.f32 %v11267_v24  ;;  %v6147_v43 = vadd.f32 %v6037_v56, %v16496_v27  ;;  %v12966_v54 = vpop.f32.mrb[60].mxu1  ;;  %v14657_v58 = vpop.eup %14656  ;;  %v16506_v24 = vadd.f32 %v16430_v44, %v16438_v41  ;;  %v16510_v56 = vadd.f32 %v16436_v14, %v16442_v57 }
 0xd8e   :  { %14670 = vrcp.f32 %v6174_v16  ;;  %v11270_v13 = vmul.f32 -1.442695, %v6148_v22  ;;  %v6052_v38 = vadd.f32 %v12966_v54, %v16409_v45  ;;  %v6046_v47 = vpop.f32.mrb[61].mxu1  ;;  %v14659_v16 = vpop.eup %14658  ;;  %v6175_v44 = vadd.f32 1.0, %v14657_v58 }
 0xd8f   :  { %14672 = vrcp.f32 %v6173_v7  ;;  %v11269_v1 = vmul.f32 -1.442695, %v6147_v43  ;;  %v6047_v30 = vadd.f32 %v6046_v47, %v16415_v39  ;;  %17768 = vst [vmem:[#allocation76_spill] sm:$0xff] %v16506_v24  ;;  %17769 = vst [vmem:[#allocation77_spill] sm:$0xff] %v16510_v56  ;;  %v14661_v46 = vpop.eup %14660  ;;  %v16518_v14 = vadd.f32 %v16447_v29, %v16470_v15 }
 0xd90   :  { %14674 = vpow2.f32 %v11270_v13  ;;  %v6198_v25 = vmul.f32 %v14651_v62, %v6052_v38  ;;  %v14663_v27 = vpop.eup %14662  ;;  %v16520_v62 = vpop.permute.xlu0 %5825 }
 0xd91   :  { %14676 = vpow2.f32 %v11269_v1  ;;  %v6197_v22 = vmul.f32 %v14653_v34, %v6047_v30  ;;  %v12969_v7 = vpop.f32.mrb[62].mxu1  ;;  %17770 = vst [vmem:[#allocation78_spill] sm:$0xff] %v16518_v14  ;;  %v14665_v57 = vpop.eup %14664  ;;  %17771 = vst [vmem:[#allocation79_spill] sm:$0xff] %v16520_v62  ;;  %v16524_v34 = vadd.f32 %v16453_v50, %v16472_v10  ;;  %v16533_v10 = vadd.f32 %v16459_v55, %v5391_v28 }
 0xd92   :  { %14678 = vrcp.f32 %v6123_v0  ;;  %v6206_v43 = vadd.f32 %v6198_v25, %v16506_v24  ;;  %v6062_v54 = vadd.f32 %v12969_v7, %v16457_v51  ;;  %v6056_v47 = vpop.f32.mrb[63].mxu1  ;;  %v16526_v30 = vpop.permute.xlu1 %5820 }
 0xd93   :  { %14680 = vrcp.f32 %v6176_v33  ;;  %v6205_v41 = vadd.f32 %v6197_v22, %v16510_v56  ;;  %v6057_v38 = vadd.f32 %v6056_v47, %v16461_v48  ;;  %17772 = vst [vmem:[#allocation80_spill] sm:$0xff] %v16524_v34  ;;  %17773 = vst [vmem:[#allocation81_spill] sm:$0xff] %v16526_v30  ;;  %v16536_v47 = vadd.f32 %v16464_v20, %v5386_v18 }
 0xd94   :  { %14682 = vtanh.f32 %v6206_v43  ;;  %v6200_v1 = vmul.f32 %v14655_v52, %v6062_v54  ;;  %17774 = vst [vmem:[#allocation82_spill] sm:$0xff] %v16533_v10  ;;  %v5401_v55 = vpop.permute.xlu0 %5400 }
 0xd95   :  { %14684 = vtanh.f32 %v6205_v41  ;;  %v6199_v0 = vmul.f32 %v14659_v16, %v6057_v38  ;;  %v12972_v13 = vpop.f32.mrb[64].mxu1  ;;  %17775 = vst [vmem:[#allocation83_spill] sm:$0xff] %v16536_v47 }
 0xd96   :  { %v14667_v33 = vpop.eup %14666  ;;  %v6208_v58 = vadd.f32 %v6200_v1, %v16518_v14  ;;  %v6072_v15 = vadd.f32 %v12972_v13, %v16485_v40  ;;  %v6066_v29 = vpop.f32.mrb[65].mxu1  ;;  %14686 = vrcp.f32 %v6175_v44 }
 0xd97   :  { %v14669_v25 = vpop.eup %14668  ;;  %v6178_v52 = vadd.f32 1.0, %v14667_v33  ;;  %v6207_v22 = vadd.f32 %v6199_v0, %v16524_v34  ;;  %v6067_v7 = vadd.f32 %v6066_v29, %v16492_v32  ;;  %v5396_v18 = vpop.permute.xlu1 %5395 }
 0xd98   :  { %v14671_v50 = vpop.eup %14670  ;;  %v6177_v16 = vadd.f32 1.0, %v14669_v25  ;;  %14688 = vtanh.f32 %v6208_v58  ;;  %v6202_v43 = vmul.f32 %v14661_v46, %v6072_v15 }
 0xd99   :  { %v14673_v54 = vpop.eup %14672  ;;  %14690 = vrcp.f32 %v6178_v52  ;;  %v6201_v41 = vmul.f32 %v14663_v27, %v6067_v7  ;;  %v12975_v38 = vpop.f32.mrb[66].mxu1  ;;  %v16543_v27 = vadd.f32 %v16466_v19, %v5401_v55  ;;  %v16546_v52 = vadd.f32 %v16468_v49, %v5396_v18 }
 0xd9a   :  { %v14675_v44 = vpop.eup %14674  ;;  %14692 = vrcp.f32 %v6177_v16  ;;  %v6210_v1 = vadd.f32 %v6202_v43, %v16533_v10  ;;  %v6082_v0 = vadd.f32 %v12975_v38, %v16520_v62  ;;  %v6076_v13 = vpop.f32.mrb[67].mxu1  ;;  %v6222_v16 = vsub.f32 1.0, %v14671_v50 }
 0xd9b   :  { %v14677_v33 = vpop.eup %14676  ;;  %v6180_v28 = vadd.f32 1.0, %v14675_v44  ;;  %14694 = vtanh.f32 %v6207_v22  ;;  %v6209_v46 = vadd.f32 %v6201_v41, %v16536_v47  ;;  %v6077_v58 = vadd.f32 %v6076_v13, %v16526_v30  ;;  %17776 = vst [vmem:[#allocation84_spill] sm:$0xff] %v16543_v27  ;;  %17777 = vst [vmem:[#allocation85_spill] sm:$0xff] %v16546_v52 }
 0xd9c   :  { %v14679_v20 = vpop.eup %14678  ;;  %v6179_v15 = vadd.f32 1.0, %v14677_v33  ;;  %14696 = vtanh.f32 %v6210_v1  ;;  %v6204_v29 = vmul.f32 %v14665_v57, %v6082_v0  ;;  %v6221_v41 = vsub.f32 1.0, %v14673_v54 }
 0xd9d   :  { %v14681_v25 = vpop.eup %14680  ;;  %14698 = vrcp.f32 %v6180_v28  ;;  %v6203_v7 = vmul.f32 %v14679_v20, %v6077_v58  ;;  %v6238_v13 = vmul.f32 0.0, %v14671_v50  ;;  %v6237_v1 = vmul.f32 0.0, %v14673_v54 }
 0xd9e   :  { %v14683_v22 = vpop.eup %14682  ;;  %14700 = vrcp.f32 %v6179_v15  ;;  %v6212_v43 = vadd.f32 %v6204_v29, %v16543_v27  ;;  %v6224_v33 = vsub.f32 1.0, %v14681_v25  ;;  %v6240_v18 = vmul.f32 0.0, %v14681_v25 }
 0xd9f   :  { %v14685_v38 = vpop.eup %14684  ;;  %14702 = vtanh.f32 %v6209_v46  ;;  %v6211_v19 = vadd.f32 %v6203_v7, %v16546_v52  ;;  %v6230_v44 = vmul.f32 %v14683_v22, %v6222_v16 }
 0xda0   :  { %14704 = vtanh.f32 %v6212_v43  ;;  %v6229_v57 = vmul.f32 %v14685_v38, %v6221_v41  ;;  %v14687_v0 = vpop.eup %14686 }
 0xda1   :  { %14706 = vtanh.f32 %v6211_v19  ;;  %v16550_v49 = vadd.f32 %v6238_v13, %v6230_v44  ;;  %v6223_v29 = vsub.f32 1.0, %v14687_v0  ;;  %v6239_v43 = vmul.f32 0.0, %v14687_v0 }
 0xda2   :  { %v14689_v55 = vpop.eup %14688  ;;  %v16552_v28 = vadd.f32 %v6237_v1, %v6229_v57 }
 0xda3   :  { %v14691_v58 = vpop.eup %14690  ;;  %v6232_v20 = vmul.f32 %v14689_v55, %v6224_v33 }
 0xda4   :  { %v14693_v15 = vpop.eup %14692  ;;  %v13758_v46 = vpack.c.bf16 %v16550_v49, %v16552_v28  ;;  %v6226_v50 = vsub.f32 1.0, %v14691_v58  ;;  %v6242_v44 = vmul.f32 0.0, %v14691_v58 }
 0xda5   :  { %v14695_v7 = vpop.eup %14694  ;;  %v16556_v16 = vadd.f32 %v6240_v18, %v6232_v20  ;;  %v6225_v41 = vsub.f32 1.0, %v14693_v15 }
 0xda6   :  { %v14697_v54 = vpop.eup %14696  ;;  %13759 = vmatprep.subr.bf16.mxu1 %v13758_v46  ;;  %v6231_v22 = vmul.f32 %v14695_v7, %v6223_v29  ;;  %v6241_v29 = vmul.f32 0.0, %v14693_v15 }
 0xda7   :  { %v14699_v38 = vpop.eup %14698  ;;  %13761 = vmatpush3.bf16.msra.mxu1 %v13758_v46  ;;  %v6234_v19 = vmul.f32 %v14697_v54, %v6226_v50 }
 0xda8   :  { %v14701_v13 = vpop.eup %14700  ;;  %v16558_v25 = vadd.f32 %v6239_v43, %v6231_v22  ;;  %v6228_v57 = vsub.f32 1.0, %v14699_v38  ;;  %v6244_v46 = vmul.f32 0.0, %v14699_v38  ;;  %v16580_v38 = vld [vmem:[%s15147_s6 + $0x10] sm:$0xff] }
 0xda9   :  { %v14703_v1 = vpop.eup %14702  ;;  %v16560_v33 = vadd.f32 %v6242_v44, %v6234_v19  ;;  %v6227_v55 = vsub.f32 1.0, %v14701_v13  ;;  %v6243_v54 = vmul.f32 0.0, %v14701_v13  ;;  %v16585_v19 = vld [vmem:[%s15147_s6 + $0x18] sm:$0xff]  ;;  %v16590_v44 = vld [vmem:[%s15147_s6 + $0x20] sm:$0xff]  ;;  %v16595_v13 = vld [vmem:[%s15147_s6 + $0x28] sm:$0xff] }
 0xdaa   :  { %v14705_v52 = vpop.eup %14704  ;;  %v13762_v20 = vpack.c.bf16 %v16556_v16, %v16558_v25  ;;  %v6233_v18 = vmul.f32 %v14703_v1, %v6225_v41  ;;  %v16575_v41 = vld [vmem:[%s15147_s6 + $0x8] sm:$0xff]  ;;  %v16605_v1 = vld [vmem:[%s15147_s6 + $0x38] sm:$0xff] }
 0xdab   :  { %v14707_v0 = vpop.eup %14706  ;;  %v6236_v7 = vmul.f32 %v14705_v52, %v6228_v57  ;;  %v16600_v57 = vld [vmem:[%s15147_s6 + $0x30] sm:$0xff] }
 0xdac   :  { %13763 = vmatprep.subr.bf16.mxu1 %v13762_v20  ;;  %v16564_v58 = vadd.f32 %v6241_v29, %v6233_v18  ;;  %v6235_v50 = vmul.f32 %v14707_v0, %v6227_v55  ;;  %v16610_v55 = vld [vmem:[%s15147_s6 + $0x40] sm:$0xff]  ;;  %v16620_v18 = vld [vmem:[%s15147_s6 + $0x50] sm:$0xff]  ;;  %v16625_v29 = vld [vmem:[%s15147_s6 + $0x58] sm:$0xff] }
 0xdad   :  { %13765 = vmatpush3.bf16.msra.mxu1 %v13762_v20  ;;  %v16566_v22 = vadd.f32 %v6244_v46, %v6236_v7  ;;  %v16615_v20 = vld [vmem:[%s15147_s6 + $0x48] sm:$0xff]  ;;  %v17780_v46 = vld [vmem:[#allocation46_spill] sm:$0xff] }
 0xdae   :  { %v13766_v43 = vpack.c.bf16 %v16560_v33, %v16564_v58  ;;  %v16570_v15 = vadd.f32 %v6243_v54, %v6235_v50  ;;  %v17778_v0 = vld [vmem:[#allocation44_spill] sm:$0xff]  ;;  %v17779_v7 = vld [vmem:[#allocation45_spill] sm:$0xff]  ;;  %v17781_v50 = vld [vmem:[#allocation47_spill] sm:$0xff] }
 0xdaf   :  { %v17782_v54 = vld [vmem:[#allocation48_spill] sm:$0xff] }
 0xdb0   :  { %13767 = vmatprep.subr.bf16.mxu1 %v13766_v43  ;;  %v13770_v52 = vpack.c.bf16 %v16566_v22, %v16570_v15 }
 0xdb1   :  { %13769 = vmatpush3.bf16.msra.mxu1 %v13766_v43  ;;  %v17786_v43 = vld [vmem:[#allocation52_spill] sm:$0xff] }
 0xdb2   :  { %13771 = vmatprep.subr.bf16.mxu1 %v13770_v52 }
 0xdb5   :  { %13773 = vmatpush3.bf16.msra.mxu1 %v13770_v52  ;;  %v16654_v52 = vld [vmem:[%s15147_s6] sm:$0xff] }
 0xdb8   :  { %12993 = vmatmul.mubr.msk.f32.vlgmr.msra.gmra.mrb[68].mxu1 %vm2548_vm8, %v16575_v41 }
 0xdb9   :  { %12995 = vmatprep.mubr.msk.f32.mxu1 %vm2548_vm8, %v16580_v38 }
 0xdbc   :  { %12996 = vmatmul.mubr.msk.f32.gmra.mrb[70].mxu1 %vm2548_vm8, %v16585_v19 }
 0xdbd   :  { %12998 = vmatprep.mubr.msk.f32.mxu1 %vm2548_vm8, %v16590_v44 }
 0xdc0   :  { %12999 = vmatmul.mubr.msk.f32.gmra.mrb[72].mxu1 %vm2548_vm8, %v16595_v13 }
 0xdc1   :  { %13001 = vmatprep.mubr.msk.f32.mxu1 %vm2548_vm8, %v16600_v57 }
 0xdc4   :  { %13002 = vmatmul.mubr.msk.f32.gmra.mrb[74].mxu1 %vm2548_vm8, %v16605_v1 }
 0xdc5   :  { %13004 = vmatprep.mubr.msk.f32.mxu1 %vm2548_vm8, %v16610_v55 }
 0xdc8   :  { %13005 = vmatmul.mubr.msk.f32.gmra.mrb[76].mxu1 %vm2548_vm8, %v16615_v20 }
 0xdc9   :  { %13007 = vmatprep.mubr.msk.f32.mxu1 %vm2548_vm8, %v16620_v18 }
 0xdcc   :  { %13008 = vmatmul.mubr.msk.f32.gmra.mrb[78].mxu1 %vm2548_vm8, %v16625_v29 }
 0xdcd   :  { %13010 = vmatprep.mubr.msk.f32.mxu1 %vm2548_vm8, %v16263_v23  ;;  %v17783_v23 = vld [vmem:[#allocation49_spill] sm:$0xff] }
 0xdd0   :  { %13011 = vmatmul.mubr.msk.f32.gmra.mrb[80].mxu1 %vm2548_vm8, %v16269_v26  ;;  %v17784_v26 = vld [vmem:[#allocation50_spill] sm:$0xff] }
 0xdd1   :  { %13013 = vmatprep.mubr.msk.f32.mxu1 %vm2548_vm8, %v16272_v31  ;;  %v17785_v31 = vld [vmem:[#allocation51_spill] sm:$0xff] }
 0xdd4   :  { %13014 = vmatmul.mubr.msk.f32.gmra.mrb[82].mxu1 %vm2548_vm8, %v17778_v0 }
 0xdd5   :  { %13016 = vmatprep.mubr.msk.f32.mxu1 %vm2548_vm8, %v17779_v7 }
 0xdd8   :  { %13017 = vmatmul.mubr.msk.f32.gmra.mrb[84].mxu1 %vm2548_vm8, %v17780_v46 }
 0xdd9   :  { %13019 = vmatprep.mubr.msk.f32.mxu1 %vm2548_vm8, %v17781_v50 }
 0xddc   :  { %13020 = vmatmul.mubr.msk.f32.gmra.mrb[86].mxu1 %vm2548_vm8, %v17782_v54 }
 0xddd   :  { %13022 = vmatprep.mubr.msk.f32.mxu1 %vm2548_vm8, %v17783_v23 }
 0xde0   :  { %13023 = vmatmul.mubr.msk.f32.gmra.mrb[88].mxu1 %vm2548_vm8, %v17784_v26 }
 0xde1   :  { %13025 = vmatprep.mubr.msk.f32.mxu1 %vm2548_vm8, %v17785_v31 }
 0xde4   :  { %13026 = vmatmul.mubr.msk.f32.gmra.mrb[90].mxu1 %vm2548_vm8, %v17786_v43 }
 0xde5   :  { %13138 = vmatprep.mubr.msk.f32.mxu1 %vm2548_vm8, %v16654_v52 }
 0xe8b   :  { %v12994_v0 = vpop.f32.mrb[68].mxu1 }
 0xe8c   :  { %v6326_v7 = vadd.f32 %v12994_v0, %v16325_v63  ;;  %v6320_v46 = vpop.f32.mrb[69].mxu1 }
 0xe8d   :  { %v6321_v50 = vadd.f32 %v6320_v46, %v16327_v5 }
 0xe8e   :  { %6449 = vrot.lane.b32.xlu0 %v6326_v7, %s15044_s15 }
 0xe8f   :  { %v12997_v54 = vpop.f32.mrb[70].mxu1  ;;  %6447 = vrot.lane.b32.xlu1 %v6321_v50, %s15044_s15 }
 0xe90   :  { %v6336_v23 = vadd.f32 %v12997_v54, %v16329_v2  ;;  %v6330_v26 = vpop.f32.mrb[71].mxu1 }
 0xe91   :  { %v6331_v31 = vadd.f32 %v6330_v26, %v16331_v3 }
 0xe92   :  { %6453 = vrot.lane.b32.xlu0 %v6336_v23, %s15044_s15 }
 0xe93   :  { %v13000_v43 = vpop.f32.mrb[72].mxu1  ;;  %6451 = vrot.lane.b32.xlu1 %v6331_v31, %s15044_s15 }
 0xe94   :  { %v6346_v0 = vadd.f32 %v13000_v43, %v16333_v6  ;;  %v6340_v63 = vpop.f32.mrb[73].mxu1 }
 0xe95   :  { %v6341_v46 = vadd.f32 %v6340_v63, %v16335_v8 }
 0xe96   :  { %6457 = vrot.lane.b32.xlu0 %v6346_v0, %s15044_s15 }
 0xe97   :  { %v13003_v7 = vpop.f32.mrb[74].mxu1  ;;  %6455 = vrot.lane.b32.xlu1 %v6341_v46, %s15044_s15 }
 0xe98   :  { %v6356_v50 = vadd.f32 %v13003_v7, %v16339_v35  ;;  %v6350_v54 = vpop.f32.mrb[75].mxu1 }
 0xe99   :  { %v6351_v26 = vadd.f32 %v6350_v54, %v16341_v21 }
 0xe9a   :  { %6461 = vrot.lane.b32.xlu0 %v6356_v50, %s15044_s15 }
 0xe9b   :  { %v13006_v23 = vpop.f32.mrb[76].mxu1  ;;  %6459 = vrot.lane.b32.xlu1 %v6351_v26, %s15044_s15 }
 0xe9c   :  { %v6366_v31 = vadd.f32 %v13006_v23, %v16343_v12  ;;  %v6360_v43 = vpop.f32.mrb[77].mxu1 }
 0xe9d   :  { %v6361_v63 = vadd.f32 %v6360_v43, %v16345_v9 }
 0xe9e   :  { %6537 = vrot.lane.b32.xlu0 %v6366_v31, %s15044_s15 }
 0xe9f   :  { %v13009_v0 = vpop.f32.mrb[78].mxu1  ;;  %6535 = vrot.lane.b32.xlu1 %v6361_v63, %s15044_s15 }
 0xea0   :  { %v6376_v46 = vadd.f32 %v13009_v0, %v16351_v37  ;;  %v6370_v7 = vpop.f32.mrb[79].mxu1 }
 0xea1   :  { %v6371_v54 = vadd.f32 %v6370_v7, %v16353_v42 }
 0xea2   :  { %6541 = vrot.lane.b32.xlu0 %v6376_v46, %s15044_s15 }
 0xea3   :  { %v13012_v50 = vpop.f32.mrb[80].mxu1  ;;  %6539 = vrot.lane.b32.xlu1 %v6371_v54, %s15044_s15 }
 0xea4   :  { %v6386_v26 = vadd.f32 %v13012_v50, %v16359_v60  ;;  %v6380_v23 = vpop.f32.mrb[81].mxu1 }
 0xea5   :  { %v6381_v43 = vadd.f32 %v6380_v23, %v16361_v59 }
 0xea6   :  { %6545 = vrot.lane.b32.xlu0 %v6386_v26, %s15044_s15 }
 0xea7   :  { %v13015_v31 = vpop.f32.mrb[82].mxu1  ;;  %6543 = vrot.lane.b32.xlu1 %v6381_v43, %s15044_s15 }
 0xea8   :  { %v6396_v63 = vadd.f32 %v13015_v31, %v16382_v4  ;;  %v6390_v0 = vpop.f32.mrb[83].mxu1 }
 0xea9   :  { %v6391_v7 = vadd.f32 %v6390_v0, %v16387_v17 }
 0xeaa   :  { %6549 = vrot.lane.b32.xlu0 %v6396_v63, %s15044_s15 }
 0xeab   :  { %v13018_v46 = vpop.f32.mrb[84].mxu1  ;;  %6547 = vrot.lane.b32.xlu1 %v6391_v7, %s15044_s15 }
 0xeac   :  { %v6406_v54 = vadd.f32 %v13018_v46, %v16409_v45  ;;  %v6400_v50 = vpop.f32.mrb[85].mxu1 }
 0xead   :  { %v6401_v23 = vadd.f32 %v6400_v50, %v16415_v39  ;;  %v17795_v39 = vld [vmem:[#allocation67_spill] sm:$0xff] }
 0xeae   :  { %6625 = vrot.lane.b32.xlu0 %v6406_v54, %s15044_s15 }
 0xeaf   :  { %v13021_v26 = vpop.f32.mrb[86].mxu1  ;;  %6623 = vrot.lane.b32.xlu1 %v6401_v23, %s15044_s15 }
 0xeb0   :  { %v6416_v43 = vadd.f32 %v13021_v26, %v16457_v51  ;;  %v6410_v31 = vpop.f32.mrb[87].mxu1 }
 0xeb1   :  { %v6411_v0 = vadd.f32 %v6410_v31, %v16461_v48 }
 0xeb2   :  { %6629 = vrot.lane.b32.xlu0 %v6416_v43, %s15044_s15  ;;  %v11311_v43 = vld [vmem:[%s17787_s17 + $0x2] sm:$0x3] }
 0xeb3   :  { %v13024_v63 = vpop.f32.mrb[88].mxu1  ;;  %6627 = vrot.lane.b32.xlu1 %v6411_v0, %s15044_s15  ;;  %13028 = vmatprep.subr.msk.mxu0 %vm6778_vm13, %v11311_v43 }
 0xeb4   :  { %v6426_v7 = vadd.f32 %v13024_v63, %v16485_v40  ;;  %v6420_v46 = vpop.f32.mrb[89].mxu1  ;;  %13029 = vmatpush3.msk.msra.mxu0 %vm6778_vm13, %v11311_v43 }
 0xeb5   :  { %v6421_v50 = vadd.f32 %v6420_v46, %v16492_v32  ;;  %v17788_v46 = vld [vmem:[#allocation55_spill] sm:$0xff] }
 0xeb6   :  { %6633 = vrot.lane.b32.xlu0 %v6426_v7, %s15044_s15 }
 0xeb7   :  { %v13027_v54 = vpop.f32.mrb[90].mxu1  ;;  %6631 = vrot.lane.b32.xlu1 %v6421_v50, %s15044_s15 }
 0xeb8   :  { %v6436_v23 = vadd.f32 %v13027_v54, %v16520_v62  ;;  %v6430_v26 = vpop.f32.mrb[91].mxu1 }
 0xeb9   :  { %v6431_v31 = vadd.f32 %v6430_v26, %v16526_v30 }
 0xeba   :  { %6637 = vrot.lane.b32.xlu0 %v6436_v23, %s15044_s15 }
 0xebb   :  { %6635 = vrot.lane.b32.xlu1 %v6431_v31, %s15044_s15  ;;  %v17789_v31 = vld [vmem:[#allocation56_spill] sm:$0xff] }
 0xebe   :  { %6697 = vrot.lane.b32.xlu0 %v16550_v49, %s15044_s15 }
 0xebf   :  { %6695 = vrot.lane.b32.xlu1 %v16552_v28, %s15044_s15 }
 0xec2   :  { %6701 = vrot.lane.b32.xlu0 %v16556_v16, %s15044_s15 }
 0xec3   :  { %6699 = vrot.lane.b32.xlu1 %v16558_v25, %s15044_s15 }
 0xec6   :  { %6705 = vrot.lane.b32.xlu0 %v16560_v33, %s15044_s15 }
 0xec7   :  { %6703 = vrot.lane.b32.xlu1 %v16564_v58, %s15044_s15 }
 0xeca   :  { %6709 = vrot.lane.b32.xlu0 %v16566_v22, %s15044_s15 }
 0xecb   :  { %6707 = vrot.lane.b32.xlu1 %v16570_v15, %s15044_s15 }
 0xf00   :  { %v6450_v0 = vpop.permute.xlu0 %6449 }
 0xf01   :  { %v6472_v63 = vadd.f32 %v6450_v0, %v16367_v53  ;;  %v6448_v7 = vpop.permute.xlu1 %6447 }
 0xf02   :  { %v6471_v50 = vadd.f32 %v6448_v7, %v17788_v46 }
 0xf03   :  { %v11296_v54 = vmul.f32 -1.442695, %v6472_v63 }
 0xf04   :  { %v11295_v23 = vmul.f32 -1.442695, %v6471_v50  ;;  %v6454_v26 = vpop.permute.xlu0 %6453 }
 0xf05   :  { %14708 = vpow2.f32 %v11296_v54  ;;  %v6474_v43 = vadd.f32 %v6454_v26, %v17789_v31  ;;  %v6452_v30 = vpop.permute.xlu1 %6451  ;;  %v17790_v54 = vld [vmem:[#allocation60_spill] sm:$0xff] }
 0xf06   :  { %14710 = vpow2.f32 %v11295_v23  ;;  %v6473_v62 = vadd.f32 %v6452_v30, %v16380_v36  ;;  %v17791_v23 = vld [vmem:[#allocation65_spill] sm:$0xff] }
 0xf07   :  { %v11298_v32 = vmul.f32 -1.442695, %v6474_v43 }
 0xf08   :  { %v11297_v40 = vmul.f32 -1.442695, %v6473_v62  ;;  %v6458_v48 = vpop.permute.xlu0 %6457 }
 0xf09   :  { %14712 = vpow2.f32 %v11298_v32  ;;  %v6476_v51 = vadd.f32 %v6458_v48, %v16385_v61  ;;  %v6456_v0 = vpop.permute.xlu1 %6455 }
 0xf0a   :  { %14714 = vpow2.f32 %v11297_v40  ;;  %v6475_v7 = vadd.f32 %v6456_v0, %v16392_v11  ;;  %v17792_v40 = vld [vmem:[#allocation62_spill] sm:$0xff] }
 0xf0b   :  { %v11300_v63 = vmul.f32 -1.442695, %v6476_v51 }
 0xf0c   :  { %v11299_v50 = vmul.f32 -1.442695, %v6475_v7  ;;  %v6462_v46 = vpop.permute.xlu0 %6461  ;;  %v17793_v7 = vld [vmem:[#allocation64_spill] sm:$0xff] }
 0xf0d   :  { %14716 = vpow2.f32 %v11300_v63  ;;  %v6478_v26 = vadd.f32 %v6462_v46, %v17790_v54  ;;  %v6460_v31 = vpop.permute.xlu1 %6459 }
 0xf0e   :  { %14718 = vpow2.f32 %v11299_v50  ;;  %v6477_v30 = vadd.f32 %v6460_v31, %v17791_v23 }
 0xf0f   :  { %v14709_v43 = vpop.eup %14708  ;;  %v11302_v62 = vmul.f32 -1.442695, %v6478_v26  ;;  %v17794_v26 = vld [vmem:[#allocation66_spill] sm:$0xff] }
 0xf10   :  { %v14711_v36 = vpop.eup %14710  ;;  %v6504_v32 = vadd.f32 1.0, %v14709_v43  ;;  %v11301_v53 = vmul.f32 -1.442695, %v6477_v30  ;;  %v6538_v48 = vpop.permute.xlu0 %6537 }
 0xf11   :  { %14720 = vpow2.f32 %v11302_v62  ;;  %v6560_v61 = vadd.f32 %v6538_v48, %v17792_v40  ;;  %v6536_v0 = vpop.permute.xlu1 %6535  ;;  %v6503_v51 = vadd.f32 1.0, %v14711_v36 }
 0xf12   :  { %v6559_v11 = vadd.f32 %v6536_v0, %v17793_v7  ;;  %14722 = vrcp.f32 %v6504_v32 }
 0xf13   :  { %v14713_v63 = vpop.eup %14712  ;;  %v11304_v46 = vmul.f32 -1.442695, %v6560_v61  ;;  %14724 = vpow2.f32 %v11301_v53  ;;  %v17796_v53 = vld [vmem:[#allocation70_spill] sm:$0xff] }
 0xf14   :  { %v14715_v54 = vpop.eup %14714  ;;  %v6506_v50 = vadd.f32 1.0, %v14713_v63  ;;  %v11303_v31 = vmul.f32 -1.442695, %v6559_v11  ;;  %v6542_v23 = vpop.permute.xlu0 %6541 }
 0xf15   :  { %14726 = vpow2.f32 %v11304_v46  ;;  %v6562_v43 = vadd.f32 %v6542_v23, %v17794_v26  ;;  %v6540_v30 = vpop.permute.xlu1 %6539  ;;  %v6505_v62 = vadd.f32 1.0, %v14715_v54  ;;  %v17797_v23 = vld [vmem:[#allocation71_spill] sm:$0xff] }
 0xf16   :  { %14728 = vrcp.f32 %v6503_v51  ;;  %v6561_v48 = vadd.f32 %v6540_v30, %v17795_v39 }
 0xf17   :  { %v14717_v40 = vpop.eup %14716  ;;  %14730 = vrcp.f32 %v6506_v50  ;;  %v11306_v36 = vmul.f32 -1.442695, %v6562_v43 }
 0xf18   :  { %v14719_v0 = vpop.eup %14718  ;;  %v6508_v7 = vadd.f32 1.0, %v14717_v40  ;;  %14732 = vpow2.f32 %v11303_v31  ;;  %v11305_v61 = vmul.f32 -1.442695, %v6561_v48  ;;  %v6546_v32 = vpop.permute.xlu0 %6545  ;;  %v17798_v40 = vld [vmem:[#allocation73_spill] sm:$0xff] }
 0xf19   :  { %14734 = vpow2.f32 %v11306_v36  ;;  %v6564_v11 = vadd.f32 %v6546_v32, %v17796_v53  ;;  %v6544_v63 = vpop.permute.xlu1 %6543  ;;  %v6507_v46 = vadd.f32 1.0, %v14719_v0  ;;  %v17799_v32 = vld [vmem:[#allocation75_spill] sm:$0xff] }
 0xf1a   :  { %14736 = vrcp.f32 %v6505_v62  ;;  %v6563_v26 = vadd.f32 %v6544_v63, %v17797_v23 }
 0xf1b   :  { %v14721_v51 = vpop.eup %14720  ;;  %14738 = vrcp.f32 %v6508_v7  ;;  %v11308_v54 = vmul.f32 -1.442695, %v6564_v11 }
 0xf1c   :  { %v6510_v30 = vadd.f32 1.0, %v14721_v51  ;;  %14740 = vpow2.f32 %v11305_v61  ;;  %v11307_v50 = vmul.f32 -1.442695, %v6563_v26  ;;  %v6550_v43 = vpop.permute.xlu0 %6549  ;;  %v14723_v39 = vpop.eup %14722 }
 0xf1d   :  { %14742 = vpow2.f32 %v11308_v54  ;;  %v6566_v31 = vadd.f32 %v6550_v43, %v17798_v40  ;;  %v6548_v48 = vpop.permute.xlu1 %6547  ;;  %v14725_v36 = vpop.eup %14724 }
 0xf1e   :  { %14744 = vrcp.f32 %v6507_v46  ;;  %v6565_v53 = vadd.f32 %v6548_v48, %v17799_v32  ;;  %v6509_v0 = vadd.f32 1.0, %v14725_v36 }
 0xf1f   :  { %v14727_v62 = vpop.eup %14726  ;;  %14746 = vpow2.f32 %v11307_v50  ;;  %v11310_v63 = vmul.f32 -1.442695, %v6566_v31 }
 0xf20   :  { %v14729_v23 = vpop.eup %14728  ;;  %14748 = vrcp.f32 %v6510_v30  ;;  %v6592_v7 = vadd.f32 1.0, %v14727_v62  ;;  %v11309_v11 = vmul.f32 -1.442695, %v6565_v53  ;;  %v6626_v61 = vpop.permute.xlu0 %6625 }
 0xf21   :  { %v14731_v26 = vpop.eup %14730  ;;  %14750 = vrcp.f32 %v6509_v0  ;;  %v6648_v51 = vmul.f32 %v14723_v39, %v6626_v61  ;;  %v6624_v54 = vpop.permute.xlu1 %6623 }
 0xf22   :  { %v14733_v45 = vpop.eup %14732  ;;  %14752 = vrcp.f32 %v6592_v7  ;;  %v6647_v43 = vmul.f32 %v14729_v23, %v6624_v54 }
 0xf23   :  { %v14735_v40 = vpop.eup %14734  ;;  %v6591_v46 = vadd.f32 1.0, %v14733_v45  ;;  %14754 = vpow2.f32 %v11310_v63  ;;  %v6656_v48 = vadd.f32 %v6648_v51, %v16506_v24 }
 0xf24   :  { %v14737_v36 = vpop.eup %14736  ;;  %v6594_v50 = vadd.f32 1.0, %v14735_v40  ;;  %14756 = vpow2.f32 %v11309_v11  ;;  %v6655_v30 = vadd.f32 %v6647_v43, %v16510_v56  ;;  %v6630_v31 = vpop.permute.xlu0 %6629 }
 0xf25   :  { %v14739_v53 = vpop.eup %14738  ;;  %14758 = vrcp.f32 %v6591_v46  ;;  %v6650_v62 = vmul.f32 %v14731_v26, %v6630_v31  ;;  %v6628_v0 = vpop.permute.xlu1 %6627  ;;  %v16746_v31 = vld [vmem:[%s17787_s17] sm:$0x3] }
 0xf26   :  { %v14741_v39 = vpop.eup %14740  ;;  %14760 = vrcp.f32 %v6594_v50  ;;  %v6649_v61 = vmul.f32 %v14737_v36, %v6628_v0  ;;  %13042 = vmatprep.subr.msk.mxu0 %vm6778_vm13, %v16746_v31 }
 0xf27   :  { %v14743_v7 = vpop.eup %14742  ;;  %v6593_v23 = vadd.f32 1.0, %v14741_v39  ;;  %14762 = vtanh.f32 %v6656_v48  ;;  %v6658_v45 = vadd.f32 %v6650_v62, %v16518_v14 }
 0xf28   :  { %v14745_v63 = vpop.eup %14744  ;;  %v6596_v51 = vadd.f32 1.0, %v14743_v7  ;;  %14764 = vtanh.f32 %v6655_v30  ;;  %v6634_v40 = vpop.permute.xlu0 %6633  ;;  %v6657_v54 = vadd.f32 %v6649_v61, %v16524_v34 }
 0xf29   :  { %v14747_v11 = vpop.eup %14746  ;;  %14766 = vrcp.f32 %v6593_v23  ;;  %v6652_v43 = vmul.f32 %v14739_v53, %v6634_v40  ;;  %v6632_v26 = vpop.permute.xlu1 %6631 }
 0xf2a   :  { %v14749_v46 = vpop.eup %14748  ;;  %14768 = vrcp.f32 %v6596_v51  ;;  %v6595_v50 = vadd.f32 1.0, %v14747_v11  ;;  %v6651_v36 = vmul.f32 %v14745_v63, %v6632_v26 }
 0xf2b   :  { %v14751_v0 = vpop.eup %14750  ;;  %14770 = vtanh.f32 %v6658_v45  ;;  %v6660_v48 = vadd.f32 %v6652_v43, %v16533_v10 }
 0xf2c   :  { %v14753_v30 = vpop.eup %14752  ;;  %14772 = vrcp.f32 %v6595_v50  ;;  %v6659_v62 = vadd.f32 %v6651_v36, %v16536_v47  ;;  %v6638_v39 = vpop.permute.xlu0 %6637  ;;  %v17800_v50 = vld [vmem:[#allocation85_spill] sm:$0xff] }
 0xf2d   :  { %v14755_v53 = vpop.eup %14754  ;;  %14774 = vtanh.f32 %v6657_v54  ;;  %v6654_v61 = vmul.f32 %v14749_v46, %v6638_v39  ;;  %v6636_v7 = vpop.permute.xlu1 %6635  ;;  %v6672_v40 = vsub.f32 1.0, %v14753_v30 }
 0xf2e   :  { %v14757_v23 = vpop.eup %14756  ;;  %v6598_v63 = vadd.f32 1.0, %v14755_v53  ;;  %14776 = vtanh.f32 %v6660_v48  ;;  %v6653_v51 = vmul.f32 %v14751_v0, %v6636_v7 }
 0xf2f   :  { %v14759_v45 = vpop.eup %14758  ;;  %v6597_v11 = vadd.f32 1.0, %v14757_v23  ;;  %14778 = vtanh.f32 %v6659_v62  ;;  %v6662_v43 = vadd.f32 %v6654_v61, %v16543_v27 }
 0xf30   :  { %v14761_v26 = vpop.eup %14760  ;;  %14780 = vrcp.f32 %v6598_v63  ;;  %v6661_v10 = vadd.f32 %v6653_v51, %v17800_v50  ;;  %v6698_v36 = vpop.permute.xlu0 %6697  ;;  %v6671_v47 = vsub.f32 1.0, %v14759_v45 }
 0xf31   :  { %v14763_v34 = vpop.eup %14762  ;;  %14782 = vrcp.f32 %v6597_v11  ;;  %v6720_v54 = vmul.f32 %v14753_v30, %v6698_v36  ;;  %v6696_v46 = vpop.permute.xlu1 %6695  ;;  %v6674_v53 = vsub.f32 1.0, %v14761_v26 }
 0xf32   :  { %v14765_v39 = vpop.eup %14764  ;;  %14784 = vtanh.f32 %v6662_v43  ;;  %v6680_v48 = vmul.f32 %v14763_v34, %v6672_v40  ;;  %v6719_v0 = vmul.f32 %v14759_v45, %v6696_v46 }
 0xf33   :  { %v14767_v7 = vpop.eup %14766  ;;  %14786 = vtanh.f32 %v6661_v10  ;;  %v6679_v62 = vmul.f32 %v14765_v39, %v6671_v47 }
 0xf34   :  { %v14769_v23 = vpop.eup %14768  ;;  %v16754_v61 = vadd.f32 %v6720_v54, %v6680_v48  ;;  %v6702_v63 = vpop.permute.xlu0 %6701  ;;  %v6673_v27 = vsub.f32 1.0, %v14767_v7 }
 0xf35   :  { %v14771_v51 = vpop.eup %14770  ;;  %v16756_v50 = vadd.f32 %v6719_v0, %v6679_v62  ;;  %v6722_v14 = vmul.f32 %v14761_v26, %v6702_v63  ;;  %v6700_v11 = vpop.permute.xlu1 %6699  ;;  %v6676_v30 = vsub.f32 1.0, %v14769_v23 }
 0xf36   :  { %v14773_v36 = vpop.eup %14772  ;;  %v6682_v56 = vmul.f32 %v14771_v51, %v6674_v53  ;;  %6747 = vrot.lane.b32.xlu0 %v16754_v61, %s15050_s22  ;;  %v6721_v34 = vmul.f32 %v14767_v7, %v6700_v11 }
 0xf37   :  { %v14775_v40 = vpop.eup %14774  ;;  %6745 = vrot.lane.b32.xlu1 %v16756_v50, %s15050_s22  ;;  %v6675_v10 = vsub.f32 1.0, %v14773_v36 }
 0xf38   :  { %v14777_v47 = vpop.eup %14776  ;;  %v16762_v45 = vadd.f32 %v6722_v14, %v6682_v56  ;;  %v6681_v43 = vmul.f32 %v14775_v40, %v6673_v27  ;;  %v6706_v54 = vpop.permute.xlu0 %6705 }
 0xf39   :  { %v14779_v46 = vpop.eup %14778  ;;  %v6684_v26 = vmul.f32 %v14777_v47, %v6676_v30  ;;  %v6724_v39 = vmul.f32 %v14769_v23, %v6706_v54  ;;  %v6704_v48 = vpop.permute.xlu1 %6703 }
 0xf3a   :  { %v14781_v0 = vpop.eup %14780  ;;  %v16764_v53 = vadd.f32 %v6721_v34, %v6681_v43  ;;  %6751 = vrot.lane.b32.xlu0 %v16762_v45, %s15050_s22  ;;  %v6683_v7 = vmul.f32 %v14779_v46, %v6675_v10  ;;  %v6723_v62 = vmul.f32 %v14773_v36, %v6704_v48 }
 0xf3b   :  { %v14783_v63 = vpop.eup %14782  ;;  %v16768_v51 = vadd.f32 %v6724_v39, %v6684_v26  ;;  %v6678_v11 = vsub.f32 1.0, %v14781_v0 }
 0xf3c   :  { %v14785_v56 = vpop.eup %14784  ;;  %v16770_v14 = vadd.f32 %v6723_v62, %v6683_v7  ;;  %6749 = vrot.lane.b32.xlu1 %v16764_v53, %s15050_s22  ;;  %v6710_v27 = vpop.permute.xlu0 %6709  ;;  %v6677_v23 = vsub.f32 1.0, %v14783_v63 }
 0xf3d   :  { %v14787_v30 = vpop.eup %14786  ;;  %v6686_v34 = vmul.f32 %v14785_v56, %v6678_v11  ;;  %v6726_v40 = vmul.f32 %v14781_v0, %v6710_v27  ;;  %v6708_v47 = vpop.permute.xlu1 %6707 }
 0xf3e   :  { %6755 = vrot.lane.b32.xlu0 %v16768_v51, %s15050_s22  ;;  %v6685_v36 = vmul.f32 %v14787_v30, %v6677_v23  ;;  %v6725_v10 = vmul.f32 %v14783_v63, %v6708_v47 }
 0xf3f   :  { %v16776_v43 = vadd.f32 %v6726_v40, %v6686_v34 }
 0xf40   :  { %v16778_v54 = vadd.f32 %v6725_v10, %v6685_v36  ;;  %6753 = vrot.lane.b32.xlu1 %v16770_v14, %s15050_s22 }
 0xf42   :  { %6759 = vrot.lane.b32.xlu0 %v16776_v43, %s15050_s22 }
 0xf44   :  { %6757 = vrot.lane.b32.xlu1 %v16778_v54, %s15050_s22 }
 0xfa8   :  { %v6748_v46 = vpop.permute.xlu0 %6747 }
 0xfa9   :  { %v6746_v26 = vpop.permute.xlu1 %6745 }
 0xfaa   :  { %v13774_v39 = vpack.c.bf16 %v6748_v46, %v6746_v26  ;;  %13030 = vmatprep.mubr.msk.f32.mxu0 %vm6761_vm14, %v6746_v26 }
 0xfab   :  { %13031 = vmatmul.mubr.msk.f32.vlgmr.msra.gmra.mrb[36].mxu0 %vm6761_vm14, %v6748_v46 }
 0xfac   :  { %13043 = vmatpush3.msk.msra.mxu0 %vm6778_vm13, %v16746_v31  ;;  %v6752_v48 = vpop.permute.xlu0 %6751 }
 0xfad   :  { %13775 = vmatprep.subr.bf16.mxu0 %v13774_v39 }
 0xfae   :  { %v6750_v0 = vpop.permute.xlu1 %6749 }
 0xfaf   :  { %13033 = vmatprep.mubr.msk.f32.mxu0 %vm6761_vm14, %v6750_v0  ;;  %v13778_v31 = vpack.c.bf16 %v6752_v48, %v6750_v0 }
 0xfb0   :  { %13034 = vmatmul.mubr.msk.f32.gmra.mrb[38].mxu0 %vm6761_vm14, %v6752_v48  ;;  %v6756_v7 = vpop.permute.xlu0 %6755 }
 0xfb2   :  { %v6754_v62 = vpop.permute.xlu1 %6753 }
 0xfb3   :  { %13036 = vmatprep.mubr.msk.f32.mxu0 %vm6761_vm14, %v6754_v62  ;;  %v13782_v56 = vpack.c.bf16 %v6756_v7, %v6754_v62 }
 0xfb4   :  { %13037 = vmatmul.mubr.msk.f32.gmra.mrb[40].mxu0 %vm6761_vm14, %v6756_v7  ;;  %v6760_v11 = vpop.permute.xlu0 %6759 }
 0xfb6   :  { %v6758_v63 = vpop.permute.xlu1 %6757 }
 0xfb7   :  { %13039 = vmatprep.mubr.msk.f32.mxu0 %vm6761_vm14, %v6758_v63  ;;  %v13786_v27 = vpack.c.bf16 %v6760_v11, %v6758_v63 }
 0xfb8   :  { %13040 = vmatmul.mubr.msk.f32.gmra.mrb[42].mxu0 %vm6761_vm14, %v6760_v11 }
 0xfb9   :  { %13044 = vmatprep.mubr.msk.f32.mxu0 %vm6761_vm14, %v16552_v28  ;;  %v16842_v28 = vld [vmem:[%s15147_s6 + $0x68] sm:$0xff] }
 0xfbc   :  { %13045 = vmatmul.mubr.msk.f32.vlgmr.msra.gmra.mrb[36].mxu0 %vm6761_vm14, %v16550_v49  ;;  %v16837_v49 = vld [vmem:[%s15147_s6 + $0x60] sm:$0xff] }
 0xfbd   :  { %13777 = vmatpush3.bf16.msra.mxu0 %v13774_v39  ;;  %13047 = vmatprep.mubr.msk.f32.mxu0 %vm6761_vm14, %v16558_v25  ;;  %v16852_v25 = vld [vmem:[%s15147_s6 + $0x78] sm:$0xff] }
 0xfbe   :  { %13779 = vmatprep.subr.bf16.mxu0 %v13778_v31 }
 0xfc0   :  { %13048 = vmatmul.mubr.msk.f32.gmra.mrb[38].mxu0 %vm6761_vm14, %v16556_v16  ;;  %v16847_v16 = vld [vmem:[%s15147_s6 + $0x70] sm:$0xff] }
 0xfc1   :  { %13781 = vmatpush3.bf16.msra.mxu0 %v13778_v31  ;;  %13050 = vmatprep.mubr.msk.f32.mxu0 %vm6761_vm14, %v16564_v58  ;;  %v16862_v58 = vld [vmem:[%s15147_s6 + $0x88] sm:$0xff] }
 0xfc2   :  { %13783 = vmatprep.subr.bf16.mxu0 %v13782_v56 }
 0xfc4   :  { %13051 = vmatmul.mubr.msk.f32.gmra.mrb[40].mxu0 %vm6761_vm14, %v16560_v33  ;;  %v16857_v33 = vld [vmem:[%s15147_s6 + $0x80] sm:$0xff] }
 0xfc5   :  { %13785 = vmatpush3.bf16.msra.mxu0 %v13782_v56  ;;  %13053 = vmatprep.mubr.msk.f32.mxu0 %vm6761_vm14, %v16570_v15  ;;  %v16872_v15 = vld [vmem:[%s15147_s6 + $0x98] sm:$0xff] }
 0xfc6   :  { %13787 = vmatprep.subr.bf16.mxu0 %v13786_v27 }
 0xfc8   :  { %13054 = vmatmul.mubr.msk.f32.gmra.mrb[42].mxu0 %vm6761_vm14, %v16566_v22  ;;  %v16867_v22 = vld [vmem:[%s15147_s6 + $0x90] sm:$0xff] }
 0xfc9   :  { %13789 = vmatpush3.bf16.msra.mxu0 %v13786_v27  ;;  %13072 = vmatprep.mubr.msk.f32.mxu0 %vm2548_vm8, %v16654_v52 }
 0xfcc   :  { %13073 = vmatmul.mubr.msk.f32.vlgmr.msra.gmra.mrb[44].mxu0 %vm2548_vm8, %v16575_v41  ;;  %v16877_v41 = vld [vmem:[%s15147_s6 + $0xa0] sm:$0xff] }
 0xfcd   :  { %13075 = vmatprep.mubr.msk.f32.mxu0 %vm2548_vm8, %v16580_v38  ;;  %v16882_v38 = vld [vmem:[%s15147_s6 + $0xa8] sm:$0xff] }
 0xfd0   :  { %13076 = vmatmul.mubr.msk.f32.gmra.mrb[46].mxu0 %vm2548_vm8, %v16585_v19  ;;  %v16887_v19 = vld [vmem:[%s15147_s6 + $0xb0] sm:$0xff] }
 0xfd1   :  { %13078 = vmatprep.mubr.msk.f32.mxu0 %vm2548_vm8, %v16590_v44  ;;  %v16892_v44 = vld [vmem:[%s15147_s6 + $0xb8] sm:$0xff] }
 0xfd4   :  { %13079 = vmatmul.mubr.msk.f32.gmra.mrb[48].mxu0 %vm2548_vm8, %v16595_v13 }
 0xfd5   :  { %13081 = vmatprep.mubr.msk.f32.mxu0 %vm2548_vm8, %v16600_v57  ;;  %v17801_v57 = vld [vmem:[#allocation53_spill] sm:$0xff] }
 0xfd8   :  { %13082 = vmatmul.mubr.msk.f32.gmra.mrb[50].mxu0 %vm2548_vm8, %v16605_v1 }
 0xfd9   :  { %13084 = vmatprep.mubr.msk.f32.mxu0 %vm2548_vm8, %v16610_v55 }
 0xfdc   :  { %13085 = vmatmul.mubr.msk.f32.gmra.mrb[52].mxu0 %vm2548_vm8, %v16615_v20 }
 0xfdd   :  { %13087 = vmatprep.mubr.msk.f32.mxu0 %vm2548_vm8, %v16620_v18 }
 0xfe0   :  { %13088 = vmatmul.mubr.msk.f32.gmra.mrb[54].mxu0 %vm2548_vm8, %v16625_v29 }
 0xfe1   :  { %13090 = vmatprep.mubr.msk.f32.mxu0 %vm2548_vm8, %v16837_v49 }
 0xfe4   :  { %13091 = vmatmul.mubr.msk.f32.gmra.mrb[56].mxu0 %vm2548_vm8, %v16842_v28 }
 0xfe5   :  { %13093 = vmatprep.mubr.msk.f32.mxu0 %vm2548_vm8, %v16847_v16 }
 0xfe8   :  { %13094 = vmatmul.mubr.msk.f32.gmra.mrb[58].mxu0 %vm2548_vm8, %v16852_v25 }
 0xfe9   :  { %13096 = vmatprep.mubr.msk.f32.mxu0 %vm2548_vm8, %v16857_v33 }
 0xfec   :  { %13097 = vmatmul.mubr.msk.f32.gmra.mrb[60].mxu0 %vm2548_vm8, %v16862_v58 }
 0xfed   :  { %13099 = vmatprep.mubr.msk.f32.mxu0 %vm2548_vm8, %v16867_v22 }
 0xff0   :  { %13100 = vmatmul.mubr.msk.f32.gmra.mrb[62].mxu0 %vm2548_vm8, %v16872_v15 }
 0xff1   :  { %13102 = vmatprep.mubr.msk.f32.mxu0 %vm2548_vm8, %v16877_v41 }
 0xff4   :  { %13103 = vmatmul.mubr.msk.f32.gmra.mrb[64].mxu0 %vm2548_vm8, %v16882_v38 }
 0xff5   :  { %13105 = vmatprep.mubr.msk.f32.mxu0 %vm2548_vm8, %v16887_v19 }
 0xff8   :  { %13106 = vmatmul.mubr.msk.f32.gmra.mrb[66].mxu0 %vm2548_vm8, %v16892_v44 }
0x109f   :  { %v13074_v13 = vpop.f32.mrb[44].mxu0 }
0x10a0   :  { %v7091_v1 = vadd.f32 %v13074_v13, %v17801_v57  ;;  %v7085_v55 = vpop.f32.mrb[45].mxu0 }
0x10a1   :  { %v7086_v20 = vadd.f32 %v7085_v55, %v16327_v5 }
0x10a2   :  { %7214 = vrot.lane.b32.xlu0 %v7091_v1, %s15049_s18 }
0x10a3   :  { %v13077_v18 = vpop.f32.mrb[46].mxu0  ;;  %7212 = vrot.lane.b32.xlu1 %v7086_v20, %s15049_s18 }
0x10a4   :  { %v7101_v29 = vadd.f32 %v13077_v18, %v16329_v2  ;;  %v7095_v52 = vpop.f32.mrb[47].mxu0 }
0x10a5   :  { %v7096_v23 = vadd.f32 %v7095_v52, %v16331_v3 }
0x10a6   :  { %7218 = vrot.lane.b32.xlu0 %v7101_v29, %s15049_s18 }
0x10a7   :  { %v13080_v30 = vpop.f32.mrb[48].mxu0  ;;  %7216 = vrot.lane.b32.xlu1 %v7096_v23, %s15049_s18  ;;  %v17802_v23 = vld [vmem:[#allocation61_spill] sm:$0xff] }
0x10a8   :  { %v7111_v34 = vadd.f32 %v13080_v30, %v16333_v6  ;;  %v7105_v40 = vpop.f32.mrb[49].mxu0 }
0x10a9   :  { %v7106_v47 = vadd.f32 %v7105_v40, %v16335_v8  ;;  %v17803_v40 = vld [vmem:[#allocation63_spill] sm:$0xff] }
0x10aa   :  { %7222 = vrot.lane.b32.xlu0 %v7111_v34, %s15049_s18 }
0x10ab   :  { %v13083_v36 = vpop.f32.mrb[50].mxu0  ;;  %7220 = vrot.lane.b32.xlu1 %v7106_v47, %s15049_s18 }
0x10ac   :  { %v7121_v10 = vadd.f32 %v13083_v36, %v16339_v35  ;;  %v7115_v46 = vpop.f32.mrb[51].mxu0 }
0x10ad   :  { %v7116_v26 = vadd.f32 %v7115_v46, %v16341_v21 }
0x10ae   :  { %7226 = vrot.lane.b32.xlu0 %v7121_v10, %s15049_s18  ;;  %v17804_v10 = vld [vmem:[#allocation68_spill] sm:$0xff] }
0x10af   :  { %v13086_v39 = vpop.f32.mrb[52].mxu0  ;;  %7224 = vrot.lane.b32.xlu1 %v7116_v26, %s15049_s18 }
0x10b0   :  { %v7131_v48 = vadd.f32 %v13086_v39, %v16343_v12  ;;  %v7125_v0 = vpop.f32.mrb[53].mxu0  ;;  %v17805_v39 = vld [vmem:[#allocation69_spill] sm:$0xff] }
0x10b1   :  { %v7126_v7 = vadd.f32 %v7125_v0, %v16345_v9 }
0x10b2   :  { %7302 = vrot.lane.b32.xlu0 %v7131_v48, %s15049_s18 }
0x10b3   :  { %v13089_v62 = vpop.f32.mrb[54].mxu0  ;;  %7300 = vrot.lane.b32.xlu1 %v7126_v7, %s15049_s18  ;;  %v17806_v7 = vld [vmem:[#allocation72_spill] sm:$0xff] }
0x10b4   :  { %v7141_v63 = vadd.f32 %v13089_v62, %v16351_v37  ;;  %v7135_v11 = vpop.f32.mrb[55].mxu0 }
0x10b5   :  { %v7136_v31 = vadd.f32 %v7135_v11, %v16353_v42  ;;  %v17807_v11 = vld [vmem:[#allocation74_spill] sm:$0xff] }
0x10b6   :  { %7306 = vrot.lane.b32.xlu0 %v7141_v63, %s15049_s18 }
0x10b7   :  { %v13092_v56 = vpop.f32.mrb[56].mxu0  ;;  %7304 = vrot.lane.b32.xlu1 %v7136_v31, %s15049_s18 }
0x10b8   :  { %v7151_v27 = vadd.f32 %v13092_v56, %v16359_v60  ;;  %v7145_v13 = vpop.f32.mrb[57].mxu0 }
0x10b9   :  { %v7146_v1 = vadd.f32 %v7145_v13, %v16361_v59 }
0x10ba   :  { %7310 = vrot.lane.b32.xlu0 %v7151_v27, %s15049_s18  ;;  %v17808_v27 = vld [vmem:[#allocation79_spill] sm:$0xff] }
0x10bb   :  { %v13095_v55 = vpop.f32.mrb[58].mxu0  ;;  %7308 = vrot.lane.b32.xlu1 %v7146_v1, %s15049_s18 }
0x10bc   :  { %v7161_v20 = vadd.f32 %v13095_v55, %v16382_v4  ;;  %v7155_v18 = vpop.f32.mrb[59].mxu0  ;;  %v17809_v55 = vld [vmem:[#allocation81_spill] sm:$0xff] }
0x10bd   :  { %v7156_v29 = vadd.f32 %v7155_v18, %v16387_v17 }
0x10be   :  { %7314 = vrot.lane.b32.xlu0 %v7161_v20, %s15049_s18 }
0x10bf   :  { %v13098_v52 = vpop.f32.mrb[60].mxu0  ;;  %7312 = vrot.lane.b32.xlu1 %v7156_v29, %s15049_s18 }
0x10c0   :  { %v7171_v30 = vadd.f32 %v13098_v52, %v17802_v23  ;;  %v7165_v34 = vpop.f32.mrb[61].mxu0 }
0x10c1   :  { %v7166_v47 = vadd.f32 %v7165_v34, %v17803_v40 }
0x10c2   :  { %7390 = vrot.lane.b32.xlu0 %v7171_v30, %s15049_s18 }
0x10c3   :  { %v13101_v36 = vpop.f32.mrb[62].mxu0  ;;  %7388 = vrot.lane.b32.xlu1 %v7166_v47, %s15049_s18 }
0x10c4   :  { %v7181_v46 = vadd.f32 %v13101_v36, %v17804_v10  ;;  %v7175_v26 = vpop.f32.mrb[63].mxu0 }
0x10c5   :  { %v7176_v48 = vadd.f32 %v7175_v26, %v17805_v39 }
0x10c6   :  { %7394 = vrot.lane.b32.xlu0 %v7181_v46, %s15049_s18 }
0x10c7   :  { %v13104_v0 = vpop.f32.mrb[64].mxu0  ;;  %7392 = vrot.lane.b32.xlu1 %v7176_v48, %s15049_s18 }
0x10c8   :  { %v7191_v62 = vadd.f32 %v13104_v0, %v17806_v7  ;;  %v7185_v63 = vpop.f32.mrb[65].mxu0 }
0x10c9   :  { %v7186_v31 = vadd.f32 %v7185_v63, %v17807_v11  ;;  %v17815_v63 = vld [vmem:[#allocation59_spill] sm:$0xff] }
0x10ca   :  { %7398 = vrot.lane.b32.xlu0 %v7191_v62, %s15049_s18 }
0x10cb   :  { %v13107_v56 = vpop.f32.mrb[66].mxu0  ;;  %7396 = vrot.lane.b32.xlu1 %v7186_v31, %s15049_s18 }
0x10cc   :  { %v7201_v13 = vadd.f32 %v13107_v56, %v17808_v27  ;;  %v7195_v1 = vpop.f32.mrb[67].mxu0 }
0x10cd   :  { %v7196_v20 = vadd.f32 %v7195_v1, %v17809_v55 }
0x10ce   :  { %7402 = vrot.lane.b32.xlu0 %v7201_v13, %s15049_s18 }
0x10cf   :  { %7400 = vrot.lane.b32.xlu1 %v7196_v20, %s15049_s18  ;;  %v17816_v20 = vld [vmem:[#allocation60_spill] sm:$0xff] }
0x10d2   :  { %7454 = vrot.lane.b32.xlu0 %v16754_v61, %s15044_s15 }
0x10d3   :  { %7452 = vrot.lane.b32.xlu1 %v16756_v50, %s15044_s15  ;;  %v17810_v50 = vld [vmem:[#allocation54_spill] sm:$0xff] }
0x10d6   :  { %7458 = vrot.lane.b32.xlu0 %v16762_v45, %s15044_s15  ;;  %v17811_v45 = vld [vmem:[#allocation55_spill] sm:$0xff] }
0x10d7   :  { %7456 = vrot.lane.b32.xlu1 %v16764_v53, %s15044_s15 }
0x10da   :  { %7462 = vrot.lane.b32.xlu0 %v16768_v51, %s15044_s15  ;;  %v17812_v51 = vld [vmem:[#allocation56_spill] sm:$0xff] }
0x10db   :  { %7460 = vrot.lane.b32.xlu1 %v16770_v14, %s15044_s15  ;;  %v17813_v14 = vld [vmem:[#allocation57_spill] sm:$0xff] }
0x10de   :  { %7466 = vrot.lane.b32.xlu0 %v16776_v43, %s15044_s15 }
0x10df   :  { %7464 = vrot.lane.b32.xlu1 %v16778_v54, %s15044_s15  ;;  %v17814_v54 = vld [vmem:[#allocation58_spill] sm:$0xff] }
0x1114   :  { %v7215_v61 = vpop.permute.xlu0 %7214 }
0x1115   :  { %v7237_v18 = vadd.f32 %v7215_v61, %v17810_v50  ;;  %v7213_v29 = vpop.permute.xlu1 %7212 }
0x1116   :  { %v7236_v52 = vadd.f32 %v7213_v29, %v17811_v45  ;;  %v17817_v29 = vld [vmem:[#allocation65_spill] sm:$0xff] }
0x1117   :  { %v11355_v30 = vmul.f32 -1.442695, %v7237_v18 }
0x1118   :  { %v11354_v53 = vmul.f32 -1.442695, %v7236_v52  ;;  %v7219_v34 = vpop.permute.xlu0 %7218 }
0x1119   :  { %14788 = vpow2.f32 %v11355_v30  ;;  %v7239_v47 = vadd.f32 %v7219_v34, %v17812_v51  ;;  %v7217_v36 = vpop.permute.xlu1 %7216 }
0x111a   :  { %14790 = vpow2.f32 %v11354_v53  ;;  %v7238_v46 = vadd.f32 %v7217_v36, %v17813_v14 }
0x111b   :  { %v11357_v43 = vmul.f32 -1.442695, %v7239_v47 }
0x111c   :  { %v11356_v26 = vmul.f32 -1.442695, %v7238_v46  ;;  %v7223_v48 = vpop.permute.xlu0 %7222 }
0x111d   :  { %14792 = vpow2.f32 %v11357_v43  ;;  %v7241_v0 = vadd.f32 %v7223_v48, %v17814_v54  ;;  %v7221_v62 = vpop.permute.xlu1 %7220  ;;  %v17818_v43 = vld [vmem:[#allocation62_spill] sm:$0xff] }
0x111e   :  { %14794 = vpow2.f32 %v11356_v26  ;;  %v7240_v31 = vadd.f32 %v7221_v62, %v17815_v63  ;;  %v17819_v62 = vld [vmem:[#allocation64_spill] sm:$0xff]  ;;  %v17821_v63 = vld [vmem:[#allocation67_spill] sm:$0xff] }
0x111f   :  { %v11359_v56 = vmul.f32 -1.442695, %v7241_v0 }
0x1120   :  { %v11358_v13 = vmul.f32 -1.442695, %v7240_v31  ;;  %v7227_v1 = vpop.permute.xlu0 %7226 }
0x1121   :  { %14796 = vpow2.f32 %v11359_v56  ;;  %v7243_v61 = vadd.f32 %v7227_v1, %v17816_v20  ;;  %v7225_v18 = vpop.permute.xlu1 %7224 }
0x1122   :  { %14798 = vpow2.f32 %v11358_v13  ;;  %v7242_v52 = vadd.f32 %v7225_v18, %v17817_v29 }
0x1123   :  { %v14789_v30 = vpop.eup %14788  ;;  %v11361_v53 = vmul.f32 -1.442695, %v7243_v61  ;;  %v17820_v61 = vld [vmem:[#allocation66_spill] sm:$0xff] }
0x1124   :  { %v14791_v34 = vpop.eup %14790  ;;  %v7269_v47 = vadd.f32 1.0, %v14789_v30  ;;  %v11360_v36 = vmul.f32 -1.442695, %v7242_v52  ;;  %v7303_v46 = vpop.permute.xlu0 %7302 }
0x1125   :  { %14800 = vpow2.f32 %v11361_v53  ;;  %v7325_v26 = vadd.f32 %v7303_v46, %v17818_v43  ;;  %v7301_v48 = vpop.permute.xlu1 %7300  ;;  %v7268_v0 = vadd.f32 1.0, %v14791_v34 }
0x1126   :  { %v7324_v31 = vadd.f32 %v7301_v48, %v17819_v62  ;;  %14802 = vrcp.f32 %v7269_v47 }
0x1127   :  { %v14793_v56 = vpop.eup %14792  ;;  %v11363_v1 = vmul.f32 -1.442695, %v7325_v26  ;;  %14804 = vpow2.f32 %v11360_v36  ;;  %v17822_v36 = vld [vmem:[#allocation70_spill] sm:$0xff] }
0x1128   :  { %v14795_v20 = vpop.eup %14794  ;;  %v7271_v13 = vadd.f32 1.0, %v14793_v56  ;;  %v11362_v18 = vmul.f32 -1.442695, %v7324_v31  ;;  %v7307_v29 = vpop.permute.xlu0 %7306 }
0x1129   :  { %14806 = vpow2.f32 %v11363_v1  ;;  %v7327_v30 = vadd.f32 %v7307_v29, %v17820_v61  ;;  %v7305_v52 = vpop.permute.xlu1 %7304  ;;  %v7270_v53 = vadd.f32 1.0, %v14795_v20  ;;  %v17823_v29 = vld [vmem:[#allocation71_spill] sm:$0xff] }
0x112a   :  { %14808 = vrcp.f32 %v7268_v0  ;;  %v7326_v46 = vadd.f32 %v7305_v52, %v17821_v63 }
0x112b   :  { %v14797_v43 = vpop.eup %14796  ;;  %14810 = vrcp.f32 %v7271_v13  ;;  %v11365_v34 = vmul.f32 -1.442695, %v7327_v30 }
0x112c   :  { %v14799_v48 = vpop.eup %14798  ;;  %v7273_v62 = vadd.f32 1.0, %v14797_v43  ;;  %14812 = vpow2.f32 %v11362_v18  ;;  %v11364_v47 = vmul.f32 -1.442695, %v7326_v46  ;;  %v7311_v26 = vpop.permute.xlu0 %7310  ;;  %v17824_v43 = vld [vmem:[#allocation73_spill] sm:$0xff] }
0x112d   :  { %14814 = vpow2.f32 %v11365_v34  ;;  %v7329_v31 = vadd.f32 %v7311_v26, %v17822_v36  ;;  %v7309_v56 = vpop.permute.xlu1 %7308  ;;  %v7272_v1 = vadd.f32 1.0, %v14799_v48 }
0x112e   :  { %14816 = vrcp.f32 %v7270_v53  ;;  %v7328_v61 = vadd.f32 %v7309_v56, %v17823_v29 }
0x112f   :  { %v14801_v0 = vpop.eup %14800  ;;  %14818 = vrcp.f32 %v7273_v62  ;;  %v11367_v20 = vmul.f32 -1.442695, %v7329_v31 }
0x1130   :  { %v7275_v52 = vadd.f32 1.0, %v14801_v0  ;;  %14820 = vpow2.f32 %v11364_v47  ;;  %v11366_v13 = vmul.f32 -1.442695, %v7328_v61  ;;  %v7315_v30 = vpop.permute.xlu0 %7314  ;;  %v14803_v63 = vpop.eup %14802 }
0x1131   :  { %14822 = vpow2.f32 %v11367_v20  ;;  %v7331_v18 = vadd.f32 %v7315_v30, %v17824_v43  ;;  %v7313_v46 = vpop.permute.xlu1 %7312  ;;  %v14805_v34 = vpop.eup %14804 }
0x1132   :  { %14824 = vrcp.f32 %v7272_v1  ;;  %v7330_v26 = vadd.f32 %v7313_v46, %v17799_v32  ;;  %v7274_v48 = vadd.f32 1.0, %v14805_v34 }
0x1133   :  { %v14807_v53 = vpop.eup %14806  ;;  %14826 = vpow2.f32 %v11366_v13  ;;  %v11369_v56 = vmul.f32 -1.442695, %v7331_v18  ;;  %v17825_v18 = vld [vmem:[#allocation77_spill] sm:$0xff] }
0x1134   :  { %v14809_v29 = vpop.eup %14808  ;;  %14828 = vrcp.f32 %v7275_v52  ;;  %v7357_v62 = vadd.f32 1.0, %v14807_v53  ;;  %v11368_v31 = vmul.f32 -1.442695, %v7330_v26  ;;  %v7391_v47 = vpop.permute.xlu0 %7390 }
0x1135   :  { %v14811_v61 = vpop.eup %14810  ;;  %14830 = vrcp.f32 %v7274_v48  ;;  %v7413_v0 = vmul.f32 %v14803_v63, %v7391_v47  ;;  %v7389_v20 = vpop.permute.xlu1 %7388 }
0x1136   :  { %v14813_v36 = vpop.eup %14812  ;;  %14832 = vrcp.f32 %v7357_v62  ;;  %v7412_v30 = vmul.f32 %v14809_v29, %v7389_v20 }
0x1137   :  { %v14815_v43 = vpop.eup %14814  ;;  %v7356_v1 = vadd.f32 1.0, %v14813_v36  ;;  %14834 = vpow2.f32 %v11369_v56  ;;  %v7421_v46 = vadd.f32 %v7413_v0, %v16506_v24  ;;  %v17826_v36 = vld [vmem:[#allocation78_spill] sm:$0xff] }
0x1138   :  { %v14817_v34 = vpop.eup %14816  ;;  %v7359_v13 = vadd.f32 1.0, %v14815_v43  ;;  %14836 = vpow2.f32 %v11368_v31  ;;  %v7420_v52 = vadd.f32 %v7412_v30, %v17825_v18  ;;  %v7395_v53 = vpop.permute.xlu0 %7394  ;;  %v11370_v31 = vld [vmem:[%s17787_s17 + $0x4] sm:$0x3] }
0x1139   :  { %v14819_v26 = vpop.eup %14818  ;;  %14838 = vrcp.f32 %v7356_v1  ;;  %v7415_v48 = vmul.f32 %v14811_v61, %v7395_v53  ;;  %v7393_v63 = vpop.permute.xlu1 %7392  ;;  %v17827_v18 = vld [vmem:[#allocation80_spill] sm:$0xff]  ;;  %13108 = vmatprep.subr.msk.mxu0 %vm6778_vm13, %v11370_v31 }
0x113a   :  { %v14821_v47 = vpop.eup %14820  ;;  %14840 = vrcp.f32 %v7359_v13  ;;  %v7414_v62 = vmul.f32 %v14817_v34, %v7393_v63  ;;  %13109 = vmatpush3.msk.msra.mxu0 %vm6778_vm13, %v11370_v31 }
0x113b   :  { %v14823_v29 = vpop.eup %14822  ;;  %v7358_v20 = vadd.f32 1.0, %v14821_v47  ;;  %14842 = vtanh.f32 %v7421_v46  ;;  %v7423_v56 = vadd.f32 %v7415_v48, %v17826_v36  ;;  %v17828_v48 = vld [vmem:[#allocation82_spill] sm:$0xff]  ;;  %v17829_v47 = vld [vmem:[#allocation83_spill] sm:$0xff] }
0x113c   :  { %v14825_v0 = vpop.eup %14824  ;;  %v7361_v24 = vadd.f32 1.0, %v14823_v29  ;;  %14844 = vtanh.f32 %v7420_v52  ;;  %v7399_v43 = vpop.permute.xlu0 %7398  ;;  %v7422_v32 = vadd.f32 %v7414_v62, %v17827_v18 }
0x113d   :  { %v14827_v30 = vpop.eup %14826  ;;  %14846 = vrcp.f32 %v7358_v20  ;;  %v7417_v1 = vmul.f32 %v14819_v26, %v7399_v43  ;;  %v7397_v61 = vpop.permute.xlu1 %7396 }
0x113e   :  { %v14829_v13 = vpop.eup %14828  ;;  %14848 = vrcp.f32 %v7361_v24  ;;  %v7360_v34 = vadd.f32 1.0, %v14827_v30  ;;  %v7416_v53 = vmul.f32 %v14825_v0, %v7397_v61 }
0x113f   :  { %v14831_v46 = vpop.eup %14830  ;;  %14850 = vtanh.f32 %v7423_v56  ;;  %v7425_v52 = vadd.f32 %v7417_v1, %v17828_v48  ;;  %v17830_v56 = vld [vmem:[#allocation84_spill] sm:$0xff] }
0x1140   :  { %v14833_v63 = vpop.eup %14832  ;;  %14852 = vrcp.f32 %v7360_v34  ;;  %v7424_v29 = vadd.f32 %v7416_v53, %v17829_v47  ;;  %v7403_v20 = vpop.permute.xlu0 %7402  ;;  %v17831_v34 = vld [vmem:[#allocation85_spill] sm:$0xff] }
0x1141   :  { %v14835_v62 = vpop.eup %14834  ;;  %14854 = vtanh.f32 %v7422_v32  ;;  %v7419_v26 = vmul.f32 %v14829_v13, %v7403_v20  ;;  %v7401_v43 = vpop.permute.xlu1 %7400  ;;  %v7437_v0 = vsub.f32 1.0, %v14833_v63 }
0x1142   :  { %v14837_v18 = vpop.eup %14836  ;;  %v7363_v36 = vadd.f32 1.0, %v14835_v62  ;;  %14856 = vtanh.f32 %v7425_v52  ;;  %v7418_v24 = vmul.f32 %v14831_v46, %v7401_v43 }
0x1143   :  { %v14839_v30 = vpop.eup %14838  ;;  %v7362_v31 = vadd.f32 1.0, %v14837_v18  ;;  %14858 = vtanh.f32 %v7424_v29  ;;  %v7427_v61 = vadd.f32 %v7419_v26, %v17830_v56 }
0x1144   :  { %v14841_v1 = vpop.eup %14840  ;;  %14860 = vrcp.f32 %v7363_v36  ;;  %v7426_v48 = vadd.f32 %v7418_v24, %v17831_v34  ;;  %v7455_v53 = vpop.permute.xlu0 %7454  ;;  %v7436_v47 = vsub.f32 1.0, %v14839_v30 }
0x1145   :  { %v14843_v54 = vpop.eup %14842  ;;  %14862 = vrcp.f32 %v7362_v31  ;;  %v7477_v32 = vmul.f32 %v14833_v63, %v7455_v53  ;;  %v7453_v13 = vpop.permute.xlu1 %7452  ;;  %v7439_v62 = vsub.f32 1.0, %v14841_v1 }
0x1146   :  { %v14845_v20 = vpop.eup %14844  ;;  %14864 = vtanh.f32 %v7427_v61  ;;  %v7445_v52 = vmul.f32 %v14843_v54, %v7437_v0  ;;  %v7476_v46 = vmul.f32 %v14839_v30, %v7453_v13 }
0x1147   :  { %v14847_v43 = vpop.eup %14846  ;;  %14866 = vtanh.f32 %v7426_v48  ;;  %v7444_v18 = vmul.f32 %v14845_v20, %v7436_v47 }
0x1148   :  { %v14849_v29 = vpop.eup %14848  ;;  %v16987_v26 = vadd.f32 %v7477_v32, %v7445_v52  ;;  %v7459_v36 = vpop.permute.xlu0 %7458  ;;  %v7438_v56 = vsub.f32 1.0, %v14847_v43 }
0x1149   :  { %v14851_v24 = vpop.eup %14850  ;;  %v16989_v34 = vadd.f32 %v7476_v46, %v7444_v18  ;;  %v7479_v14 = vmul.f32 %v14841_v1, %v7459_v36  ;;  %v7457_v31 = vpop.permute.xlu1 %7456  ;;  %v7441_v63 = vsub.f32 1.0, %v14849_v29 }
0x114a   :  { %v14853_v53 = vpop.eup %14852  ;;  %v7447_v51 = vmul.f32 %v14851_v24, %v7439_v62  ;;  %7504 = vrot.lane.b32.xlu0 %v16987_v26, %s15057_s7  ;;  %v7478_v54 = vmul.f32 %v14847_v43, %v7457_v31 }
0x114b   :  { %v14855_v0 = vpop.eup %14854  ;;  %7502 = vrot.lane.b32.xlu1 %v16989_v34, %s15057_s7  ;;  %v7440_v48 = vsub.f32 1.0, %v14853_v53 }
0x114c   :  { %v14857_v47 = vpop.eup %14856  ;;  %v16995_v30 = vadd.f32 %v7479_v14, %v7447_v51  ;;  %v7446_v61 = vmul.f32 %v14855_v0, %v7438_v56  ;;  %v7463_v32 = vpop.permute.xlu0 %7462 }
0x114d   :  { %v14859_v13 = vpop.eup %14858  ;;  %v7449_v1 = vmul.f32 %v14857_v47, %v7441_v63  ;;  %v7481_v20 = vmul.f32 %v14849_v29, %v7463_v32  ;;  %v7461_v52 = vpop.permute.xlu1 %7460 }
0x114e   :  { %v14861_v46 = vpop.eup %14860  ;;  %v16997_v62 = vadd.f32 %v7478_v54, %v7446_v61  ;;  %7508 = vrot.lane.b32.xlu0 %v16995_v30, %s15057_s7  ;;  %v7448_v43 = vmul.f32 %v14859_v13, %v7440_v48  ;;  %v7480_v18 = vmul.f32 %v14853_v53, %v7461_v52 }
0x114f   :  { %v14863_v36 = vpop.eup %14862  ;;  %v17001_v24 = vadd.f32 %v7481_v20, %v7449_v1  ;;  %v7443_v31 = vsub.f32 1.0, %v14861_v46 }
0x1150   :  { %v14865_v51 = vpop.eup %14864  ;;  %v17003_v14 = vadd.f32 %v7480_v18, %v7448_v43  ;;  %7506 = vrot.lane.b32.xlu1 %v16997_v62, %s15057_s7  ;;  %v7467_v56 = vpop.permute.xlu0 %7466  ;;  %v7442_v29 = vsub.f32 1.0, %v14863_v36 }
0x1151   :  { %v14867_v63 = vpop.eup %14866  ;;  %v7451_v54 = vmul.f32 %v14865_v51, %v7443_v31  ;;  %v7483_v0 = vmul.f32 %v14861_v46, %v7467_v56  ;;  %v7465_v47 = vpop.permute.xlu1 %7464 }
0x1152   :  { %7512 = vrot.lane.b32.xlu0 %v17001_v24, %s15057_s7  ;;  %v7450_v53 = vmul.f32 %v14867_v63, %v7442_v29  ;;  %v7482_v48 = vmul.f32 %v14863_v36, %v7465_v47  ;;  %v14977_v63 = vld [vmem:[%s15147_s6 + $0x8] sm:$0xff]  ;;  %v14980_v47 = vld [vmem:[%s15147_s6 + $0x20] sm:$0xff] }
0x1153   :  { %v17009_v61 = vadd.f32 %v7483_v0, %v7451_v54  ;;  %v14978_v54 = vld [vmem:[%s15147_s6 + $0x10] sm:$0xff]  ;;  %v14979_v0 = vld [vmem:[%s15147_s6 + $0x18] sm:$0xff] }
0x1154   :  { %v17011_v32 = vadd.f32 %v7482_v48, %v7450_v53  ;;  %7510 = vrot.lane.b32.xlu1 %v17003_v14, %s15057_s7  ;;  %v14981_v53 = vld [vmem:[%s15147_s6 + $0x28] sm:$0xff]  ;;  %v14982_v48 = vld [vmem:[%s15147_s6 + $0x30] sm:$0xff] }
0x1156   :  { %7516 = vrot.lane.b32.xlu0 %v17009_v61, %s15057_s7 }
0x1158   :  { %7514 = vrot.lane.b32.xlu1 %v17011_v32, %s15057_s7 }
0x11bc   :  { %v7505_v13 = vpop.permute.xlu0 %7504 }
0x11bd   :  { %v7503_v1 = vpop.permute.xlu1 %7502 }
0x11be   :  { %v13790_v20 = vpack.c.bf16 %v7505_v13, %v7503_v1  ;;  %13110 = vmatprep.mubr.msk.f32.mxu0 %vm6761_vm14, %v7503_v1  ;;  %v14984_v1 = vld [vmem:[%s15147_s6 + $0x40] sm:$0xff] }
0x11bf   :  { %13111 = vmatmul.mubr.msk.f32.vlgmr.msra.gmra.mrb[36].mxu0 %vm6761_vm14, %v7505_v13  ;;  %v14983_v13 = vld [vmem:[%s15147_s6 + $0x38] sm:$0xff] }
0x11c0   :  { %v7509_v52 = vpop.permute.xlu0 %7508  ;;  %13791 = vmatprep.subr.bf16.mxu1 %v13790_v20 }
0x11c1   :  { %13793 = vmatpush3.bf16.msra.mxu1 %v13790_v20  ;;  %v14985_v20 = vld [vmem:[%s15147_s6 + $0x48] sm:$0xff] }
0x11c2   :  { %v7507_v46 = vpop.permute.xlu1 %7506 }
0x11c3   :  { %v13794_v43 = vpack.c.bf16 %v7509_v52, %v7507_v46  ;;  %13113 = vmatprep.mubr.msk.f32.mxu0 %vm6761_vm14, %v7507_v46  ;;  %v14987_v46 = vld [vmem:[%s15147_s6 + $0x58] sm:$0xff] }
0x11c4   :  { %13114 = vmatmul.mubr.msk.f32.gmra.mrb[38].mxu0 %vm6761_vm14, %v7509_v52  ;;  %v7513_v18 = vpop.permute.xlu0 %7512  ;;  %v14986_v52 = vld [vmem:[%s15147_s6 + $0x50] sm:$0xff]  ;;  %s17881_s6 = sld [smem:[#allocation15_spill]] }
0x11c5   :  { %13795 = vmatprep.subr.bf16.mxu1 %v13794_v43 }
0x11c6   :  { %13797 = vmatpush3.bf16.msra.mxu1 %v13794_v43  ;;  %v7511_v36 = vpop.permute.xlu1 %7510 }
0x11c7   :  { %v13798_v31 = vpack.c.bf16 %v7513_v18, %v7511_v36  ;;  %13116 = vmatprep.mubr.msk.f32.mxu0 %vm6761_vm14, %v7511_v36 }
0x11c8   :  { %13117 = vmatmul.mubr.msk.f32.gmra.mrb[40].mxu0 %vm6761_vm14, %v7513_v18  ;;  %v7517_v51 = vpop.permute.xlu0 %7516 }
0x11c9   :  { %13799 = vmatprep.subr.bf16.mxu1 %v13798_v31 }
0x11ca   :  { %13801 = vmatpush3.bf16.msra.mxu1 %v13798_v31  ;;  %v7515_v56 = vpop.permute.xlu1 %7514 }
0x11cb   :  { %v13802_v29 = vpack.c.bf16 %v7517_v51, %v7515_v56  ;;  %13119 = vmatprep.mubr.msk.f32.mxu0 %vm6761_vm14, %v7515_v56 }
0x11cc   :  { %13120 = vmatmul.mubr.msk.f32.gmra.mrb[42].mxu0 %vm6761_vm14, %v7517_v51 }
0x11cd   :  { %13803 = vmatprep.subr.bf16.mxu1 %v13802_v29 }
0x11ce   :  { %13805 = vmatpush3.bf16.msra.mxu1 %v13802_v29 }
0x11d1   :  { %13139 = vmatmul.mubr.msk.f32.vlgmr.msra.gmra.mrb[92].mxu1 %vm2548_vm8, %v14977_v63 }
0x11d2   :  { %13141 = vmatprep.mubr.msk.f32.mxu1 %vm2548_vm8, %v14978_v54 }
0x11d5   :  { %13142 = vmatmul.mubr.msk.f32.gmra.mrb[94].mxu1 %vm2548_vm8, %v14979_v0 }
0x11d6   :  { %13144 = vmatprep.mubr.msk.f32.mxu1 %vm2548_vm8, %v14980_v47 }
0x11d9   :  { %13145 = vmatmul.mubr.msk.f32.gmra.mrb[96].mxu1 %vm2548_vm8, %v14981_v53 }
0x11da   :  { %13147 = vmatprep.mubr.msk.f32.mxu1 %vm2548_vm8, %v14982_v48 }
0x11dd   :  { %13148 = vmatmul.mubr.msk.f32.gmra.mrb[98].mxu1 %vm2548_vm8, %v14983_v13 }
0x11de   :  { %13150 = vmatprep.mubr.msk.f32.mxu1 %vm2548_vm8, %v14984_v1 }
0x11e1   :  { %13151 = vmatmul.mubr.msk.f32.gmra.mrb[100].mxu1 %vm2548_vm8, %v14985_v20 }
0x11e2   :  { %13153 = vmatprep.mubr.msk.f32.mxu1 %vm2548_vm8, %v14986_v52 }
0x11e5   :  { %13154 = vmatmul.mubr.msk.f32.gmra.mrb[102].mxu1 %vm2548_vm8, %v14987_v46 }
0x11e6   :  { %13156 = vmatprep.mubr.msk.f32.mxu1 %vm2548_vm8, %v16837_v49 }
0x11e9   :  { %13157 = vmatmul.mubr.msk.f32.gmra.mrb[104].mxu1 %vm2548_vm8, %v16842_v28 }
0x11ea   :  { %13159 = vmatprep.mubr.msk.f32.mxu1 %vm2548_vm8, %v16847_v16 }
0x11ed   :  { %13160 = vmatmul.mubr.msk.f32.gmra.mrb[106].mxu1 %vm2548_vm8, %v16852_v25 }
0x11ee   :  { %13162 = vmatprep.mubr.msk.f32.mxu1 %vm2548_vm8, %v16857_v33 }
0x11f1   :  { %13163 = vmatmul.mubr.msk.f32.gmra.mrb[108].mxu1 %vm2548_vm8, %v16862_v58 }
0x11f2   :  { %13165 = vmatprep.mubr.msk.f32.mxu1 %vm2548_vm8, %v16867_v22 }
0x11f5   :  { %13166 = vmatmul.mubr.msk.f32.gmra.mrb[110].mxu1 %vm2548_vm8, %v16872_v15 }
0x11f6   :  { %13168 = vmatprep.mubr.msk.f32.mxu1 %vm2548_vm8, %v16877_v41 }
0x11f9   :  { %13169 = vmatmul.mubr.msk.f32.gmra.mrb[112].mxu1 %vm2548_vm8, %v16882_v38 }
0x11fa   :  { %13171 = vmatprep.mubr.msk.f32.mxu1 %vm2548_vm8, %v16887_v19 }
0x11fd   :  { %13172 = vmatmul.mubr.msk.f32.gmra.mrb[114].mxu1 %vm2548_vm8, %v16892_v44 }
0x12a4   :  { %v13140_v49 = vpop.f32.mrb[92].mxu1 }
0x12a5   :  { %v7730_v28 = vadd.f32 %v13140_v49, %v17801_v57  ;;  %v7724_v16 = vpop.f32.mrb[93].mxu1 }
0x12a6   :  { %v7725_v25 = vadd.f32 %v7724_v16, %v16327_v5 }
0x12a7   :  { %7853 = vrot.lane.b32.xlu0 %v7730_v28, %s15045_s16 }
0x12a8   :  { %v13143_v33 = vpop.f32.mrb[94].mxu1  ;;  %7851 = vrot.lane.b32.xlu1 %v7725_v25, %s15045_s16  ;;  %v17835_v25 = vld [vmem:[#allocation59_spill] sm:$0xff] }
0x12a9   :  { %v7740_v58 = vadd.f32 %v13143_v33, %v16329_v2  ;;  %v7734_v22 = vpop.f32.mrb[95].mxu1 }
0x12aa   :  { %v7735_v15 = vadd.f32 %v7734_v22, %v16331_v3 }
0x12ab   :  { %7857 = vrot.lane.b32.xlu0 %v7740_v58, %s15045_s16 }
0x12ac   :  { %v13146_v41 = vpop.f32.mrb[96].mxu1  ;;  %7855 = vrot.lane.b32.xlu1 %v7735_v15, %s15045_s16  ;;  %v17836_v15 = vld [vmem:[#allocation60_spill] sm:$0xff] }
0x12ad   :  { %v7750_v38 = vadd.f32 %v13146_v41, %v16333_v6  ;;  %v7744_v19 = vpop.f32.mrb[97].mxu1 }
0x12ae   :  { %v7745_v5 = vadd.f32 %v7744_v19, %v16335_v8  ;;  %v17837_v19 = vld [vmem:[#allocation65_spill] sm:$0xff] }
0x12af   :  { %7861 = vrot.lane.b32.xlu0 %v7750_v38, %s15045_s16 }
0x12b0   :  { %v13149_v44 = vpop.f32.mrb[98].mxu1  ;;  %7859 = vrot.lane.b32.xlu1 %v7745_v5, %s15045_s16 }
0x12b1   :  { %v7760_v2 = vadd.f32 %v13149_v44, %v16339_v35  ;;  %v7754_v57 = vpop.f32.mrb[99].mxu1 }
0x12b2   :  { %v7755_v3 = vadd.f32 %v7754_v57, %v16341_v21 }
0x12b3   :  { %7865 = vrot.lane.b32.xlu0 %v7760_v2, %s15045_s16 }
0x12b4   :  { %v13152_v43 = vpop.f32.mrb[100].mxu1  ;;  %7863 = vrot.lane.b32.xlu1 %v7755_v3, %s15045_s16 }
0x12b5   :  { %v7770_v6 = vadd.f32 %v13152_v43, %v16343_v12  ;;  %v7764_v18 = vpop.f32.mrb[101].mxu1 }
0x12b6   :  { %v7765_v8 = vadd.f32 %v7764_v18, %v16345_v9  ;;  %v17838_v18 = vld [vmem:[#allocation62_spill] sm:$0xff] }
0x12b7   :  { %7941 = vrot.lane.b32.xlu0 %v7770_v6, %s15045_s16 }
0x12b8   :  { %v13155_v36 = vpop.f32.mrb[102].mxu1  ;;  %7939 = vrot.lane.b32.xlu1 %v7765_v8, %s15045_s16 }
0x12b9   :  { %v7780_v35 = vadd.f32 %v13155_v36, %v16351_v37  ;;  %v7774_v31 = vpop.f32.mrb[103].mxu1 }
0x12ba   :  { %v7775_v21 = vadd.f32 %v7774_v31, %v16353_v42  ;;  %v17839_v31 = vld [vmem:[#allocation64_spill] sm:$0xff] }
0x12bb   :  { %7945 = vrot.lane.b32.xlu0 %v7780_v35, %s15045_s16 }
0x12bc   :  { %v13158_v51 = vpop.f32.mrb[104].mxu1  ;;  %7943 = vrot.lane.b32.xlu1 %v7775_v21, %s15045_s16 }
0x12bd   :  { %v7790_v12 = vadd.f32 %v13158_v51, %v16359_v60  ;;  %v7784_v56 = vpop.f32.mrb[105].mxu1 }
0x12be   :  { %v7785_v9 = vadd.f32 %v7784_v56, %v16361_v59 }
0x12bf   :  { %7949 = vrot.lane.b32.xlu0 %v7790_v12, %s15045_s16 }
0x12c0   :  { %v13161_v29 = vpop.f32.mrb[106].mxu1  ;;  %7947 = vrot.lane.b32.xlu1 %v7785_v9, %s15045_s16 }
0x12c1   :  { %v7800_v37 = vadd.f32 %v13161_v29, %v16382_v4  ;;  %v7794_v63 = vpop.f32.mrb[107].mxu1 }
0x12c2   :  { %v7795_v42 = vadd.f32 %v7794_v63, %v16387_v17  ;;  %v17840_v63 = vld [vmem:[#allocation66_spill] sm:$0xff] }
0x12c3   :  { %7953 = vrot.lane.b32.xlu0 %v7800_v37, %s15045_s16 }
0x12c4   :  { %v13164_v54 = vpop.f32.mrb[108].mxu1  ;;  %7951 = vrot.lane.b32.xlu1 %v7795_v42, %s15045_s16 }
0x12c5   :  { %v7810_v60 = vadd.f32 %v13164_v54, %v17802_v23  ;;  %v7804_v0 = vpop.f32.mrb[109].mxu1 }
0x12c6   :  { %v7805_v59 = vadd.f32 %v7804_v0, %v17803_v40  ;;  %v17841_v0 = vld [vmem:[#allocation67_spill] sm:$0xff] }
0x12c7   :  { %8029 = vrot.lane.b32.xlu0 %v7810_v60, %s15045_s16 }
0x12c8   :  { %v13167_v47 = vpop.f32.mrb[110].mxu1  ;;  %8027 = vrot.lane.b32.xlu1 %v7805_v59, %s15045_s16 }
0x12c9   :  { %v7820_v4 = vadd.f32 %v13167_v47, %v17804_v10  ;;  %v7814_v53 = vpop.f32.mrb[111].mxu1 }
0x12ca   :  { %v7815_v17 = vadd.f32 %v7814_v53, %v17805_v39 }
0x12cb   :  { %8033 = vrot.lane.b32.xlu0 %v7820_v4, %s15045_s16 }
0x12cc   :  { %v13170_v48 = vpop.f32.mrb[112].mxu1  ;;  %8031 = vrot.lane.b32.xlu1 %v7815_v17, %s15045_s16 }
0x12cd   :  { %v7830_v23 = vadd.f32 %v13170_v48, %v17806_v7  ;;  %v7824_v13 = vpop.f32.mrb[113].mxu1 }
0x12ce   :  { %v7825_v40 = vadd.f32 %v7824_v13, %v17807_v11  ;;  %v17842_v13 = vld [vmem:[#allocation70_spill] sm:$0xff] }
0x12cf   :  { %8037 = vrot.lane.b32.xlu0 %v7830_v23, %s15045_s16 }
0x12d0   :  { %v13173_v1 = vpop.f32.mrb[114].mxu1  ;;  %8035 = vrot.lane.b32.xlu1 %v7825_v40, %s15045_s16 }
0x12d1   :  { %v7840_v10 = vadd.f32 %v13173_v1, %v17808_v27  ;;  %v7834_v20 = vpop.f32.mrb[115].mxu1 }
0x12d2   :  { %v7835_v39 = vadd.f32 %v7834_v20, %v17809_v55  ;;  %v17843_v20 = vld [vmem:[#allocation71_spill] sm:$0xff] }
0x12d3   :  { %8041 = vrot.lane.b32.xlu0 %v7840_v10, %s15045_s16 }
0x12d4   :  { %8039 = vrot.lane.b32.xlu1 %v7835_v39, %s15045_s16 }
0x12d7   :  { %8093 = vrot.lane.b32.xlu0 %v16987_v26, %s15044_s15 }
0x12d8   :  { %8091 = vrot.lane.b32.xlu1 %v16989_v34, %s15044_s15 }
0x12db   :  { %8097 = vrot.lane.b32.xlu0 %v16995_v30, %s15044_s15 }
0x12dc   :  { %8095 = vrot.lane.b32.xlu1 %v16997_v62, %s15044_s15  ;;  %v17832_v62 = vld [vmem:[#allocation56_spill] sm:$0xff] }
0x12df   :  { %8101 = vrot.lane.b32.xlu0 %v17001_v24, %s15044_s15 }
0x12e0   :  { %8099 = vrot.lane.b32.xlu1 %v17003_v14, %s15044_s15  ;;  %v17833_v14 = vld [vmem:[#allocation57_spill] sm:$0xff] }
0x12e3   :  { %8105 = vrot.lane.b32.xlu0 %v17009_v61, %s15044_s15 }
0x12e4   :  { %8103 = vrot.lane.b32.xlu1 %v17011_v32, %s15044_s15  ;;  %v17834_v32 = vld [vmem:[#allocation58_spill] sm:$0xff] }
0x1319   :  { %v7854_v7 = vpop.permute.xlu0 %7853 }
0x131a   :  { %v7876_v11 = vadd.f32 %v7854_v7, %v17810_v50  ;;  %v7852_v27 = vpop.permute.xlu1 %7851 }
0x131b   :  { %v7875_v55 = vadd.f32 %v7852_v27, %v17811_v45 }
0x131c   :  { %v11405_v34 = vmul.f32 -1.442695, %v7876_v11 }
0x131d   :  { %v11404_v26 = vmul.f32 -1.442695, %v7875_v55  ;;  %v7858_v30 = vpop.permute.xlu0 %7857 }
0x131e   :  { %14868 = vpow2.f32 %v11405_v34  ;;  %v7878_v24 = vadd.f32 %v7858_v30, %v17832_v62  ;;  %v7856_v52 = vpop.permute.xlu1 %7855  ;;  %v17844_v30 = vld [vmem:[#allocation73_spill] sm:$0xff] }
0x131f   :  { %14870 = vpow2.f32 %v11404_v26  ;;  %v7877_v46 = vadd.f32 %v7856_v52, %v17833_v14  ;;  %v17845_v14 = vld [vmem:[#allocation75_spill] sm:$0xff] }
0x1320   :  { %v11407_v61 = vmul.f32 -1.442695, %v7878_v24 }
0x1321   :  { %v11406_v49 = vmul.f32 -1.442695, %v7877_v46  ;;  %v7862_v28 = vpop.permute.xlu0 %7861 }
0x1322   :  { %14872 = vpow2.f32 %v11407_v61  ;;  %v7880_v16 = vadd.f32 %v7862_v28, %v17834_v32  ;;  %v7860_v50 = vpop.permute.xlu1 %7859 }
0x1323   :  { %14874 = vpow2.f32 %v11406_v49  ;;  %v7879_v45 = vadd.f32 %v7860_v50, %v17835_v25 }
0x1324   :  { %v11409_v33 = vmul.f32 -1.442695, %v7880_v16 }
0x1325   :  { %v11408_v58 = vmul.f32 -1.442695, %v7879_v45  ;;  %v7866_v22 = vpop.permute.xlu0 %7865 }
0x1326   :  { %14876 = vpow2.f32 %v11409_v33  ;;  %v7882_v41 = vadd.f32 %v7866_v22, %v17836_v15  ;;  %v7864_v38 = vpop.permute.xlu1 %7863 }
0x1327   :  { %14878 = vpow2.f32 %v11408_v58  ;;  %v7881_v5 = vadd.f32 %v7864_v38, %v17837_v19  ;;  %v17846_v19 = vld [vmem:[#allocation76_spill] sm:$0xff] }
0x1328   :  { %v14869_v44 = vpop.eup %14868  ;;  %v11411_v2 = vmul.f32 -1.442695, %v7882_v41 }
0x1329   :  { %v14871_v57 = vpop.eup %14870  ;;  %v7908_v3 = vadd.f32 1.0, %v14869_v44  ;;  %v11410_v43 = vmul.f32 -1.442695, %v7881_v5  ;;  %v7942_v6 = vpop.permute.xlu0 %7941 }
0x132a   :  { %14880 = vpow2.f32 %v11411_v2  ;;  %v7964_v8 = vadd.f32 %v7942_v6, %v17838_v18  ;;  %v7940_v36 = vpop.permute.xlu1 %7939  ;;  %v7907_v35 = vadd.f32 1.0, %v14871_v57  ;;  %v17847_v57 = vld [vmem:[#allocation77_spill] sm:$0xff] }
0x132b   :  { %v7963_v21 = vadd.f32 %v7940_v36, %v17839_v31  ;;  %14882 = vrcp.f32 %v7908_v3 }
0x132c   :  { %v14873_v51 = vpop.eup %14872  ;;  %v11413_v12 = vmul.f32 -1.442695, %v7964_v8  ;;  %14884 = vpow2.f32 %v11410_v43 }
0x132d   :  { %v14875_v56 = vpop.eup %14874  ;;  %v7910_v9 = vadd.f32 1.0, %v14873_v51  ;;  %v11412_v29 = vmul.f32 -1.442695, %v7963_v21  ;;  %v7946_v37 = vpop.permute.xlu0 %7945  ;;  %v17848_v51 = vld [vmem:[#allocation78_spill] sm:$0xff] }
0x132e   :  { %14886 = vpow2.f32 %v11413_v12  ;;  %v7966_v42 = vadd.f32 %v7946_v37, %v17840_v63  ;;  %v7944_v54 = vpop.permute.xlu1 %7943  ;;  %v7909_v60 = vadd.f32 1.0, %v14875_v56  ;;  %v11420_v37 = vld [vmem:[%s17787_s17 + $0x6] sm:$0x3] }
0x132f   :  { %14888 = vrcp.f32 %v7907_v35  ;;  %v7965_v59 = vadd.f32 %v7944_v54, %v17841_v0  ;;  %13174 = vmatprep.subr.msk.mxu0 %vm6778_vm13, %v11420_v37 }
0x1330   :  { %v14877_v47 = vpop.eup %14876  ;;  %14890 = vrcp.f32 %v7910_v9  ;;  %v11415_v4 = vmul.f32 -1.442695, %v7966_v42  ;;  %v17849_v42 = vld [vmem:[#allocation80_spill] sm:$0xff]  ;;  %13175 = vmatpush3.msk.msra.mxu0 %vm6778_vm13, %v11420_v37 }
0x1331   :  { %v14879_v53 = vpop.eup %14878  ;;  %v7912_v17 = vadd.f32 1.0, %v14877_v47  ;;  %14892 = vpow2.f32 %v11412_v29  ;;  %v11414_v48 = vmul.f32 -1.442695, %v7965_v59  ;;  %v7950_v23 = vpop.permute.xlu0 %7949 }
0x1332   :  { %14894 = vpow2.f32 %v11415_v4  ;;  %v7968_v40 = vadd.f32 %v7950_v23, %v17842_v13  ;;  %v7948_v1 = vpop.permute.xlu1 %7947  ;;  %v7911_v10 = vadd.f32 1.0, %v14879_v53  ;;  %v17851_v13 = vld [vmem:[#allocation83_spill] sm:$0xff] }
0x1333   :  { %14896 = vrcp.f32 %v7909_v60  ;;  %v7967_v39 = vadd.f32 %v7948_v1, %v17843_v20 }
0x1334   :  { %v14881_v7 = vpop.eup %14880  ;;  %14898 = vrcp.f32 %v7912_v17  ;;  %v11417_v11 = vmul.f32 -1.442695, %v7968_v40  ;;  %v17850_v17 = vld [vmem:[#allocation82_spill] sm:$0xff] }
0x1335   :  { %v7914_v27 = vadd.f32 1.0, %v14881_v7  ;;  %14900 = vpow2.f32 %v11414_v48  ;;  %v11416_v55 = vmul.f32 -1.442695, %v7967_v39  ;;  %v7954_v34 = vpop.permute.xlu0 %7953  ;;  %v14883_v26 = vpop.eup %14882 }
0x1336   :  { %14902 = vpow2.f32 %v11417_v11  ;;  %v7970_v62 = vadd.f32 %v7954_v34, %v17844_v30  ;;  %v7952_v24 = vpop.permute.xlu1 %7951  ;;  %v14885_v52 = vpop.eup %14884  ;;  %v17852_v30 = vld [vmem:[#allocation84_spill] sm:$0xff] }
0x1337   :  { %14904 = vrcp.f32 %v7911_v10  ;;  %v7969_v46 = vadd.f32 %v7952_v24, %v17845_v14  ;;  %v7913_v49 = vadd.f32 1.0, %v14885_v52  ;;  %v17853_v52 = vld [vmem:[#allocation85_spill] sm:$0xff] }
0x1338   :  { %v14887_v61 = vpop.eup %14886  ;;  %14906 = vpow2.f32 %v11416_v55  ;;  %v11419_v28 = vmul.f32 -1.442695, %v7970_v62 }
0x1339   :  { %v14889_v32 = vpop.eup %14888  ;;  %14908 = vrcp.f32 %v7914_v27  ;;  %v7996_v16 = vadd.f32 1.0, %v14887_v61  ;;  %v11418_v50 = vmul.f32 -1.442695, %v7969_v46  ;;  %v8030_v25 = vpop.permute.xlu0 %8029 }
0x133a   :  { %v14891_v45 = vpop.eup %14890  ;;  %14910 = vrcp.f32 %v7913_v49  ;;  %v8052_v33 = vmul.f32 %v14883_v26, %v8030_v25  ;;  %v8028_v58 = vpop.permute.xlu1 %8027 }
0x133b   :  { %v14893_v22 = vpop.eup %14892  ;;  %14912 = vrcp.f32 %v7996_v16  ;;  %v8051_v15 = vmul.f32 %v14889_v32, %v8028_v58 }
0x133c   :  { %v14895_v41 = vpop.eup %14894  ;;  %v7995_v38 = vadd.f32 1.0, %v14893_v22  ;;  %14914 = vpow2.f32 %v11419_v28  ;;  %v8060_v5 = vadd.f32 %v8052_v33, %v17846_v19 }
0x133d   :  { %v14897_v44 = vpop.eup %14896  ;;  %v7998_v2 = vadd.f32 1.0, %v14895_v41  ;;  %14916 = vpow2.f32 %v11418_v50  ;;  %v8059_v3 = vadd.f32 %v8051_v15, %v17847_v57  ;;  %v8034_v43 = vpop.permute.xlu0 %8033 }
0x133e   :  { %v14899_v6 = vpop.eup %14898  ;;  %14918 = vrcp.f32 %v7995_v38  ;;  %v8054_v18 = vmul.f32 %v14891_v45, %v8034_v43  ;;  %v8032_v8 = vpop.permute.xlu1 %8031 }
0x133f   :  { %v14901_v36 = vpop.eup %14900  ;;  %14920 = vrcp.f32 %v7998_v2  ;;  %v8053_v35 = vmul.f32 %v14897_v44, %v8032_v8 }
0x1340   :  { %v14903_v31 = vpop.eup %14902  ;;  %v7997_v21 = vadd.f32 1.0, %v14901_v36  ;;  %14922 = vtanh.f32 %v8060_v5  ;;  %v8062_v12 = vadd.f32 %v8054_v18, %v17848_v51  ;;  %v8289_v51 = vld [vmem:[%s17854_s21] sm:$0xff] }
0x1341   :  { %v14905_v56 = vpop.eup %14904  ;;  %v8000_v9 = vadd.f32 1.0, %v14903_v31  ;;  %14924 = vtanh.f32 %v8059_v3  ;;  %v8038_v29 = vpop.permute.xlu0 %8037  ;;  %v8061_v54 = vadd.f32 %v8053_v35, %v17849_v42  ;;  %13188 = vmatprep.subr.mxu1 %v8289_v51 }
0x1342   :  { %v14907_v63 = vpop.eup %14906  ;;  %14926 = vrcp.f32 %v7997_v21  ;;  %v8056_v60 = vmul.f32 %v14899_v6, %v8038_v29  ;;  %v8036_v0 = vpop.permute.xlu1 %8035  ;;  %13189 = vmatpush3.msra.mxu1 %v8289_v51  ;;  %v17860_v51 = vld [vmem:[#allocation33_spill] sm:$0xff] }
0x1343   :  { %v14909_v59 = vpop.eup %14908  ;;  %14928 = vrcp.f32 %v8000_v9  ;;  %v7999_v47 = vadd.f32 1.0, %v14907_v63  ;;  %v8055_v4 = vmul.f32 %v14905_v56, %v8036_v0 }
0x1344   :  { %v14911_v53 = vpop.eup %14910  ;;  %14930 = vtanh.f32 %v8062_v12  ;;  %v8064_v48 = vadd.f32 %v8056_v60, %v17850_v17 }
0x1345   :  { %v14913_v23 = vpop.eup %14912  ;;  %14932 = vrcp.f32 %v7999_v47  ;;  %v8063_v40 = vadd.f32 %v8055_v4, %v17851_v13  ;;  %v8042_v1 = vpop.permute.xlu0 %8041 }
0x1346   :  { %v14915_v10 = vpop.eup %14914  ;;  %14934 = vtanh.f32 %v8061_v54  ;;  %v8058_v20 = vmul.f32 %v14909_v59, %v8042_v1  ;;  %v8040_v39 = vpop.permute.xlu1 %8039  ;;  %v8076_v55 = vsub.f32 1.0, %v14913_v23 }
0x1347   :  { %v14917_v7 = vpop.eup %14916  ;;  %v8002_v11 = vadd.f32 1.0, %v14915_v10  ;;  %14936 = vtanh.f32 %v8064_v48  ;;  %v8057_v27 = vmul.f32 %v14911_v53, %v8040_v39 }
0x1348   :  { %v14919_v34 = vpop.eup %14918  ;;  %v8001_v26 = vadd.f32 1.0, %v14917_v7  ;;  %14938 = vtanh.f32 %v8063_v40  ;;  %v8066_v62 = vadd.f32 %v8058_v20, %v17852_v30 }
0x1349   :  { %v14921_v24 = vpop.eup %14920  ;;  %14940 = vrcp.f32 %v8002_v11  ;;  %v8065_v14 = vadd.f32 %v8057_v27, %v17853_v52  ;;  %v8094_v46 = vpop.permute.xlu0 %8093  ;;  %v8075_v61 = vsub.f32 1.0, %v14919_v34 }
0x134a   :  { %v14923_v49 = vpop.eup %14922  ;;  %14942 = vrcp.f32 %v8001_v26  ;;  %v8116_v28 = vmul.f32 %v14913_v23, %v8094_v46  ;;  %v8092_v32 = vpop.permute.xlu1 %8091  ;;  %v8078_v45 = vsub.f32 1.0, %v14921_v24 }
0x134b   :  { %v14925_v16 = vpop.eup %14924  ;;  %14944 = vtanh.f32 %v8066_v62  ;;  %v8084_v50 = vmul.f32 %v14923_v49, %v8076_v55  ;;  %v8115_v25 = vmul.f32 %v14919_v34, %v8092_v32 }
0x134c   :  { %v14927_v33 = vpop.eup %14926  ;;  %14946 = vtanh.f32 %v8065_v14  ;;  %v8083_v58 = vmul.f32 %v14925_v16, %v8075_v61 }
0x134d   :  { %v14929_v22 = vpop.eup %14928  ;;  %v8124_v15 = vadd.f32 %v8116_v28, %v8084_v50  ;;  %v8098_v41 = vpop.permute.xlu0 %8097  ;;  %v8077_v38 = vsub.f32 1.0, %v14927_v33  ;;  %v17855_v50 = vld [vmem:[#allocation28_spill] sm:$0xff] }
0x134e   :  { %v14931_v19 = vpop.eup %14930  ;;  %v8123_v5 = vadd.f32 %v8115_v25, %v8083_v58  ;;  %v8118_v44 = vmul.f32 %v14921_v24, %v8098_v41  ;;  %v8096_v2 = vpop.permute.xlu1 %8095  ;;  %v8080_v57 = vsub.f32 1.0, %v14929_v22 }
0x134f   :  { %v14933_v3 = vpop.eup %14932  ;;  %v8086_v43 = vmul.f32 %v14931_v19, %v8078_v45  ;;  %8143 = vrot.lane.b32.xlu0 %v8124_v15, %s15062_s10  ;;  %v8117_v6 = vmul.f32 %v14927_v33, %v8096_v2  ;;  %v17856_v33 = vld [vmem:[#allocation29_spill] sm:$0xff] }
0x1350   :  { %v14935_v18 = vpop.eup %14934  ;;  %8141 = vrot.lane.b32.xlu1 %v8123_v5, %s15062_s10  ;;  %v8079_v8 = vsub.f32 1.0, %v14933_v3  ;;  %v17857_v5 = vld [vmem:[#allocation30_spill] sm:$0xff] }
0x1351   :  { %v14937_v36 = vpop.eup %14936  ;;  %v8126_v35 = vadd.f32 %v8118_v44, %v8086_v43  ;;  %v8085_v31 = vmul.f32 %v14935_v18, %v8077_v38  ;;  %v8102_v21 = vpop.permute.xlu0 %8101 }
0x1352   :  { %v14939_v12 = vpop.eup %14938  ;;  %v8088_v56 = vmul.f32 %v14937_v36, %v8080_v57  ;;  %v8120_v9 = vmul.f32 %v14929_v22, %v8102_v21  ;;  %v8100_v29 = vpop.permute.xlu1 %8099  ;;  %v17858_v57 = vld [vmem:[#allocation31_spill] sm:$0xff]  ;;  %v17859_v36 = vld [vmem:[#allocation32_spill] sm:$0xff] }
0x1353   :  { %v14941_v37 = vpop.eup %14940  ;;  %v8125_v63 = vadd.f32 %v8117_v6, %v8085_v31  ;;  %8147 = vrot.lane.b32.xlu0 %v8126_v35, %s15062_s10  ;;  %v8087_v42 = vmul.f32 %v14939_v12, %v8079_v8  ;;  %v8119_v54 = vmul.f32 %v14933_v3, %v8100_v29 }
0x1354   :  { %v14943_v60 = vpop.eup %14942  ;;  %v8128_v0 = vadd.f32 %v8120_v9, %v8088_v56  ;;  %v8082_v59 = vsub.f32 1.0, %v14941_v37 }
0x1355   :  { %v14945_v47 = vpop.eup %14944  ;;  %v8127_v4 = vadd.f32 %v8119_v54, %v8087_v42  ;;  %8145 = vrot.lane.b32.xlu1 %v8125_v63, %s15062_s10  ;;  %v8106_v53 = vpop.permute.xlu0 %8105  ;;  %v8081_v17 = vsub.f32 1.0, %v14943_v60  ;;  %v17862_v63 = vld [vmem:[#allocation34_spill] sm:$0xff] }
0x1356   :  { %v14947_v48 = vpop.eup %14946  ;;  %v8090_v23 = vmul.f32 %v14945_v47, %v8082_v59  ;;  %v8122_v13 = vmul.f32 %v14941_v37, %v8106_v53  ;;  %v8104_v40 = vpop.permute.xlu1 %8103 }
0x1357   :  { %8151 = vrot.lane.b32.xlu0 %v8128_v0, %s15062_s10  ;;  %v8089_v1 = vmul.f32 %v14947_v48, %v8081_v17  ;;  %v8121_v10 = vmul.f32 %v14943_v60, %v8104_v40  ;;  %v17863_v0 = vld [vmem:[#allocation35_spill] sm:$0xff] }
0x1358   :  { %v8130_v20 = vadd.f32 %v8122_v13, %v8090_v23  ;;  %v11464_v48 = vld [vmem:[%s17861_s25 + $0x2] ss:$0 sm:$0xff] }
0x1359   :  { %v8129_v39 = vadd.f32 %v8121_v10, %v8089_v1  ;;  %8149 = vrot.lane.b32.xlu1 %v8127_v4, %s15062_s10  ;;  %v11438_v10 = vld [vmem:[%s17861_s25] ss:$0 sm:$0xff] }
0x135b   :  { %8155 = vrot.lane.b32.xlu0 %v8130_v20, %s15062_s10 }
0x135d   :  { %8153 = vrot.lane.b32.xlu1 %v8129_v39, %s15062_s10 }
0x13c1   :  { %v8144_v7 = vpop.permute.xlu0 %8143 }
0x13c2   :  { %v8142_v11 = vpop.permute.xlu1 %8141 }
0x13c3   :  { %13176 = vmatprep.mubr.msk.f32.mxu0 %vm6761_vm14, %v8142_v11  ;;  %v17212_v11 = vld [vmem:[#allocation2 + $0x28] sm:$0xff] }
0x13c4   :  { %13177 = vmatmul.mubr.msk.f32.vlgmr.msra.gmra.mrb[36].mxu0 %vm6761_vm14, %v8144_v7 }
0x13c5   :  { %v8148_v27 = vpop.permute.xlu0 %8147 }
0x13c7   :  { %v8146_v55 = vpop.permute.xlu1 %8145 }
0x13c8   :  { %13179 = vmatprep.mubr.msk.f32.mxu0 %vm6761_vm14, %v8146_v55 }
0x13c9   :  { %13180 = vmatmul.mubr.msk.f32.gmra.mrb[38].mxu0 %vm6761_vm14, %v8148_v27  ;;  %v8152_v34 = vpop.permute.xlu0 %8151 }
0x13cb   :  { %v8150_v26 = vpop.permute.xlu1 %8149 }
0x13cc   :  { %13182 = vmatprep.mubr.msk.f32.mxu0 %vm6761_vm14, %v8150_v26 }
0x13cd   :  { %13183 = vmatmul.mubr.msk.f32.gmra.mrb[40].mxu0 %vm6761_vm14, %v8152_v34  ;;  %v8156_v62 = vpop.permute.xlu0 %8155 }
0x13cf   :  { %v8154_v30 = vpop.permute.xlu1 %8153 }
0x13d0   :  { %13185 = vmatprep.mubr.msk.f32.mxu0 %vm6761_vm14, %v8154_v30 }
0x13d1   :  { %13186 = vmatmul.mubr.msk.f32.gmra.mrb[42].mxu0 %vm6761_vm14, %v8156_v62 }
0x1497   :  { %v13178_v24 = vpop.f32.mrb[36].mxu0 }
0x1498   :  { %v8242_v52 = vpop.f32.mrb[37].mxu0 }
0x1499   :  { %13190 = vmatprep.mubr.msk.f32.mxu1 %vm5105_vm12, %v8242_v52 }
0x149a   :  { %13191 = vmatmul.mubr.msk.f32.vlgmr.msra.gmra.mrb[116].mxu1 %vm5105_vm12, %v13178_v24 }
0x149c   :  { %v13181_v14 = vpop.f32.mrb[38].mxu0 }
0x149d   :  { %v8252_v46 = vpop.f32.mrb[39].mxu0 }
0x149e   :  { %13193 = vmatprep.mubr.msk.f32.mxu1 %vm5105_vm12, %v8252_v46 }
0x149f   :  { %13194 = vmatmul.mubr.msk.f32.gmra.mrb[118].mxu1 %vm5105_vm12, %v13181_v14 }
0x14a0   :  { %v13184_v61 = vpop.f32.mrb[40].mxu0 }
0x14a1   :  { %v8262_v49 = vpop.f32.mrb[41].mxu0 }
0x14a2   :  { %13196 = vmatprep.mubr.msk.f32.mxu1 %vm5105_vm12, %v8262_v49 }
0x14a3   :  { %13197 = vmatmul.mubr.msk.f32.gmra.mrb[120].mxu1 %vm5105_vm12, %v13184_v61 }
0x14a4   :  { %v13187_v28 = vpop.f32.mrb[42].mxu0 }
0x14a5   :  { %v8272_v32 = vpop.f32.mrb[43].mxu0 }
0x14a6   :  { %13199 = vmatprep.mubr.msk.f32.mxu1 %vm5105_vm12, %v8272_v32 }
0x14a7   :  { %13200 = vmatmul.mubr.msk.f32.gmra.mrb[122].mxu1 %vm5105_vm12, %v13187_v28 }
0x156d   :  { %v13192_v16 = vpop.f32.mrb[116].mxu1 }
0x156e   :  { %v8386_v25 = vadd.f32 %v13192_v16, %v17855_v50  ;;  %v8380_v45 = vpop.f32.mrb[117].mxu1 }
0x156f   :  { %v8381_v58 = vadd.f32 %v8380_v45, %v17856_v33 }
0x1570   :  { %v8420_v22 = vmul.f32 0.999995, %v8386_v25  ;;  %v11439_v25 = vld [vmem:[%s17864_s29 + $0x40] sm:$0xff] }
0x1571   :  { %v8419_v15 = vmul.f32 0.999995, %v8381_v58  ;;  %13218 = vmatprep.mubr.msk.f32.mxu1 %vm2548_vm8, %v11439_v25 }
0x1572   :  { %v8428_v41 = vmax.f32 %v8420_v22, 0.0  ;;  %v13195_v38 = vpop.f32.mrb[118].mxu1 }
0x1573   :  { %v8427_v19 = vmax.f32 %v8419_v15, 0.0  ;;  %v8396_v44 = vadd.f32 %v13195_v38, %v17857_v5  ;;  %v8390_v2 = vpop.f32.mrb[119].mxu1 }
0x1574   :  { %v8391_v3 = vadd.f32 %v8390_v2, %v17858_v57  ;;  %8453 = vrot.lane.b32.xlu0 %v8428_v41, %s15048_s27 }
0x1575   :  { %v8422_v43 = vmul.f32 0.999995, %v8396_v44  ;;  %8451 = vrot.lane.b32.xlu1 %v8427_v19, %s15048_s27 }
0x1576   :  { %v8421_v6 = vmul.f32 0.999995, %v8391_v3  ;;  %v13198_v18 = vpop.f32.mrb[120].mxu1 }
0x1577   :  { %v8430_v8 = vmax.f32 %v8422_v43, 0.0  ;;  %v8406_v35 = vadd.f32 %v13198_v18, %v17859_v36  ;;  %v8400_v31 = vpop.f32.mrb[121].mxu1 }
0x1578   :  { %v8429_v21 = vmax.f32 %v8421_v6, 0.0  ;;  %v8401_v12 = vadd.f32 %v8400_v31, %v17860_v51 }
0x1579   :  { %v8424_v56 = vmul.f32 0.999995, %v8406_v35  ;;  %8457 = vrot.lane.b32.xlu0 %v8430_v8, %s15048_s27 }
0x157a   :  { %v8423_v9 = vmul.f32 0.999995, %v8401_v12  ;;  %8455 = vrot.lane.b32.xlu1 %v8429_v21, %s15048_s27  ;;  %v13201_v29 = vpop.f32.mrb[122].mxu1  ;;  %v9010_v12 = vld [vmem:[%s17865_s3] sm:$0xff] }
0x157b   :  { %v8432_v37 = vmax.f32 %v8424_v56, 0.0  ;;  %v8416_v42 = vadd.f32 %v13201_v29, %v17862_v63  ;;  %v8410_v54 = vpop.f32.mrb[123].mxu1  ;;  %v9011_v56 = vld [vmem:[%s17865_s3 + $0x8] sm:$0xff] }
0x157c   :  { %v8431_v60 = vmax.f32 %v8423_v9, 0.0  ;;  %v8411_v59 = vadd.f32 %v8410_v54, %v17863_v0  ;;  %v13854_v9 = vpack.c.bf16 %v9011_v56, %v9010_v12 }
0x157d   :  { %v8426_v47 = vmul.f32 0.999995, %v8416_v42  ;;  %8461 = vrot.lane.b32.xlu0 %v8432_v37, %s15048_s27 }
0x157e   :  { %v8425_v4 = vmul.f32 0.999995, %v8411_v59  ;;  %8459 = vrot.lane.b32.xlu1 %v8431_v60, %s15048_s27  ;;  %13855 = vmatprep.subr.bf16.mxu0 %v13854_v9 }
0x157f   :  { %v8434_v53 = vmax.f32 %v8426_v47, 0.0  ;;  %13857 = vmatpush3.bf16.msra.mxu0 %v13854_v9 }
0x1580   :  { %v8433_v17 = vmax.f32 %v8425_v4, 0.0 }
0x1581   :  { %8465 = vrot.lane.b32.xlu0 %v8434_v53, %s15048_s27 }
0x1582   :  { %8463 = vrot.lane.b32.xlu1 %v8433_v17, %s15048_s27 }
0x1586   :  { %8821 = vrot.lane.b32.xlu1 %v11464_v48, %s15044_s15 }
0x15e6   :  { %v8454_v23 = vpop.permute.xlu0 %8453 }
0x15e7   :  { %8477 = vst.msk [vmem:[#allocation2 + $0x8] sm:$0xff] %vm8475_vm15, %v8454_v23  ;;  %v8452_v13 = vpop.permute.xlu1 %8451 }
0x15e8   :  { %8476 = vst.msk [vmem:[#allocation2] sm:$0xff] %vm8475_vm15, %v8452_v13 }
0x15eb   :  { %v8458_v40 = vpop.permute.xlu0 %8457 }
0x15ec   :  { %8479 = vst.msk [vmem:[#allocation2 + $0x18] sm:$0xff] %vm8475_vm15, %v8458_v40  ;;  %v8456_v1 = vpop.permute.xlu1 %8455 }
0x15ed   :  { %8478 = vst.msk [vmem:[#allocation2 + $0x10] sm:$0xff] %vm8475_vm15, %v8456_v1  ;;  %v11440_v1 = vld [vmem:[%s17864_s29 + $0x48] sm:$0xff] }
0x15ee   :  { %v8485_v20 = vld [vmem:[#allocation2 + $0x8] sm:$0xff] }
0x15ef   :  { %v8462_v39 = vpop.permute.xlu0 %8461  ;;  %v8484_v7 = vld [vmem:[#allocation2] sm:$0xff]  ;;  %9159 = vst [vmem:[#allocation2 + $0x8] sm:$0xff] %v17212_v11  ;;  %v8500_v27 = vmul.f32 %v11438_v10, %v8485_v20 }
0x15f0   :  { %8481 = vst.msk [vmem:[#allocation2 + $0x28] sm:$0xff] %vm8475_vm15, %v8462_v39  ;;  %v8460_v55 = vpop.permute.xlu1 %8459  ;;  %v14488_v34 = vpack.i.bf16 %v8485_v20, %v8484_v7  ;;  %9158 = vst [vmem:[#allocation2] sm:$0xff] %v17212_v11  ;;  %v8499_v26 = vmul.f32 %v11438_v10, %v8484_v7  ;;  %v11443_v39 = vld [vmem:[%s17864_s29 + $0x60] sm:$0xff] }
0x15f1   :  { %8480 = vst.msk [vmem:[#allocation2 + $0x20] sm:$0xff] %vm8475_vm15, %v8460_v55  ;;  %v11445_v55 = vld [vmem:[%s17864_s29 + $0x70] sm:$0xff] }
0x15f2   :  { %14489 = vrot.lane.b32.xlu0 %v14488_v34, %s15051_s23  ;;  %v17219_v30 = vpack.c.bf16 %v8500_v27, %v8499_v26  ;;  %v11444_v27 = vld [vmem:[%s17864_s29 + $0x68] sm:$0xff] }
0x15f3   :  { %v8466_v62 = vpop.permute.xlu0 %8465  ;;  %v8487_v24 = vld [vmem:[#allocation2 + $0x18] sm:$0xff] }
0x15f4   :  { %8483 = vst.msk [vmem:[#allocation2 + $0x38] sm:$0xff] %vm8475_vm15, %v8466_v62  ;;  %v8464_v52 = vpop.permute.xlu1 %8463  ;;  %v8486_v14 = vld [vmem:[#allocation2 + $0x10] sm:$0xff]  ;;  %9161 = vst [vmem:[#allocation2 + $0x18] sm:$0xff] %v17212_v11  ;;  %v8502_v46 = vmul.f32 %v11438_v10, %v8487_v24  ;;  %v11446_v62 = vld [vmem:[%s17864_s29 + $0x78] sm:$0xff] }
0x15f5   :  { %8482 = vst.msk [vmem:[#allocation2 + $0x30] sm:$0xff] %vm8475_vm15, %v8464_v52  ;;  %v14493_v61 = vpack.i.bf16 %v8487_v24, %v8486_v14  ;;  %9160 = vst [vmem:[#allocation2 + $0x10] sm:$0xff] %v17212_v11  ;;  %v8501_v49 = vmul.f32 %v11438_v10, %v8486_v14 }
0x15f7   :  { %14494 = vrot.lane.b32.xlu1 %v14493_v61, %s15051_s23  ;;  %v8489_v28 = vld [vmem:[#allocation2 + $0x28] sm:$0xff]  ;;  %v17226_v32 = vpack.c.bf16 %v8502_v46, %v8501_v49 }
0x15f8   :  { %v8822_v16 = vpop.permute.xlu1 %8821  ;;  %v8488_v50 = vld [vmem:[#allocation2 + $0x20] sm:$0xff]  ;;  %9163 = vst [vmem:[#allocation2 + $0x28] sm:$0xff] %v17212_v11  ;;  %v8504_v45 = vmul.f32 %v11438_v10, %v8489_v28  ;;  %v8508_v49 = vld [vmem:[%s17864_s29 + $0x8] sm:$0xff] }
0x15f9   :  { %v14498_v33 = vpack.i.bf16 %v8489_v28, %v8488_v50  ;;  %9162 = vst [vmem:[#allocation2 + $0x20] sm:$0xff] %v17212_v11  ;;  %v8824_v58 = vmul.f32 %v8822_v16, %v8484_v7  ;;  %v8825_v22 = vmul.f32 %v8822_v16, %v8485_v20  ;;  %v8503_v15 = vmul.f32 %v11438_v10, %v8488_v50  ;;  %v11442_v20 = vld [vmem:[%s17864_s29 + $0x58] sm:$0xff] }
0x15fa   :  { %v8826_v38 = vmul.f32 %v8822_v16, %v8486_v14  ;;  %v8827_v5 = vmul.f32 %v8822_v16, %v8487_v24  ;;  %v8828_v44 = vmul.f32 %v8822_v16, %v8488_v50  ;;  %v8829_v2 = vmul.f32 %v8822_v16, %v8489_v28  ;;  %v8507_v24 = vld [vmem:[%s17864_s29] sm:$0xff]  ;;  %v8509_v28 = vld [vmem:[%s17864_s29 + $0x10] sm:$0xff] }
0x15fb   :  { %14499 = vrot.lane.b32.xlu0 %v14498_v33, %s15051_s23  ;;  %v8491_v41 = vld [vmem:[#allocation2 + $0x38] sm:$0xff]  ;;  %v17234_v57 = vpack.c.bf16 %v8504_v45, %v8503_v15  ;;  %v14508_v43 = vpack.i.bf16 %v8825_v22, %v8824_v58  ;;  %v8511_v33 = vld [vmem:[%s17864_s29 + $0x20] sm:$0xff] }
0x15fc   :  { %v8490_v19 = vld [vmem:[#allocation2 + $0x30] sm:$0xff]  ;;  %9165 = vst [vmem:[#allocation2 + $0x38] sm:$0xff] %v17212_v11  ;;  %v8506_v18 = vmul.f32 %v11438_v10, %v8491_v41  ;;  %v14513_v36 = vpack.i.bf16 %v8827_v5, %v8826_v38  ;;  %v14518_v35 = vpack.i.bf16 %v8829_v2, %v8828_v44  ;;  %v8831_v21 = vmul.f32 %v8822_v16, %v8491_v41  ;;  %v8510_v45 = vld [vmem:[%s17864_s29 + $0x18] sm:$0xff]  ;;  %v11465_v44 = vld [vmem:[%s17864_s29 + $0x80] sm:$0xff] }
0x15fd   :  { %v14503_v3 = vpack.i.bf16 %v8491_v41, %v8490_v19  ;;  %9164 = vst [vmem:[#allocation2 + $0x30] sm:$0xff] %v17212_v11  ;;  %v8505_v6 = vmul.f32 %v11438_v10, %v8490_v19  ;;  %v8830_v31 = vmul.f32 %v8822_v16, %v8490_v19  ;;  %v11441_v10 = vld [vmem:[%s17864_s29 + $0x50] sm:$0xff]  ;;  %v8512_v41 = vld [vmem:[%s17864_s29 + $0x28] sm:$0xff]  ;;  %v8514_v5 = vld [vmem:[%s17864_s29 + $0x38] sm:$0xff] }
0x15fe   :  { %v8513_v38 = vld [vmem:[%s17864_s29 + $0x30] sm:$0xff]  ;;  %v11466_v2 = vld [vmem:[%s17864_s29 + $0x88] sm:$0xff] }
0x15ff   :  { %14504 = vrot.lane.b32.xlu1 %v14503_v3, %s15051_s23  ;;  %14509 = vrot.lane.b32.xlu0 %v14508_v43, %s15050_s22  ;;  %v17239_v8 = vpack.c.bf16 %v8506_v18, %v8505_v6  ;;  %v14523_v51 = vpack.i.bf16 %v8831_v21, %v8830_v31  ;;  %v11468_v3 = vld [vmem:[%s17864_s29 + $0x98] sm:$0xff]  ;;  %v11469_v43 = vld [vmem:[%s17864_s29 + $0xa0] sm:$0xff] }
0x1600   :  { %v11470_v6 = vld [vmem:[%s17864_s29 + $0xa8] sm:$0xff]  ;;  %v11471_v18 = vld [vmem:[%s17864_s29 + $0xb0] sm:$0xff] }
0x1603   :  { %14514 = vrot.lane.b32.xlu1 %v14513_v36, %s15050_s22  ;;  %14519 = vrot.lane.b32.xlu0 %v14518_v35, %s15050_s22 }
0x1607   :  { %14524 = vrot.lane.b32.xlu1 %v14523_v51, %s15050_s22 }
0x1664   :  { %v14490_v29 = vpop.permute.xlu0 %14489 }
0x1665   :  { %v14492_v37 = vunpack.i.h.bf16 %v14490_v29  ;;  %v14491_v63 = vunpack.i.l.bf16 %v14490_v29 }
0x1667   :  { %v13806_v42 = vpack.c.bf16 %v14492_v37, %v14491_v63  ;;  %v17866_v37 = vld [vmem:[#allocation20_spill] sm:$0xff] }
0x1669   :  { %v14495_v54 = vpop.permute.xlu1 %14494  ;;  %13807 = vmatprep.subr.bf16.mxu1 %v13806_v42 }
0x166a   :  { %v14497_v60 = vunpack.i.h.bf16 %v14495_v54  ;;  %v14496_v0 = vunpack.i.l.bf16 %v14495_v54  ;;  %13809 = vmatpush3.bf16.msra.mxu1 %v13806_v42  ;;  %v17867_v54 = vld [vmem:[#allocation21_spill] sm:$0xff] }
0x166c   :  { %v13810_v59 = vpack.c.bf16 %v14497_v60, %v14496_v0 }
0x166d   :  { %v14500_v47 = vpop.permute.xlu0 %14499 }
0x166e   :  { %v14502_v4 = vunpack.i.h.bf16 %v14500_v47  ;;  %v14501_v53 = vunpack.i.l.bf16 %v14500_v47  ;;  %13811 = vmatprep.subr.bf16.mxu1 %v13810_v59 }
0x166f   :  { %13813 = vmatpush3.bf16.msra.mxu1 %v13810_v59 }
0x1670   :  { %v13814_v17 = vpack.c.bf16 %v14502_v4, %v14501_v53  ;;  %v17868_v53 = vld [vmem:[#allocation22_spill] sm:$0xff] }
0x1671   :  { %v14505_v48 = vpop.permute.xlu1 %14504  ;;  %v14510_v7 = vpop.permute.xlu0 %14509 }
0x1672   :  { %v14507_v23 = vunpack.i.h.bf16 %v14505_v48  ;;  %v14506_v13 = vunpack.i.l.bf16 %v14505_v48  ;;  %13815 = vmatprep.subr.bf16.mxu1 %v13814_v17  ;;  %v14512_v34 = vunpack.i.h.bf16 %v14510_v7  ;;  %v14511_v26 = vunpack.i.l.bf16 %v14510_v7  ;;  %v17870_v7 = vld [vmem:[#allocation24_spill] sm:$0xff] }
0x1673   :  { %13817 = vmatpush3.bf16.msra.mxu1 %v13814_v17 }
0x1674   :  { %v13818_v40 = vpack.c.bf16 %v14507_v23, %v14506_v13  ;;  %v13838_v52 = vpack.c.bf16 %v14512_v34, %v14511_v26  ;;  %v17869_v13 = vld [vmem:[#allocation23_spill] sm:$0xff]  ;;  %v17871_v26 = vld [vmem:[#allocation25_spill] sm:$0xff] }
0x1675   :  { %v14520_v61 = vpop.permute.xlu0 %14519 }
0x1676   :  { %13819 = vmatprep.subr.bf16.mxu1 %v13818_v40  ;;  %v14521_v16 = vunpack.i.l.bf16 %v14520_v61 }
0x1677   :  { %13821 = vmatpush3.bf16.msra.mxu1 %v13818_v40 }
0x1678   :  { %13823 = vmatprep.subr.bf16.mxu1 %v17219_v30 }
0x167a   :  { %13219 = vmatmul.mubr.msk.f32.vlgmr.msra.gmra.mrb[124].mxu1 %vm2548_vm8, %v11440_v1 }
0x167b   :  { %13825 = vmatpush3.bf16.msra.mxu1 %v17219_v30  ;;  %13221 = vmatprep.mubr.msk.f32.mxu1 %vm2548_vm8, %v11441_v10  ;;  %v14515_v30 = vpop.permute.xlu1 %14514 }
0x167c   :  { %13827 = vmatprep.subr.bf16.mxu1 %v17226_v32  ;;  %v14517_v14 = vunpack.i.h.bf16 %v14515_v30  ;;  %v14516_v46 = vunpack.i.l.bf16 %v14515_v30 }
0x167e   :  { %13222 = vmatmul.mubr.msk.f32.gmra.mrb[126].mxu1 %vm2548_vm8, %v11442_v20  ;;  %v13842_v50 = vpack.c.bf16 %v14517_v14, %v14516_v46  ;;  %v17873_v46 = vld [vmem:[#allocation26_spill] sm:$0xff] }
0x167f   :  { %13829 = vmatpush3.bf16.msra.mxu1 %v17226_v32  ;;  %13224 = vmatprep.mubr.msk.f32.mxu1 %vm2548_vm8, %v11443_v39  ;;  %v14522_v32 = vunpack.i.h.bf16 %v14520_v61  ;;  %v14525_v25 = vpop.permute.xlu1 %14524 }
0x1680   :  { %13831 = vmatprep.subr.bf16.mxu1 %v17234_v57  ;;  %v14527_v22 = vunpack.i.h.bf16 %v14525_v25  ;;  %v14526_v15 = vunpack.i.l.bf16 %v14525_v25 }
0x1681   :  { %v13846_v58 = vpack.c.bf16 %v14522_v32, %v14521_v16  ;;  %v17874_v32 = vld [vmem:[#allocation27_spill] sm:$0xff] }
0x1682   :  { %13225 = vmatmul.mubr.msk.f32.gmra.mrb[128].mxu1 %vm2548_vm8, %v11444_v27  ;;  %v13850_v19 = vpack.c.bf16 %v14527_v22, %v14526_v15 }
0x1683   :  { %13833 = vmatpush3.bf16.msra.mxu1 %v17234_v57  ;;  %13227 = vmatprep.mubr.msk.f32.mxu1 %vm2548_vm8, %v11445_v55  ;;  %v11467_v57 = vld [vmem:[%s17864_s29 + $0x90] sm:$0xff] }
0x1684   :  { %13835 = vmatprep.subr.bf16.mxu1 %v17239_v8 }
0x1686   :  { %13228 = vmatmul.mubr.msk.f32.gmra.mrb[130].mxu1 %vm2548_vm8, %v11446_v62 }
0x1687   :  { %13837 = vmatpush3.bf16.msra.mxu1 %v17239_v8  ;;  %13246 = vmatprep.mubr.msk.f32.mxu1 %vm2548_vm8, %v8507_v24  ;;  %v11472_v8 = vld [vmem:[%s17864_s29 + $0xb8] sm:$0xff] }
0x1688   :  { %13839 = vmatprep.subr.bf16.mxu1 %v13838_v52 }
0x168a   :  { %13247 = vmatmul.mubr.msk.f32.vlgmr.msra.gmra.mrb[124].mxu1 %vm2548_vm8, %v8508_v49 }
0x168b   :  { %13841 = vmatpush3.bf16.msra.mxu1 %v13838_v52  ;;  %13249 = vmatprep.mubr.msk.f32.mxu1 %vm2548_vm8, %v8509_v28 }
0x168c   :  { %13843 = vmatprep.subr.bf16.mxu1 %v13842_v50 }
0x168e   :  { %13250 = vmatmul.mubr.msk.f32.gmra.mrb[126].mxu1 %vm2548_vm8, %v8510_v45 }
0x168f   :  { %13845 = vmatpush3.bf16.msra.mxu1 %v13842_v50  ;;  %13252 = vmatprep.mubr.msk.f32.mxu1 %vm2548_vm8, %v8511_v33 }
0x1690   :  { %13847 = vmatprep.subr.bf16.mxu1 %v13846_v58 }
0x1692   :  { %13253 = vmatmul.mubr.msk.f32.gmra.mrb[128].mxu1 %vm2548_vm8, %v8512_v41  ;;  %v15071_v41 = vmov 0.0|0.0  }
0x1693   :  { %13849 = vmatpush3.bf16.msra.mxu1 %v13846_v58  ;;  %13255 = vmatprep.mubr.msk.f32.mxu1 %vm2548_vm8, %v8513_v38  ;;  %v11494_v58 = vld [vmem:[%s17872_s8 + $0x2] ss:$0 sm:$0xff] }
0x1694   :  { %13851 = vmatprep.subr.bf16.mxu1 %v13850_v19  ;;  %13858 = vmatprep.subr.bf16.mxu0 %v15071_v41 }
0x1696   :  { %13256 = vmatmul.mubr.msk.f32.gmra.mrb[130].mxu1 %vm2548_vm8, %v8514_v5  ;;  %v11489_v5 = vld [vmem:[%s17872_s8] ss:$0 sm:$0xff] }
0x1697   :  { %13853 = vmatpush3.bf16.msra.mxu1 %v13850_v19  ;;  %13274 = vmatprep.mubr.msk.f32.mxu1 %vm2548_vm8, %v11465_v44 }
0x1698   :  { %13894 = vmatprep.subr.bf16.mxu1 %v15071_v41 }
0x169a   :  { %13275 = vmatmul.mubr.msk.f32.vlgmr.msra.gmra.mrb[124].mxu1 %vm2548_vm8, %v11466_v2 }
0x169b   :  { %13277 = vmatprep.mubr.msk.f32.mxu1 %vm2548_vm8, %v11467_v57 }
0x169e   :  { %13278 = vmatmul.mubr.msk.f32.gmra.mrb[126].mxu1 %vm2548_vm8, %v11468_v3 }
0x169f   :  { %13280 = vmatprep.mubr.msk.f32.mxu1 %vm2548_vm8, %v11469_v43 }
0x16a2   :  { %13281 = vmatmul.mubr.msk.f32.gmra.mrb[128].mxu1 %vm2548_vm8, %v11470_v6 }
0x16a3   :  { %13283 = vmatprep.mubr.msk.f32.mxu1 %vm2548_vm8, %v11471_v18 }
0x16a6   :  { %13284 = vmatmul.mubr.msk.f32.gmra.mrb[130].mxu1 %vm2548_vm8, %v11472_v8 }
0x16a7   :  { %13367 = vmatprep.mubr.msk.f32.mxu1 %vm15072_vm4, %v17212_v11 }
0x176d   :  { %v13276_v36 = vpop.f32.mrb[124].mxu1 }
0x176e   :  { %v8963_v35 = vpop.f32.mrb[125].mxu1 }
0x176f   :  { %13290 = vmatprep.mubr.msk.f32.mxu0 %vm9012_vm0, %v8963_v35 }
0x1770   :  { %13291 = vmatmul.mubr.msk.f32.vlgmr.msra.gmra.mrb[68].mxu0 %vm9012_vm0, %v13276_v36 }
0x1771   :  { %v13279_v31 = vpop.f32.mrb[126].mxu1 }
0x1772   :  { %v8973_v21 = vpop.f32.mrb[127].mxu1 }
0x1773   :  { %13293 = vmatprep.mubr.msk.f32.mxu0 %vm9012_vm0, %v8973_v21 }
0x1774   :  { %13294 = vmatmul.mubr.msk.f32.gmra.mrb[70].mxu0 %vm9012_vm0, %v13279_v31 }
0x1775   :  { %v13282_v51 = vpop.f32.mrb[128].mxu1 }
0x1776   :  { %v8983_v12 = vpop.f32.mrb[129].mxu1 }
0x1777   :  { %13296 = vmatprep.mubr.msk.f32.mxu0 %vm9012_vm0, %v8983_v12 }
0x1778   :  { %13297 = vmatmul.mubr.msk.f32.gmra.mrb[72].mxu0 %vm9012_vm0, %v13282_v51 }
0x1779   :  { %v13285_v56 = vpop.f32.mrb[130].mxu1 }
0x177a   :  { %v8993_v9 = vpop.f32.mrb[131].mxu1 }
0x177b   :  { %13299 = vmatprep.mubr.msk.f32.mxu0 %vm9012_vm0, %v8993_v9 }
0x177c   :  { %13300 = vmatmul.mubr.msk.f32.gmra.mrb[74].mxu0 %vm9012_vm0, %v13285_v56 }
0x177d   :  { %13318 = vmatprep.mubr.msk.f32.mxu0 %vm15072_vm4, %v17212_v11 }
0x1843   :  { %v13292_v29 = vpop.f32.mrb[68].mxu0 }
0x1844   :  { %v9109_v63 = vadd.f32 %v13292_v29, %v17866_v37  ;;  %v9103_v42 = vpop.f32.mrb[69].mxu0 }
0x1845   :  { %v9104_v60 = vadd.f32 %v9103_v42, %v17867_v54 }
0x1846   :  { %v9143_v0 = vmul.f32 0.999995, %v9109_v63 }
0x1847   :  { %v9142_v59 = vmul.f32 0.999995, %v9104_v60  ;;  %v13295_v47 = vpop.f32.mrb[70].mxu0 }
0x1848   :  { %v9151_v4 = vmax.f32 %v9143_v0, 0.0  ;;  %v9119_v17 = vadd.f32 %v13295_v47, %v17868_v53  ;;  %v9113_v48 = vpop.f32.mrb[71].mxu0 }
0x1849   :  { %v9150_v23 = vmax.f32 %v9142_v59, 0.0  ;;  %v9114_v40 = vadd.f32 %v9113_v48, %v17869_v13 }
0x184a   :  { %v9145_v1 = vmul.f32 0.999995, %v9119_v17  ;;  %9176 = vrot.lane.b32.xlu1 %v9151_v4, %s15048_s27 }
0x184b   :  { %v9144_v10 = vmul.f32 0.999995, %v9114_v40  ;;  %9174 = vrot.lane.b32.xlu0 %v9150_v23, %s15048_s27  ;;  %v13298_v20 = vpop.f32.mrb[72].mxu0 }
0x184c   :  { %v9153_v39 = vmax.f32 %v9145_v1, 0.0  ;;  %v9129_v27 = vadd.f32 %v13298_v20, %v17870_v7  ;;  %v9123_v55 = vpop.f32.mrb[73].mxu0 }
0x184d   :  { %v9152_v34 = vmax.f32 %v9144_v10, 0.0  ;;  %v9124_v30 = vadd.f32 %v9123_v55, %v17871_v26 }
0x184e   :  { %v9147_v62 = vmul.f32 0.999995, %v9129_v27  ;;  %9180 = vrot.lane.b32.xlu1 %v9153_v39, %s15048_s27 }
0x184f   :  { %v9146_v24 = vmul.f32 0.999995, %v9124_v30  ;;  %9178 = vrot.lane.b32.xlu0 %v9152_v34, %s15048_s27  ;;  %v13301_v52 = vpop.f32.mrb[74].mxu0  ;;  %v17877_v30 = vld [vmem:[#allocation36_spill] sm:$0xff] }
0x1850   :  { %v9155_v14 = vmax.f32 %v9147_v62, 0.0  ;;  %v9139_v61 = vadd.f32 %v13301_v52, %v17873_v46  ;;  %v9133_v49 = vpop.f32.mrb[75].mxu0  ;;  %v17878_v62 = vld [vmem:[#allocation38_spill] sm:$0xff]  ;;  %v10544_v46 = vld [vmem:[%s17876_s19] sm:$0xff] }
0x1851   :  { %v9154_v28 = vmax.f32 %v9146_v24, 0.0  ;;  %v9134_v16 = vadd.f32 %v9133_v49, %v17874_v32  ;;  %v17879_v24 = vld [vmem:[#allocation40_spill] sm:$0xff]  ;;  %v17880_v52 = vld [vmem:[#allocation42_spill] sm:$0xff] }
0x1852   :  { %v9149_v50 = vmul.f32 0.999995, %v9139_v61  ;;  %9184 = vrot.lane.b32.xlu1 %v9155_v14, %s15048_s27  ;;  %v11505_v14 = vld [vmem:[%s17875_s14 + $0x2] ss:$0 sm:$0xff]  ;;  %v10547_v61 = vld [vmem:[%s17876_s19 + $0x18] sm:$0xff]  ;;  %v9539_v32 = vld [vmem:[%s17881_s6 + $0x10] sm:$0xff] }
0x1853   :  { %v9148_v25 = vmul.f32 0.999995, %v9134_v16  ;;  %9182 = vrot.lane.b32.xlu0 %v9154_v28, %s15048_s27  ;;  %v9537_v49 = vld [vmem:[%s17881_s6] sm:$0xff]  ;;  %v9538_v28 = vld [vmem:[%s17881_s6 + $0x8] sm:$0xff] }
0x1854   :  { %v9157_v45 = vmax.f32 %v9149_v50, 0.0  ;;  %v13895_v16 = vpack.c.bf16 %v9538_v28, %v9537_v49  ;;  %v9540_v50 = vld [vmem:[%s17881_s6 + $0x18] sm:$0xff]  ;;  %v11514_v28 = vld [vmem:[%s17883_s20 + $0x60] sm:$0xff] }
0x1855   :  { %v9156_v33 = vmax.f32 %v9148_v25, 0.0  ;;  %v13898_v25 = vpack.c.bf16 %v9540_v50, %v9539_v32  ;;  %v17885_v49 = vld [vmem:[#allocation39_spill] sm:$0xff]  ;;  %v17886_v50 = vld [vmem:[#allocation41_spill] sm:$0xff] }
0x1856   :  { %9188 = vrot.lane.b32.xlu1 %v9157_v45, %s15048_s27  ;;  %13896 = vmatpush3.bf16.msra.mxu1 %v13895_v16  ;;  %v11515_v16 = vld [vmem:[%s17883_s20 + $0x68] sm:$0xff] }
0x1857   :  { %9186 = vrot.lane.b32.xlu0 %v9156_v33, %s15048_s27  ;;  %13897 = vmatprep.subr.bf16.mxu1 %v15071_v41 }
0x185a   :  { %13899 = vmatpush3.bf16.msra.mxu1 %v13898_v25  ;;  %v11516_v25 = vld [vmem:[%s17883_s20 + $0x70] sm:$0xff] }
0x185b   :  { %9418 = vrot.lane.b32.xlu0 %v11494_v58, %s15044_s15  ;;  %13370 = vmatprep.subr.mxu1 %v17212_v11 }
0x18bc   :  { %v9177_v22 = vpop.permute.xlu1 %9176 }
0x18bd   :  { %9200 = vst.msk [vmem:[#allocation2 + $0x8] sm:$0xff] %vm9198_vm3, %v9177_v22  ;;  %v9175_v15 = vpop.permute.xlu0 %9174 }
0x18be   :  { %9199 = vst.msk [vmem:[#allocation2] sm:$0xff] %vm9198_vm3, %v9175_v15 }
0x18c0   :  { %v9181_v38 = vpop.permute.xlu1 %9180 }
0x18c1   :  { %9202 = vst.msk [vmem:[#allocation2 + $0x18] sm:$0xff] %vm9198_vm3, %v9181_v38  ;;  %v9179_v19 = vpop.permute.xlu0 %9178 }
0x18c2   :  { %9201 = vst.msk [vmem:[#allocation2 + $0x10] sm:$0xff] %vm9198_vm3, %v9179_v19 }
0x18c4   :  { %v9208_v44 = vld [vmem:[#allocation2 + $0x8] sm:$0xff]  ;;  %v9185_v2 = vpop.permute.xlu1 %9184 }
0x18c5   :  { %9618 = vst [vmem:[#allocation2 + $0x8] sm:$0xff] %v17212_v11  ;;  %9204 = vst.msk [vmem:[#allocation2 + $0x28] sm:$0xff] %vm9198_vm3, %v9185_v2  ;;  %v9183_v57 = vpop.permute.xlu0 %9182  ;;  %v9207_v3 = vld [vmem:[#allocation2] sm:$0xff]  ;;  %v17335_v43 = vmul.f32 %v11489_v5, %v9208_v44 }
0x18c6   :  { %9203 = vst.msk [vmem:[#allocation2 + $0x20] sm:$0xff] %vm9198_vm3, %v9183_v57  ;;  %v14528_v6 = vpack.i.bf16 %v9208_v44, %v9207_v3  ;;  %9617 = vst [vmem:[#allocation2] sm:$0xff] %v17212_v11  ;;  %v17339_v18 = vmul.f32 %v11489_v5, %v9207_v3 }
0x18c8   :  { %v9210_v8 = vld [vmem:[#allocation2 + $0x18] sm:$0xff]  ;;  %14529 = vrot.lane.b32.xlu1 %v14528_v6, %s15051_s23  ;;  %v9189_v36 = vpop.permute.xlu1 %9188  ;;  %v13871_v35 = vpack.c.bf16 %v17335_v43, %v17339_v18 }
0x18c9   :  { %9620 = vst [vmem:[#allocation2 + $0x18] sm:$0xff] %v17212_v11  ;;  %v9209_v31 = vld [vmem:[#allocation2 + $0x10] sm:$0xff]  ;;  %9206 = vst.msk [vmem:[#allocation2 + $0x38] sm:$0xff] %vm9198_vm3, %v9189_v36  ;;  %v9187_v21 = vpop.permute.xlu0 %9186  ;;  %v17346_v51 = vmul.f32 %v11489_v5, %v9210_v8 }
0x18ca   :  { %9619 = vst [vmem:[#allocation2 + $0x10] sm:$0xff] %v17212_v11  ;;  %9205 = vst.msk [vmem:[#allocation2 + $0x30] sm:$0xff] %vm9198_vm3, %v9187_v21  ;;  %v14533_v12 = vpack.i.bf16 %v9210_v8, %v9209_v31  ;;  %v17350_v56 = vmul.f32 %v11489_v5, %v9209_v31  ;;  %v11490_v21 = vld [vmem:[%s17882_s12 + $0x4] sm:$0xf] }
0x18cc   :  { %v9212_v9 = vld [vmem:[#allocation2 + $0x28] sm:$0xff]  ;;  %14534 = vrot.lane.b32.xlu0 %v14533_v12, %s15051_s23  ;;  %v13874_v29 = vpack.c.bf16 %v17346_v51, %v17350_v56 }
0x18cd   :  { %9622 = vst [vmem:[#allocation2 + $0x28] sm:$0xff] %v17212_v11  ;;  %v9211_v37 = vld [vmem:[#allocation2 + $0x20] sm:$0xff]  ;;  %v9419_v63 = vpop.permute.xlu0 %9418  ;;  %v17356_v42 = vmul.f32 %v11489_v5, %v9212_v9 }
0x18ce   :  { %9621 = vst [vmem:[#allocation2 + $0x20] sm:$0xff] %v17212_v11  ;;  %v14538_v54 = vpack.i.bf16 %v9212_v9, %v9211_v37  ;;  %v9421_v60 = vmul.f32 %v9419_v63, %v9207_v3  ;;  %v9422_v0 = vmul.f32 %v9419_v63, %v9208_v44  ;;  %v17361_v59 = vmul.f32 %v11489_v5, %v9211_v37 }
0x18cf   :  { %v9423_v4 = vmul.f32 %v9419_v63, %v9209_v31  ;;  %v9424_v17 = vmul.f32 %v9419_v63, %v9210_v8  ;;  %v9425_v48 = vmul.f32 %v9419_v63, %v9211_v37  ;;  %v9426_v23 = vmul.f32 %v9419_v63, %v9212_v9  ;;  %v9230_v9 = vld [vmem:[%s17882_s12] sm:$0xf] }
0x18d0   :  { %v9214_v47 = vld [vmem:[#allocation2 + $0x38] sm:$0xff]  ;;  %14539 = vrot.lane.b32.xlu1 %v14538_v54, %s15051_s23  ;;  %v13877_v13 = vpack.c.bf16 %v17356_v42, %v17361_v59  ;;  %v14548_v1 = vpack.i.bf16 %v9422_v0, %v9421_v60 }
0x18d1   :  { %9624 = vst [vmem:[#allocation2 + $0x38] sm:$0xff] %v17212_v11  ;;  %v9213_v53 = vld [vmem:[#allocation2 + $0x30] sm:$0xff]  ;;  %v17372_v20 = vmul.f32 %v11489_v5, %v9214_v47  ;;  %v14553_v7 = vpack.i.bf16 %v9424_v17, %v9423_v4  ;;  %v14558_v27 = vpack.i.bf16 %v9426_v23, %v9425_v48  ;;  %v9428_v34 = vmul.f32 %v9419_v63, %v9214_v47 }
0x18d2   :  { %9623 = vst [vmem:[#allocation2 + $0x30] sm:$0xff] %v17212_v11  ;;  %v14543_v40 = vpack.i.bf16 %v9214_v47, %v9213_v53  ;;  %v17370_v10 = vmul.f32 %v11489_v5, %v9213_v53  ;;  %v9427_v55 = vmul.f32 %v9419_v63, %v9213_v53 }
0x18d4   :  { %14544 = vrot.lane.b32.xlu0 %v14543_v40, %s15051_s23  ;;  %14549 = vrot.lane.b32.xlu1 %v14548_v1, %s15050_s22  ;;  %v13880_v39 = vpack.c.bf16 %v17372_v20, %v17370_v10  ;;  %v14563_v26 = vpack.i.bf16 %v9428_v34, %v9427_v55  ;;  %v11495_v20 = vld [vmem:[%s17882_s12 + $0x8] sm:$0xf] }
0x18d8   :  { %14554 = vrot.lane.b32.xlu0 %v14553_v7, %s15050_s22  ;;  %14559 = vrot.lane.b32.xlu1 %v14558_v27, %s15050_s22 }
0x18dc   :  { %14564 = vrot.lane.b32.xlu0 %v14563_v26, %s15050_s22  ;;  %14569 = vrot.lane.b32.xlu1 %v17877_v30, %s15050_s22 }
0x18e0   :  { %14574 = vrot.lane.b32.xlu0 %v17878_v62, %s15050_s22  ;;  %14579 = vrot.lane.b32.xlu1 %v17879_v24, %s15050_s22 }
0x18e4   :  { %14584 = vrot.lane.b32.xlu0 %v17880_v52, %s15050_s22  ;;  %14589 = vrot.lane.b32.xlu1 %v17877_v30, %s15057_s7 }
0x18e8   :  { %14594 = vrot.lane.b32.xlu0 %v17878_v62, %s15057_s7  ;;  %14599 = vrot.lane.b32.xlu1 %v17879_v24, %s15057_s7 }
0x18ec   :  { %14604 = vrot.lane.b32.xlu0 %v17880_v52, %s15057_s7  ;;  %14609 = vrot.lane.b32.xlu1 %v17877_v30, %s15062_s10 }
0x18f0   :  { %14614 = vrot.lane.b32.xlu0 %v17878_v62, %s15062_s10  ;;  %14619 = vrot.lane.b32.xlu1 %v17879_v24, %s15062_s10 }
0x18f4   :  { %14624 = vrot.lane.b32.xlu0 %v17880_v52, %s15062_s10  ;;  %v11511_v52 = vld [vmem:[%s17883_s20 + $0x48] sm:$0xff] }
0x18f8   :  { %9804 = vrot.lane.b32.xlu0 %v11505_v14, %s15044_s15  ;;  %v17884_v14 = vld [vmem:[#allocation37_spill] sm:$0xff]  ;;  %s15073_s15 = smov [#allocation4]  }
0x18f9   :  { %s10702_s16 = sshll.u32 %s15073_s15, 4  ;;  %s10703_s16 = int_to_ptr.vmem [resolvable:$true] %s10702_s16 }
0x18fa   :  { %s14994_s0 = scalar_lea.vmem %s10703_s16, 32  ;;  %p14995_p1 = scmp.lt.s32.totalorder %s10703_s16, %s10703_s16 }
0x18fc   :  { %10554 = vperm.xlu0 %14486, %v10544_v46   ;;  %v11512_v46 = vld [vmem:[%s17883_s20 + $0x50] sm:$0xff] }
0x1900   :  { %10569 = vperm.xlu0 %14486, %v10547_v61   ;;  %v11513_v61 = vld [vmem:[%s17883_s20 + $0x58] sm:$0xff] }
0x193a   :  { %v14530_v45 = vpop.permute.xlu1 %14529 }
0x193b   :  { %v14532_v33 = vunpack.i.h.bf16 %v14530_v45  ;;  %v14531_v58 = vunpack.i.l.bf16 %v14530_v45 }
0x193d   :  { %v13859_v22 = vpack.c.bf16 %v14532_v33, %v14531_v58 }
0x193e   :  { %v14535_v15 = vpop.permute.xlu0 %14534 }
0x193f   :  { %v14537_v38 = vunpack.i.h.bf16 %v14535_v15  ;;  %v14536_v19 = vunpack.i.l.bf16 %v14535_v15  ;;  %13860 = vmatpush3.bf16.msra.mxu0 %v13859_v22  ;;  %v11517_v22 = vld [vmem:[%s17883_s20 + $0x78] sm:$0xff] }
0x1940   :  { %13861 = vmatprep.subr.bf16.mxu0 %v15071_v41  ;;  %v17887_v15 = vld [vmem:[#allocation43_spill] sm:$0xff] }
0x1941   :  { %v13862_v5 = vpack.c.bf16 %v14537_v38, %v14536_v19  ;;  %v9897_v38 = vld [vmem:[%s17883_s20] sm:$0xff] }
0x1942   :  { %v14540_v44 = vpop.permute.xlu1 %14539 }
0x1943   :  { %v14542_v2 = vunpack.i.h.bf16 %v14540_v44  ;;  %v14541_v57 = vunpack.i.l.bf16 %v14540_v44  ;;  %13863 = vmatpush3.bf16.msra.mxu0 %v13862_v5 }
0x1944   :  { %13864 = vmatprep.subr.bf16.mxu0 %v15071_v41 }
0x1945   :  { %v13865_v3 = vpack.c.bf16 %v14542_v2, %v14541_v57  ;;  %v9898_v57 = vld [vmem:[%s17883_s20 + $0x8] sm:$0xff] }
0x1946   :  { %v14545_v6 = vpop.permute.xlu0 %14544  ;;  %v14550_v12 = vpop.permute.xlu1 %14549 }
0x1947   :  { %v14547_v8 = vunpack.i.h.bf16 %v14545_v6  ;;  %v14546_v36 = vunpack.i.l.bf16 %v14545_v6  ;;  %13866 = vmatpush3.bf16.msra.mxu0 %v13865_v3  ;;  %v14552_v43 = vunpack.i.h.bf16 %v14550_v12  ;;  %v14551_v18 = vunpack.i.l.bf16 %v14550_v12  ;;  %v9899_v3 = vld [vmem:[%s17883_s20 + $0x10] sm:$0xff]  ;;  %v9901_v12 = vld [vmem:[%s17883_s20 + $0x20] sm:$0xff] }
0x1948   :  { %13867 = vmatprep.subr.bf16.mxu0 %v15071_v41 }
0x1949   :  { %v13868_v31 = vpack.c.bf16 %v14547_v8, %v14546_v36  ;;  %v13883_v51 = vpack.c.bf16 %v14552_v43, %v14551_v18 }
0x194a   :  { %v14560_v56 = vpop.permute.xlu1 %14559 }
0x194b   :  { %13869 = vmatpush3.bf16.msra.mxu0 %v13868_v31  ;;  %v14562_v63 = vunpack.i.h.bf16 %v14560_v56  ;;  %v14561_v42 = vunpack.i.l.bf16 %v14560_v56  ;;  %v9903_v56 = vld [vmem:[%s17883_s20 + $0x30] sm:$0xff] }
0x194c   :  { %13870 = vmatprep.subr.bf16.mxu0 %v15071_v41 }
0x194d   :  { %v13889_v59 = vpack.c.bf16 %v14562_v63, %v14561_v42 }
0x194e   :  { %13319 = vmatmul.mubr.msk.f32.vlgmr.msra.gmra.mrb[76].mxu0 %vm2548_vm8, %v11490_v21  ;;  %v14570_v0 = vpop.permute.xlu1 %14569  ;;  %v9900_v21 = vld [vmem:[%s17883_s20 + $0x18] sm:$0xff] }
0x194f   :  { %13872 = vmatpush3.bf16.msra.mxu0 %v13871_v35  ;;  %13337 = vmatprep.mubr.msk.f32.mxu0 %vm15072_vm4, %v17212_v11  ;;  %v14555_v35 = vpop.permute.xlu0 %14554  ;;  %v14572_v53 = vunpack.i.h.bf16 %v14570_v0  ;;  %v14571_v17 = vunpack.i.l.bf16 %v14570_v0 }
0x1950   :  { %13873 = vmatprep.subr.bf16.mxu0 %v15071_v41  ;;  %v14556_v37 = vunpack.i.l.bf16 %v14555_v35 }
0x1952   :  { %v14580_v10 = vpop.permute.xlu1 %14579 }
0x1953   :  { %13875 = vmatpush3.bf16.msra.mxu0 %v13874_v29  ;;  %v14557_v29 = vunpack.i.h.bf16 %v14555_v35  ;;  %v14565_v60 = vpop.permute.xlu0 %14564  ;;  %v14582_v7 = vunpack.i.h.bf16 %v14580_v10  ;;  %v14581_v27 = vunpack.i.l.bf16 %v14580_v10  ;;  %v11538_v10 = vld [vmem:[%s17883_s20 + $0xa0] sm:$0xff] }
0x1954   :  { %13876 = vmatprep.subr.bf16.mxu0 %v15071_v41  ;;  %v14567_v47 = vunpack.i.h.bf16 %v14565_v60  ;;  %v14566_v4 = vunpack.i.l.bf16 %v14565_v60  ;;  %v11534_v60 = vld [vmem:[%s17883_s20 + $0x80] sm:$0xff] }
0x1955   :  { %v13886_v54 = vpack.c.bf16 %v14557_v29, %v14556_v37  ;;  %v13908_v26 = vpack.c.bf16 %v14582_v7, %v14581_v27  ;;  %v11539_v27 = vld [vmem:[%s17883_s20 + $0xa8] sm:$0xff] }
0x1956   :  { %v13892_v23 = vpack.c.bf16 %v14567_v47, %v14566_v4  ;;  %v14590_v32 = vpop.permute.xlu1 %14589 }
0x1957   :  { %13878 = vmatpush3.bf16.msra.mxu0 %v13877_v13  ;;  %v14575_v48 = vpop.permute.xlu0 %14574  ;;  %v13900_v13 = vpack.c.bf16 %v14572_v53, %v14571_v17  ;;  %v14592_v45 = vunpack.i.h.bf16 %v14590_v32  ;;  %v14591_v33 = vunpack.i.l.bf16 %v14590_v32  ;;  %v11535_v53 = vld [vmem:[%s17883_s20 + $0x88] sm:$0xff]  ;;  %v11536_v17 = vld [vmem:[%s17883_s20 + $0x90] sm:$0xff]  ;;  %v11554_v32 = vld [vmem:[%s17883_s20 + $0xe0] sm:$0xff] }
0x1958   :  { %13879 = vmatprep.subr.bf16.mxu0 %v15071_v41  ;;  %v14577_v40 = vunpack.i.h.bf16 %v14575_v48  ;;  %v14576_v1 = vunpack.i.l.bf16 %v14575_v48 }
0x1959   :  { %v13932_v19 = vpack.c.bf16 %v14592_v45, %v14591_v33  ;;  %v14989_v33 = vld [vmem:[%s15082_s5] sm:$0xf]  ;;  %s17888_s5 = sld [smem:[#allocation16_spill]] }
0x195a   :  { %v13904_v55 = vpack.c.bf16 %v14577_v40, %v14576_v1  ;;  %v14600_v2 = vpop.permute.xlu1 %14599  ;;  %v11537_v1 = vld [vmem:[%s17883_s20 + $0x98] sm:$0xff] }
0x195b   :  { %13881 = vmatpush3.bf16.msra.mxu0 %v13880_v39  ;;  %v11510_v39 = vld [vmem:[%s17883_s20 + $0x40] sm:$0xff]  ;;  %v14585_v34 = vpop.permute.xlu0 %14584  ;;  %v14602_v6 = vunpack.i.h.bf16 %v14600_v2  ;;  %v14601_v8 = vunpack.i.l.bf16 %v14600_v2 }
0x195c   :  { %13882 = vmatprep.subr.bf16.mxu0 %v15071_v41  ;;  %v14587_v30 = vunpack.i.h.bf16 %v14585_v34  ;;  %v14586_v62 = vunpack.i.l.bf16 %v14585_v34 }
0x195d   :  { %v13940_v43 = vpack.c.bf16 %v14602_v6, %v14601_v8 }
0x195e   :  { %13338 = vmatmul.mubr.msk.f32.vlgmr.msra.gmra.mrb[76].mxu0 %vm2548_vm8, %v9230_v9  ;;  %v13912_v24 = vpack.c.bf16 %v14587_v30, %v14586_v62  ;;  %v14610_v9 = vpop.permute.xlu1 %14609  ;;  %v11550_v30 = vld [vmem:[%s17883_s20 + $0xc0] sm:$0xff]  ;;  %v11551_v62 = vld [vmem:[%s17883_s20 + $0xc8] sm:$0xff] }
0x195f   :  { %13884 = vmatpush3.bf16.msra.mxu0 %v13883_v51  ;;  %13356 = vmatprep.mubr.msk.f32.mxu0 %vm15072_vm4, %v17212_v11  ;;  %v14595_v58 = vpop.permute.xlu0 %14594  ;;  %v9902_v51 = vld [vmem:[%s17883_s20 + $0x28] sm:$0xff]  ;;  %v14612_v29 = vunpack.i.h.bf16 %v14610_v9  ;;  %v14611_v37 = vunpack.i.l.bf16 %v14610_v9  ;;  %v10609_v9 = vld [vmem:[#allocation3] sm:$0x1] }
0x1960   :  { %13885 = vmatprep.subr.bf16.mxu0 %v15071_v41  ;;  %v14597_v5 = vunpack.i.h.bf16 %v14595_v58  ;;  %v14596_v44 = vunpack.i.l.bf16 %v14595_v58 }
0x1961   :  { %v13948_v0 = vpack.c.bf16 %v14612_v29, %v14611_v37 }
0x1962   :  { %v13936_v36 = vpack.c.bf16 %v14597_v5, %v14596_v44  ;;  %v14620_v4 = vpop.permute.xlu1 %14619 }
0x1963   :  { %13887 = vmatpush3.bf16.msra.mxu0 %v13886_v54  ;;  %v14605_v31 = vpop.permute.xlu0 %14604  ;;  %v9904_v54 = vld [vmem:[%s17883_s20 + $0x38] sm:$0xff]  ;;  %v14622_v48 = vunpack.i.h.bf16 %v14620_v4 }
0x1964   :  { %13888 = vmatprep.subr.bf16.mxu0 %v15071_v41  ;;  %v14607_v18 = vunpack.i.h.bf16 %v14605_v31  ;;  %v14606_v35 = vunpack.i.l.bf16 %v14605_v31  ;;  %v10545_v31 = vld [vmem:[%s17876_s19 + $0x8] sm:$0xff] }
0x1966   :  { %v13944_v63 = vpack.c.bf16 %v14607_v18, %v14606_v35  ;;  %v10548_v18 = vld [vmem:[%s17876_s19 + $0x20] sm:$0xff]  ;;  %v10550_v35 = vld [vmem:[%s17876_s19 + $0x30] sm:$0xff] }
0x1967   :  { %13890 = vmatpush3.bf16.msra.mxu0 %v13889_v59  ;;  %v14615_v42 = vpop.permute.xlu0 %14614 }
0x1968   :  { %13891 = vmatprep.subr.bf16.mxu0 %v15071_v41  ;;  %v14617_v59 = vunpack.i.h.bf16 %v14615_v42  ;;  %v14616_v47 = vunpack.i.l.bf16 %v14615_v42 }
0x196b   :  { %13893 = vmatpush3.bf16.msra.mxu0 %v13892_v23  ;;  %v14621_v23 = vunpack.i.l.bf16 %v14620_v4  ;;  %v14625_v40 = vpop.permute.xlu0 %14624 }
0x196c   :  { %13901 = vmatprep.subr.bf16.mxu0 %v13900_v13  ;;  %v14626_v7 = vunpack.i.l.bf16 %v14625_v40 }
0x196e   :  { %13357 = vmatmul.mubr.msk.f32.vlgmr.msra.gmra.mrb[76].mxu0 %vm2548_vm8, %v11495_v20  ;;  %v13956_v20 = vpack.c.bf16 %v14622_v48, %v14621_v23 }
0x196f   :  { %13903 = vmatpush3.bf16.msra.mxu0 %v13900_v13  ;;  %13401 = vmatprep.mubr.msk.f32.mxu0 %vm2548_vm8, %v11510_v39  ;;  %v13952_v13 = vpack.c.bf16 %v14617_v59, %v14616_v47  ;;  %v14627_v39 = vunpack.i.h.bf16 %v14625_v40  ;;  %v9805_v6 = vpop.permute.xlu0 %9804 }
0x1970   :  { %13905 = vmatprep.subr.bf16.mxu0 %v13904_v55 }
0x1971   :  { %v13960_v34 = vpack.c.bf16 %v14627_v39, %v14626_v7 }
0x1973   :  { %13907 = vmatpush3.bf16.msra.mxu0 %v13904_v55  ;;  %v11540_v55 = vld [vmem:[%s17883_s20 + $0xb0] sm:$0xff] }
0x1974   :  { %13909 = vmatprep.subr.bf16.mxu0 %v13908_v26 }
0x1977   :  { %13911 = vmatpush3.bf16.msra.mxu0 %v13908_v26  ;;  %v11541_v26 = vld [vmem:[%s17883_s20 + $0xb8] sm:$0xff] }
0x1978   :  { %13913 = vmatprep.subr.bf16.mxu0 %v13912_v24 }
0x197b   :  { %13915 = vmatpush3.bf16.msra.mxu0 %v13912_v24  ;;  %v11552_v24 = vld [vmem:[%s17883_s20 + $0xd0] sm:$0xff]  ;;  %v10555_v29 = vpop.permute.xlu0 %10554 }
0x197c   :  { %13917 = vmatprep.subr.bf16.mxu0 %v17884_v14 }
0x197e   :  { %13402 = vmatmul.mubr.msk.f32.vlgmr.msra.gmra.mrb[78].mxu0 %vm2548_vm8, %v11511_v52  ;;  %v11553_v52 = vld [vmem:[%s17883_s20 + $0xd8] sm:$0xff] }
0x197f   :  { %13919 = vmatpush3.bf16.msra.mxu0 %v17884_v14  ;;  %13404 = vmatprep.mubr.msk.f32.mxu0 %vm2548_vm8, %v11512_v46  ;;  %v10570_v42 = vpop.permute.xlu0 %10569 }
0x1980   :  { %13921 = vmatprep.subr.bf16.mxu0 %v17885_v49 }
0x1982   :  { %13405 = vmatmul.mubr.msk.f32.gmra.mrb[80].mxu0 %vm2548_vm8, %v11513_v61 }
0x1983   :  { %13923 = vmatpush3.bf16.msra.mxu0 %v17885_v49  ;;  %13407 = vmatprep.mubr.msk.f32.mxu0 %vm2548_vm8, %v11514_v28 }
0x1984   :  { %13925 = vmatprep.subr.bf16.mxu0 %v17886_v50 }
0x1986   :  { %13408 = vmatmul.mubr.msk.f32.gmra.mrb[82].mxu0 %vm2548_vm8, %v11515_v16  ;;  %v11555_v16 = vld [vmem:[%s17883_s20 + $0xe8] sm:$0xff] }
0x1987   :  { %13927 = vmatpush3.bf16.msra.mxu0 %v17886_v50  ;;  %13410 = vmatprep.mubr.msk.f32.mxu0 %vm2548_vm8, %v11516_v25  ;;  %v11556_v50 = vld [vmem:[%s17883_s20 + $0xf0] sm:$0xff]  ;;  %v11557_v25 = vld [vmem:[%s17883_s20 + $0xf8] sm:$0xff] }
0x1988   :  { %13929 = vmatprep.subr.bf16.mxu0 %v17887_v15 }
0x198a   :  { %13411 = vmatmul.mubr.msk.f32.gmra.mrb[84].mxu0 %vm2548_vm8, %v11517_v22 }
0x198b   :  { %13931 = vmatpush3.bf16.msra.mxu0 %v17887_v15  ;;  %13429 = vmatprep.mubr.msk.f32.mxu0 %vm2548_vm8, %v9897_v38 }
0x198c   :  { %13933 = vmatprep.subr.bf16.mxu0 %v13932_v19 }
0x198e   :  { %13430 = vmatmul.mubr.msk.f32.vlgmr.msra.gmra.mrb[78].mxu0 %vm2548_vm8, %v9898_v57 }
0x198f   :  { %13935 = vmatpush3.bf16.msra.mxu0 %v13932_v19  ;;  %13432 = vmatprep.mubr.msk.f32.mxu0 %vm2548_vm8, %v9899_v3 }
0x1990   :  { %13937 = vmatprep.subr.bf16.mxu0 %v13936_v36 }
0x1992   :  { %13433 = vmatmul.mubr.msk.f32.gmra.mrb[80].mxu0 %vm2548_vm8, %v9900_v21  ;;  %v10549_v21 = vld [vmem:[%s17876_s19 + $0x28] sm:$0xff] }
0x1993   :  { %13939 = vmatpush3.bf16.msra.mxu0 %v13936_v36  ;;  %13435 = vmatprep.mubr.msk.f32.mxu0 %vm2548_vm8, %v9901_v12  ;;  %v10546_v12 = vld [vmem:[%s17876_s19 + $0x10] sm:$0xff] }
0x1994   :  { %13941 = vmatprep.subr.bf16.mxu0 %v13940_v43 }
0x1996   :  { %13436 = vmatmul.mubr.msk.f32.gmra.mrb[82].mxu0 %vm2548_vm8, %v9902_v51  ;;  %v11498_v51 = vld [vmem:[%s17875_s14] ss:$0 sm:$0xff] }
0x1997   :  { %13943 = vmatpush3.bf16.msra.mxu0 %v13940_v43  ;;  %13438 = vmatprep.mubr.msk.f32.mxu0 %vm2548_vm8, %v9903_v56  ;;  %v10551_v43 = vld [vmem:[%s17876_s19 + $0x38] sm:$0xff]  ;;  %v11499_v56 = vld [vmem:[%s17888_s5 + $0x1] sm:$0x1] }
0x1998   :  { %13945 = vmatprep.subr.bf16.mxu0 %v13944_v63 }
0x199a   :  { %13439 = vmatmul.mubr.msk.f32.gmra.mrb[84].mxu0 %vm2548_vm8, %v9904_v54  ;;  %v9640_v54 = vld [vmem:[%s17888_s5] sm:$0x1] }
0x199b   :  { %13947 = vmatpush3.bf16.msra.mxu0 %v13944_v63  ;;  %13457 = vmatprep.mubr.msk.f32.mxu0 %vm2548_vm8, %v11534_v60 }
0x199c   :  { %13949 = vmatprep.subr.bf16.mxu0 %v13948_v0 }
0x199e   :  { %13458 = vmatmul.mubr.msk.f32.vlgmr.msra.gmra.mrb[78].mxu0 %vm2548_vm8, %v11535_v53 }
0x199f   :  { %13951 = vmatpush3.bf16.msra.mxu0 %v13948_v0  ;;  %13460 = vmatprep.mubr.msk.f32.mxu0 %vm2548_vm8, %v11536_v17  ;;  %v11506_v0 = vld [vmem:[%s17888_s5 + $0x2] sm:$0x1] }
0x19a0   :  { %13953 = vmatprep.subr.bf16.mxu0 %v13952_v13 }
0x19a2   :  { %13461 = vmatmul.mubr.msk.f32.gmra.mrb[80].mxu0 %vm2548_vm8, %v11537_v1 }
0x19a3   :  { %13955 = vmatpush3.bf16.msra.mxu0 %v13952_v13  ;;  %13463 = vmatprep.mubr.msk.f32.mxu0 %vm2548_vm8, %v11538_v10 }
0x19a4   :  { %13957 = vmatprep.subr.bf16.mxu0 %v13956_v20 }
0x19a6   :  { %13464 = vmatmul.mubr.msk.f32.gmra.mrb[82].mxu0 %vm2548_vm8, %v11539_v27 }
0x19a7   :  { %13959 = vmatpush3.bf16.msra.mxu0 %v13956_v20  ;;  %13466 = vmatprep.mubr.msk.f32.mxu0 %vm2548_vm8, %v11540_v55 }
0x19a8   :  { %13961 = vmatprep.subr.bf16.mxu0 %v13960_v34 }
0x19aa   :  { %13467 = vmatmul.mubr.msk.f32.gmra.mrb[84].mxu0 %vm2548_vm8, %v11541_v26 }
0x19ab   :  { %13963 = vmatpush3.bf16.msra.mxu0 %v13960_v34  ;;  %13485 = vmatprep.mubr.msk.f32.mxu0 %vm2548_vm8, %v11550_v30 }
0x19ae   :  { %13486 = vmatmul.mubr.msk.f32.vlgmr.msra.gmra.mrb[78].mxu0 %vm2548_vm8, %v11551_v62 }
0x19af   :  { %13488 = vmatprep.mubr.msk.f32.mxu0 %vm2548_vm8, %v11552_v24 }
0x19b2   :  { %13489 = vmatmul.mubr.msk.f32.gmra.mrb[80].mxu0 %vm2548_vm8, %v11553_v52 }
0x19b3   :  { %13491 = vmatprep.mubr.msk.f32.mxu0 %vm2548_vm8, %v11554_v32 }
0x19b6   :  { %13492 = vmatmul.mubr.msk.f32.gmra.mrb[82].mxu0 %vm2548_vm8, %v11555_v16 }
0x19b7   :  { %13494 = vmatprep.mubr.msk.f32.mxu0 %vm2548_vm8, %v11556_v50  ;;  %v10615_v50 = vlaneseq }
0x19ba   :  { %13495 = vmatmul.mubr.msk.f32.gmra.mrb[84].mxu0 %vm2548_vm8, %v11557_v25  ;;  %v10616_v25 = vshrl.u32 %v10615_v50, 7 }
0x1a41   :  { %v9532_v14 = vpop.f32.mrb[76].mxu0 }
0x1a42   :  { %v13358_v46 = vpop.f32.mrb[77].mxu0  ;;  %13368 = vmatmul.mubr.msk.f32.vlgmr.msra.gmra.mrb[132].mxu1 %vm9541_vm5, %v9532_v14 }
0x1a43   :  { %13372 = vmatprep.mubr.msk.f32.mxu1 %vm15072_vm4, %v17212_v11 }
0x1a81   :  { %v17514_v61 = vpop.f32.mrb[78].mxu0 }
0x1a82   :  { %v17516_v49 = vpop.f32.mrb[79].mxu0 }
0x1a83   :  { %v10592_v59 = vadd.f32 %v10555_v29, %v17516_v49  ;;  %v10608_v49 = vld [vmem:[%s15217_s30] sm:$0x1]  ;;  %s14990_s30 = scalar_lea.vmem %s10703_s16, 16 }
0x1a84   :  { %p14991_p0 = scmp.ne.s32.totalorder %s10703_s16, %s14990_s30  ;;  %p14996_p2 = scmp.lt.s32.totalorder %s14994_s0, %s14990_s30 }
0x1a85   :  { %v17518_v28 = vpop.f32.mrb[80].mxu0  ;;  %v10600_v17 = vmax.f32 %v10592_v59, 0.0 }
0x1a86   :  { %v10507_v19 = vpop.f32.mrb[81].mxu0  ;;  %v10595_v48 = vadd.f32 %v17518_v28, %v10570_v42  ;;  %p14997_p3 = por %p14996_p2, %p14995_p1 }
0x1a88   :  { %v10603_v10 = vmax.f32 %v10595_v48, 0.0  ;;  %p14998_p4 = pnand %p14997_p3, %p14991_p0 }
0x1a89   :  { %v13493_v5 = vpop.f32.mrb[82].mxu0 }
0x1a8a   :  { %v17530_v44 = vpop.f32.mrb[83].mxu0 }
0x1a8d   :  { %v17532_v2 = vpop.f32.mrb[84].mxu0 }
0x1a8e   :  { %v17534_v57 = vpop.f32.mrb[85].mxu0 }
0x1b15   :  { %v9611_v45 = vpop.f32.mrb[132].mxu1 }
0x1b16   :  { %v9612_v58 = vadd.f32 %v14989_v33, %v9611_v45  ;;  %v13369_v22 = vpop.f32.mrb[133].mxu1 }
0x1b18   :  { %v9615_v15 = vmul.f32 0.999995, %v9612_v58  ;;  %v10617_v58 = vsub.s32 0, %v10616_v25 }
0x1b1a   :  { %v9616_v38 = vmax.f32 %v9615_v15, 0.0 }
0x1b1c   :  { %9626 = vrot.lane.b32.xlu1 %v9616_v38, %s15048_s27 }
0x1b8e   :  { %v9627_v3 = vpop.permute.xlu1 %9626 }
0x1b8f   :  { %9630 = vst.msk [vmem:[#allocation2] sm:$0xf] %vm9629_vm6, %v9627_v3 }
0x1b96   :  { %v9631_v8 = vld [vmem:[#allocation2] sm:$0xf] }
0x1b97   :  { %9644 = vrot.lane.b32.xlu1 %v9631_v8, %s15051_s23  ;;  %v9807_v36 = vmul.f32 %v9805_v6, %v9631_v8  ;;  %v9639_v63 = vmul.f32 %v11498_v51, %v9631_v8 }
0x1b99   :  { %9811 = vrot.lane.b32.xlu0 %v9807_v36, %s15050_s22 }
0x1b9b   :  { %10559 = vperm.xlu1 %14487, %v10545_v31  }
0x1b9d   :  { %10579 = vperm.xlu0 %14486, %v10549_v21  }
0x1b9f   :  { %10564 = vperm.xlu1 %14487, %v10546_v12  }
0x1ba1   :  { %10589 = vperm.xlu0 %14486, %v10551_v43  }
0x1ba3   :  { %10574 = vperm.xlu1 %14487, %v10548_v18  }
0x1ba7   :  { %10584 = vperm.xlu1 %14487, %v10550_v35  }
0x1bab   :  { %10612 = vperm.xlu1 %14487, %v10609_v9  }
0x1c09   :  { %v9645_v37 = vpop.permute.xlu1 %9644 }
0x1c0a   :  { %13371 = vmatpush3.msk.msra.mxu1 %vm208_vm2, %v9645_v37 }
0x1c0b   :  { %13373 = vmatmul.mubr.msk.f32.vlgmr.msra.gmra.mrb[134].mxu1 %vm183_vm1, %v11499_v56  ;;  %13375 = vmatprep.subr.mxu1 %v17212_v11  ;;  %v9812_v60 = vpop.permute.xlu0 %9811 }
0x1c0c   :  { %13376 = vmatpush3.msk.msra.mxu1 %vm208_vm2, %v9639_v63  ;;  %13377 = vmatprep.mubr.msk.f32.mxu1 %vm15072_vm4, %v17212_v11 }
0x1c0d   :  { %13380 = vmatprep.subr.mxu1 %v17212_v11 }
0x1c13   :  { %13378 = vmatmul.mubr.msk.f32.vlgmr.msra.gmra.mrb[134].mxu1 %vm183_vm1, %v9640_v54 }
0x1c14   :  { %13381 = vmatpush3.msk.msra.mxu1 %vm208_vm2, %v9812_v60  ;;  %13382 = vmatprep.mubr.msk.f32.mxu1 %vm15072_vm4, %v17212_v11  ;;  %vm9895_vm2 = vcmask 516096  }
0x1c15   :  { %13964 = vmatprep.subr.bf16.mxu1 %v15071_v41 }
0x1c1a   :  { %v10560_v47 = vpop.permute.xlu1 %10559 }
0x1c1b   :  { %v10593_v4 = vadd.f32 %v17514_v61, %v10560_v47  ;;  %13383 = vmatmul.mubr.msk.f32.vlgmr.msra.gmra.mrb[134].mxu1 %vm183_vm1, %v11506_v0  ;;  %vm10692_vm1 = vcmask 8192  }
0x1c1c   :  { %v10580_v53 = vpop.permute.xlu0 %10579  ;;  %13513 = vmatprep.mubr.msk.f32.mxu1 %vm15072_vm4, %v17212_v11 }
0x1c1d   :  { %v10601_v23 = vmax.f32 %v10593_v4, 0.0  ;;  %v10597_v20 = vadd.f32 %v13493_v5, %v10580_v53 }
0x1c1e   :  { %v10565_v13 = vpop.permute.xlu1 %10564 }
0x1c1f   :  { %v13965_v40 = vpack.c.bf16 %v10601_v23, %v10600_v17  ;;  %v10594_v1 = vadd.f32 %v10565_v13, %v10507_v19  ;;  %v10605_v11 = vmax.f32 %v10597_v20, 0.0 }
0x1c20   :  { %v10590_v7 = vpop.permute.xlu0 %10589 }
0x1c21   :  { %v10602_v39 = vmax.f32 %v10594_v1, 0.0  ;;  %13966 = vmatpush3.bf16.msra.mxu1 %v13965_v40  ;;  %v10599_v26 = vadd.f32 %v17532_v2, %v10590_v7 }
0x1c22   :  { %v10575_v27 = vpop.permute.xlu1 %10574  ;;  %13967 = vmatprep.subr.bf16.mxu1 %v15071_v41 }
0x1c23   :  { %v13968_v55 = vpack.c.bf16 %v10603_v10, %v10602_v39  ;;  %v10596_v34 = vadd.f32 %v10575_v27, %v17530_v44  ;;  %v10607_v14 = vmax.f32 %v10599_v26, 0.0 }
0x1c25   :  { %v10604_v30 = vmax.f32 %v10596_v34, 0.0  ;;  %13969 = vmatpush3.bf16.msra.mxu1 %v13968_v55 }
0x1c26   :  { %v10585_v62 = vpop.permute.xlu1 %10584  ;;  %13970 = vmatprep.subr.bf16.mxu1 %v15071_v41 }
0x1c27   :  { %v13971_v24 = vpack.c.bf16 %v10605_v11, %v10604_v30  ;;  %v10598_v52 = vadd.f32 %v10585_v62, %v17534_v57 }
0x1c29   :  { %v10606_v46 = vmax.f32 %v10598_v52, 0.0  ;;  %13972 = vmatpush3.bf16.msra.mxu1 %v13971_v24 }
0x1c2a   :  { %13973 = vmatprep.subr.bf16.mxu1 %v15071_v41  ;;  %v10613_v22 = vpop.permute.xlu1 %10612 }
0x1c2b   :  { %v13974_v61 = vpack.c.bf16 %v10607_v14, %v10606_v46  ;;  %v10618_v15 = vrot.slane %v10613_v22, %v10617_v58 }
0x1c2d   :  { %13975 = vmatpush3.bf16.msra.mxu1 %v13974_v61 }
0x1c30   :  { %13514 = vmatmul.mubr.msk.f32.vlgmr.msra.gmra.mrb[136].mxu1 %vm2548_vm8, %v10608_v49 }
0x1cee   :  { %v9884_v28 = vpop.f32.mrb[134].mxu1 }
0x1cef   :  { %v11509_v32 = vmul.f32 -1.442695, %v9884_v28  ;;  %v13384_v16 = vpop.f32.mrb[135].mxu1 }
0x1cf1   :  { %14948 = vpow2.f32 %v11509_v32 }
0x1cfb   :  { %v14949_v45 = vpop.eup %14948 }
0x1cfc   :  { %v9892_v33 = vadd.f32 1.0, %v14949_v45 }
0x1cfe   :  { %14950 = vrcp.f32 %v9892_v33 }
0x1d03   :  { %v10688_v41 = vpop.f32.mrb[136].mxu1 }
0x1d04   :  { %v10689_v38 = vadd.f32 %v10688_v41, %v10618_v15  ;;  %v13515_v19 = vpop.f32.mrb[137].mxu1 }
0x1d06   :  { %10693 = vst.msk [vmem:[#allocation4] sm:$0x1] %vm10692_vm1, %v10689_v38 }
0x1d07   :  { %15001 = shalt.err (!%p14998_p4)
}
0x1d08   :  { %s15002_s27 = scalar_lea.hbm %s15230_s24, 16 }
0x1d09   :  { %p15003_p5 = scmp.ne.s32.totalorder %s15230_s24, %s15002_s27  ;;  %p15006_p6 = scmp.lt.u32.totalorder %s15002_s27, %s15230_s24 }
0x1d0b   :  { %p15008_p7 = pnand %p15006_p6, %p15003_p5 }
0x1d0d   :  { %15011 = shalt.err (!%p15008_p7)
}
0x1d0e   :  { %10705 = dma.vmem_to_hbm [thread:$0]  %s10703_s16, 16, %s15230_s24, [#allocation5]   ;;  %v14951_v5 = vpop.eup %14950 }
0x1d0f   :  { %9896 = vst.msk [vmem:[%s15225_s4] sm:$0x1] %vm9895_vm2, %v14951_v5 }
0x1d10   :  { %15012 = dma.done.wait [#allocation5], 16  }
0x1d11   :  { %15013 = vsyncadd [#allocation5], 4294967280 }
0x1d12   :  { %10711 = vsyncpa [#allocation5], 1 }

</bundles_post_ra>
